<compile_context>
chip_gen: v5e
topology: v5e:2x2
jax: 0.10.0
libtpu: 0.0.40
codegen_flags: <defaults>
</compile_context>

<pallas_src>
import functools

import jax
import jax.numpy as jnp
from jax.experimental import pallas as pl
from jax.experimental.pallas import tpu as pltpu

HIDDEN = 256
TRAIN_SAMPLES = 256
BN_EPS = 1e-5


def _make_infonce_kernel(B, N, with_logits):
    """Fused projector (Linear -> BN -> ReLU -> Linear) + cross-entropy."""

    def kernel(xc_ref, act_ref, neg_ref, gt_ref,
               w1x_ref, w1a_ref, gamma_ref, beta_ref, w2_ref, b2_ref,
               *out_refs):
        if with_logits:
            loss_ref, logits_ref = out_refs
        else:
            (loss_ref,) = out_refs

        # Broadcast the (small) split weights once so every contraction is a
        # plain batched einsum (the Mosaic-supported batched-dot pattern).
        w1x_b = jnp.broadcast_to(w1x_ref[...], (B,) + w1x_ref.shape)   # [B,Fx,H]
        w1a_b = jnp.broadcast_to(w1a_ref[...], (B,) + w1a_ref.shape)   # [B,A,H]

        # Linear(D -> H, bias=False) with W1 split row-wise:
        #   h = [x1|x2|target] @ W1 = xc @ W1_x + target @ W1_a
        # so x1/x2 are projected once per batch row, never replicated over N.
        hx = jnp.einsum('bqf,bfh->bqh', xc_ref[...], w1x_b,
                        preferred_element_type=jnp.float32)            # [B,1,H]
        ha_pos = jnp.einsum('bqa,bah->bqh', act_ref[...], w1a_b,
                            preferred_element_type=jnp.float32)        # [B,1,H]
        ha_neg = jnp.einsum('bna,bah->bnh', neg_ref[...], w1a_b,
                            preferred_element_type=jnp.float32)        # [B,N,H]

        # Positive action occupies slot gt[b]; every other slot is an i.i.d.
        # uniform negative (equivalent to the reference permutation).
        pos_mask = (jax.lax.broadcasted_iota(jnp.int32, (B, N, 1), 1)
                    == gt_ref[...])                                    # [B,N,1]
        h = hx + jnp.where(pos_mask, ha_pos, ha_neg)                   # [B,N,H]

        # BatchNorm1d, training mode: batch mean + biased variance over the
        # B*N rows, eps=1e-5 (matches torch forward normalization).
        # TODO(synk): BatchNorm running-stat (module state) updates are not
        # modeled; this is a pure functional forward pass.
        inv_cnt = 1.0 / float(B * N)
        mean = jnp.sum(jnp.sum(h, axis=1, keepdims=True),
                       axis=0, keepdims=True) * inv_cnt                # [1,1,H]
        d = h - mean
        var = jnp.sum(jnp.sum(d * d, axis=1, keepdims=True),
                      axis=0, keepdims=True) * inv_cnt                 # [1,1,H]
        hn = d * jax.lax.rsqrt(var + BN_EPS) * gamma_ref[...] + beta_ref[...]
        hr = jnp.maximum(hn, 0.0)                                      # ReLU

        # Linear(H -> 1): VPU multiply + lane (XLU) reduction — avoids an MXU
        # matmul with a single output column.
        energy = (jnp.sum(hr * w2_ref[...], axis=-1, keepdims=True)
                  + b2_ref[0, 0])                                      # [B,N,1]

        logits = -energy
        if with_logits:
            logits_ref[...] = logits

        # Numerically stable softmax cross-entropy, mean over the batch.
        m = jnp.max(logits, axis=1, keepdims=True)                     # [B,1,1]
        lse = m + jnp.log(jnp.sum(jnp.exp(logits - m), axis=1, keepdims=True))
        tgt = jnp.sum(jnp.where(pos_mask, logits, 0.0), axis=1, keepdims=True)
        loss_ref[0, 0] = jnp.sum(lse - tgt) * (1.0 / float(B))

    return kernel


def init_params(key, feature_dim, hidden=HIDDEN):
    """Deterministic synthetic init mimicking nn.Linear default bounds."""
    k1, k2, k3 = jax.random.split(key, 3)
    bound1 = 1.0 / (feature_dim ** 0.5)
    w1 = jax.random.uniform(k1, (feature_dim, hidden), jnp.float32,
                            minval=-bound1, maxval=bound1)
    gamma = jnp.ones((1, hidden), jnp.float32)   # BatchNorm1d weight
    beta = jnp.zeros((1, hidden), jnp.float32)   # BatchNorm1d bias
    bound2 = 1.0 / (hidden ** 0.5)
    w2 = jax.random.uniform(k2, (hidden, 1), jnp.float32,
                            minval=-bound2, maxval=bound2)
    b2 = jax.random.uniform(k3, (1, 1), jnp.float32,
                            minval=-bound2, maxval=bound2)
    return dict(w1=w1, gamma=gamma, beta=beta, w2=w2, b2=b2)


@functools.partial(jax.jit, static_argnames=("return_logits",))
def infonce_forward(x1, x2, action, params, key, return_logits=False):
    B = x1.shape[0]
    A = action.shape[1]
    Fx = x1.shape[1] + x2.shape[1]
    H = params["w1"].shape[1]
    N = TRAIN_SAMPLES + 1

    k_neg, k_pos = jax.random.split(key)
    # i.i.d. uniform(-1, 1) candidate slots; slot gt[b] is overwritten with the
    # real action inside the kernel.  Placing the positive at a uniformly
    # random index is distributionally equivalent to the reference's
    # rand().argsort() permutation of [action] + negatives (negatives i.i.d.),
    # and removes the XLA sort + gather glue over (B, 257).
    negatives = jax.random.uniform(k_neg, (B, N, A), jnp.float32,
                                   minval=-1.0, maxval=1.0)
    ground_truth = jax.random.randint(k_pos, (B,), 0, N, dtype=jnp.int32)

    xc = jnp.concatenate([x1, x2], axis=1).astype(jnp.float32).reshape(B, 1, Fx)
    act3 = action.astype(jnp.float32).reshape(B, 1, A)
    gt3 = ground_truth.reshape(B, 1, 1)

    w1 = params["w1"]
    w1x = w1[:Fx, :]                       # rows acting on [x1|x2]
    w1a = w1[Fx:, :]                       # rows acting on the candidate action
    gamma = params["gamma"].reshape(1, 1, H)
    beta = params["beta"].reshape(1, 1, H)
    w2row = params["w2"].reshape(1, 1, H)  # (H,1) -> lane-dense row
    b2 = params["b2"].reshape(1, 1)

    vmem = pl.BlockSpec(memory_space=pltpu.MemorySpace.VMEM)
    smem = pl.BlockSpec(memory_space=pltpu.MemorySpace.SMEM)

    out_shape = [jax.ShapeDtypeStruct((1, 1), jnp.float32)]   # loss (SMEM)
    out_specs = [smem]
    if return_logits:
        out_shape.append(jax.ShapeDtypeStruct((B, N, 1), jnp.float32))
        out_specs.append(vmem)

    outs = pl.pallas_call(
        _make_infonce_kernel(B, N, return_logits),
        out_shape=tuple(out_shape),
        in_specs=[vmem] * 9 + [smem],
        out_specs=tuple(out_specs),
    )(xc, act3, negatives, gt3, w1x, w1a, gamma, beta, w2row, b2)

    if return_logits:
        return outs[1].reshape(B, N)
    return outs[0][0, 0]


if __name__ == "__main__":
    key = jax.random.PRNGKey(0)
    k_x1, k_x2, k_a, k_p, k_fwd = jax.random.split(key, 5)

    B, f1, f2, A = 2, 16, 16, 4
    feature_dim = f1 + f2 + A   # projector in_dim = dim(x1)+dim(x2)+action_dim

    x1 = jax.random.normal(k_x1, (B, f1), jnp.float32)
    x2 = jax.random.normal(k_x2, (B, f2), jnp.float32)
    action = jax.random.uniform(k_a, (B, A), jnp.float32, minval=-1.0, maxval=1.0)

    params = init_params(k_p, feature_dim)

    loss = infonce_forward(x1, x2, action, params, k_fwd)
    jax.block_until_ready(loss)

    logits = infonce_forward(x1, x2, action, params, k_fwd, return_logits=True)
    jax.block_until_ready(logits)

    print("KERNEL_OK")
</pallas_src>

<mosaic_0001>
module attributes {stable_mosaic.version = 11 : i64} {
  func.func @kernel(%arg0: memref<2x1x32xf32, #tpu.memory_space<vmem>>, %arg1: memref<2x1x4xf32, #tpu.memory_space<vmem>>, %arg2: memref<2x257x4xf32, #tpu.memory_space<vmem>>, %arg3: memref<2x1x1xi32, #tpu.memory_space<vmem>>, %arg4: memref<32x256xf32, #tpu.memory_space<vmem>>, %arg5: memref<4x256xf32, #tpu.memory_space<vmem>>, %arg6: memref<1x1x256xf32, #tpu.memory_space<vmem>>, %arg7: memref<1x1x256xf32, #tpu.memory_space<vmem>>, %arg8: memref<1x1x256xf32, #tpu.memory_space<vmem>>, %arg9: memref<1x1xf32, #tpu.memory_space<smem>>, %arg10: memref<1x1xf32, #tpu.memory_space<smem>>) attributes {dimension_semantics = [], scalar_prefetch = 0 : i64, scratch_operands = 0 : i64, tpu.core_type = #tpu.core_type<tc>} {
    %c0 = arith.constant 0 : index
    %c0_0 = arith.constant 0 : index
    %0 = vector.load %arg4[%c0, %c0_0] : memref<32x256xf32, #tpu.memory_space<vmem>>, vector<32x256xf32>
    %1 = vector.shape_cast %0 : vector<32x256xf32> to vector<1x32x256xf32>
    %2 = vector.broadcast %1 : vector<1x32x256xf32> to vector<2x32x256xf32>
    %c0_1 = arith.constant 0 : index
    %c0_2 = arith.constant 0 : index
    %3 = vector.load %arg5[%c0_1, %c0_2] : memref<4x256xf32, #tpu.memory_space<vmem>>, vector<4x256xf32>
    %4 = vector.shape_cast %3 : vector<4x256xf32> to vector<1x4x256xf32>
    %5 = vector.broadcast %4 : vector<1x4x256xf32> to vector<2x4x256xf32>
    %c0_3 = arith.constant 0 : index
    %c0_4 = arith.constant 0 : index
    %c0_5 = arith.constant 0 : index
    %6 = vector.load %arg0[%c0_3, %c0_4, %c0_5] : memref<2x1x32xf32, #tpu.memory_space<vmem>>, vector<2x1x32xf32>
    "tpu.trace_start"() <{level = 10 : i32, message = "bqf,bfh->bqh"}> : () -> ()
    %cst = arith.constant dense<0.000000e+00> : vector<2x1x256xf32>
    %7 = tpu.matmul %6, %2, %cst {dimension_numbers = #tpu.dot_dimension_numbers<[2], [1], [1], [2], [0, 0, 0, 1, 1, 2], [0], [0]>} : vector<2x1x32xf32>, vector<2x32x256xf32>, vector<2x1x256xf32> -> vector<2x1x256xf32>
    "tpu.trace_stop"() : () -> ()
    %c0_6 = arith.constant 0 : index
    %c0_7 = arith.constant 0 : index
    %c0_8 = arith.constant 0 : index
    %8 = vector.load %arg1[%c0_6, %c0_7, %c0_8] : memref<2x1x4xf32, #tpu.memory_space<vmem>>, vector<2x1x4xf32>
    "tpu.trace_start"() <{level = 10 : i32, message = "bqa,bah->bqh"}> : () -> ()
    %cst_9 = arith.constant dense<0.000000e+00> : vector<2x1x256xf32>
    %9 = tpu.matmul %8, %5, %cst_9 {dimension_numbers = #tpu.dot_dimension_numbers<[2], [1], [1], [2], [0, 0, 0, 1, 1, 2], [0], [0]>} : vector<2x1x4xf32>, vector<2x4x256xf32>, vector<2x1x256xf32> -> vector<2x1x256xf32>
    "tpu.trace_stop"() : () -> ()
    %c0_10 = arith.constant 0 : index
    %c0_11 = arith.constant 0 : index
    %c0_12 = arith.constant 0 : index
    %10 = vector.load %arg2[%c0_10, %c0_11, %c0_12] : memref<2x257x4xf32, #tpu.memory_space<vmem>>, vector<2x257x4xf32>
    "tpu.trace_start"() <{level = 10 : i32, message = "bna,bah->bnh"}> : () -> ()
    %cst_13 = arith.constant dense<0.000000e+00> : vector<2x257x256xf32>
    %11 = tpu.matmul %10, %5, %cst_13 {dimension_numbers = #tpu.dot_dimension_numbers<[2], [1], [1], [2], [0, 0, 0, 1, 1, 2], [0], [0]>} : vector<2x257x4xf32>, vector<2x4x256xf32>, vector<2x257x256xf32> -> vector<2x257x256xf32>
    "tpu.trace_stop"() : () -> ()
    %12 = tpu.iota {dimensions = array<i32: 1>} : vector<2x257x1xi32>
    %c0_14 = arith.constant 0 : index
    %c0_15 = arith.constant 0 : index
    %c0_16 = arith.constant 0 : index
    %13 = vector.load %arg3[%c0_14, %c0_15, %c0_16] : memref<2x1x1xi32, #tpu.memory_space<vmem>>, vector<2x1x1xi32>
    %14 = vector.broadcast %13 : vector<2x1x1xi32> to vector<2x257x1xi32>
    %15 = arith.cmpi eq, %12, %14 : vector<2x257x1xi32>
    %16 = vector.shape_cast %15 : vector<2x257x1xi1> to vector<2x257x1xi1>
    %17 = vector.broadcast %16 : vector<2x257x1xi1> to vector<2x257x256xi1>
    %18 = vector.shape_cast %9 : vector<2x1x256xf32> to vector<2x1x256xf32>
    %19 = vector.broadcast %18 : vector<2x1x256xf32> to vector<2x257x256xf32>
    %20 = arith.select %17, %19, %11 : vector<2x257x256xi1>, vector<2x257x256xf32>
    %21 = vector.broadcast %7 : vector<2x1x256xf32> to vector<2x257x256xf32>
    %22 = arith.addf %21, %20 : vector<2x257x256xf32>
    %cst_17 = arith.constant dense<0.000000e+00> : vector<2x256xf32>
    %23 = vector.multi_reduction <add>, %22, %cst_17 [1] : vector<2x257x256xf32> to vector<2x256xf32>
    %24 = vector.shape_cast %23 : vector<2x256xf32> to vector<2x1x256xf32>
    %cst_18 = arith.constant dense<0.000000e+00> : vector<1x256xf32>
    %25 = vector.multi_reduction <add>, %24, %cst_18 [0] : vector<2x1x256xf32> to vector<1x256xf32>
    %26 = vector.shape_cast %25 : vector<1x256xf32> to vector<1x1x256xf32>
    %cst_19 = arith.constant 0.00194552529 : f32
    %27 = vector.broadcast %cst_19 : f32 to vector<1x1x256xf32>
    %28 = arith.mulf %26, %27 : vector<1x1x256xf32>
    %29 = vector.broadcast %28 : vector<1x1x256xf32> to vector<2x257x256xf32>
    %30 = arith.subf %22, %29 : vector<2x257x256xf32>
    %31 = arith.mulf %30, %30 : vector<2x257x256xf32>
    %cst_20 = arith.constant dense<0.000000e+00> : vector<2x256xf32>
    %32 = vector.multi_reduction <add>, %31, %cst_20 [1] : vector<2x257x256xf32> to vector<2x256xf32>
    %33 = vector.shape_cast %32 : vector<2x256xf32> to vector<2x1x256xf32>
    %cst_21 = arith.constant dense<0.000000e+00> : vector<1x256xf32>
    %34 = vector.multi_reduction <add>, %33, %cst_21 [0] : vector<2x1x256xf32> to vector<1x256xf32>
    %35 = vector.shape_cast %34 : vector<1x256xf32> to vector<1x1x256xf32>
    %cst_22 = arith.constant 0.00194552529 : f32
    %36 = vector.broadcast %cst_22 : f32 to vector<1x1x256xf32>
    %37 = arith.mulf %35, %36 : vector<1x1x256xf32>
    %cst_23 = arith.constant 9.99999974E-6 : f32
    %38 = vector.broadcast %cst_23 : f32 to vector<1x1x256xf32>
    %39 = arith.addf %37, %38 : vector<1x1x256xf32>
    %40 = math.rsqrt %39 : vector<1x1x256xf32>
    %41 = vector.broadcast %40 : vector<1x1x256xf32> to vector<2x257x256xf32>
    %42 = arith.mulf %30, %41 : vector<2x257x256xf32>
    %c0_24 = arith.constant 0 : index
    %c0_25 = arith.constant 0 : index
    %c0_26 = arith.constant 0 : index
    %43 = vector.load %arg6[%c0_24, %c0_25, %c0_26] : memref<1x1x256xf32, #tpu.memory_space<vmem>>, vector<1x1x256xf32>
    %44 = vector.broadcast %43 : vector<1x1x256xf32> to vector<2x257x256xf32>
    %45 = arith.mulf %42, %44 : vector<2x257x256xf32>
    %c0_27 = arith.constant 0 : index
    %c0_28 = arith.constant 0 : index
    %c0_29 = arith.constant 0 : index
    %46 = vector.load %arg7[%c0_27, %c0_28, %c0_29] : memref<1x1x256xf32, #tpu.memory_space<vmem>>, vector<1x1x256xf32>
    %47 = vector.broadcast %46 : vector<1x1x256xf32> to vector<2x257x256xf32>
    %48 = arith.addf %45, %47 : vector<2x257x256xf32>
    %cst_30 = arith.constant 0.000000e+00 : f32
    %49 = vector.broadcast %cst_30 : f32 to vector<2x257x256xf32>
    %50 = arith.maximumf %48, %49 : vector<2x257x256xf32>
    %c0_31 = arith.constant 0 : index
    %c0_32 = arith.constant 0 : index
    %c0_33 = arith.constant 0 : index
    %51 = vector.load %arg8[%c0_31, %c0_32, %c0_33] : memref<1x1x256xf32, #tpu.memory_space<vmem>>, vector<1x1x256xf32>
    %52 = vector.broadcast %51 : vector<1x1x256xf32> to vector<2x257x256xf32>
    %53 = arith.mulf %50, %52 : vector<2x257x256xf32>
    %cst_34 = arith.constant dense<0.000000e+00> : vector<2x257xf32>
    %54 = vector.multi_reduction <add>, %53, %cst_34 [2] : vector<2x257x256xf32> to vector<2x257xf32>
    %55 = vector.shape_cast %54 : vector<2x257xf32> to vector<2x257x1xf32>
    %c0_35 = arith.constant 0 : index
    %c0_36 = arith.constant 0 : index
    %56 = memref.load %arg9[%c0_35, %c0_36] : memref<1x1xf32, #tpu.memory_space<smem>>
    %57 = vector.broadcast %56 : f32 to vector<2x257x1xf32>
    %58 = arith.addf %55, %57 : vector<2x257x1xf32>
    %cst_37 = arith.constant 0.000000e+00 : f32
    %59 = vector.broadcast %cst_37 : f32 to vector<2x257x1xf32>
    %60 = arith.subf %59, %58 : vector<2x257x1xf32>
    %cst_38 = arith.constant dense<0xFF800000> : vector<2x1xf32>
    %61 = vector.multi_reduction <maximumf>, %60, %cst_38 [1] : vector<2x257x1xf32> to vector<2x1xf32>
    %62 = vector.shape_cast %61 : vector<2x1xf32> to vector<2x1x1xf32>
    %63 = vector.broadcast %62 : vector<2x1x1xf32> to vector<2x257x1xf32>
    %64 = arith.subf %60, %63 : vector<2x257x1xf32>
    %65 = math.exp %64 : vector<2x257x1xf32>
    %cst_39 = arith.constant dense<0.000000e+00> : vector<2x1xf32>
    %66 = vector.multi_reduction <add>, %65, %cst_39 [1] : vector<2x257x1xf32> to vector<2x1xf32>
    %67 = vector.shape_cast %66 : vector<2x1xf32> to vector<2x1x1xf32>
    %68 = math.log %67 : vector<2x1x1xf32>
    %69 = arith.addf %62, %68 : vector<2x1x1xf32>
    %cst_40 = arith.constant 0.000000e+00 : f32
    %70 = vector.broadcast %cst_40 : f32 to vector<2x257x1xf32>
    %71 = arith.select %15, %60, %70 : vector<2x257x1xi1>, vector<2x257x1xf32>
    %cst_41 = arith.constant dense<0.000000e+00> : vector<2x1xf32>
    %72 = vector.multi_reduction <add>, %71, %cst_41 [1] : vector<2x257x1xf32> to vector<2x1xf32>
    %73 = vector.shape_cast %72 : vector<2x1xf32> to vector<2x1x1xf32>
    %74 = arith.subf %69, %73 : vector<2x1x1xf32>
    %75 = vector.shape_cast %74 : vector<2x1x1xf32> to vector<1x2x1x1xf32>
    %cst_42 = arith.constant dense<0.000000e+00> : vector<1xf32>
    %76 = vector.multi_reduction <add>, %75, %cst_42 [1, 2, 3] : vector<1x2x1x1xf32> to vector<1xf32>
    %77 = vector.shape_cast %76 : vector<1xf32> to vector<1x1x1x1xf32>
    %78 = vector.extract %77[0, 0, 0, 0] : f32 from vector<1x1x1x1xf32>
    %cst_43 = arith.constant 5.000000e-01 : f32
    %79 = arith.mulf %78, %cst_43 : f32
    %c0_44 = arith.constant 0 : index
    %c0_45 = arith.constant 0 : index
    %80 = memref.load %arg10[%c0_44, %c0_45] : memref<1x1xf32, #tpu.memory_space<smem>>
    memref.store %79, %arg10[%c0_44, %c0_45] : memref<1x1xf32, #tpu.memory_space<smem>>
    return
  }
}

</mosaic_0001>

<bundles_post_ra>
// kernel: infonce_forward.21
= control target key start
LH: loop header
LB: loop body
LE: loop exit
PB: predicated region body
PF: predicated region fallthrough
CT: control target
= control target key end

     0   :  { %v982_v3 = vlaneseq  ;;  %v9606_v6 = vmov 0   ;;  %vm48_vm1 = vcmask 261120   ;;  %s9537_s0 = inlined_call_operand.vmem [shape: f32[2,1,32], index: 0, kind: input, shape index: {}]   ;;  %s9538_s1 = inlined_call_operand.vmem [shape: f32[2,1,4], index: 1, kind: input, shape index: {}]   ;;  %s9539_s2 = inlined_call_operand.vmem [shape: f32[2,257,4], index: 2, kind: input, shape index: {}]   ;;  %s9540_s3 = inlined_call_operand.vmem [shape: s32[2,1,1], index: 3, kind: input, shape index: {}]   ;;  %s9541_s4 = inlined_call_operand.vmem [shape: f32[32,256], index: 4, kind: input, shape index: {}]   ;;  %s9542_s5 = inlined_call_operand.vmem [shape: f32[4,256], index: 5, kind: input, shape index: {}]   ;;  %s9543_s6 = inlined_call_operand.vmem [shape: f32[1,1,256], index: 6, kind: input, shape index: {}]   ;;  %s9544_s7 = inlined_call_operand.vmem [shape: f32[1,1,256], index: 7, kind: input, shape index: {}]   ;;  %s9545_s8 = inlined_call_operand.vmem [shape: f32[1,1,256], index: 8, kind: input, shape index: {}]   ;;  %s9546_s9 = inlined_call_operand.<no memory space> [shape: f32[1,1], index: 9, kind: input, shape index: {}]   ;;  %s9547_s10 = inlined_call_operand.hbm [shape: f32[1,1], index: 10, kind: output, shape index: {}]  }
   0x1   :  { %v43_v0 = vld [vmem:[%s9541_s4 + $0x30] sm:$0xff]  ;;  %v44_v1 = vld [vmem:[%s9541_s4 + $0x38] sm:$0xff]  ;;  %v41_v2 = vld [vmem:[%s9541_s4 + $0x20] sm:$0xff]  ;;  %4063 = vset.pattern.permute.xlu0 %v9606_v6  ;;  %4065 = vset.pattern.permute.xlu2 %v9606_v6 }
   0x2   :  { %64 = vmatpush.msra.mxu0 %v43_v0  ;;  %84 = vmatpush.msra.mxu1 %v44_v1  ;;  %v42_v4 = vld [vmem:[%s9541_s4 + $0x28] sm:$0xff]  ;;  %v4294_v5 = vld [vmem:[%s9540_s3] ss:$0 sm:$0xff]  ;;  %v4297_v7 = vshrl.u32 %v982_v3, 7  ;;  %v39_v8 = vld [vmem:[%s9541_s4 + $0x10] sm:$0xff] }
   0x3   :  { %9948 = vst [vmem:[#allocation6_spill] sm:$0xff] %v4294_v5  ;;  %v40_v9 = vld [vmem:[%s9541_s4 + $0x18] sm:$0xff]  ;;  %v37_v10 = vld [vmem:[%s9541_s4] sm:$0xff]  ;;  %4064 = vset.pattern.permute.xlu1 %v9606_v6  ;;  %v38_v14 = vld [vmem:[%s9541_s4 + $0x8] sm:$0xff]  ;;  %107 = vmatpush.msra.mxu2 %v43_v0 }
   0x4   :  { %9949 = vst [vmem:[#allocation7_spill] sm:$0xff] %v4297_v7  ;;  %65 = vmatpush.msra.mxu0 %v41_v2  ;;  %85 = vmatpush.msra.mxu1 %v42_v4  ;;  %v4312_v11 = vld [vmem:[%s9542_s5] sm:$0xff]  ;;  %vm9558_vm0 = vcmp.eq.s32.totalorder %v4297_v7, %v4294_v5  ;;  %v4318_v12 = vadd.s32 32, %v4297_v7  ;;  %v4321_v13 = vadd.s32 16, %v4297_v7  ;;  %v4327_v15 = vadd.s32 8, %v4297_v7 }
   0x5   :  { %138 = vst [vmem:[#allocation1] ss:$2 sm:$0xff] %v4312_v11  ;;  %v1086_v16 = vsel %vm9558_vm0, 1, %v9606_v6  ;;  %v46_v17 = vld [vmem:[%s9537_s0] sm:$0x1]  ;;  %127 = vmatpush.msra.mxu3 %v44_v1  ;;  %v4342_v18 = vadd.s32 40, %v4297_v7 }
   0x6   :  { %9950 = vst [vmem:[#allocation8_spill] sm:$0xff] %v4318_v12  ;;  %66 = vmatpush.msra.mxu0 %v39_v8  ;;  %86 = vmatpush.msra.mxu1 %v40_v9  ;;  %vm9555_vm2 = vcmp.eq.s32.totalorder %v4318_v12, %v4294_v5  ;;  %vm9557_vm3 = vcmp.eq.s32.totalorder %v4321_v13, %v4294_v5  ;;  %v4345_v19 = vadd.s32 24, %v4297_v7 }
   0x7   :  { %9951 = vst [vmem:[#allocation9_spill] sm:$0xff] %v4321_v13  ;;  %1153 = vperm.xlu0 %4063, %v1086_v16   ;;  %v1090_v20 = vsel %vm9555_vm2, 1, %v9606_v6  ;;  %v1088_v21 = vsel %vm9557_vm3, 1, %v9606_v6  ;;  %vm9559_vm4 = vcmp.eq.s32.totalorder %v4327_v15, %v4294_v5 }
   0x8   :  { %9952 = vst [vmem:[#allocation10_spill] sm:$0xff] %v4327_v15  ;;  %67 = vmatpush.msra.mxu0 %v37_v10  ;;  %87 = vmatpush.msra.mxu1 %v38_v14 }
   0x9   :  { %9953 = vst [vmem:[#allocation11_spill] sm:$0xff] %v4342_v18  ;;  %1165 = vperm.xlu2 %4065, %v1090_v20   ;;  %1159 = vperm.xlu1 %4064, %v1088_v21  }
   0xa   :  { %9954 = vst [vmem:[#allocation12_spill] sm:$0xff] %v4345_v19 }
   0xb   :  { %16 = vsyncpa [#allocation4], 0  ;;  %3911 = vmatmul.msk.f32.vlgmr.msra.gmra.mxu0 %vm48_vm1, %v46_v17  ;;  %3912 = vmatmul.msk.f32.vlgmr.msra.gmra.mxu1 %vm48_vm1, %v46_v17  ;;  %vm145_vm5 = vcmask 1043456   ;;  %v1087_v22 = vsel %vm9559_vm4, 1, %v9606_v6  ;;  %vm9554_vm6 = vcmp.eq.s32.totalorder %v4342_v18, %v4294_v5  ;;  %vm9556_vm7 = vcmp.eq.s32.totalorder %v4345_v19, %v4294_v5  ;;  %v47_v26 = vld [vmem:[%s9537_s0 + $0x1] sm:$0x1] }
   0xc   :  { %108 = vmatpush.msra.mxu2 %v41_v2  ;;  %128 = vmatpush.msra.mxu3 %v42_v4  ;;  %v4368_v23 = vadd.s32 48, %v4297_v7  ;;  %v139_v24 = vld.sshfl [vmem:[#allocation1] sm:$0xff pattern:$0x75316420]  ;;  %v1091_v27 = vsel %vm9554_vm6, 1, %v9606_v6  ;;  %v1089_v28 = vsel %vm9556_vm7, 1, %v9606_v6 }
   0xd   :  { %v140_v25 = vld.sshfl [vmem:[#allocation1 + $0x8] sm:$0xff pattern:$0x75316420]  ;;  %3915 = vmatpush.msk.msrb.mxu0 %vm145_vm5, %v139_v24  ;;  %v135_v29 = vld [vmem:[%s9538_s1] sm:$0x1]  ;;  %vm141_vm8 = vcmask 31744  }
   0xe   :  { %9955 = vst [vmem:[#allocation13_spill] sm:$0xff] %v4368_v23  ;;  %109 = vmatpush.msra.mxu2 %v39_v8  ;;  %129 = vmatpush.msra.mxu3 %v40_v9  ;;  %v4388_v30 = vadd.s32 64, %v4297_v7  ;;  %v4391_v31 = vadd.s32 56, %v4297_v7  ;;  %vm9553_vm9 = vcmp.eq.s32.totalorder %v4368_v23, %v4294_v5  ;;  %v4408_v33 = vadd.s32 72, %v4297_v7  ;;  %v136_v36 = vld [vmem:[%s9538_s1 + $0x1] sm:$0x1] }
   0xf   :  { %190 = vst [vmem:[#allocation1] ss:$2 sm:$0xff] %v4312_v11  ;;  %3917 = vmatpush.msk.msrb.mxu1 %vm145_vm5, %v140_v25  ;;  %1156 = vperm.xlu0 %4063, %v1087_v22   ;;  %v1092_v32 = vsel %vm9553_vm9, 1, %v9606_v6  ;;  %v4425_v39 = vadd.s32 88, %v4297_v7  ;;  %v4428_v40 = vadd.s32 80, %v4297_v7  ;;  %v240_v41 = vld [vmem:[%s9539_s2] sm:$0xff] }
  0x10   :  { %110 = vmatpush.msra.mxu2 %v37_v10  ;;  %9956 = vst [vmem:[#allocation14_spill] sm:$0xff] %v4388_v30  ;;  %130 = vmatpush.msra.mxu3 %v38_v14  ;;  %vm9551_vm10 = vcmp.eq.s32.totalorder %v4388_v30, %v4294_v5  ;;  %vm9552_vm11 = vcmp.eq.s32.totalorder %v4391_v31, %v4294_v5  ;;  %v4461_v47 = vld [vmem:[%s9540_s3 + $0x1] ss:$0 sm:$0xff]  ;;  %v241_v48 = vld [vmem:[%s9539_s2 + $0x8] sm:$0xff]  ;;  %v242_v55 = vld [vmem:[%s9539_s2 + $0x10] sm:$0xff]  ;;  %v4576_v9 = vadd.s32 96, %v4297_v7 }
  0x11   :  { %9957 = vst [vmem:[#allocation15_spill] sm:$0xff] %v4391_v31  ;;  %3913 = vmatmul.msk.f32.vlgmr.msra.gmra.mxu2 %vm48_vm1, %v47_v26  ;;  %1168 = vperm.xlu2 %4065, %v1091_v27   ;;  %v1094_v37 = vsel %vm9551_vm10, 1, %v9606_v6  ;;  %v1093_v38 = vsel %vm9552_vm11, 1, %v9606_v6  ;;  %vm9550_vm12 = vcmp.eq.s32.totalorder %v4408_v33, %v4294_v5  ;;  %vm9548_vm13 = vcmp.eq.s32.totalorder %v4425_v39, %v4294_v5  ;;  %v273_v49 = vld [vmem:[%s9539_s2 + $0x108] sm:$0xff]  ;;  %v274_v56 = vld [vmem:[%s9539_s2 + $0x110] sm:$0xff]  ;;  %v243_v60 = vld [vmem:[%s9539_s2 + $0x18] sm:$0xff] }
  0x12   :  { %1162 = vperm.xlu1 %4064, %v1089_v28   ;;  %3914 = vmatmul.msk.f32.vlgmr.msra.gmra.mxu3 %vm48_vm1, %v47_v26  ;;  %9958 = vst [vmem:[#allocation16_spill] sm:$0xff] %v4408_v33  ;;  %v1095_v42 = vsel %vm9550_vm12, 1, %v9606_v6  ;;  %vm9549_vm14 = vcmp.eq.s32.totalorder %v4428_v40, %v4294_v5  ;;  %v1097_v45 = vsel %vm9548_vm13, 1, %v9606_v6  ;;  %vm9743_vm15 = vcmp.eq.s32.totalorder %v4297_v7, %v4461_v47  ;;  %v275_v61 = vld [vmem:[%s9539_s2 + $0x118] sm:$0xff]  ;;  %v244_v1 = vld [vmem:[%s9539_s2 + $0x20] sm:$0xff]  ;;  %v277_v14 = vld [vmem:[%s9539_s2 + $0x128] sm:$0xff] }
  0x13   :  { %3916 = vmatmul.msk.f32.vlgmr.msrb.gmra.mxu0 %vm141_vm8, %v135_v29  ;;  %3918 = vmatmul.msk.f32.vlgmr.msrb.gmra.mxu1 %vm141_vm8, %v135_v29  ;;  %9959 = vst [vmem:[#allocation17_spill] sm:$0xff] %v4425_v39  ;;  %v1096_v46 = vsel %vm9549_vm14, 1, %v9606_v6  ;;  %vm9740_vm1 = vcmp.eq.s32.totalorder %v4321_v13, %v4461_v47  ;;  %vm9746_vm13 = vcmp.eq.s32.totalorder %v4327_v15, %v4461_v47  ;;  %v1119_v52 = vsel %vm9743_vm15, 1, %v9606_v6  ;;  %v276_v2 = vld [vmem:[%s9539_s2 + $0x120] sm:$0xff]  ;;  %v246_v22 = vld [vmem:[%s9539_s2 + $0x30] sm:$0xff]  ;;  %s3901_s30 = sshll.u32 %s9547_s10, 4  ;;  %s3902_s30 = int_to_ptr.hbm [resolvable:$true] %s3901_s30 }
  0x14   :  { %9960 = vst [vmem:[#allocation18_spill] sm:$0xff] %v4428_v40  ;;  %v1121_v53 = vsel %vm9740_vm1, 1, %v9606_v6  ;;  %v1120_v54 = vsel %vm9746_vm13, 1, %v9606_v6  ;;  %vm9727_vm14 = vcmp.eq.s32.totalorder %v4342_v18, %v4461_v47  ;;  %vm9733_vm12 = vcmp.eq.s32.totalorder %v4318_v12, %v4461_v47  ;;  %v278_v24 = vld [vmem:[%s9539_s2 + $0x130] sm:$0xff]  ;;  %s4223_s4 = smov [#allocation3]  }
  0x15   :  { %9961 = vst [vmem:[#allocation19_spill] sm:$0xff] %v4461_v47  ;;  %v1124_v58 = vsel %vm9727_vm14, 1, %v9606_v6  ;;  %v1123_v59 = vsel %vm9733_vm12, 1, %v9606_v6  ;;  %vm9723_vm10 = vcmp.eq.s32.totalorder %v4368_v23, %v4461_v47  ;;  %vm9707_vm11 = vcmp.eq.s32.totalorder %v4388_v30, %v4461_v47 }
  0x16   :  { %v191_v34 = vld.sshfl [vmem:[#allocation1] sm:$0xff pattern:$0x75316420]  ;;  %v192_v35 = vld.sshfl [vmem:[#allocation1 + $0x8] sm:$0xff pattern:$0x75316420]  ;;  %vm9710_vm9 = vcmp.eq.s32.totalorder %v4391_v31, %v4461_v47  ;;  %vm9705_vm6 = vcmp.eq.s32.totalorder %v4408_v33, %v4461_v47  ;;  %vm9611_vm2 = vcmp.eq.s32.totalorder %v4425_v39, %v4461_v47  ;;  %vm9690_vm7 = vcmp.eq.s32.totalorder %v4428_v40, %v4461_v47 }
  0x17   :  { %3919 = vmatpush.msk.msrb.mxu2 %vm145_vm5, %v191_v34  ;;  %3921 = vmatpush.msk.msrb.mxu3 %vm145_vm5, %v192_v35  ;;  %306 = vst [vmem:[#allocation1] ss:$2 sm:$0xff] %v4312_v11  ;;  %v1125_v62 = vsel %vm9723_vm10, 1, %v9606_v6  ;;  %v1127_v63 = vsel %vm9707_vm11, 1, %v9606_v6  ;;  %v1126_v0 = vsel %vm9710_vm9, 1, %v9606_v6  ;;  %v1128_v3 = vsel %vm9705_vm6, 1, %v9606_v6 }
  0x18   :  { %1171 = vperm.xlu0 %4063, %v1092_v32   ;;  %v1130_v4 = vsel %vm9611_vm2, 1, %v9606_v6  ;;  %v1129_v8 = vsel %vm9690_vm7, 1, %v9606_v6  ;;  %9962 = vst [vmem:[#allocation20_spill] sm:$0xff] %v4576_v9  ;;  %v4581_v10 = vadd.s32 104, %v4297_v7  ;;  %vm9560_vm3 = vcmp.eq.s32.totalorder %v4576_v9, %v4294_v5  ;;  %v247_v32 = vld [vmem:[%s9539_s2 + $0x38] sm:$0xff] }
  0x19   :  { %3920 = vmatmul.msk.f32.vlgmr.msrb.gmra.mxu2 %vm141_vm8, %v136_v36  ;;  %1177 = vperm.xlu2 %4065, %v1094_v37   ;;  %vm9562_vm4 = vcmp.eq.s32.totalorder %v4576_v9, %v4461_v47  ;;  %v1098_v16 = vsel %vm9560_vm3, 1, %v9606_v6  ;;  %v4612_v21 = vadd.s32 112, %v4297_v7  ;;  %v4641_v28 = vadd.s32 120, %v4297_v7  ;;  %v279_v34 = vld [vmem:[%s9539_s2 + $0x138] sm:$0xff] }
  0x1a   :  { %1174 = vperm.xlu1 %4064, %v1093_v38   ;;  %3922 = vmatmul.msk.f32.vlgmr.msrb.gmra.mxu3 %vm141_vm8, %v136_v36  ;;  %9963 = vst [vmem:[#allocation21_spill] sm:$0xff] %v4581_v10  ;;  %vm9561_vm0 = vcmp.eq.s32.totalorder %v4581_v10, %v4294_v5  ;;  %v1131_v20 = vsel %vm9562_vm4, 1, %v9606_v6  ;;  %vm9565_vm3 = vcmp.eq.s32.totalorder %v4581_v10, %v4461_v47  ;;  %v4646_v29 = vadd.s32 128, %v4297_v7 }
  0x1b   :  { %v1099_v17 = vsel %vm9561_vm0, 1, %v9606_v6  ;;  %9964 = vst [vmem:[#allocation22_spill] sm:$0xff] %v4612_v21  ;;  %vm9563_vm0 = vcmp.eq.s32.totalorder %v4612_v21, %v4461_v47  ;;  %vm9564_vm4 = vcmp.eq.s32.totalorder %v4612_v21, %v4294_v5  ;;  %v1132_v25 = vsel %vm9565_vm3, 1, %v9606_v6 }
  0x1c   :  { %v1133_v26 = vsel %vm9563_vm0, 1, %v9606_v6  ;;  %v1100_v27 = vsel %vm9564_vm4, 1, %v9606_v6  ;;  %9965 = vst [vmem:[#allocation23_spill] sm:$0xff] %v4641_v28  ;;  %vm9566_vm0 = vcmp.eq.s32.totalorder %v4641_v28, %v4294_v5  ;;  %vm9567_vm4 = vcmp.eq.s32.totalorder %v4646_v29, %v4294_v5 }
  0x1d   :  { %9966 = vst [vmem:[#allocation24_spill] sm:$0xff] %v4646_v29  ;;  %vm9568_vm3 = vcmp.eq.s32.totalorder %v4641_v28, %v4461_v47  ;;  %v1101_v35 = vsel %vm9566_vm0, 1, %v9606_v6  ;;  %v1102_v36 = vsel %vm9567_vm4, 1, %v9606_v6  ;;  %v4677_v38 = vadd.s32 136, %v4297_v7 }
  0x1e   :  { %v307_v43 = vld.sshfl [vmem:[#allocation1] sm:$0xff pattern:$0x75316420]  ;;  %v308_v44 = vld.sshfl [vmem:[#allocation1 + $0x8] sm:$0xff pattern:$0x75316420]  ;;  %vm9571_vm0 = vcmp.eq.s32.totalorder %v4646_v29, %v4461_v47 }
  0x1f   :  { %3923 = vmatpush.msk.msra.mxu0 %vm145_vm5, %v307_v43  ;;  %3957 = vmatpush.msk.msra.mxu1 %vm145_vm5, %v308_v44  ;;  %644 = vst [vmem:[#allocation1] ss:$2 sm:$0xff] %v4312_v11  ;;  %v245_v11 = vld [vmem:[%s9539_s2 + $0x28] sm:$0xff]  ;;  %v1134_v37 = vsel %vm9568_vm3, 1, %v9606_v6  ;;  %vm9569_vm4 = vcmp.eq.s32.totalorder %v4677_v38, %v4461_v47  ;;  %vm9570_vm3 = vcmp.eq.s32.totalorder %v4677_v38, %v4294_v5  ;;  %v1135_v43 = vsel %vm9571_vm0, 1, %v9606_v6 }
  0x20   :  { %3924 = vmatmul.msk.f32.vlgmr.msra.gmra.mxu0 %vm141_vm8, %v240_v41  ;;  %3958 = vmatmul.msk.f32.vlgmr.msra.gmra.mxu1 %vm141_vm8, %v240_v41  ;;  %9967 = vst [vmem:[#allocation25_spill] sm:$0xff] %v4677_v38  ;;  %v248_v41 = vld [vmem:[%s9539_s2 + $0x40] sm:$0xff]  ;;  %v1136_v44 = vsel %vm9569_vm4, 1, %v9606_v6 }
  0x21   :  { %1180 = vperm.xlu0 %4063, %v1095_v42   ;;  %1186 = vperm.xlu2 %4065, %v1097_v45   ;;  %v280_v42 = vld [vmem:[%s9539_s2 + $0x140] sm:$0xff]  ;;  %v1103_v45 = vsel %vm9570_vm3, 1, %v9606_v6 }
  0x22   :  { %1183 = vperm.xlu1 %4064, %v1096_v46   ;;  %v4706_v46 = vadd.s32 144, %v4297_v7 }
  0x24   :  { %9968 = vst [vmem:[#allocation26_spill] sm:$0xff] %v4706_v46  ;;  %vm9572_vm4 = vcmp.eq.s32.totalorder %v4706_v46, %v4294_v5  ;;  %vm9574_vm0 = vcmp.eq.s32.totalorder %v4706_v46, %v4461_v47 }
  0x26   :  { %v645_v50 = vld.sshfl [vmem:[#allocation1] sm:$0xff pattern:$0x75316420]  ;;  %v646_v51 = vld.sshfl [vmem:[#allocation1 + $0x8] sm:$0xff pattern:$0x75316420] }
  0x27   :  { %3991 = vmatpush.msk.msra.mxu2 %vm145_vm5, %v645_v50  ;;  %4025 = vmatpush.msk.msra.mxu3 %vm145_vm5, %v646_v51  ;;  %vm9734_vm5 = vcmp.eq.s32.totalorder %v4345_v19, %v4461_v47  ;;  %v281_v50 = vld [vmem:[%s9539_s2 + $0x148] sm:$0xff]  ;;  %v1104_v51 = vsel %vm9572_vm4, 1, %v9606_v6 }
  0x28   :  { %3925 = vmatmul.msk.f32.gmra.mxu0 %vm141_vm8, %v241_v48  ;;  %3959 = vmatmul.msk.f32.gmra.mxu1 %vm141_vm8, %v241_v48  ;;  %v1122_v57 = vsel %vm9734_vm5, 1, %v9606_v6  ;;  %v4711_v48 = vadd.s32 152, %v4297_v7 }
  0x29   :  { %3992 = vmatmul.msk.f32.vlgmr.msra.gmra.mxu2 %vm141_vm8, %v273_v49  ;;  %4026 = vmatmul.msk.f32.vlgmr.msra.gmra.mxu3 %vm141_vm8, %v273_v49  ;;  %v249_v49 = vld [vmem:[%s9539_s2 + $0x48] sm:$0xff] }
  0x2a   :  { %1252 = vperm.xlu0 %4063, %v1119_v52   ;;  %1258 = vperm.xlu2 %4065, %v1121_v53   ;;  %9969 = vst [vmem:[#allocation27_spill] sm:$0xff] %v4711_v48  ;;  %vm9573_vm3 = vcmp.eq.s32.totalorder %v4711_v48, %v4294_v5  ;;  %v1137_v53 = vsel %vm9574_vm0, 1, %v9606_v6  ;;  %vm9577_vm4 = vcmp.eq.s32.totalorder %v4711_v48, %v4461_v47 }
  0x2b   :  { %1255 = vperm.xlu1 %4064, %v1120_v54   ;;  %v1105_v52 = vsel %vm9573_vm3, 1, %v9606_v6  ;;  %v4742_v54 = vadd.s32 160, %v4297_v7 }
  0x2d   :  { %9970 = vst [vmem:[#allocation28_spill] sm:$0xff] %v4742_v54  ;;  %vm9575_vm3 = vcmp.eq.s32.totalorder %v4742_v54, %v4461_v47  ;;  %vm9576_vm0 = vcmp.eq.s32.totalorder %v4742_v54, %v4294_v5 }
  0x30   :  { %3926 = vmatmul.msk.f32.gmra.mxu0 %vm141_vm8, %v242_v55  ;;  %3960 = vmatmul.msk.f32.gmra.mxu1 %vm141_vm8, %v242_v55  ;;  %v250_v55 = vld [vmem:[%s9539_s2 + $0x50] sm:$0xff] }
  0x31   :  { %3993 = vmatmul.msk.f32.gmra.mxu2 %vm141_vm8, %v274_v56  ;;  %4027 = vmatmul.msk.f32.gmra.mxu3 %vm141_vm8, %v274_v56  ;;  %v282_v56 = vld [vmem:[%s9539_s2 + $0x150] sm:$0xff] }
  0x32   :  { %1261 = vperm.xlu0 %4063, %v1122_v57   ;;  %1267 = vperm.xlu2 %4065, %v1124_v58   ;;  %v1138_v57 = vsel %vm9577_vm4, 1, %v9606_v6  ;;  %v1139_v58 = vsel %vm9575_vm3, 1, %v9606_v6 }
  0x33   :  { %1264 = vperm.xlu1 %4064, %v1123_v59   ;;  %v1106_v59 = vsel %vm9576_vm0, 1, %v9606_v6 }
  0x38   :  { %3927 = vmatmul.msk.f32.gmra.mxu0 %vm141_vm8, %v243_v60  ;;  %3961 = vmatmul.msk.f32.gmra.mxu1 %vm141_vm8, %v243_v60  ;;  %v4771_v60 = vadd.s32 168, %v4297_v7 }
  0x39   :  { %3994 = vmatmul.msk.f32.gmra.mxu2 %vm141_vm8, %v275_v61  ;;  %4028 = vmatmul.msk.f32.gmra.mxu3 %vm141_vm8, %v275_v61  ;;  %v4776_v61 = vadd.s32 176, %v4297_v7 }
  0x3a   :  { %1270 = vperm.xlu0 %4063, %v1125_v62   ;;  %1276 = vperm.xlu2 %4065, %v1127_v63   ;;  %9971 = vst [vmem:[#allocation29_spill] sm:$0xff] %v4771_v60  ;;  %vm9578_vm3 = vcmp.eq.s32.totalorder %v4771_v60, %v4294_v5  ;;  %v251_v62 = vld [vmem:[%s9539_s2 + $0x58] sm:$0xff]  ;;  %vm9580_vm4 = vcmp.eq.s32.totalorder %v4771_v60, %v4461_v47 }
  0x3b   :  { %1273 = vperm.xlu1 %4064, %v1126_v0   ;;  %9972 = vst [vmem:[#allocation30_spill] sm:$0xff] %v4776_v61  ;;  %vm9579_vm0 = vcmp.eq.s32.totalorder %v4776_v61, %v4294_v5  ;;  %v283_v63 = vld [vmem:[%s9539_s2 + $0x158] sm:$0xff]  ;;  %v1107_v0 = vsel %vm9578_vm3, 1, %v9606_v6  ;;  %vm9583_vm3 = vcmp.eq.s32.totalorder %v4776_v61, %v4461_v47 }
  0x40   :  { %3928 = vmatmul.msk.f32.gmra.mxu0 %vm141_vm8, %v244_v1  ;;  %3962 = vmatmul.msk.f32.gmra.mxu1 %vm141_vm8, %v244_v1  ;;  %v1108_v1 = vsel %vm9579_vm0, 1, %v9606_v6 }
  0x41   :  { %3995 = vmatmul.msk.f32.gmra.mxu2 %vm141_vm8, %v276_v2  ;;  %4029 = vmatmul.msk.f32.gmra.mxu3 %vm141_vm8, %v276_v2  ;;  %v1140_v2 = vsel %vm9580_vm4, 1, %v9606_v6 }
  0x42   :  { %1279 = vperm.xlu0 %4063, %v1128_v3   ;;  %1285 = vperm.xlu2 %4065, %v1130_v4   ;;  %v4807_v3 = vadd.s32 184, %v4297_v7  ;;  %v252_v4 = vld [vmem:[%s9539_s2 + $0x60] sm:$0xff] }
  0x43   :  { %1282 = vperm.xlu1 %4064, %v1129_v8   ;;  %v284_v8 = vld [vmem:[%s9539_s2 + $0x160] sm:$0xff] }
  0x44   :  { %9973 = vst [vmem:[#allocation31_spill] sm:$0xff] %v4807_v3  ;;  %vm9581_vm0 = vcmp.eq.s32.totalorder %v4807_v3, %v4461_v47  ;;  %vm9582_vm4 = vcmp.eq.s32.totalorder %v4807_v3, %v4294_v5 }
  0x48   :  { %3929 = vmatmul.msk.f32.gmra.mxu0 %vm141_vm8, %v245_v11  ;;  %3963 = vmatmul.msk.f32.gmra.mxu1 %vm141_vm8, %v245_v11  ;;  %v1141_v11 = vsel %vm9583_vm3, 1, %v9606_v6 }
  0x49   :  { %3996 = vmatmul.msk.f32.gmra.mxu2 %vm141_vm8, %v277_v14  ;;  %4030 = vmatmul.msk.f32.gmra.mxu3 %vm141_vm8, %v277_v14  ;;  %v1142_v14 = vsel %vm9581_vm0, 1, %v9606_v6 }
  0x4a   :  { %1189 = vperm.xlu0 %4063, %v1098_v16   ;;  %1192 = vperm.xlu2 %4065, %v1099_v17   ;;  %v1109_v16 = vsel %vm9582_vm4, 1, %v9606_v6  ;;  %v4836_v17 = vadd.s32 192, %v4297_v7 }
  0x4b   :  { %1288 = vperm.xlu1 %4064, %v1131_v20  }
  0x4c   :  { %9974 = vst [vmem:[#allocation32_spill] sm:$0xff] %v4836_v17  ;;  %vm9585_vm0 = vcmp.eq.s32.totalorder %v4836_v17, %v4294_v5  ;;  %vm9586_vm3 = vcmp.eq.s32.totalorder %v4836_v17, %v4461_v47 }
  0x50   :  { %3930 = vmatmul.msk.f32.gmra.mxu0 %vm141_vm8, %v246_v22  ;;  %3964 = vmatmul.msk.f32.gmra.mxu1 %vm141_vm8, %v246_v22  ;;  %v4843_v22 = vadd.s32 200, %v4297_v7 }
  0x51   :  { %3997 = vmatmul.msk.f32.gmra.mxu2 %vm141_vm8, %v278_v24  ;;  %4031 = vmatmul.msk.f32.gmra.mxu3 %vm141_vm8, %v278_v24  ;;  %v253_v24 = vld [vmem:[%s9539_s2 + $0x68] sm:$0xff] }
  0x52   :  { %1291 = vperm.xlu0 %4063, %v1132_v25   ;;  %1294 = vperm.xlu2 %4065, %v1133_v26   ;;  %9975 = vst [vmem:[#allocation33_spill] sm:$0xff] %v4843_v22  ;;  %vm9584_vm4 = vcmp.eq.s32.totalorder %v4843_v22, %v4294_v5  ;;  %v285_v25 = vld [vmem:[%s9539_s2 + $0x168] sm:$0xff]  ;;  %v1110_v26 = vsel %vm9585_vm0, 1, %v9606_v6 }
  0x53   :  { %1195 = vperm.xlu1 %4064, %v1100_v27  }
  0x58   :  { %3931 = vmatmul.msk.f32.gmra.mxu0 %vm141_vm8, %v247_v32  ;;  %3965 = vmatmul.msk.f32.gmra.mxu1 %vm141_vm8, %v247_v32  ;;  %v1111_v32 = vsel %vm9584_vm4, 1, %v9606_v6  ;;  %vm9588_vm4 = vcmp.eq.s32.totalorder %v4843_v22, %v4461_v47 }
  0x59   :  { %3998 = vmatmul.msk.f32.gmra.mxu2 %vm141_vm8, %v279_v34  ;;  %4032 = vmatmul.msk.f32.gmra.mxu3 %vm141_vm8, %v279_v34  ;;  %v1143_v34 = vsel %vm9586_vm3, 1, %v9606_v6 }
  0x5a   :  { %1198 = vperm.xlu0 %4063, %v1101_v35   ;;  %1201 = vperm.xlu2 %4065, %v1102_v36  }
  0x5b   :  { %1297 = vperm.xlu1 %4064, %v1134_v37   ;;  %v4880_v37 = vadd.s32 208, %v4297_v7 }
  0x5d   :  { %9976 = vst [vmem:[#allocation34_spill] sm:$0xff] %v4880_v37  ;;  %vm9589_vm0 = vcmp.eq.s32.totalorder %v4880_v37, %v4461_v47  ;;  %vm9587_vm3 = vcmp.eq.s32.totalorder %v4880_v37, %v4294_v5 }
  0x60   :  { %3932 = vmatmul.msk.f32.gmra.mxu0 %vm141_vm8, %v248_v41  ;;  %3966 = vmatmul.msk.f32.gmra.mxu1 %vm141_vm8, %v248_v41 }
  0x61   :  { %3999 = vmatmul.msk.f32.gmra.mxu2 %vm141_vm8, %v280_v42  ;;  %4033 = vmatmul.msk.f32.gmra.mxu3 %vm141_vm8, %v280_v42  ;;  %v254_v42 = vld [vmem:[%s9539_s2 + $0x70] sm:$0xff] }
  0x62   :  { %1300 = vperm.xlu0 %4063, %v1135_v43   ;;  %1303 = vperm.xlu2 %4065, %v1136_v44   ;;  %v286_v43 = vld [vmem:[%s9539_s2 + $0x170] sm:$0xff]  ;;  %v1144_v44 = vsel %vm9588_vm4, 1, %v9606_v6 }
  0x63   :  { %1204 = vperm.xlu1 %4064, %v1103_v45   ;;  %v4900_v45 = vpop.permute.xlu2 %1165 }
  0x68   :  { %3933 = vmatmul.msk.f32.gmra.mxu0 %vm141_vm8, %v249_v49  ;;  %3967 = vmatmul.msk.f32.gmra.mxu1 %vm141_vm8, %v249_v49  ;;  %v1145_v49 = vsel %vm9589_vm0, 1, %v9606_v6 }
  0x69   :  { %4000 = vmatmul.msk.f32.gmra.mxu2 %vm141_vm8, %v281_v50  ;;  %4034 = vmatmul.msk.f32.gmra.mxu3 %vm141_vm8, %v281_v50  ;;  %v1112_v50 = vsel %vm9587_vm3, 1, %v9606_v6 }
  0x6a   :  { %1207 = vperm.xlu0 %4063, %v1104_v51   ;;  %1210 = vperm.xlu2 %4065, %v1105_v52   ;;  %v4913_v51 = vadd.s32 216, %v4297_v7  ;;  %v4918_v52 = vadd.s32 224, %v4297_v7 }
  0x6b   :  { %1306 = vperm.xlu1 %4064, %v1137_v53  }
  0x6c   :  { %9977 = vst [vmem:[#allocation35_spill] sm:$0xff] %v4913_v51  ;;  %vm9591_vm3 = vcmp.eq.s32.totalorder %v4913_v51, %v4294_v5  ;;  %vm9590_vm4 = vcmp.eq.s32.totalorder %v4918_v52, %v4294_v5  ;;  %vm9592_vm0 = vcmp.eq.s32.totalorder %v4913_v51, %v4461_v47 }
  0x6d   :  { %9978 = vst [vmem:[#allocation36_spill] sm:$0xff] %v4918_v52 }
  0x70   :  { %3934 = vmatmul.msk.f32.gmra.mxu0 %vm141_vm8, %v250_v55  ;;  %3968 = vmatmul.msk.f32.gmra.mxu1 %vm141_vm8, %v250_v55 }
  0x71   :  { %4001 = vmatmul.msk.f32.gmra.mxu2 %vm141_vm8, %v282_v56  ;;  %4035 = vmatmul.msk.f32.gmra.mxu3 %vm141_vm8, %v282_v56 }
  0x72   :  { %1309 = vperm.xlu0 %4063, %v1138_v57   ;;  %1312 = vperm.xlu2 %4065, %v1139_v58   ;;  %v255_v58 = vld [vmem:[%s9539_s2 + $0x78] sm:$0xff] }
  0x73   :  { %1213 = vperm.xlu1 %4064, %v1106_v59   ;;  %v287_v59 = vld [vmem:[%s9539_s2 + $0x178] sm:$0xff] }
  0x78   :  { %3935 = vmatmul.msk.f32.gmra.mxu0 %vm141_vm8, %v251_v62  ;;  %3969 = vmatmul.msk.f32.gmra.mxu1 %vm141_vm8, %v251_v62  ;;  %v1113_v62 = vsel %vm9591_vm3, 1, %v9606_v6 }
  0x79   :  { %4002 = vmatmul.msk.f32.gmra.mxu2 %vm141_vm8, %v283_v63  ;;  %4036 = vmatmul.msk.f32.gmra.mxu3 %vm141_vm8, %v283_v63  ;;  %v4838_v20 = vpop.permute.xlu0 %1153 }
  0x7a   :  { %1216 = vperm.xlu0 %4063, %v1107_v0   ;;  %1219 = vperm.xlu2 %4065, %v1108_v1   ;;  %v1114_v1 = vsel %vm9590_vm4, 1, %v9606_v6  ;;  %vm9595_vm4 = vcmp.eq.s32.totalorder %v4918_v52, %v4461_v47 }
  0x7b   :  { %1315 = vperm.xlu1 %4064, %v1140_v2   ;;  %v4861_v27 = vpop.permute.xlu1 %1159  ;;  %v1146_v2 = vsel %vm9592_vm0, 1, %v9606_v6 }
  0x80   :  { %3936 = vmatmul.msk.f32.gmra.mxu0 %vm141_vm8, %v252_v4  ;;  %3970 = vmatmul.msk.f32.gmra.mxu1 %vm141_vm8, %v252_v4  ;;  %v4961_v4 = vadd.s32 232, %v4297_v7 }
  0x81   :  { %4003 = vmatmul.msk.f32.gmra.mxu2 %vm141_vm8, %v284_v8  ;;  %4037 = vmatmul.msk.f32.gmra.mxu3 %vm141_vm8, %v284_v8  ;;  %v4882_v41 = vpop.permute.xlu0 %1156  ;;  %v4963_v8 = vpop.permute.xlu2 %1168 }
  0x82   :  { %1318 = vperm.xlu0 %4063, %v1141_v11   ;;  %1321 = vperm.xlu2 %4065, %v1142_v14   ;;  %9979 = vst [vmem:[#allocation37_spill] sm:$0xff] %v4961_v4  ;;  %vm9594_vm3 = vcmp.eq.s32.totalorder %v4961_v4, %v4461_v47  ;;  %vm9593_vm0 = vcmp.eq.s32.totalorder %v4961_v4, %v4294_v5  ;;  %v5044_v4 = vadd.s32 256, %v4297_v7 }
  0x83   :  { %1222 = vperm.xlu1 %4064, %v1109_v16  }
  0x84   :  { %v4920_v53 = vpop.permute.xlu1 %1162  ;;  %9982 = vst [vmem:[#allocation40_spill] sm:$0xff] %v5044_v4  ;;  %vm9658_vm2 = vcmp.eq.s32.totalorder %v5044_v4, %v4294_v5 }
  0x88   :  { %3937 = vmatmul.msk.f32.gmra.mxu0 %vm141_vm8, %v253_v24  ;;  %3971 = vmatmul.msk.f32.gmra.mxu1 %vm141_vm8, %v253_v24  ;;  %v4875_v35 = vpop.f32.mrf.mxu0  ;;  %v4877_v36 = vpop.f32.mrf.mxu1  ;;  %v256_v24 = vld [vmem:[%s9539_s2 + $0x80] sm:$0xff] }
  0x89   :  { %4004 = vmatmul.msk.f32.gmra.mxu2 %vm141_vm8, %v285_v25  ;;  %4038 = vmatmul.msk.f32.gmra.mxu3 %vm141_vm8, %v285_v25  ;;  %v288_v25 = vld [vmem:[%s9539_s2 + $0x180] sm:$0xff] }
  0x8a   :  { %1225 = vperm.xlu0 %4063, %v1110_v26   ;;  %1228 = vperm.xlu2 %4065, %v1111_v32   ;;  %v4928_v57 = vpop.permute.xlu0 %1171  ;;  %v1147_v32 = vsel %vm9595_vm4, 1, %v9606_v6 }
  0x8b   :  { %1324 = vperm.xlu1 %4064, %v1143_v34   ;;  %v1148_v34 = vsel %vm9594_vm3, 1, %v9606_v6 }
  0x8c   :  { %v4965_v11 = vpop.permute.xlu1 %1174 }
  0x90   :  { %3938 = vmatmul.msk.f32.gmra.mxu0 %vm141_vm8, %v254_v42  ;;  %3972 = vmatmul.msk.f32.gmra.mxu1 %vm141_vm8, %v254_v42  ;;  %v4922_v55 = vpop.f32.mrf.mxu0  ;;  %v4924_v56 = vpop.f32.mrf.mxu1  ;;  %v1115_v42 = vsel %vm9593_vm0, 1, %v9606_v6 }
  0x91   :  { %4005 = vmatmul.msk.f32.gmra.mxu2 %vm141_vm8, %v286_v43  ;;  %4039 = vmatmul.msk.f32.gmra.mxu3 %vm141_vm8, %v286_v43  ;;  %v5000_v43 = vadd.s32 240, %v4297_v7 }
  0x92   :  { %1327 = vperm.xlu0 %4063, %v1144_v44   ;;  %1330 = vperm.xlu2 %4065, %v1145_v49   ;;  %v5005_v44 = vadd.s32 248, %v4297_v7 }
  0x93   :  { %1231 = vperm.xlu1 %4064, %v1112_v50   ;;  %v4983_v26 = vpop.permute.xlu0 %1180  ;;  %9980 = vst [vmem:[#allocation38_spill] sm:$0xff] %v5000_v43  ;;  %vm9598_vm0 = vcmp.eq.s32.totalorder %v5000_v43, %v4294_v5  ;;  %vm9610_vm4 = vcmp.eq.s32.totalorder %v5000_v43, %v4461_v47 }
  0x94   :  { %v4946_v63 = vpop.f32.mrf.mxu2  ;;  %9981 = vst [vmem:[#allocation39_spill] sm:$0xff] %v5005_v44  ;;  %vm9605_vm3 = vcmp.eq.s32.totalorder %v5005_v44, %v4294_v5 }
  0x95   :  { %v4948_v0 = vpop.f32.mrf.mxu3 }
  0x98   :  { %3939 = vmatmul.msk.f32.gmra.mxu0 %vm141_vm8, %v255_v58  ;;  %3973 = vmatmul.msk.f32.gmra.mxu1 %vm141_vm8, %v255_v58  ;;  %v5007_v58 = vpop.permute.xlu2 %1177 }
  0x99   :  { %4006 = vmatmul.msk.f32.gmra.mxu2 %vm141_vm8, %v287_v59  ;;  %4040 = vmatmul.msk.f32.gmra.mxu3 %vm141_vm8, %v287_v59  ;;  %vm1358_vm7 = vcmp.eq.s32.totalorder %v5007_v58, 1 }
  0x9a   :  { %1234 = vperm.xlu0 %4063, %v1113_v62   ;;  %1237 = vperm.xlu2 %4065, %v1114_v1   ;;  %v257_v1 = vld [vmem:[%s9539_s2 + $0x88] sm:$0xff] }
  0x9b   :  { %1333 = vperm.xlu1 %4064, %v1146_v2   ;;  %v289_v2 = vld [vmem:[%s9539_s2 + $0x188] sm:$0xff] }
  0x9c   :  { %v217_v49 = vpop.f32.mrf.mxu2 }
  0x9d   :  { %v4969_v14 = vpop.f32.mrf.mxu0  ;;  %v4971_v16 = vpop.f32.mrf.mxu1 }
  0x9e   :  { %v237_v50 = vpop.f32.mrf.mxu3 }
  0x9f   :  { %v5048_v52 = vperm.slane %v237_v50, 0  ;;  %v9985_v50 = vmov 0  }
  0xa0   :  { %3940 = vmatmul.msk.f32.gmra.mxu0 %vm141_vm8, %v256_v24  ;;  %3974 = vmatmul.msk.f32.gmra.mxu1 %vm141_vm8, %v256_v24  ;;  %v5025_v24 = vpop.permute.xlu1 %1183 }
  0xa1   :  { %4007 = vmatmul.msk.f32.gmra.mxu2 %vm141_vm8, %v288_v25  ;;  %4041 = vmatmul.msk.f32.gmra.mxu3 %vm141_vm8, %v288_v25  ;;  %v1116_v25 = vsel %vm9598_vm0, 1, %v9606_v6  ;;  %9984 = vst [vmem:[#allocation42_spill] sm:$0xff] %v5048_v52 }
  0xa2   :  { %1336 = vperm.xlu0 %4063, %v1147_v32   ;;  %1339 = vperm.xlu2 %4065, %v1148_v34   ;;  %v1117_v32 = vsel %vm9605_vm3, 1, %v9606_v6  ;;  %v1149_v34 = vsel %vm9610_vm4, 1, %v9606_v6  ;;  %vm9669_vm3 = vcmp.eq.s32.totalorder %v5005_v44, %v4461_v47  ;;  %vm9689_vm4 = vcmp.eq.s32.totalorder %v5044_v4, %v4461_v47 }
  0xa3   :  { %1240 = vperm.xlu1 %4064, %v1115_v42   ;;  %v1253_v42 = vpop.permute.xlu0 %1252 }
  0xa4   :  { %vm1383_vm0 = vcmp.eq.s32.totalorder %v1253_v42, 1  ;;  %v1118_v42 = vsel %vm9658_vm2, 1, %v9985_v50  ;;  %vm1359_vm2 = vcmp.eq.s32.totalorder %v4983_v26, 1  ;;  %v265_v26 = vld [vmem:[%s9539_s2 + $0xc8] sm:$0xff] }
  0xa5   :  { %v5011_v59 = vpop.f32.mrf.mxu0  ;;  %v5013_v62 = vpop.f32.mrf.mxu1 }
  0xa8   :  { %3941 = vmatmul.msk.f32.gmra.mxu0 %vm141_vm8, %v257_v1  ;;  %3975 = vmatmul.msk.f32.gmra.mxu1 %vm141_vm8, %v257_v1  ;;  %v5046_v1 = vperm.slane %v217_v49, 0  ;;  %v258_v49 = vld [vmem:[%s9539_s2 + $0x90] sm:$0xff]  ;;  %v1256_v37 = vpop.permute.xlu1 %1255 }
  0xa9   :  { %4008 = vmatmul.msk.f32.gmra.mxu2 %vm141_vm8, %v289_v2  ;;  %4042 = vmatmul.msk.f32.gmra.mxu3 %vm141_vm8, %v289_v2 }
  0xaa   :  { %1243 = vperm.xlu0 %4063, %v1116_v25   ;;  %9983 = vst [vmem:[#allocation41_spill] sm:$0xff] %v5046_v1  ;;  %1246 = vperm.xlu2 %4065, %v1117_v32   ;;  %v1150_v32 = vsel %vm9669_vm3, 1, %v9985_v50  ;;  %vm1360_vm3 = vcmp.eq.s32.totalorder %v5025_v24, 1  ;;  %v298_v24 = vld [vmem:[%s9539_s2 + $0x1d0] sm:$0xff] }
  0xab   :  { %1342 = vperm.xlu1 %4064, %v1149_v34   ;;  %v1151_v34 = vsel %vm9689_vm4, 1, %v9985_v50  ;;  %vm1353_vm4 = vcmp.eq.s32.totalorder %v4920_v53, 1  ;;  %v5544_v53 = vperm.slane %v4948_v0, 0 }
  0xac   :  { %v767_v51 = vpop.f32.mrf.mxu2  ;;  %v883_v22 = vpop.f32.mrf.mxu3 }
  0xad   :  { %v5053_v6 = vsel %vm1383_vm0, %v5046_v1, %v767_v51  ;;  %v5056_v2 = vsel %vm1383_vm0, %v5048_v52, %v883_v22  ;;  %v5058_v43 = vpop.f32.mrf.mxu0  ;;  %v5060_v25 = vpop.f32.mrf.mxu1  ;;  %v290_v51 = vld [vmem:[%s9539_s2 + $0x190] sm:$0xff]  ;;  %vm1384_vm0 = vcmp.eq.s32.totalorder %v1256_v37, 1  ;;  %v291_v37 = vld [vmem:[%s9539_s2 + $0x198] sm:$0xff] }
  0xae   :  { %v5072_v22 = vpop.permute.xlu2 %1186 }
  0xb0   :  { %3942 = vmatmul.msk.f32.gmra.mxu0 %vm141_vm8, %v258_v49  ;;  %3976 = vmatmul.msk.f32.gmra.mxu1 %vm141_vm8, %v258_v49 }
  0xb1   :  { %4009 = vmatmul.msk.f32.gmra.mxu2 %vm141_vm8, %v290_v51  ;;  %4043 = vmatmul.msk.f32.gmra.mxu3 %vm141_vm8, %v290_v51  ;;  %v259_v51 = vld [vmem:[%s9539_s2 + $0x98] sm:$0xff] }
  0xb2   :  { %1345 = vperm.xlu0 %4063, %v1150_v32   ;;  %1348 = vperm.xlu2 %4065, %v1151_v34  }
  0xb3   :  { %1249 = vperm.xlu1 %4064, %v1118_v42  }
  0xb4   :  { %v770_v49 = vpop.f32.mrf.mxu2  ;;  %v886_v44 = vpop.f32.mrf.mxu3 }
  0xb5   :  { %v5091_v17 = vsel %vm1384_vm0, %v5046_v1, %v770_v49  ;;  %v5094_v3 = vsel %vm1384_vm0, %v5048_v52, %v886_v44  ;;  %v5096_v61 = vpop.f32.mrf.mxu0  ;;  %v5098_v50 = vpop.f32.mrf.mxu1 }
  0xb6   :  { %v1259_v32 = vpop.permute.xlu2 %1258 }
  0xb7   :  { %vm1385_vm0 = vcmp.eq.s32.totalorder %v1259_v32, 1  ;;  %v1262_v32 = vpop.permute.xlu0 %1261 }
  0xb8   :  { %3943 = vmatmul.msk.f32.gmra.mxu0 %vm141_vm8, %v259_v51  ;;  %3977 = vmatmul.msk.f32.gmra.mxu1 %vm141_vm8, %v259_v51  ;;  %v260_v51 = vld [vmem:[%s9539_s2 + $0xa0] sm:$0xff] }
  0xb9   :  { %4010 = vmatmul.msk.f32.gmra.mxu2 %vm141_vm8, %v291_v37  ;;  %4044 = vmatmul.msk.f32.gmra.mxu3 %vm141_vm8, %v291_v37  ;;  %v292_v37 = vld [vmem:[%s9539_s2 + $0x1a0] sm:$0xff] }
  0xbc   :  { %v773_v44 = vpop.f32.mrf.mxu2  ;;  %v889_v34 = vpop.f32.mrf.mxu3 }
  0xbd   :  { %v5111_v42 = vsel %vm1385_vm0, %v5046_v1, %v773_v44  ;;  %v5114_v49 = vsel %vm1385_vm0, %v5048_v52, %v889_v34  ;;  %v5116_v4 = vpop.f32.mrf.mxu0  ;;  %v5118_v5 = vpop.f32.mrf.mxu1  ;;  %vm1386_vm0 = vcmp.eq.s32.totalorder %v1262_v32, 1 }
  0xbe   :  { %v1265_v32 = vpop.permute.xlu1 %1264 }
  0xc0   :  { %3944 = vmatmul.msk.f32.gmra.mxu0 %vm141_vm8, %v260_v51  ;;  %3978 = vmatmul.msk.f32.gmra.mxu1 %vm141_vm8, %v260_v51  ;;  %v261_v51 = vld [vmem:[%s9539_s2 + $0xa8] sm:$0xff] }
  0xc1   :  { %4011 = vmatmul.msk.f32.gmra.mxu2 %vm141_vm8, %v292_v37  ;;  %4045 = vmatmul.msk.f32.gmra.mxu3 %vm141_vm8, %v292_v37  ;;  %v293_v37 = vld [vmem:[%s9539_s2 + $0x1a8] sm:$0xff] }
  0xc4   :  { %v776_v44 = vpop.f32.mrf.mxu2  ;;  %v892_v34 = vpop.f32.mrf.mxu3 }
  0xc5   :  { %v5131_v60 = vsel %vm1386_vm0, %v5046_v1, %v776_v44  ;;  %v5134_v54 = vsel %vm1386_vm0, %v5048_v52, %v892_v34  ;;  %v5136_v48 = vpop.f32.mrf.mxu0  ;;  %v5138_v46 = vpop.f32.mrf.mxu1  ;;  %vm1387_vm0 = vcmp.eq.s32.totalorder %v1265_v32, 1 }
  0xc6   :  { %v1268_v32 = vpop.permute.xlu2 %1267 }
  0xc8   :  { %3945 = vmatmul.msk.f32.gmra.mxu0 %vm141_vm8, %v261_v51  ;;  %3979 = vmatmul.msk.f32.gmra.mxu1 %vm141_vm8, %v261_v51  ;;  %v262_v51 = vld [vmem:[%s9539_s2 + $0xb0] sm:$0xff] }
  0xc9   :  { %4012 = vmatmul.msk.f32.gmra.mxu2 %vm141_vm8, %v293_v37  ;;  %4046 = vmatmul.msk.f32.gmra.mxu3 %vm141_vm8, %v293_v37  ;;  %v294_v37 = vld [vmem:[%s9539_s2 + $0x1b0] sm:$0xff] }
  0xcc   :  { %v779_v44 = vpop.f32.mrf.mxu2  ;;  %v895_v34 = vpop.f32.mrf.mxu3 }
  0xcd   :  { %v5151_v38 = vsel %vm1387_vm0, %v5046_v1, %v779_v44  ;;  %v5154_v29 = vsel %vm1387_vm0, %v5048_v52, %v895_v34  ;;  %v5156_v28 = vpop.f32.mrf.mxu0  ;;  %v5158_v21 = vpop.f32.mrf.mxu1  ;;  %vm1388_vm0 = vcmp.eq.s32.totalorder %v1268_v32, 1 }
  0xce   :  { %v1271_v32 = vpop.permute.xlu0 %1270 }
  0xd0   :  { %3946 = vmatmul.msk.f32.gmra.mxu0 %vm141_vm8, %v262_v51  ;;  %3980 = vmatmul.msk.f32.gmra.mxu1 %vm141_vm8, %v262_v51  ;;  %v263_v51 = vld [vmem:[%s9539_s2 + $0xb8] sm:$0xff] }
  0xd1   :  { %4013 = vmatmul.msk.f32.gmra.mxu2 %vm141_vm8, %v294_v37  ;;  %4047 = vmatmul.msk.f32.gmra.mxu3 %vm141_vm8, %v294_v37  ;;  %v295_v37 = vld [vmem:[%s9539_s2 + $0x1b8] sm:$0xff] }
  0xd4   :  { %v782_v44 = vpop.f32.mrf.mxu2  ;;  %v898_v34 = vpop.f32.mrf.mxu3 }
  0xd5   :  { %v5171_v10 = vsel %vm1388_vm0, %v5046_v1, %v782_v44  ;;  %v5174_v9 = vsel %vm1388_vm0, %v5048_v52, %v898_v34  ;;  %v5176_v39 = vpop.f32.mrf.mxu0  ;;  %v5178_v40 = vpop.f32.mrf.mxu1  ;;  %vm1389_vm0 = vcmp.eq.s32.totalorder %v1271_v32, 1 }
  0xd6   :  { %v1274_v32 = vpop.permute.xlu1 %1273 }
  0xd8   :  { %3947 = vmatmul.msk.f32.gmra.mxu0 %vm141_vm8, %v263_v51  ;;  %3981 = vmatmul.msk.f32.gmra.mxu1 %vm141_vm8, %v263_v51  ;;  %v264_v51 = vld [vmem:[%s9539_s2 + $0xc0] sm:$0xff] }
  0xd9   :  { %4014 = vmatmul.msk.f32.gmra.mxu2 %vm141_vm8, %v295_v37  ;;  %4048 = vmatmul.msk.f32.gmra.mxu3 %vm141_vm8, %v295_v37  ;;  %v296_v37 = vld [vmem:[%s9539_s2 + $0x1c0] sm:$0xff] }
  0xdc   :  { %v785_v44 = vpop.f32.mrf.mxu2  ;;  %v901_v34 = vpop.f32.mrf.mxu3 }
  0xdd   :  { %v5191_v33 = vsel %vm1389_vm0, %v5046_v1, %v785_v44  ;;  %v5194_v30 = vsel %vm1389_vm0, %v5048_v52, %v901_v34  ;;  %v5196_v31 = vpop.f32.mrf.mxu0  ;;  %v5198_v23 = vpop.f32.mrf.mxu1  ;;  %vm1390_vm0 = vcmp.eq.s32.totalorder %v1274_v32, 1  ;;  %v5212_v44 = vperm.slane %v4922_v55, 0 }
  0xde   :  { %9986 = vst [vmem:[#allocation43_spill] sm:$0xff] %v5194_v30  ;;  %v5215_v34 = vperm.slane %v4924_v56, 0 }
  0xdf   :  { %9987 = vst [vmem:[#allocation44_spill] sm:$0xff] %v5198_v23 }
  0xe0   :  { %3948 = vmatmul.msk.f32.gmra.mxu0 %vm141_vm8, %v264_v51  ;;  %3982 = vmatmul.msk.f32.gmra.mxu1 %vm141_vm8, %v264_v51  ;;  %v1427_v0 = vsel %vm1353_vm4, %v5215_v34, %v5098_v50 }
  0xe1   :  { %4015 = vmatmul.msk.f32.gmra.mxu2 %vm141_vm8, %v296_v37  ;;  %4049 = vmatmul.msk.f32.gmra.mxu3 %vm141_vm8, %v296_v37 }
  0xe4   :  { %v788_v18 = vpop.f32.mrf.mxu2  ;;  %v904_v12 = vpop.f32.mrf.mxu3 }
  0xe5   :  { %v5218_v19 = vsel %vm1390_vm0, %v5046_v1, %v788_v18  ;;  %v5221_v51 = vsel %vm1390_vm0, %v5048_v52, %v904_v12  ;;  %v456_v13 = vpop.f32.mrf.mxu0  ;;  %v572_v7 = vpop.f32.mrf.mxu1  ;;  %v297_v18 = vld [vmem:[%s9539_s2 + $0x1c8] sm:$0xff] }
  0xe6   :  { %9988 = vst [vmem:[#allocation45_spill] sm:$0xff] %v5221_v51  ;;  %v5227_v55 = vsel %vm1359_vm2, %v5212_v44, %v456_v13  ;;  %v5230_v56 = vsel %vm1359_vm2, %v5215_v34, %v572_v7  ;;  %v1277_v12 = vpop.permute.xlu2 %1276 }
  0xe7   :  { %9989 = vst [vmem:[#allocation46_spill] sm:$0xff] %v5230_v56  ;;  %vm1391_vm0 = vcmp.eq.s32.totalorder %v1277_v12, 1  ;;  %v1280_v12 = vpop.permute.xlu0 %1279 }
  0xe8   :  { %3949 = vmatmul.msk.f32.gmra.mxu0 %vm141_vm8, %v265_v26  ;;  %3983 = vmatmul.msk.f32.gmra.mxu1 %vm141_vm8, %v265_v26  ;;  %v266_v26 = vld [vmem:[%s9539_s2 + $0xd0] sm:$0xff]  ;;  %vm1392_vm2 = vcmp.eq.s32.totalorder %v1280_v12, 1 }
  0xe9   :  { %4016 = vmatmul.msk.f32.gmra.mxu2 %vm141_vm8, %v297_v18  ;;  %4050 = vmatmul.msk.f32.gmra.mxu3 %vm141_vm8, %v297_v18 }
  0xec   :  { %v791_v13 = vpop.f32.mrf.mxu2  ;;  %v907_v37 = vpop.f32.mrf.mxu3 }
  0xed   :  { %v5241_v7 = vsel %vm1391_vm0, %v5046_v1, %v791_v13  ;;  %v5244_v32 = vsel %vm1391_vm0, %v5048_v52, %v907_v37  ;;  %v459_v47 = vpop.f32.mrf.mxu0  ;;  %v575_v15 = vpop.f32.mrf.mxu1  ;;  %vm1361_vm0 = vcmp.eq.s32.totalorder %v5072_v22, 1  ;;  %v299_v22 = vld [vmem:[%s9539_s2 + $0x1d8] sm:$0xff] }
  0xee   :  { %9990 = vst [vmem:[#allocation47_spill] sm:$0xff] %v5244_v32  ;;  %v5250_v56 = vsel %vm1360_vm3, %v5212_v44, %v459_v47  ;;  %v5253_v18 = vsel %vm1360_vm3, %v5215_v34, %v575_v15  ;;  %v1286_v12 = vpop.permute.xlu2 %1285 }
  0xef   :  { %9991 = vst [vmem:[#allocation48_spill] sm:$0xff] %v5250_v56 }
  0xf0   :  { %9992 = vst [vmem:[#allocation49_spill] sm:$0xff] %v5253_v18  ;;  %3950 = vmatmul.msk.f32.gmra.mxu0 %vm141_vm8, %v266_v26  ;;  %3984 = vmatmul.msk.f32.gmra.mxu1 %vm141_vm8, %v266_v26  ;;  %v267_v26 = vld [vmem:[%s9539_s2 + $0xd8] sm:$0xff] }
  0xf1   :  { %4017 = vmatmul.msk.f32.gmra.mxu2 %vm141_vm8, %v298_v24  ;;  %4051 = vmatmul.msk.f32.gmra.mxu3 %vm141_vm8, %v298_v24 }
  0xf4   :  { %v794_v47 = vpop.f32.mrf.mxu2  ;;  %v910_v13 = vpop.f32.mrf.mxu3 }
  0xf5   :  { %v5264_v15 = vsel %vm1392_vm2, %v5046_v1, %v794_v47  ;;  %v5267_v37 = vsel %vm1392_vm2, %v5048_v52, %v910_v13  ;;  %v462_v18 = vpop.f32.mrf.mxu0  ;;  %v578_v32 = vpop.f32.mrf.mxu1 }
  0xf6   :  { %9993 = vst [vmem:[#allocation50_spill] sm:$0xff] %v5267_v37  ;;  %v5273_v51 = vsel %vm1361_vm0, %v5212_v44, %v462_v18  ;;  %v5276_v24 = vsel %vm1361_vm0, %v5215_v34, %v578_v32  ;;  %v1283_v47 = vpop.permute.xlu1 %1282  ;;  %v1190_v18 = vpop.permute.xlu0 %1189  ;;  %vm1394_vm0 = vcmp.eq.s32.totalorder %v1286_v12, 1 }
  0xf7   :  { %9994 = vst [vmem:[#allocation51_spill] sm:$0xff] %v5273_v51  ;;  %vm1393_vm3 = vcmp.eq.s32.totalorder %v1283_v47, 1  ;;  %vm1362_vm2 = vcmp.eq.s32.totalorder %v1190_v18, 1  ;;  %v300_v47 = vld [vmem:[%s9539_s2 + $0x1e0] sm:$0xff]  ;;  %v1193_v18 = vpop.permute.xlu2 %1192 }
  0xf8   :  { %9995 = vst [vmem:[#allocation52_spill] sm:$0xff] %v5276_v24  ;;  %3951 = vmatmul.msk.f32.gmra.mxu0 %vm141_vm8, %v267_v26  ;;  %3985 = vmatmul.msk.f32.gmra.mxu1 %vm141_vm8, %v267_v26  ;;  %v268_v26 = vld [vmem:[%s9539_s2 + $0xe0] sm:$0xff] }
  0xf9   :  { %4018 = vmatmul.msk.f32.gmra.mxu2 %vm141_vm8, %v299_v22  ;;  %4052 = vmatmul.msk.f32.gmra.mxu3 %vm141_vm8, %v299_v22 }
  0xfc   :  { %v797_v13 = vpop.f32.mrf.mxu2  ;;  %v913_v32 = vpop.f32.mrf.mxu3 }
  0xfd   :  { %v5286_v24 = vsel %vm1393_vm3, %v5046_v1, %v797_v13  ;;  %v5289_v37 = vsel %vm1393_vm3, %v5048_v52, %v913_v32  ;;  %v465_v51 = vpop.f32.mrf.mxu0  ;;  %v581_v30 = vpop.f32.mrf.mxu1  ;;  %vm1363_vm3 = vcmp.eq.s32.totalorder %v1193_v18, 1 }
  0xfe   :  { %9996 = vst [vmem:[#allocation53_spill] sm:$0xff] %v5286_v24  ;;  %v5295_v23 = vsel %vm1362_vm2, %v5212_v44, %v465_v51  ;;  %v5298_v22 = vsel %vm1362_vm2, %v5215_v34, %v581_v30  ;;  %v1289_v18 = vpop.permute.xlu1 %1288 }
  0xff   :  { %9997 = vst [vmem:[#allocation54_spill] sm:$0xff] %v5289_v37  ;;  %vm1395_vm2 = vcmp.eq.s32.totalorder %v1289_v18, 1 }
 0x100   :  { %9998 = vst [vmem:[#allocation55_spill] sm:$0xff] %v5295_v23  ;;  %3952 = vmatmul.msk.f32.gmra.mxu0 %vm141_vm8, %v268_v26  ;;  %3986 = vmatmul.msk.f32.gmra.mxu1 %vm141_vm8, %v268_v26  ;;  %v269_v26 = vld [vmem:[%s9539_s2 + $0xe8] sm:$0xff] }
 0x101   :  { %9999 = vst [vmem:[#allocation56_spill] sm:$0xff] %v5298_v22  ;;  %4019 = vmatmul.msk.f32.gmra.mxu2 %vm141_vm8, %v300_v47  ;;  %4053 = vmatmul.msk.f32.gmra.mxu3 %vm141_vm8, %v300_v47  ;;  %v301_v47 = vld [vmem:[%s9539_s2 + $0x1e8] sm:$0xff] }
 0x104   :  { %v800_v13 = vpop.f32.mrf.mxu2  ;;  %v916_v51 = vpop.f32.mrf.mxu3 }
 0x105   :  { %v5308_v30 = vsel %vm1394_vm0, %v5046_v1, %v800_v13  ;;  %v5311_v32 = vsel %vm1394_vm0, %v5048_v52, %v916_v51  ;;  %v468_v22 = vpop.f32.mrf.mxu0  ;;  %v584_v37 = vpop.f32.mrf.mxu1  ;;  %vm1350_vm0 = vcmp.eq.s32.totalorder %v4838_v20, 1  ;;  %v5508_v20 = vperm.slane %v4946_v63, 0 }
 0x106   :  { %10000 = vst [vmem:[#allocation57_spill] sm:$0xff] %v5308_v30  ;;  %v5317_v23 = vsel %vm1363_vm3, %v5212_v44, %v468_v22  ;;  %v5320_v12 = vsel %vm1363_vm3, %v5215_v34, %v584_v37  ;;  %vm1352_vm3 = vcmp.eq.s32.totalorder %v4861_v27, 1 }
 0x107   :  { %10001 = vst [vmem:[#allocation58_spill] sm:$0xff] %v5311_v32  ;;  %v304_v32 = vld [vmem:[%s9539_s2 + $0x200] sm:$0xff]  ;;  %v5557_v27 = vadd.f32 %v5508_v20, %v5053_v6 }
 0x108   :  { %10002 = vst [vmem:[#allocation59_spill] sm:$0xff] %v5317_v23  ;;  %3953 = vmatmul.msk.f32.gmra.mxu0 %vm141_vm8, %v269_v26  ;;  %3987 = vmatmul.msk.f32.gmra.mxu1 %vm141_vm8, %v269_v26  ;;  %v270_v26 = vld [vmem:[%s9539_s2 + $0xf0] sm:$0xff] }
 0x109   :  { %10003 = vst [vmem:[#allocation60_spill] sm:$0xff] %v5320_v12  ;;  %4020 = vmatmul.msk.f32.gmra.mxu2 %vm141_vm8, %v301_v47  ;;  %4054 = vmatmul.msk.f32.gmra.mxu3 %vm141_vm8, %v301_v47  ;;  %v302_v47 = vld [vmem:[%s9539_s2 + $0x1f0] sm:$0xff] }
 0x10a   :  { %10067 = vst [vmem:[#allocation124_spill] sm:$0xff] %v5557_v27 }
 0x10c   :  { %v803_v13 = vpop.f32.mrf.mxu2  ;;  %v919_v22 = vpop.f32.mrf.mxu3 }
 0x10d   :  { %v5330_v51 = vsel %vm1395_vm2, %v5046_v1, %v803_v13  ;;  %v5333_v37 = vsel %vm1395_vm2, %v5048_v52, %v919_v22  ;;  %v5335_v12 = vpop.f32.mrf.mxu0  ;;  %v271_v22 = vld [vmem:[%s9539_s2 + $0xf8] sm:$0xff]  ;;  %v272_v52 = vld [vmem:[%s9539_s2 + $0x100] sm:$0x1]  ;;  %vm1354_vm2 = vcmp.eq.s32.totalorder %v4900_v45, 1 }
 0x10e   :  { %10004 = vst [vmem:[#allocation61_spill] sm:$0xff] %v5330_v51 }
 0x10f   :  { %10005 = vst [vmem:[#allocation62_spill] sm:$0xff] %v5333_v37  ;;  %v303_v37 = vld [vmem:[%s9539_s2 + $0x1f8] sm:$0xff] }
 0x110   :  { %10006 = vst [vmem:[#allocation63_spill] sm:$0xff] %v5335_v12  ;;  %3954 = vmatmul.msk.f32.gmra.mxu0 %vm141_vm8, %v270_v26  ;;  %3988 = vmatmul.msk.f32.gmra.mxu1 %vm141_vm8, %v270_v26 }
 0x111   :  { %4021 = vmatmul.msk.f32.gmra.mxu2 %vm141_vm8, %v302_v47  ;;  %4055 = vmatmul.msk.f32.gmra.mxu3 %vm141_vm8, %v302_v47 }
 0x114   :  { %v5347_v18 = vpop.f32.mrf.mxu2 }
 0x115   :  { %10007 = vst [vmem:[#allocation64_spill] sm:$0xff] %v5347_v18  ;;  %v5349_v13 = vpop.f32.mrf.mxu0 }
 0x116   :  { %10008 = vst [vmem:[#allocation65_spill] sm:$0xff] %v5349_v13  ;;  %v305_v13 = vld [vmem:[%s9539_s2 + $0x208] sm:$0x1] }
 0x118   :  { %3955 = vmatmul.msk.f32.gmra.mxu0 %vm141_vm8, %v271_v22  ;;  %3989 = vmatmul.msk.f32.gmra.mxu1 %vm141_vm8, %v271_v22 }
 0x119   :  { %4022 = vmatmul.msk.f32.gmra.mxu2 %vm141_vm8, %v303_v37  ;;  %4056 = vmatmul.msk.f32.gmra.mxu3 %vm141_vm8, %v303_v37  ;;  %v5375_v37 = vpop.f32.mrf.mxu3 }
 0x11a   :  { %10011 = vst [vmem:[#allocation68_spill] sm:$0xff] %v5375_v37  ;;  %v5394_v37 = vpop.permute.xlu2 %1294 }
 0x11c   :  { %v5361_v26 = vpop.f32.mrf.mxu2 }
 0x11d   :  { %10009 = vst [vmem:[#allocation66_spill] sm:$0xff] %v5361_v26  ;;  %v5363_v47 = vpop.f32.mrf.mxu0 }
 0x11e   :  { %10010 = vst [vmem:[#allocation67_spill] sm:$0xff] %v5363_v47 }
 0x120   :  { %3956 = vmatmul.msk.f32.gmra.mxu0 %vm141_vm8, %v272_v52  ;;  %3990 = vmatmul.msk.f32.gmra.mxu1 %vm141_vm8, %v272_v52 }
 0x121   :  { %4023 = vmatmul.msk.f32.gmra.mxu2 %vm141_vm8, %v304_v32  ;;  %4057 = vmatmul.msk.f32.gmra.mxu3 %vm141_vm8, %v304_v32  ;;  %v5386_v23 = vpop.f32.mrf.mxu3  ;;  %v5392_v32 = vpop.f32.mrf.mxu1 }
 0x122   :  { %10014 = vst [vmem:[#allocation71_spill] sm:$0xff] %v5386_v23  ;;  %v5408_v23 = vpop.permute.xlu2 %1201 }
 0x123   :  { %10017 = vst [vmem:[#allocation74_spill] sm:$0xff] %v5392_v32 }
 0x124   :  { %v5377_v22 = vpop.f32.mrf.mxu2  ;;  %10022 = vst [vmem:[#allocation79_spill] sm:$0xff] %v5408_v23 }
 0x125   :  { %10012 = vst [vmem:[#allocation69_spill] sm:$0xff] %v5377_v22  ;;  %v5379_v47 = vpop.f32.mrf.mxu0  ;;  %v5396_v22 = vpop.permute.xlu0 %1291 }
 0x126   :  { %10013 = vst [vmem:[#allocation70_spill] sm:$0xff] %v5379_v47  ;;  %v5398_v47 = vpop.permute.xlu1 %1195 }
 0x129   :  { %4024 = vmatmul.msk.f32.gmra.mxu2 %vm141_vm8, %v305_v13  ;;  %4058 = vmatmul.msk.f32.gmra.mxu3 %vm141_vm8, %v305_v13  ;;  %v5404_v1 = vpop.f32.mrf.mxu3  ;;  %v5406_v13 = vpop.f32.mrf.mxu1  ;;  %vm1351_vm8 = vcmp.eq.s32.totalorder %v4882_v41, 1 }
 0x12a   :  { %10020 = vst [vmem:[#allocation77_spill] sm:$0xff] %v5404_v1  ;;  %v1423_v41 = vsel %vm1351_vm8, %v5215_v34, %v5013_v62  ;;  %v5540_v62 = vadd.f32 %v5508_v20, %v5091_v17  ;;  %v1426_v17 = vsel %vm1353_vm4, %v5212_v44, %v5096_v61  ;;  %v5577_v61 = vadd.f32 %v5544_v53, %v5094_v3 }
 0x12b   :  { %10021 = vst [vmem:[#allocation78_spill] sm:$0xff] %v5406_v13  ;;  %v5595_v3 = vadd.f32 %v5544_v53, %v5056_v2  ;;  %vm1397_vm4 = vcmp.eq.s32.totalorder %v5394_v37, 1 }
 0x12c   :  { %v5388_v52 = vpop.f32.mrf.mxu2  ;;  %10063 = vst [vmem:[#allocation120_spill] sm:$0xff] %v5540_v62 }
 0x12d   :  { %10015 = vst [vmem:[#allocation72_spill] sm:$0xff] %v5388_v52  ;;  %v5390_v12 = vpop.f32.mrf.mxu0  ;;  %v5410_v52 = vpop.permute.xlu0 %1198 }
 0x12e   :  { %10016 = vst [vmem:[#allocation73_spill] sm:$0xff] %v5390_v12  ;;  %v5416_v18 = vpop.permute.xlu1 %1297 }
 0x12f   :  { %10025 = vst [vmem:[#allocation82_spill] sm:$0xff] %v5416_v18 }
 0x130   :  { %10070 = vst [vmem:[#allocation127_spill] sm:$0xff] %v5577_v61 }
 0x131   :  { %v5418_v30 = vpop.f32.mrf.mxu3  ;;  %v5420_v56 = vpop.f32.mrf.mxu1  ;;  %10072 = vst [vmem:[#allocation129_spill] sm:$0xff] %v5595_v3 }
 0x132   :  { %10026 = vst [vmem:[#allocation83_spill] sm:$0xff] %v5418_v30 }
 0x133   :  { %10027 = vst [vmem:[#allocation84_spill] sm:$0xff] %v5420_v56 }
 0x134   :  { %v5400_v26 = vpop.f32.mrf.mxu2 }
 0x135   :  { %10018 = vst [vmem:[#allocation75_spill] sm:$0xff] %v5400_v26  ;;  %v5402_v51 = vpop.f32.mrf.mxu0  ;;  %v5422_v26 = vpop.permute.xlu2 %1303 }
 0x136   :  { %10019 = vst [vmem:[#allocation76_spill] sm:$0xff] %v5402_v51  ;;  %v5428_v13 = vpop.permute.xlu0 %1300  ;;  %v5430_v23 = vpop.permute.xlu1 %1204 }
 0x137   :  { %10028 = vst [vmem:[#allocation85_spill] sm:$0xff] %v5422_v26 }
 0x138   :  { %10031 = vst [vmem:[#allocation88_spill] sm:$0xff] %v5428_v13 }
 0x139   :  { %10032 = vst [vmem:[#allocation89_spill] sm:$0xff] %v5430_v23  ;;  %v5432_v24 = vpop.f32.mrf.mxu3 }
 0x13a   :  { %10033 = vst [vmem:[#allocation90_spill] sm:$0xff] %v5432_v24 }
 0x13c   :  { %v5412_v12 = vpop.f32.mrf.mxu2 }
 0x13d   :  { %10023 = vst [vmem:[#allocation80_spill] sm:$0xff] %v5412_v12  ;;  %v5414_v32 = vpop.f32.mrf.mxu0  ;;  %v5434_v12 = vpop.f32.mrf.mxu1 }
 0x13e   :  { %10024 = vst [vmem:[#allocation81_spill] sm:$0xff] %v5414_v32  ;;  %v5438_v18 = vpop.permute.xlu2 %1210  ;;  %v5442_v56 = vpop.permute.xlu0 %1207 }
 0x13f   :  { %10034 = vst [vmem:[#allocation91_spill] sm:$0xff] %v5434_v12  ;;  %v5444_v26 = vpop.permute.xlu1 %1306 }
 0x140   :  { %10036 = vst [vmem:[#allocation93_spill] sm:$0xff] %v5438_v18 }
 0x141   :  { %10038 = vst [vmem:[#allocation95_spill] sm:$0xff] %v5442_v56 }
 0x142   :  { %10039 = vst [vmem:[#allocation96_spill] sm:$0xff] %v5444_v26 }
 0x144   :  { %v5424_v51 = vpop.f32.mrf.mxu2 }
 0x145   :  { %10029 = vst [vmem:[#allocation86_spill] sm:$0xff] %v5424_v51  ;;  %v5426_v1 = vpop.f32.mrf.mxu0  ;;  %v5446_v51 = vpop.f32.mrf.mxu3 }
 0x146   :  { %10030 = vst [vmem:[#allocation87_spill] sm:$0xff] %v5426_v1  ;;  %v5452_v23 = vpop.f32.mrf.mxu1  ;;  %v5454_v24 = vpop.permute.xlu2 %1312 }
 0x147   :  { %10040 = vst [vmem:[#allocation97_spill] sm:$0xff] %v5446_v51  ;;  %v5456_v12 = vpop.permute.xlu0 %1309 }
 0x148   :  { %10043 = vst [vmem:[#allocation100_spill] sm:$0xff] %v5452_v23 }
 0x149   :  { %10044 = vst [vmem:[#allocation101_spill] sm:$0xff] %v5454_v24 }
 0x14a   :  { %10045 = vst [vmem:[#allocation102_spill] sm:$0xff] %v5456_v12 }
 0x14c   :  { %v5436_v32 = vpop.f32.mrf.mxu2 }
 0x14d   :  { %10035 = vst [vmem:[#allocation92_spill] sm:$0xff] %v5436_v32  ;;  %v5440_v30 = vpop.f32.mrf.mxu0  ;;  %v5458_v32 = vpop.permute.xlu1 %1213 }
 0x14e   :  { %10037 = vst [vmem:[#allocation94_spill] sm:$0xff] %v5440_v30  ;;  %v5464_v56 = vpop.f32.mrf.mxu3  ;;  %v5466_v26 = vpop.f32.mrf.mxu1 }
 0x14f   :  { %10046 = vst [vmem:[#allocation103_spill] sm:$0xff] %v5458_v32  ;;  %v5468_v51 = vpop.permute.xlu2 %1219 }
 0x150   :  { %10049 = vst [vmem:[#allocation106_spill] sm:$0xff] %v5464_v56  ;;  %vm9774_vm15 = vcmp.eq.s32.totalorder %v5468_v51, 1 }
 0x151   :  { %10050 = vst [vmem:[#allocation107_spill] sm:$0xff] %v5466_v26 }
 0x154   :  { %v5448_v1 = vpop.f32.mrf.mxu2 }
 0x155   :  { %10041 = vst [vmem:[#allocation98_spill] sm:$0xff] %v5448_v1  ;;  %v5450_v13 = vpop.f32.mrf.mxu0  ;;  %v5470_v1 = vpop.permute.xlu0 %1216 }
 0x156   :  { %10042 = vst [vmem:[#allocation99_spill] sm:$0xff] %v5450_v13  ;;  %v5474_v23 = vpop.permute.xlu1 %1315  ;;  %v5478_v12 = vpop.f32.mrf.mxu3 }
 0x157   :  { %10051 = vst [vmem:[#allocation108_spill] sm:$0xff] %v5470_v1  ;;  %v5480_v32 = vpop.f32.mrf.mxu1 }
 0x158   :  { %10053 = vst [vmem:[#allocation110_spill] sm:$0xff] %v5474_v23 }
 0x159   :  { %10055 = vst [vmem:[#allocation112_spill] sm:$0xff] %v5478_v12  ;;  %v1422_v12 = vsel %vm1351_vm8, %v5212_v44, %v5011_v59  ;;  %v1421_v59 = vsel %vm1350_vm0, %v5215_v34, %v4971_v16  ;;  %vm1355_vm8 = vcmp.eq.s32.totalorder %v4963_v8, 1 }
 0x15a   :  { %10056 = vst [vmem:[#allocation113_spill] sm:$0xff] %v5480_v32  ;;  %v1430_v2 = vsel %vm1355_vm8, %v5212_v44, %v5136_v48 }
 0x15c   :  { %v5460_v18 = vpop.f32.mrf.mxu2 }
 0x15d   :  { %10047 = vst [vmem:[#allocation104_spill] sm:$0xff] %v5460_v18  ;;  %v5462_v30 = vpop.f32.mrf.mxu0  ;;  %v5482_v18 = vpop.permute.xlu2 %1321 }
 0x15e   :  { %10048 = vst [vmem:[#allocation105_spill] sm:$0xff] %v5462_v30  ;;  %v5486_v56 = vpop.permute.xlu0 %1318  ;;  %v5489_v26 = vpop.permute.xlu1 %1222  ;;  %vm9776_vm13 = vcmp.eq.s32.totalorder %v5482_v18, 1 }
 0x15f   :  { %v5497_v32 = vpop.f32.mrf.mxu3 }
 0x160   :  { %10059 = vst [vmem:[#allocation116_spill] sm:$0xff] %v5497_v32  ;;  %v5518_v32 = vpop.f32.mrf.mxu1 }
 0x161   :  { %10060 = vst [vmem:[#allocation117_spill] sm:$0xff] %v5518_v32 }
 0x164   :  { %v5472_v13 = vpop.f32.mrf.mxu2 }
 0x165   :  { %10052 = vst [vmem:[#allocation109_spill] sm:$0xff] %v5472_v13  ;;  %v5476_v24 = vpop.f32.mrf.mxu0 }
 0x166   :  { %10054 = vst [vmem:[#allocation111_spill] sm:$0xff] %v5476_v24  ;;  %v5500_v24 = vperm.slane %v4875_v35, 0  ;;  %v1424_v35 = vsel %vm1352_vm3, %v5212_v44, %v5058_v43  ;;  %v1425_v43 = vsel %vm1352_vm3, %v5215_v34, %v5060_v25  ;;  %v5565_v25 = vadd.f32 %v5508_v20, %v5111_v42 }
 0x167   :  { %vm1357_vm3 = vcmp.eq.s32.totalorder %v4965_v11, 1  ;;  %v1767_v42 = vadd.f32 %v5540_v62, %v5557_v27 }
 0x168   :  { %v5526_v63 = vadd.f32 %v5500_v24, %v1422_v12  ;;  %v5553_v32 = vadd.f32 %v5500_v24, %v1424_v35  ;;  %10068 = vst [vmem:[#allocation125_spill] sm:$0xff] %v5565_v25  ;;  %v1428_v35 = vsel %vm1354_vm2, %v5212_v44, %v5116_v4 }
 0x169   :  { %v1768_v4 = vadd.f32 %v1767_v42, %v5565_v25  ;;  %v1806_v25 = vadd.f32 %v5577_v61, %v5595_v3  ;;  %v5631_v45 = vadd.f32 %v5500_v24, %v1428_v35  ;;  %v10104_v3 = vld [vmem:[#allocation88_spill] sm:$0xff] }
 0x16a   :  { %10061 = vst [vmem:[#allocation118_spill] sm:$0xff] %v5526_v63  ;;  %vm1399_vm11 = vcmp.eq.s32.totalorder %v10104_v3, 1 }
 0x16b   :  { %10066 = vst [vmem:[#allocation123_spill] sm:$0xff] %v5553_v32 }
 0x16c   :  { %v5484_v30 = vpop.f32.mrf.mxu2  ;;  %10078 = vst [vmem:[#allocation135_spill] sm:$0xff] %v5631_v45 }
 0x16d   :  { %10057 = vst [vmem:[#allocation114_spill] sm:$0xff] %v5484_v30  ;;  %v5493_v13 = vpop.f32.mrf.mxu0  ;;  %v5503_v30 = vperm.slane %v4877_v36, 0 }
 0x16e   :  { %10058 = vst [vmem:[#allocation115_spill] sm:$0xff] %v5493_v13  ;;  %v1420_v13 = vsel %vm1350_vm0, %v5212_v44, %v4969_v14  ;;  %v5528_v14 = vpop.permute.xlu2 %1228  ;;  %vm1356_vm0 = vcmp.eq.s32.totalorder %v4928_v57, 1 }
 0x16f   :  { %v5532_v16 = vadd.f32 %v5503_v30, %v1423_v41  ;;  %v5547_v12 = vadd.f32 %v5500_v24, %v1420_v13  ;;  %v5550_v41 = vadd.f32 %v5503_v30, %v1421_v59  ;;  %v5567_v13 = vpop.permute.xlu0 %1225  ;;  %v5573_v6 = vadd.f32 %v5503_v30, %v1425_v43  ;;  %v5591_v43 = vpop.permute.xlu1 %1324 }
 0x170   :  { %v5602_v62 = vadd.f32 %v5503_v30, %v1427_v0  ;;  %v5619_v0 = vpop.f32.mrf.mxu3 }
 0x171   :  { %10062 = vst [vmem:[#allocation119_spill] sm:$0xff] %v5532_v16  ;;  %v1688_v59 = vadd.f32 %v5526_v63, %v5547_v12  ;;  %v1728_v50 = vadd.f32 %v5532_v16, %v5550_v41  ;;  %v5589_v63 = vadd.f32 %v5508_v20, %v5131_v60  ;;  %v1429_v60 = vsel %vm1354_vm2, %v5215_v34, %v5118_v5 }
 0x172   :  { %10064 = vst [vmem:[#allocation121_spill] sm:$0xff] %v5547_v12  ;;  %v5628_v5 = vadd.f32 %v5544_v53, %v5114_v49  ;;  %v5646_v49 = vpop.f32.mrf.mxu1  ;;  %v5651_v61 = vadd.f32 %v5503_v30, %v1429_v60  ;;  %v5669_v60 = vadd.f32 %v5508_v20, %v5191_v33  ;;  %v1436_v33 = vsel %vm1358_vm7, %v5212_v44, %v5196_v31  ;;  %v10131_v12 = vld [vmem:[#allocation101_spill] sm:$0xff] }
 0x173   :  { %10065 = vst [vmem:[#allocation122_spill] sm:$0xff] %v5550_v41  ;;  %v1689_v16 = vadd.f32 %v1688_v59, %v5553_v32  ;;  %v5599_v41 = vadd.f32 %v5500_v24, %v1426_v17  ;;  %v5617_v17 = vadd.f32 %v5508_v20, %v5151_v38  ;;  %v1729_v42 = vadd.f32 %v1728_v50, %v5573_v6 }
 0x174   :  { %v5520_v36 = vpop.f32.mrf.mxu2  ;;  %10069 = vst [vmem:[#allocation126_spill] sm:$0xff] %v5573_v6  ;;  %v1769_v48 = vadd.f32 %v1768_v4, %v5589_v63  ;;  %v1431_v38 = vsel %vm1355_vm8, %v5215_v34, %v5138_v46  ;;  %v1432_v50 = vsel %vm1356_vm0, %v5212_v44, %v5156_v28  ;;  %v5644_v6 = vadd.f32 %v5508_v20, %v5171_v10 }
 0x175   :  { %10071 = vst [vmem:[#allocation128_spill] sm:$0xff] %v5589_v63  ;;  %v5604_v27 = vpop.f32.mrf.mxu0  ;;  %v1690_v35 = vadd.f32 %v1689_v16, %v5599_v41  ;;  %v1730_v4 = vadd.f32 %v1729_v42, %v5602_v62  ;;  %v5654_v46 = vadd.f32 %v5500_v24, %v1430_v2  ;;  %v5660_v28 = vadd.f32 %v5544_v53, %v5134_v54 }
 0x176   :  { %10073 = vst [vmem:[#allocation130_spill] sm:$0xff] %v5599_v41  ;;  %v5656_v8 = vpop.permute.xlu2 %1330  ;;  %v1770_v10 = vadd.f32 %v1769_v48, %v5617_v17  ;;  %v1434_v16 = vsel %vm1357_vm3, %v5212_v44, %v5176_v39  ;;  %v1807_v2 = vadd.f32 %v1806_v25, %v5628_v5  ;;  %v5677_v54 = vadd.f32 %v5500_v24, %v1432_v50  ;;  %v10128_v41 = vld [vmem:[#allocation59_spill] sm:$0xff] }
 0x177   :  { %10074 = vst [vmem:[#allocation131_spill] sm:$0xff] %v5602_v62  ;;  %v1691_v42 = vadd.f32 %v1690_v35, %v5631_v45  ;;  %v5674_v62 = vadd.f32 %v5503_v30, %v1431_v38  ;;  %v1433_v48 = vsel %vm1356_vm0, %v5215_v34, %v5158_v21  ;;  %v5690_v25 = vadd.f32 %v5508_v20, %v5218_v19  ;;  %v5692_v38 = vpop.permute.xlu0 %1327  ;;  %v10125_v45 = vld [vmem:[#allocation63_spill] sm:$0xff] }
 0x178   :  { %10075 = vst [vmem:[#allocation132_spill] sm:$0xff] %v5617_v17  ;;  %v1771_v39 = vadd.f32 %v1770_v10, %v5644_v6  ;;  %v1731_v50 = vadd.f32 %v1730_v4, %v5651_v61  ;;  %v5698_v21 = vadd.f32 %v5544_v53, %v5154_v29  ;;  %v5701_v57 = vadd.f32 %v5500_v24, %v1434_v16  ;;  %v5711_v10 = vpop.permute.xlu1 %1231 }
 0x179   :  { %10076 = vst [vmem:[#allocation133_spill] sm:$0xff] %v5619_v0  ;;  %v1692_v35 = vadd.f32 %v1691_v42, %v5654_v46  ;;  %v1808_v31 = vadd.f32 %v1807_v2, %v5660_v28  ;;  %vm1396_vm2 = vcmp.eq.s32.totalorder %v5396_v22, 1  ;;  %v5709_v4 = vadd.f32 %v5508_v20, %v5241_v7 }
 0x17a   :  { %10077 = vst [vmem:[#allocation134_spill] sm:$0xff] %v5628_v5  ;;  %v1772_v19 = vadd.f32 %v1771_v39, %v5669_v60  ;;  %vm1364_vm8 = vcmp.eq.s32.totalorder %v5398_v47, 1  ;;  %v5718_v16 = vadd.f32 %v5503_v30, %v1433_v48  ;;  %v1435_v2 = vsel %vm1357_vm3, %v5215_v34, %v5178_v40  ;;  %v5739_v5 = vpop.f32.mrf.mxu3 }
 0x17b   :  { %10079 = vst [vmem:[#allocation136_spill] sm:$0xff] %v5644_v6  ;;  %v1693_v29 = vadd.f32 %v1692_v35, %v5677_v54  ;;  %v5725_v39 = vadd.f32 %v5500_v24, %v1436_v33  ;;  %v5737_v48 = vadd.f32 %v5508_v20, %v5264_v15  ;;  %v1809_v40 = vadd.f32 %v1808_v31, %v5698_v21  ;;  %v5757_v31 = vpop.f32.mrf.mxu1  ;;  %v10113_v6 = vld [vmem:[#allocation51_spill] sm:$0xff] }
 0x17c   :  { %v5621_v59 = vpop.f32.mrf.mxu2  ;;  %10080 = vst [vmem:[#allocation137_spill] sm:$0xff] %v5646_v49  ;;  %v1773_v35 = vadd.f32 %v1772_v19, %v5690_v25  ;;  %vm1365_vm0 = vcmp.eq.s32.totalorder %v5410_v52, 1  ;;  %v5746_v33 = vadd.f32 %v5500_v24, %v5227_v55  ;;  %v10100_v19 = vld [vmem:[#allocation53_spill] sm:$0xff]  ;;  %v5832_v32 = vadd.f32 %v5500_v24, %v10128_v41  ;;  %v10140_v49 = vld [vmem:[#allocation67_spill] sm:$0xff]  ;;  %v10219_v52 = vld [vmem:[#allocation84_spill] sm:$0xff] }
 0x17d   :  { %10081 = vst [vmem:[#allocation138_spill] sm:$0xff] %v5651_v61  ;;  %v5727_v7 = vpop.f32.mrf.mxu0  ;;  %v1732_v61 = vadd.f32 %v1731_v50, %v5674_v62  ;;  %v1694_v11 = vadd.f32 %v1693_v29, %v5701_v57  ;;  %v5750_v50 = vadd.f32 %v5503_v30, %v1435_v2  ;;  %vm9760_vm12 = vcmp.eq.s32.totalorder %v10131_v12, 1 }
 0x17e   :  { %10082 = vst [vmem:[#allocation139_spill] sm:$0xff] %v5654_v46  ;;  %v1774_v15 = vadd.f32 %v1773_v35, %v5709_v4  ;;  %v10107_v35 = vld [vmem:[#allocation85_spill] sm:$0xff] }
 0x17f   :  { %10083 = vst [vmem:[#allocation140_spill] sm:$0xff] %v5660_v28  ;;  %v5732_v28 = vadd.f32 %v5544_v53, %v5174_v9  ;;  %v10098_v9 = vld [vmem:[#allocation82_spill] sm:$0xff]  ;;  %v1733_v29 = vadd.f32 %v1732_v61, %v5718_v16  ;;  %v1695_v55 = vadd.f32 %v1694_v11, %v5725_v39  ;;  %vm9747_vm9 = vcmp.eq.s32.totalorder %v10107_v35, 1  ;;  %v10116_v46 = vld [vmem:[#allocation41_spill] sm:$0xff] }
 0x180   :  { %10084 = vst [vmem:[#allocation141_spill] sm:$0xff] %v5669_v60  ;;  %vm1398_vm3 = vcmp.eq.s32.totalorder %v10098_v9, 1  ;;  %v1775_v61 = vadd.f32 %v1774_v15, %v5737_v48  ;;  %v10117_v15 = vld [vmem:[#allocation89_spill] sm:$0xff]  ;;  %v5822_v63 = vpop.permute.xlu1 %1333  ;;  %v10227_v9 = vld [vmem:[#allocation83_spill] sm:$0xff] }
 0x181   :  { %10085 = vst [vmem:[#allocation142_spill] sm:$0xff] %v5674_v62  ;;  %v5755_v62 = vadd.f32 %v5508_v20, %v10100_v19  ;;  %v1810_v19 = vadd.f32 %v1809_v40, %v5732_v28  ;;  %v5787_v40 = vadd.f32 %v5500_v24, %v10113_v6 }
 0x182   :  { %10086 = vst [vmem:[#allocation143_spill] sm:$0xff] %v5677_v54  ;;  %v1696_v54 = vadd.f32 %v1695_v55, %v5746_v33  ;;  %v5800_v55 = vpop.permute.xlu0 %1234 }
 0x183   :  { %10087 = vst [vmem:[#allocation144_spill] sm:$0xff] %v5690_v25  ;;  %v10105_v25 = vld [vmem:[#allocation48_spill] sm:$0xff] }
 0x184   :  { %10088 = vst [vmem:[#allocation145_spill] sm:$0xff] %v5692_v38  ;;  %v5713_v42 = vpop.f32.mrf.mxu2  ;;  %v5765_v2 = vadd.f32 %v5500_v24, %v10105_v25 }
 0x185   :  { %10089 = vst [vmem:[#allocation146_spill] sm:$0xff] %v5698_v21  ;;  %v10103_v21 = vld [vmem:[#allocation79_spill] sm:$0xff] }
 0x186   :  { %10090 = vst [vmem:[#allocation147_spill] sm:$0xff] %v5701_v57  ;;  %vm1366_vm6 = vcmp.eq.s32.totalorder %v10103_v21, 1  ;;  %v5767_v57 = vpop.permute.xlu2 %1237  ;;  %v1697_v17 = vadd.f32 %v1696_v54, %v5765_v2  ;;  %v10223_v21 = vld [vmem:[#allocation91_spill] sm:$0xff] }
 0x187   :  { %10091 = vst [vmem:[#allocation148_spill] sm:$0xff] %v5709_v4  ;;  %v10108_v4 = vld [vmem:[#allocation44_spill] sm:$0xff] }
 0x188   :  { %10092 = vst [vmem:[#allocation149_spill] sm:$0xff] %v5718_v16  ;;  %v1437_v60 = vsel %vm1358_vm7, %v5215_v34, %v10108_v4  ;;  %v10109_v16 = vld [vmem:[#allocation57_spill] sm:$0xff]  ;;  %v1734_v4 = vadd.f32 %v1733_v29, %v5750_v50  ;;  %vm1367_vm7 = vcmp.eq.s32.totalorder %v10117_v15, 1 }
 0x189   :  { %10093 = vst [vmem:[#allocation150_spill] sm:$0xff] %v5725_v39  ;;  %v5778_v11 = vadd.f32 %v5508_v20, %v10109_v16  ;;  %v10111_v39 = vld [vmem:[#allocation43_spill] sm:$0xff]  ;;  %v1776_v16 = vadd.f32 %v1775_v61, %v5755_v62  ;;  %v5805_v6 = vadd.f32 %v5503_v30, %v1437_v60  ;;  %v1448_v60 = vsel %vm1364_vm8, %v5212_v44, %v10125_v45  ;;  %v10153_v15 = vld [vmem:[#allocation73_spill] sm:$0xff] }
 0x18a   :  { %10094 = vst [vmem:[#allocation151_spill] sm:$0xff] %v5732_v28  ;;  %v5782_v25 = vadd.f32 %v5544_v53, %v10111_v39  ;;  %v10115_v28 = vld [vmem:[#allocation64_spill] sm:$0xff] }
 0x18b   :  { %10095 = vst [vmem:[#allocation152_spill] sm:$0xff] %v5737_v48  ;;  %v1512_v58 = vsel %vm1396_vm2, %v10116_v46, %v10115_v28  ;;  %v10118_v48 = vld [vmem:[#allocation61_spill] sm:$0xff]  ;;  %v10121_v28 = vld [vmem:[#allocation55_spill] sm:$0xff] }
 0x18c   :  { %10096 = vst [vmem:[#allocation153_spill] sm:$0xff] %v5739_v5  ;;  %v5798_v39 = vadd.f32 %v5508_v20, %v10118_v48  ;;  %v5810_v29 = vadd.f32 %v5500_v24, %v10121_v28  ;;  %v10124_v48 = vld [vmem:[#allocation95_spill] sm:$0xff]  ;;  %v5825_v54 = vadd.f32 %v5508_v20, %v1512_v58  ;;  %v10127_v28 = vld [vmem:[#allocation93_spill] sm:$0xff]  ;;  %v10132_v58 = vld [vmem:[#allocation96_spill] sm:$0xff] }
 0x18d   :  { %10097 = vst [vmem:[#allocation154_spill] sm:$0xff] %v5746_v33  ;;  %v5802_v33 = vpop.f32.mrf.mxu2  ;;  %vm9798_vm10 = vcmp.eq.s32.totalorder %v10124_v48, 1  ;;  %vm9765_vm14 = vcmp.eq.s32.totalorder %v10127_v28, 1  ;;  %vm9759_vm5 = vcmp.eq.s32.totalorder %v10132_v58, 1 }
 0x18e   :  { %10099 = vst [vmem:[#allocation82_spill] sm:$0xff] %v5750_v50  ;;  %v10123_v50 = vld [vmem:[#allocation66_spill] sm:$0xff]  ;;  %v5879_v3 = vpop.permute.xlu2 %1339 }
 0x18f   :  { %10101 = vst [vmem:[#allocation53_spill] sm:$0xff] %v5755_v62  ;;  %v1514_v61 = vsel %vm1397_vm4, %v10116_v46, %v10123_v50  ;;  %v1777_v62 = vadd.f32 %v1776_v16, %v5778_v11  ;;  %v1698_v50 = vadd.f32 %v1697_v17, %v5787_v40  ;;  %v10130_v16 = vld [vmem:[#allocation69_spill] sm:$0xff] }
 0x190   :  { %10102 = vst [vmem:[#allocation155_spill] sm:$0xff] %v5757_v31  ;;  %v1516_v45 = vsel %vm1398_vm3, %v10116_v46, %v10130_v16  ;;  %v5848_v41 = vadd.f32 %v5508_v20, %v1514_v61  ;;  %v5858_v31 = vadd.f32 %v5500_v24, %v1448_v60  ;;  %v10143_v60 = vld [vmem:[#allocation46_spill] sm:$0xff] }
 0x191   :  { %10106 = vst [vmem:[#allocation79_spill] sm:$0xff] %v5765_v2  ;;  %v1811_v2 = vadd.f32 %v1810_v19, %v5782_v25  ;;  %v1778_v5 = vadd.f32 %v1777_v62, %v5798_v39  ;;  %v10133_v19 = vld [vmem:[#allocation65_spill] sm:$0xff]  ;;  %v1699_v0 = vadd.f32 %v1698_v50, %v5810_v29  ;;  %v10139_v62 = vld [vmem:[#allocation72_spill] sm:$0xff]  ;;  %v5873_v50 = vpop.f32.mrf.mxu1 }
 0x192   :  { %10110 = vst [vmem:[#allocation48_spill] sm:$0xff] %v5778_v11  ;;  %v5838_v11 = vpop.f32.mrf.mxu0  ;;  %v1450_v17 = vsel %vm1365_vm0, %v5212_v44, %v10133_v19  ;;  %v1735_v19 = vadd.f32 %v1734_v4, %v5805_v6 }
 0x193   :  { %10112 = vst [vmem:[#allocation44_spill] sm:$0xff] %v5782_v25  ;;  %v5850_v25 = vpop.f32.mrf.mxu3  ;;  %v1779_v61 = vadd.f32 %v1778_v5, %v5825_v54  ;;  %v1700_v4 = vadd.f32 %v1699_v0, %v5832_v32  ;;  %v5883_v5 = vadd.f32 %v5500_v24, %v1450_v17 }
 0x194   :  { %10114 = vst [vmem:[#allocation57_spill] sm:$0xff] %v5787_v40  ;;  %v10136_v40 = vld [vmem:[#allocation45_spill] sm:$0xff] }
 0x195   :  { %10119 = vst [vmem:[#allocation43_spill] sm:$0xff] %v5798_v39  ;;  %v5854_v16 = vadd.f32 %v5544_v53, %v10136_v40  ;;  %v1518_v39 = vsel %vm1399_vm11, %v10116_v46, %v10139_v62  ;;  %v1452_v40 = vsel %vm1366_vm6, %v5212_v44, %v10140_v49  ;;  %v10146_v62 = vld [vmem:[#allocation75_spill] sm:$0xff]  ;;  %v5898_v0 = vpop.f32.mrf.mxu2 }
 0x196   :  { %10120 = vst [vmem:[#allocation51_spill] sm:$0xff] %v5805_v6  ;;  %v1520_v49 = vsel %vm9747_vm9, %v10116_v46, %v10146_v62  ;;  %v1780_v6 = vadd.f32 %v1779_v61, %v5848_v41  ;;  %v1701_v62 = vadd.f32 %v1700_v4, %v5858_v31  ;;  %v10151_v61 = vld [vmem:[#allocation80_spill] sm:$0xff] }
 0x197   :  { %10122 = vst [vmem:[#allocation64_spill] sm:$0xff] %v5810_v29  ;;  %v5877_v29 = vadd.f32 %v5503_v30, %v10143_v60  ;;  %v1812_v17 = vadd.f32 %v1811_v2, %v5854_v16  ;;  %v1456_v2 = vsel %vm9798_vm10, %v5212_v44, %v10153_v15  ;;  %v5937_v15 = vpop.permute.xlu1 %1240 }
 0x198   :  { %10126 = vst [vmem:[#allocation41_spill] sm:$0xff] %v5825_v54  ;;  %v10148_v54 = vld [vmem:[#allocation70_spill] sm:$0xff] }
 0x199   :  { %10129 = vst [vmem:[#allocation61_spill] sm:$0xff] %v5832_v32  ;;  %v1454_v60 = vsel %vm1367_vm7, %v5212_v44, %v10148_v54  ;;  %v5904_v32 = vadd.f32 %v5500_v24, %v1452_v40  ;;  %v5912_v54 = vpop.permute.xlu0 %1336  ;;  %v5920_v40 = vadd.f32 %v5508_v20, %v1520_v49  ;;  %v5923_v4 = vadd.f32 %v1735_v19, %v5877_v29  ;;  %v10159_v19 = vld [vmem:[#allocation76_spill] sm:$0xff] }
 0x19a   :  { %10134 = vst [vmem:[#allocation55_spill] sm:$0xff] %v5848_v41  ;;  %v1522_v41 = vsel %vm9759_vm5, %v10116_v46, %v10151_v61  ;;  %v1702_v61 = vadd.f32 %v1701_v62, %v5883_v5  ;;  %v1458_v62 = vsel %vm9765_vm14, %v5212_v44, %v10159_v19  ;;  %v10165_v19 = vld [vmem:[#allocation81_spill] sm:$0xff]  ;;  %vm9788_vm5 = vcmp.eq.s32.totalorder %v5528_v14, 1 }
 0x19b   :  { %10135 = vst [vmem:[#allocation66_spill] sm:$0xff] %v5850_v25  ;;  %v5871_v25 = vadd.f32 %v5508_v20, %v1516_v45  ;;  %v10147_v45 = vld [vmem:[#allocation102_spill] sm:$0xff]  ;;  %vm9790_vm14 = vcmp.eq.s32.totalorder %v5656_v8, 1 }
 0x19c   :  { %10137 = vst [vmem:[#allocation95_spill] sm:$0xff] %v5854_v16  ;;  %vm9758_vm1 = vcmp.eq.s32.totalorder %v10147_v45, 1  ;;  %v5927_v16 = vadd.f32 %v5500_v24, %v1454_v60  ;;  %v5945_v60 = vadd.f32 %v5508_v20, %v1522_v41  ;;  %v10164_v45 = vld [vmem:[#allocation92_spill] sm:$0xff] }
 0x19d   :  { %10138 = vst [vmem:[#allocation63_spill] sm:$0xff] %v5858_v31  ;;  %v1781_v35 = vadd.f32 %v1780_v6, %v5871_v25  ;;  %v10156_v31 = vld [vmem:[#allocation86_spill] sm:$0xff] }
 0x19e   :  { %10141 = vst [vmem:[#allocation93_spill] sm:$0xff] %v5871_v25  ;;  %v1524_v6 = vsel %vm9758_vm1, %v10116_v46, %v10156_v31  ;;  %v10157_v25 = vld [vmem:[#allocation47_spill] sm:$0xff]  ;;  %v1703_v31 = vadd.f32 %v1702_v61, %v5904_v32  ;;  %vm9770_vm1 = vcmp.eq.s32.totalorder %v5474_v23, 1  ;;  %v10175_v23 = vld [vmem:[#allocation94_spill] sm:$0xff] }
 0x19f   :  { %10142 = vst [vmem:[#allocation59_spill] sm:$0xff] %v5873_v50  ;;  %v5896_v50 = vadd.f32 %v5508_v20, %v1518_v39  ;;  %v10152_v39 = vld [vmem:[#allocation103_spill] sm:$0xff]  ;;  %v5935_v58 = vadd.f32 %v5544_v53, %v10157_v25  ;;  %v5953_v25 = vadd.f32 %v5500_v24, %v1456_v2  ;;  %v5968_v61 = vadd.f32 %v5508_v20, %v1524_v6  ;;  %v5970_v2 = vpop.f32.mrf.mxu3 }
 0x1a0   :  { %10144 = vst [vmem:[#allocation69_spill] sm:$0xff] %v5877_v29  ;;  %vm9763_vm9 = vcmp.eq.s32.totalorder %v10152_v39, 1  ;;  %v10161_v29 = vld [vmem:[#allocation49_spill] sm:$0xff] }
 0x1a1   :  { %10145 = vst [vmem:[#allocation65_spill] sm:$0xff] %v5883_v5  ;;  %v1782_v49 = vadd.f32 %v1781_v35, %v5896_v50  ;;  %v5949_v5 = vadd.f32 %v5503_v30, %v10161_v29  ;;  %v1526_v35 = vsel %vm9760_vm12, %v10116_v46, %v10164_v45  ;;  %v1460_v29 = vsel %vm9763_vm9, %v5212_v44, %v10165_v19  ;;  %v10170_v19 = vld [vmem:[#allocation87_spill] sm:$0xff] }
 0x1a2   :  { %10149 = vst [vmem:[#allocation45_spill] sm:$0xff] %v5896_v50  ;;  %v5959_v50 = vpop.f32.mrf.mxu0  ;;  %vm9794_vm12 = vcmp.eq.s32.totalorder %v5470_v1, 1  ;;  %v1704_v45 = vadd.f32 %v1703_v31, %v5927_v16  ;;  %vm9772_vm9 = vcmp.eq.s32.totalorder %v5486_v56, 1  ;;  %v5989_v12 = vadd.f32 %v5508_v20, %v1526_v35  ;;  %v5991_v31 = vpop.f32.mrf.mxu1 }
 0x1a3   :  { %10150 = vst [vmem:[#allocation72_spill] sm:$0xff] %v5904_v32  ;;  %v1783_v41 = vadd.f32 %v1782_v49, %v5920_v40  ;;  %v5976_v32 = vadd.f32 %v5500_v24, %v1458_v62  ;;  %v10169_v49 = vld [vmem:[#allocation98_spill] sm:$0xff]  ;;  %v5993_v62 = vpop.f32.mrf.mxu2  ;;  %v6007_v35 = vadd.f32 %v1812_v17, %v5935_v58  ;;  %v1464_v1 = vsel %vm9774_vm15, %v5212_v44, %v10175_v23 }
 0x1a4   :  { %10154 = vst [vmem:[#allocation67_spill] sm:$0xff] %v5920_v40  ;;  %v1528_v40 = vsel %vm9770_vm1, %v10116_v46, %v10169_v49  ;;  %v1705_v49 = vadd.f32 %v1704_v45, %v5953_v25  ;;  %vm9779_vm1 = vcmp.eq.s32.totalorder %v5489_v26, 1  ;;  %vm9784_vm15 = vcmp.eq.s32.totalorder %v5567_v13, 1 }
 0x1a5   :  { %10155 = vst [vmem:[#allocation46_spill] sm:$0xff] %v5927_v16  ;;  %v1784_v6 = vadd.f32 %v1783_v41, %v5945_v60  ;;  %v5996_v16 = vpop.permute.xlu2 %1246  ;;  %v6000_v41 = vadd.f32 %v5500_v24, %v1460_v29  ;;  %v6015_v45 = vadd.f32 %v5508_v20, %v1528_v40  ;;  %v10179_v40 = vld [vmem:[#allocation99_spill] sm:$0xff] }
 0x1a6   :  { %10158 = vst [vmem:[#allocation75_spill] sm:$0xff] %v5935_v58  ;;  %v1706_v29 = vadd.f32 %v1705_v49, %v5976_v32  ;;  %v1466_v58 = vsel %vm9779_vm1, %v5212_v44, %v10179_v40  ;;  %vm1378_vm1 = vcmp.eq.s32.totalorder %v5767_v57, 1 }
 0x1a7   :  { %10160 = vst [vmem:[#allocation70_spill] sm:$0xff] %v5945_v60  ;;  %v10174_v60 = vld [vmem:[#allocation104_spill] sm:$0xff] }
 0x1a8   :  { %10162 = vst [vmem:[#allocation80_spill] sm:$0xff] %v5949_v5 }
 0x1a9   :  { %10163 = vst [vmem:[#allocation103_spill] sm:$0xff] %v5953_v25 }
 0x1aa   :  { %10166 = vst [vmem:[#allocation73_spill] sm:$0xff] %v5968_v61 }
 0x1ab   :  { %10167 = vst [vmem:[#allocation86_spill] sm:$0xff] %v5970_v2  ;;  %v1462_v2 = vsel %vm9794_vm12, %v5212_v44, %v10170_v19  ;;  %v1530_v19 = vsel %vm9772_vm9, %v10116_v46, %v10174_v60  ;;  %v10178_v60 = vld [vmem:[#allocation109_spill] sm:$0xff]  ;;  %vm9781_vm9 = vcmp.eq.s32.totalorder %v5591_v43, 1  ;;  %vm1379_vm12 = vcmp.eq.s32.totalorder %v5937_v15, 1 }
 0x1ac   :  { %10168 = vst [vmem:[#allocation47_spill] sm:$0xff] %v5976_v32  ;;  %v6020_v25 = vadd.f32 %v5500_v24, %v1462_v2  ;;  %v1532_v17 = vsel %vm9776_vm13, %v10116_v46, %v10178_v60  ;;  %v6035_v49 = vadd.f32 %v5508_v20, %v1530_v19  ;;  %v1707_v2 = vadd.f32 %v1706_v29, %v6000_v41  ;;  %v10183_v19 = vld [vmem:[#allocation105_spill] sm:$0xff] }
 0x1ad   :  { %10171 = vst [vmem:[#allocation76_spill] sm:$0xff] %v5989_v12  ;;  %v6040_v60 = vadd.f32 %v5500_v24, %v1464_v1  ;;  %vm9786_vm13 = vcmp.eq.s32.totalorder %v5692_v38, 1  ;;  %v1468_v32 = vsel %vm9784_vm15, %v5212_v44, %v10183_v19  ;;  %v6055_v29 = vadd.f32 %v5508_v20, %v1532_v17  ;;  %v10186_v17 = vld [vmem:[#allocation111_spill] sm:$0xff] }
 0x1ae   :  { %10172 = vst [vmem:[#allocation49_spill] sm:$0xff] %v5991_v31  ;;  %v1785_v31 = vadd.f32 %v1784_v6, %v5968_v61  ;;  %v6027_v6 = vpop.permute.xlu0 %1243  ;;  %v10182_v61 = vld [vmem:[#allocation114_spill] sm:$0xff]  ;;  %v1708_v1 = vadd.f32 %v1707_v2, %v6020_v25  ;;  %vm9792_vm15 = vcmp.eq.s32.totalorder %v5711_v10, 1  ;;  %v6082_v38 = vadd.f32 %v5500_v24, %v1468_v32  ;;  %v6100_v32 = vpop.permute.xlu2 %1348 }
 0x1af   :  { %10173 = vst [vmem:[#allocation92_spill] sm:$0xff] %v6000_v41  ;;  %v1470_v41 = vsel %vm9788_vm5, %v5212_v44, %v10186_v17  ;;  %v10190_v17 = vld [vmem:[#allocation115_spill] sm:$0xff]  ;;  %vm9797_vm5 = vcmp.eq.s32.totalorder %v5800_v55, 1 }
 0x1b0   :  { %10176 = vst [vmem:[#allocation81_spill] sm:$0xff] %v6015_v45  ;;  %v1786_v23 = vadd.f32 %v1785_v31, %v5989_v12  ;;  %v1534_v31 = vsel %vm9781_vm9, %v10116_v46, %v10182_v61  ;;  %v6047_v12 = vpop.permute.xlu1 %1342  ;;  %v6060_v61 = vadd.f32 %v5500_v24, %v1466_v58  ;;  %vm9802_vm9 = vcmp.eq.s32.totalorder %v5879_v3, 1  ;;  %v6077_v58 = vpop.f32.mrf.mxu3 }
 0x1b1   :  { %10177 = vst [vmem:[#allocation98_spill] sm:$0xff] %v6020_v25  ;;  %v6075_v2 = vadd.f32 %v5508_v20, %v1534_v31  ;;  %v860_v25 = vpop.f32.mrf.mxu2 }
 0x1b2   :  { %10180 = vst [vmem:[#allocation87_spill] sm:$0xff] %v6035_v49  ;;  %v1787_v40 = vadd.f32 %v1786_v23, %v6015_v45  ;;  %v1536_v23 = vsel %vm9786_vm13, %v10116_v46, %v5520_v36  ;;  %v6066_v45 = vpop.f32.mrf.mxu0  ;;  %v1709_v36 = vadd.f32 %v1708_v1, %v6040_v60  ;;  %vm9793_vm13 = vcmp.eq.s32.totalorder %v5822_v63, 1 }
 0x1b3   :  { %10181 = vst [vmem:[#allocation104_spill] sm:$0xff] %v6040_v60  ;;  %v6097_v1 = vadd.f32 %v5508_v20, %v1536_v23  ;;  %v6104_v60 = vadd.f32 %v5500_v24, %v1470_v41  ;;  %v1474_v23 = vsel %vm9797_vm5, %v5212_v44, %v5604_v27  ;;  %vm1413_vm5 = vcmp.eq.s32.totalorder %v6047_v12, 1 }
 0x1b4   :  { %10184 = vst [vmem:[#allocation94_spill] sm:$0xff] %v6055_v29  ;;  %v1788_v19 = vadd.f32 %v1787_v40, %v6035_v49  ;;  %v1538_v40 = vsel %vm9790_vm14, %v10116_v46, %v5621_v59  ;;  %v1472_v49 = vsel %vm9792_vm15, %v5212_v44, %v10190_v17  ;;  %v1710_v59 = vadd.f32 %v1709_v36, %v6060_v61 }
 0x1b5   :  { %10185 = vst [vmem:[#allocation109_spill] sm:$0xff] %v6060_v61  ;;  %vm9796_vm14 = vcmp.eq.s32.totalorder %v5912_v54, 1  ;;  %vm1381_vm15 = vcmp.eq.s32.totalorder %v5996_v16, 1  ;;  %v6122_v36 = vadd.f32 %v5500_v24, %v1472_v49  ;;  %v6138_v49 = vadd.f32 %v5500_v24, %v1474_v23 }
 0x1b6   :  { %10187 = vst [vmem:[#allocation99_spill] sm:$0xff] %v6075_v2  ;;  %v1789_v31 = vadd.f32 %v1788_v19, %v6055_v29  ;;  %v1540_v19 = vsel %vm9793_vm13, %v10116_v46, %v5713_v42  ;;  %v6117_v29 = vadd.f32 %v5508_v20, %v1538_v40  ;;  %v1711_v41 = vadd.f32 %v1710_v59, %v6082_v38  ;;  %v6130_v27 = vpop.permute.xlu0 %1345 }
 0x1b7   :  { %10188 = vst [vmem:[#allocation114_spill] sm:$0xff] %v6077_v58  ;;  %v6094_v58 = vpop.f32.mrf.mxu1  ;;  %v1542_v42 = vsel %vm9796_vm14, %v10116_v46, %v5802_v33  ;;  %vm1415_vm13 = vcmp.eq.s32.totalorder %v6100_v32, 1  ;;  %v1476_v33 = vsel %vm1378_vm1, %v5212_v44, %v5727_v7  ;;  %vm1380_vm14 = vcmp.eq.s32.totalorder %v6027_v6, 1 }
 0x1b8   :  { %10189 = vst [vmem:[#allocation105_spill] sm:$0xff] %v6082_v38  ;;  %v1790_v17 = vadd.f32 %v1789_v31, %v6075_v2  ;;  %v6134_v31 = vadd.f32 %v5508_v20, %v1540_v19  ;;  %v1712_v59 = vadd.f32 %v1711_v41, %v6104_v60  ;;  %v1544_v2 = vsel %vm9802_vm9, %v10116_v46, %v5898_v0  ;;  %v6150_v19 = vpop.permute.xlu1 %1249  ;;  %v10200_v38 = vld [vmem:[#allocation52_spill] sm:$0xff] }
 0x1b9   :  { %10191 = vst [vmem:[#allocation111_spill] sm:$0xff] %v6097_v1  ;;  %v6154_v23 = vadd.f32 %v5508_v20, %v1542_v42  ;;  %v863_v41 = vpop.f32.mrf.mxu2  ;;  %vm9809_vm10 = vcmp.eq.s32.totalorder %v6130_v27, 1  ;;  %v1478_v0 = vsel %vm1379_vm12, %v5212_v44, %v5838_v11  ;;  %vm1382_vm9 = vcmp.eq.s32.totalorder %v6150_v19, 1 }
 0x1ba   :  { %10192 = vst [vmem:[#allocation115_spill] sm:$0xff] %v6104_v60  ;;  %v1791_v40 = vadd.f32 %v1790_v17, %v6097_v1  ;;  %v1713_v7 = vadd.f32 %v1712_v59, %v6122_v36  ;;  %v1546_v1 = vsel %vm1413_vm5, %v10116_v46, %v5993_v62  ;;  %v525_v60 = vpop.f32.mrf.mxu0  ;;  %v6173_v59 = vadd.f32 %v5508_v20, %v1544_v2 }
 0x1bb   :  { %10193 = vst [vmem:[#allocation156_spill] sm:$0xff] %v6117_v29  ;;  %v1550_v11 = vsel %vm1415_vm13, %v10116_v46, %v863_v41  ;;  %v1480_v62 = vsel %vm1380_vm14, %v5212_v44, %v5959_v50  ;;  %v6190_v2 = vadd.f32 %v5500_v24, %v1478_v0 }
 0x1bc   :  { %10194 = vst [vmem:[#allocation157_spill] sm:$0xff] %v6122_v36  ;;  %v1792_v17 = vadd.f32 %v1791_v40, %v6117_v29  ;;  %v6167_v40 = vadd.f32 %v5500_v24, %v1476_v33  ;;  %v6170_v29 = vpop.f32.mrf.mxu3  ;;  %v1714_v36 = vadd.f32 %v1713_v7, %v6138_v49  ;;  %v1548_v33 = vsel %vm9809_vm10, %v10116_v46, %v860_v25 }
 0x1bd   :  { %10195 = vst [vmem:[#allocation158_spill] sm:$0xff] %v6134_v31  ;;  %v1484_v7 = vsel %vm1382_vm9, %v5212_v44, %v525_v60  ;;  %v6205_v46 = vadd.f32 %v5503_v30, %v10200_v38  ;;  %v1482_v25 = vsel %vm1381_vm15, %v5212_v44, %v6066_v45  ;;  %v6216_v60 = vadd.f32 %v5500_v24, %v1480_v62  ;;  %v10206_v44 = vld [vmem:[#allocation56_spill] sm:$0xff] }
 0x1be   :  { %10196 = vst [vmem:[#allocation159_spill] sm:$0xff] %v6138_v49  ;;  %v1793_v42 = vadd.f32 %v1792_v17, %v6134_v31  ;;  %v6194_v31 = vadd.f32 %v5508_v20, %v1546_v1  ;;  %v10198_v49 = vld [vmem:[#allocation50_spill] sm:$0xff]  ;;  %v6212_v1 = vadd.f32 %v5508_v20, %v1550_v11  ;;  %v1715_v0 = vadd.f32 %v1714_v36, %v6167_v40 }
 0x1bf   :  { %10197 = vst [vmem:[#allocation160_spill] sm:$0xff] %v6154_v23  ;;  %v6187_v17 = vpop.f32.mrf.mxu1  ;;  %v6201_v50 = vadd.f32 %v5544_v53, %v10198_v49  ;;  %v1737_v38 = vadd.f32 %v5923_v4, %v5949_v5  ;;  %v6230_v45 = vadd.f32 %v5503_v30, %v10206_v44  ;;  %v6233_v36 = vadd.f32 %v5500_v24, %v1484_v7  ;;  %v10208_v44 = vld [vmem:[#allocation74_spill] sm:$0xff] }
 0x1c0   :  { %v1794_v41 = vadd.f32 %v1793_v42, %v6154_v23  ;;  %10201 = vst [vmem:[#allocation52_spill] sm:$0xff] %v6205_v46  ;;  %v6220_v42 = vadd.f32 %v5508_v20, %v1548_v33  ;;  %v10204_v23 = vld [vmem:[#allocation54_spill] sm:$0xff]  ;;  %v1716_v11 = vadd.f32 %v1715_v0, %v6190_v2  ;;  %v6237_v62 = vadd.f32 %v5500_v24, %v1482_v25  ;;  %v10209_v25 = vld [vmem:[#allocation68_spill] sm:$0xff] }
 0x1c1   :  { %10199 = vst [vmem:[#allocation50_spill] sm:$0xff] %v6201_v50  ;;  %v6226_v61 = vadd.f32 %v5544_v53, %v10204_v23  ;;  %vm1719_vm10 = vcmask 1040384   ;;  %v1814_v4 = vadd.f32 %v6007_v35, %v6201_v50  ;;  %v1738_v23 = vadd.f32 %v1737_v38, %v6205_v46  ;;  %v10207_v33 = vld [vmem:[#allocation58_spill] sm:$0xff]  ;;  %v10211_v46 = vld [vmem:[#allocation60_spill] sm:$0xff] }
 0x1c2   :  { %10202 = vst [vmem:[#allocation161_spill] sm:$0xff] %v6212_v1  ;;  %v1795_v49 = vadd.f32 %v1794_v41, %v6173_v59  ;;  %v6245_v41 = vadd.f32 %v5544_v53, %v10207_v33  ;;  %v1798_v7 = vsel %vm1719_vm10, %v6212_v1, 0.0  ;;  %v1449_v24 = vsel %vm1364_vm8, %v5215_v34, %v10208_v44  ;;  %v10210_v0 = vld [vmem:[#allocation42_spill] sm:$0xff] }
 0x1c3   :  { %10203 = vst [vmem:[#allocation162_spill] sm:$0xff] %v6220_v42  ;;  %v1717_v35 = vadd.f32 %v1716_v11, %v6216_v60  ;;  %v1815_v33 = vadd.f32 %v1814_v4, %v6226_v61  ;;  %v6262_v5 = vadd.f32 %v5503_v30, %v10211_v46  ;;  %v10213_v50 = vld [vmem:[#allocation62_spill] sm:$0xff]  ;;  %v1720_v47 = vsel %vm1719_vm10, %v6233_v36, 0.0 }
 0x1c4   :  { %10205 = vst [vmem:[#allocation54_spill] sm:$0xff] %v6226_v61  ;;  %v1796_v20 = vadd.f32 %v1795_v49, %v6194_v31  ;;  %v1513_v49 = vsel %vm1396_vm2, %v10210_v0, %v10209_v25  ;;  %v6266_v1 = vadd.f32 %v5544_v53, %v10213_v50  ;;  %v1739_v22 = vadd.f32 %v1738_v23, %v6230_v45  ;;  %v10215_v44 = vld [vmem:[#allocation78_spill] sm:$0xff] }
 0x1c5   :  { %10212 = vst [vmem:[#allocation56_spill] sm:$0xff] %v6262_v5  ;;  %v1451_v11 = vsel %vm1365_vm0, %v5215_v34, %v10215_v44  ;;  %v1718_v4 = vadd.f32 %v1717_v35, %v6237_v62  ;;  %v1816_v25 = vadd.f32 %v1815_v33, %v6245_v41  ;;  %v6280_v50 = vadd.f32 %v5503_v30, %v1449_v24  ;;  %v10221_v33 = vld [vmem:[#allocation77_spill] sm:$0xff] }
 0x1c6   :  { %v1797_v38 = vadd.f32 %v1796_v20, %v6220_v42  ;;  %10214 = vst [vmem:[#allocation58_spill] sm:$0xff] %v6266_v1  ;;  %v6275_v20 = vpop.f32.mrf.mxu3  ;;  %v6283_v61 = vadd.f32 %v5544_v53, %v1513_v49  ;;  %v10218_v42 = vld [vmem:[#allocation71_spill] sm:$0xff]  ;;  %v1453_v44 = vsel %vm1366_vm6, %v5215_v34, %v10219_v52  ;;  %v6298_v49 = vadd.f32 %v5503_v30, %v1451_v11 }
 0x1c7   :  { %10216 = vst [vmem:[#allocation74_spill] sm:$0xff] %v6280_v50  ;;  %v1515_v23 = vsel %vm1397_vm4, %v10210_v0, %v10218_v42  ;;  %v6293_v35 = vpop.f32.mrf.mxu1  ;;  %v1817_v24 = vadd.f32 %v1816_v25, %v6266_v1  ;;  %v1517_v37 = vsel %vm1398_vm3, %v10210_v0, %v10221_v33  ;;  %v6314_v11 = vadd.f32 %v5503_v30, %v1453_v44  ;;  %v10229_v1 = vld [vmem:[#allocation100_spill] sm:$0xff] }
 0x1c8   :  { %v1799_v46 = vadd.f32 %v1798_v7, %v1797_v38  ;;  %10217 = vst [vmem:[#allocation68_spill] sm:$0xff] %v6283_v61  ;;  %v1721_v7 = vadd.f32 %v1720_v47, %v1718_v4  ;;  %v1740_v38 = vadd.f32 %v1739_v22, %v6262_v5  ;;  %v6305_v42 = vadd.f32 %v5544_v53, %v1515_v23  ;;  %v10235_v23 = vld [vmem:[#allocation107_spill] sm:$0xff] }
 0x1c9   :  { %10220 = vst [vmem:[#allocation42_spill] sm:$0xff] %v6298_v49  ;;  %v1455_v47 = vsel %vm1367_vm7, %v5215_v34, %v10223_v21  ;;  %v1818_v25 = vadd.f32 %v1817_v24, %v6283_v61  ;;  %v6317_v5 = vadd.f32 %v5544_v53, %v1517_v37  ;;  %v1519_v33 = vsel %vm1399_vm11, %v10210_v0, %v10227_v9  ;;  %v10232_v37 = vld [vmem:[#allocation90_spill] sm:$0xff] }
 0x1ca   :  { %10222 = vst [vmem:[#allocation60_spill] sm:$0xff] %v6305_v42  ;;  %v1800_v4 = vrot.slane %v1799_v46, 4  ;;  %v1741_v22 = vadd.f32 %v1740_v38, %v6280_v50  ;;  %vm10230_vm6 = vcmp.eq.s32.totalorder %v10124_v48, 1  ;;  %v1722_v52 = vrot.slane %v1721_v7, 4  ;;  %v10233_v50 = vld [vmem:[#allocation85_spill] sm:$0xff] }
 0x1cb   :  { %10225 = vst [vmem:[#allocation62_spill] sm:$0xff] %v6314_v11  ;;  %v1457_v21 = vsel %vm10230_vm6, %v5215_v34, %v10229_v1  ;;  %v6329_v24 = vadd.f32 %v5503_v30, %v1455_v47  ;;  %v1819_v44 = vadd.f32 %v1818_v25, %v6305_v42  ;;  %vm10234_vm4 = vcmp.eq.s32.totalorder %v10233_v50, 1  ;;  %v10240_v50 = vld [vmem:[#allocation96_spill] sm:$0xff] }
 0x1cc   :  { %10226 = vst [vmem:[#allocation78_spill] sm:$0xff] %v6317_v5  ;;  %v1742_v38 = vadd.f32 %v1741_v22, %v6298_v49  ;;  %v1521_v61 = vsel %vm10234_vm4, %v10210_v0, %v10232_v37  ;;  %vm10236_vm11 = vcmp.eq.s32.totalorder %v10127_v28, 1  ;;  %v1801_v48 = vadd.f32 %v1800_v4, %v1799_v46  ;;  %v10239_v49 = vld [vmem:[#allocation97_spill] sm:$0xff] }
 0x1cd   :  { %10231 = vst [vmem:[#allocation71_spill] sm:$0xff] %v6329_v24  ;;  %v1459_v9 = vsel %vm10236_vm11, %v5215_v34, %v10235_v23  ;;  %v6342_v22 = vadd.f32 %v5544_v53, %v1519_v33  ;;  %v6345_v47 = vadd.f32 %v5503_v30, %v1457_v21  ;;  %v1820_v25 = vadd.f32 %v1819_v44, %v6317_v5  ;;  %v10243_v21 = vld [vmem:[#allocation113_spill] sm:$0xff]  ;;  %v10245_v44 = vld [vmem:[#allocation106_spill] sm:$0xff] }
 0x1ce   :  { %v1743_v1 = vadd.f32 %v1742_v38, %v6314_v11  ;;  %vm10241_vm2 = vcmp.eq.s32.totalorder %v10240_v50, 1  ;;  %v6352_v42 = vpop.f32.mrf.mxu3  ;;  %v1723_v28 = vadd.f32 %v1722_v52, %v1721_v7  ;;  %v6356_v4 = vadd.f32 %v5544_v53, %v1521_v61  ;;  %v10246_v23 = vld [vmem:[#allocation102_spill] sm:$0xff] }
 0x1cf   :  { %10237 = vst [vmem:[#allocation84_spill] sm:$0xff] %v6342_v22  ;;  %v1523_v37 = vsel %vm10241_vm2, %v10210_v0, %v10239_v49  ;;  %v6359_v33 = vadd.f32 %v5503_v30, %v1459_v9  ;;  %vm10244_vm8 = vcmp.eq.s32.totalorder %v10152_v39, 1  ;;  %vm10247_vm0 = vcmp.eq.s32.totalorder %v10246_v23, 1  ;;  %v6369_v50 = vpop.f32.mrf.mxu1  ;;  %v10251_v23 = vld [vmem:[#allocation112_spill] sm:$0xff] }
 0x1d0   :  { %10238 = vst [vmem:[#allocation77_spill] sm:$0xff] %v6345_v47  ;;  %v1744_v46 = vadd.f32 %v1743_v1, %v6329_v24  ;;  %v1461_v38 = vsel %vm10244_vm8, %v5215_v34, %v10243_v21  ;;  %v1525_v49 = vsel %vm10247_vm0, %v10210_v0, %v10245_v44  ;;  %v1802_v7 = vrot.slane %v1801_v48, 2  ;;  %v10248_v1 = vld [vmem:[#allocation117_spill] sm:$0xff]  ;;  %v10249_v24 = vld [vmem:[#allocation108_spill] sm:$0xff] }
 0x1d1   :  { %10242 = vst [vmem:[#allocation91_spill] sm:$0xff] %v6359_v33  ;;  %v1821_v52 = vadd.f32 %v1820_v25, %v6342_v22  ;;  %v6374_v9 = vadd.f32 %v5544_v53, %v1523_v37  ;;  %vm10250_vm3 = vcmp.eq.s32.totalorder %v10249_v24, 1  ;;  %v6381_v21 = vadd.f32 %v5503_v30, %v1461_v38  ;;  %v10252_v44 = vld [vmem:[#allocation101_spill] sm:$0xff] }
 0x1d2   :  { %v1745_v61 = vadd.f32 %v1744_v46, %v6345_v47  ;;  %v1463_v39 = vsel %vm10250_vm3, %v5215_v34, %v10248_v1  ;;  %vm10253_vm7 = vcmp.eq.s32.totalorder %v10252_v44, 1  ;;  %v1724_v5 = vrot.slane %v1723_v28, 2  ;;  %v10254_v24 = vld [vmem:[#allocation137_spill] sm:$0xff]  ;;  %v10256_v1 = vld [vmem:[#allocation116_spill] sm:$0xff]  ;;  %v10257_v44 = vld [vmem:[#allocation110_spill] sm:$0xff] }
 0x1d3   :  { %v1527_v11 = vsel %vm10253_vm7, %v10210_v0, %v10251_v23  ;;  %v1822_v25 = vadd.f32 %v1821_v52, %v6356_v4  ;;  %v6390_v37 = vadd.f32 %v5544_v53, %v1525_v49  ;;  %v6393_v47 = vadd.f32 %v5503_v30, %v1463_v39  ;;  %v10259_v39 = vld [vmem:[#allocation155_spill] sm:$0xff] }
 0x1d4   :  { %v1746_v46 = vadd.f32 %v1745_v61, %v6359_v33  ;;  %vm10255_vm6 = vcmp.eq.s32.totalorder %v5468_v51, 1  ;;  %vm10258_vm4 = vcmp.eq.s32.totalorder %v10257_v44, 1  ;;  %v1803_v22 = vadd.f32 %v1802_v7, %v1801_v48  ;;  %v10261_v51 = vld [vmem:[#allocation133_spill] sm:$0xff] }
 0x1d5   :  { %v1465_v38 = vsel %vm10255_vm6, %v5215_v34, %v10254_v24  ;;  %v1529_v23 = vsel %vm10258_vm4, %v10210_v0, %v10256_v1  ;;  %v1823_v52 = vadd.f32 %v1822_v25, %v6374_v9  ;;  %v6405_v61 = vadd.f32 %v5544_v53, %v1527_v11 }
 0x1d6   :  { %v1747_v49 = vadd.f32 %v1746_v46, %v6381_v21  ;;  %vm10260_vm11 = vcmp.eq.s32.totalorder %v5489_v26, 1  ;;  %vm10262_vm2 = vcmp.eq.s32.totalorder %v5486_v56, 1  ;;  %v1725_v44 = vadd.f32 %v1724_v5, %v1723_v28  ;;  %v10264_v46 = vld [vmem:[#allocation59_spill] sm:$0xff]  ;;  %v6428_v1 = vpop.f32.mrf.mxu3 }
 0x1d7   :  { %v1467_v33 = vsel %vm10260_vm11, %v5215_v34, %v10259_v39  ;;  %v1531_v24 = vsel %vm10262_vm2, %v10210_v0, %v10261_v51  ;;  %v1824_v48 = vadd.f32 %v1823_v52, %v6390_v37  ;;  %v6418_v7 = vadd.f32 %v5503_v30, %v1465_v38  ;;  %v635_v39 = vpop.f32.mrf.mxu1 }
 0x1d8   :  { %v6421_v11 = vadd.f32 %v5544_v53, %v1529_v23  ;;  %v1748_v25 = vadd.f32 %v1747_v49, %v6393_v47  ;;  %vm10265_vm8 = vcmp.eq.s32.totalorder %v5567_v13, 1  ;;  %v1804_v56 = vrot.slane %v1803_v22, 1  ;;  %v10266_v23 = vld [vmem:[#allocation153_spill] sm:$0xff] }
 0x1d9   :  { %10263 = vst [vmem:[#allocation89_spill] sm:$0xff] %v6418_v7  ;;  %v1469_v26 = vsel %vm10265_vm8, %v5215_v34, %v10264_v46  ;;  %v1825_v5 = vadd.f32 %v1824_v48, %v6405_v61  ;;  %v6432_v28 = vadd.f32 %v5503_v30, %v1467_v33  ;;  %v6435_v38 = vadd.f32 %v5544_v53, %v1531_v24  ;;  %v10268_v49 = vld [vmem:[#allocation49_spill] sm:$0xff]  ;;  %v10270_v24 = vld [vmem:[#allocation66_spill] sm:$0xff] }
 0x1da   :  { %vm10267_vm0 = vcmp.eq.s32.totalorder %v5482_v18, 1  ;;  %vm10269_vm3 = vcmp.eq.s32.totalorder %v5528_v14, 1  ;;  %v1726_v51 = vrot.slane %v1725_v44, 1  ;;  %v1749_v48 = vadd.f32 %v1748_v25, %v6418_v7 }
 0x1db   :  { %v1533_v52 = vsel %vm10267_vm0, %v10210_v0, %v10266_v23  ;;  %v1471_v13 = vsel %vm10269_vm3, %v5215_v34, %v10268_v49  ;;  %v1826_v33 = vadd.f32 %v1825_v5, %v6421_v11  ;;  %v6448_v46 = vadd.f32 %v5503_v30, %v1469_v26 }
 0x1dc   :  { %vm10271_vm7 = vcmp.eq.s32.totalorder %v5591_v43, 1  ;;  %v6455_v23 = vadd.f32 %v5544_v53, %v1533_v52  ;;  %vm10272_vm6 = vcmp.eq.s32.totalorder %v5711_v10, 1  ;;  %v1805_v49 = vadd.f32 %v1804_v56, %v1803_v22  ;;  %v10273_v43 = vld [vmem:[#allocation86_spill] sm:$0xff]  ;;  %v10274_v52 = vld [vmem:[#allocation145_spill] sm:$0xff] }
 0x1dd   :  { %v1535_v18 = vsel %vm10271_vm7, %v10210_v0, %v10270_v24  ;;  %v1473_v14 = vsel %vm10272_vm6, %v5215_v34, %v6094_v58  ;;  %v1750_v25 = vadd.f32 %v1749_v48, %v6432_v28  ;;  %v1827_v5 = vadd.f32 %v1826_v33, %v6435_v38  ;;  %v10277_v48 = vld [vmem:[#allocation114_spill] sm:$0xff] }
 0x1de   :  { %v6464_v26 = vadd.f32 %v5503_v30, %v1471_v13  ;;  %v6467_v7 = vadd.f32 %v5544_v53, %v1535_v18  ;;  %vm10275_vm4 = vcmp.eq.s32.totalorder %v10274_v52, 1  ;;  %vm10276_vm11 = vcmp.eq.s32.totalorder %v5800_v55, 1 }
 0x1df   :  { %v1537_v24 = vsel %vm10275_vm4, %v10210_v0, %v10273_v43  ;;  %v1475_v10 = vsel %vm10276_vm11, %v5215_v34, %v6187_v17  ;;  %v1727_v58 = vadd.f32 %v1726_v51, %v1725_v44  ;;  %v1751_v22 = vadd.f32 %v1750_v25, %v6448_v46  ;;  %v976_v25 = vpop.f32.mrf.mxu3 }
 0x1e0   :  { %v6479_v56 = vadd.f32 %v5503_v30, %v1473_v14  ;;  %v1828_v13 = vadd.f32 %v1827_v5, %v6455_v23  ;;  %vm10278_vm2 = vcmp.eq.s32.totalorder %v5656_v8, 1  ;;  %v1477_v18 = vsel %vm1378_vm1, %v5215_v34, %v6293_v35 }
 0x1e1   :  { %v1539_v33 = vsel %vm10278_vm2, %v10210_v0, %v10277_v48  ;;  %v1845_v55 = vadd.f32 %v1805_v49, %v1727_v58  ;;  %v1752_v17 = vadd.f32 %v1751_v22, %v6464_v26  ;;  %v6492_v44 = vadd.f32 %v5544_v53, %v1537_v24 }
 0x1e2   :  { %v6495_v51 = vadd.f32 %v5503_v30, %v1475_v10  ;;  %v1829_v14 = vadd.f32 %v1828_v13, %v6467_v7  ;;  %vm10279_vm8 = vcmp.eq.s32.totalorder %v5822_v63, 1  ;;  %v6504_v35 = vadd.f32 %v5544_v53, %v1539_v33  ;;  %v10282_v13 = vld [vmem:[#allocation121_spill] sm:$0xff]  ;;  %v10284_v33 = vld [vmem:[#allocation118_spill] sm:$0xff] }
 0x1e3   :  { %v1541_v8 = vsel %vm10279_vm8, %v10210_v0, %v6170_v29  ;;  %v1753_v57 = vadd.f32 %v1752_v17, %v6479_v56  ;;  %v6507_v49 = vadd.f32 %v5503_v30, %v1477_v18  ;;  %v1479_v5 = vsel %vm1379_vm12, %v5215_v34, %v6369_v50  ;;  %v638_v29 = vpop.f32.mrf.mxu1 }
 0x1e4   :  { %vm10280_vm1 = vcmp.eq.s32.totalorder %v5912_v54, 1  ;;  %v6517_v43 = vmul.f32 0.0019455253, %v1845_v55  ;;  %v1830_v52 = vadd.f32 %v1829_v14, %v6492_v44  ;;  %v6522_v10 = vadd.f32 %v5544_v53, %v1541_v8  ;;  %v10288_v55 = vld [vmem:[#allocation120_spill] sm:$0xff] }
 0x1e5   :  { %v1543_v63 = vsel %vm10280_vm1, %v10210_v0, %v6275_v20  ;;  %v1754_v24 = vadd.f32 %v1753_v57, %v6495_v51  ;;  %v6525_v58 = vadd.f32 %v5503_v30, %v1479_v5  ;;  %v1481_v15 = vsel %vm1380_vm14, %v5215_v34, %v635_v39  ;;  %v10286_v39 = vld [vmem:[#allocation124_spill] sm:$0xff] }
 0x1e6   :  { %v1831_v54 = vadd.f32 %v1830_v52, %v6504_v35  ;;  %v6533_v50 = vadd.f32 %v5544_v53, %v1543_v63  ;;  %vm10281_vm12 = vcmp.eq.s32.totalorder %v5879_v3, 1  ;;  %v6541_v48 = vsub.f32 %v10282_v13, %v6517_v43  ;;  %v10291_v63 = vld [vmem:[#allocation123_spill] sm:$0xff] }
 0x1e7   :  { %v1755_v20 = vadd.f32 %v1754_v24, %v6507_v49  ;;  %v1545_v22 = vsel %vm10281_vm12, %v10210_v0, %v6352_v42  ;;  %v6545_v6 = vsub.f32 %v10284_v33, %v6517_v43  ;;  %v6549_v18 = vsub.f32 %v10286_v39, %v6517_v43  ;;  %v10293_v24 = vld [vmem:[#allocation125_spill] sm:$0xff] }
 0x1e8   :  { %10283 = vst [vmem:[#allocation83_spill] sm:$0xff] %v6541_v48  ;;  %v6553_v17 = vsub.f32 %v10288_v55, %v6517_v43  ;;  %v1832_v14 = vadd.f32 %v1831_v54, %v6522_v10  ;;  %v6557_v3 = vadd.f32 %v5503_v30, %v1481_v15  ;;  %v6561_v8 = vadd.f32 %v5544_v53, %v1545_v22 }
 0x1e9   :  { %10285 = vst [vmem:[#allocation88_spill] sm:$0xff] %v6545_v6  ;;  %v1756_v42 = vadd.f32 %v1755_v20, %v6525_v58  ;;  %v1483_v5 = vsel %vm1381_vm15, %v5215_v34, %v638_v29  ;;  %v6569_v52 = vsub.f32 %v10291_v63, %v6517_v43  ;;  %v6573_v54 = vsub.f32 %v10293_v24, %v6517_v43  ;;  %v979_v29 = vpop.f32.mrf.mxu3  ;;  %v10296_v24 = vld [vmem:[#allocation128_spill] sm:$0xff] }
 0x1ea   :  { %10287 = vst [vmem:[#allocation100_spill] sm:$0xff] %v6549_v18  ;;  %v1833_v57 = vadd.f32 %v1832_v14, %v6533_v50  ;;  %v1981_v15 = vmul.f32 %v6541_v48, %v6541_v48  ;;  %v1983_v20 = vmul.f32 %v6545_v6, %v6545_v6  ;;  %v2047_v22 = vmul.f32 %v6549_v18, %v6549_v18  ;;  %v10295_v14 = vld [vmem:[#allocation130_spill] sm:$0xff] }
 0x1eb   :  { %10289 = vst [vmem:[#allocation90_spill] sm:$0xff] %v6553_v17  ;;  %v2049_v16 = vmul.f32 %v6553_v17, %v6553_v17  ;;  %v1757_v13 = vadd.f32 %v1756_v42, %v6557_v3  ;;  %v6586_v39 = vadd.f32 %v5503_v30, %v1483_v5  ;;  %v641_v55 = vpop.f32.mrf.mxu1  ;;  %v6590_v63 = vsub.f32 %v10295_v14, %v6517_v43  ;;  %v10298_v42 = vld [vmem:[#allocation135_spill] sm:$0xff]  ;;  %v10300_v5 = vld [vmem:[#allocation132_spill] sm:$0xff] }
 0x1ec   :  { %10290 = vst [vmem:[#allocation85_spill] sm:$0xff] %v6557_v3  ;;  %v1834_v33 = vadd.f32 %v1833_v57, %v6561_v8  ;;  %v6594_v6 = vsub.f32 %v10296_v24, %v6517_v43  ;;  %v1547_v17 = vsel %vm1413_vm5, %v10210_v0, %v6428_v1  ;;  %v6602_v57 = vsub.f32 %v10298_v42, %v6517_v43  ;;  %v10303_v3 = vld [vmem:[#allocation139_spill] sm:$0xff] }
 0x1ed   :  { %10292 = vst [vmem:[#allocation107_spill] sm:$0xff] %v6569_v52  ;;  %v6606_v18 = vsub.f32 %v10300_v5, %v6517_v43  ;;  %v1551_v14 = vsel %vm1415_vm13, %v10210_v0, %v979_v29  ;;  %v1985_v24 = vmul.f32 %v6569_v52, %v6569_v52  ;;  %v2051_v48 = vmul.f32 %v6573_v54, %v6573_v54  ;;  %v10305_v29 = vld [vmem:[#allocation136_spill] sm:$0xff] }
 0x1ee   :  { %10294 = vst [vmem:[#allocation97_spill] sm:$0xff] %v6573_v54  ;;  %v2113_v12 = vadd.f32 %v1983_v20, %v1981_v15  ;;  %v2191_v1 = vadd.f32 %v2049_v16, %v2047_v22  ;;  %v1485_v42 = vsel %vm1382_vm9, %v5215_v34, %v641_v55  ;;  %vm10302_vm14 = vcmp.eq.s32.totalorder %v6130_v27, 1  ;;  %v10307_v27 = vld [vmem:[#allocation143_spill] sm:$0xff] }
 0x1ef   :  { %10297 = vst [vmem:[#allocation96_spill] sm:$0xff] %v6594_v6  ;;  %v1549_v5 = vsel %vm10302_vm14, %v10210_v0, %v976_v25  ;;  %v6623_v32 = vsub.f32 %v10303_v3, %v6517_v43  ;;  %v6627_v52 = vsub.f32 %v10305_v29, %v6517_v43  ;;  %v1987_v15 = vmul.f32 %v6590_v63, %v6590_v63  ;;  %v10309_v25 = vld [vmem:[#allocation141_spill] sm:$0xff]  ;;  %v10311_v29 = vld [vmem:[#allocation147_spill] sm:$0xff] }
 0x1f0   :  { %10299 = vst [vmem:[#allocation113_spill] sm:$0xff] %v6602_v57  ;;  %v2053_v20 = vmul.f32 %v6594_v6, %v6594_v6  ;;  %v2114_v19 = vadd.f32 %v2113_v12, %v1985_v24  ;;  %v2192_v34 = vadd.f32 %v2191_v1, %v2051_v48  ;;  %v6634_v22 = vadd.f32 %v5544_v53, %v1547_v17 }
 0x1f1   :  { %10301 = vst [vmem:[#allocation106_spill] sm:$0xff] %v6606_v18  ;;  %v6638_v0 = vsub.f32 %v10307_v27, %v6517_v43  ;;  %v6642_v3 = vsub.f32 %v10309_v25, %v6517_v43  ;;  %v6645_v16 = vadd.f32 %v5544_v53, %v1551_v14  ;;  %v1989_v55 = vmul.f32 %v6602_v57, %v6602_v57  ;;  %v10313_v14 = vld [vmem:[#allocation144_spill] sm:$0xff] }
 0x1f2   :  { %10304 = vst [vmem:[#allocation102_spill] sm:$0xff] %v6623_v32  ;;  %v2055_v48 = vmul.f32 %v6606_v18, %v6606_v18  ;;  %v2115_v24 = vadd.f32 %v2114_v19, %v1987_v15  ;;  %v2193_v17 = vadd.f32 %v2192_v34, %v2053_v20  ;;  %v6652_v12 = vadd.f32 %v5503_v30, %v1485_v42  ;;  %v10317_v19 = vld [vmem:[#allocation148_spill] sm:$0xff] }
 0x1f3   :  { %10306 = vst [vmem:[#allocation117_spill] sm:$0xff] %v6627_v52  ;;  %v6655_v1 = vadd.f32 %v5544_v53, %v1549_v5  ;;  %v6659_v27 = vsub.f32 %v10311_v29, %v6517_v43  ;;  %v6663_v25 = vsub.f32 %v10313_v14, %v6517_v43  ;;  %v1991_v6 = vmul.f32 %v6623_v32, %v6623_v32  ;;  %v10315_v53 = vld [vmem:[#allocation150_spill] sm:$0xff] }
 0x1f4   :  { %10308 = vst [vmem:[#allocation108_spill] sm:$0xff] %v6638_v0  ;;  %v2057_v15 = vmul.f32 %v6627_v52, %v6627_v52  ;;  %v2116_v20 = vadd.f32 %v2115_v24, %v1989_v55  ;;  %v2194_v30 = vadd.f32 %v2193_v17, %v2055_v48  ;;  %v1835_v42 = vadd.f32 %v1834_v33, %v6634_v22  ;;  %v10321_v52 = vld [vmem:[#allocation152_spill] sm:$0xff] }
 0x1f5   :  { %10310 = vst [vmem:[#allocation112_spill] sm:$0xff] %v6642_v3  ;;  %v6672_v5 = vsub.f32 %v10315_v53, %v6517_v43  ;;  %v6676_v34 = vsub.f32 %v10317_v19, %v6517_v43  ;;  %v1837_v29 = vsel %vm1719_vm10, %v6645_v16, 0.0  ;;  %v1993_v14 = vmul.f32 %v6638_v0, %v6638_v0  ;;  %v10319_v53 = vld [vmem:[#allocation154_spill] sm:$0xff] }
 0x1f6   :  { %10312 = vst [vmem:[#allocation101_spill] sm:$0xff] %v6659_v27  ;;  %v2059_v55 = vmul.f32 %v6642_v3, %v6642_v3  ;;  %v2117_v48 = vadd.f32 %v2116_v20, %v1991_v6  ;;  %v2195_v24 = vadd.f32 %v2194_v30, %v2057_v15  ;;  %v1759_v33 = vsel %vm1719_vm10, %v6652_v12, 0.0 }
 0x1f7   :  { %10314 = vst [vmem:[#allocation137_spill] sm:$0xff] %v6663_v25  ;;  %v1836_v17 = vadd.f32 %v1835_v42, %v6655_v1  ;;  %v6689_v19 = vsub.f32 %v10319_v53, %v6517_v43  ;;  %v6693_v18 = vsub.f32 %v10321_v52, %v6517_v43  ;;  %v1995_v54 = vmul.f32 %v6659_v27, %v6659_v27  ;;  %v10323_v42 = vld [vmem:[#allocation79_spill] sm:$0xff]  ;;  %v10325_v53 = vld [vmem:[#allocation53_spill] sm:$0xff] }
 0x1f8   :  { %10316 = vst [vmem:[#allocation116_spill] sm:$0xff] %v6672_v5  ;;  %v2061_v6 = vmul.f32 %v6663_v25, %v6663_v25  ;;  %v2118_v15 = vadd.f32 %v2117_v48, %v1993_v14  ;;  %v2196_v20 = vadd.f32 %v2195_v24, %v2059_v55  ;;  %v1758_v30 = vadd.f32 %v1757_v13, %v6586_v39  ;;  %v10327_v13 = vld [vmem:[#allocation57_spill] sm:$0xff]  ;;  %v10329_v24 = vld [vmem:[#allocation48_spill] sm:$0xff] }
 0x1f9   :  { %10318 = vst [vmem:[#allocation110_spill] sm:$0xff] %v6676_v34  ;;  %v6702_v3 = vsub.f32 %v10323_v42, %v6517_v43  ;;  %v6706_v0 = vsub.f32 %v10325_v53, %v6517_v43  ;;  %v1838_v52 = vadd.f32 %v1837_v29, %v1836_v17  ;;  %v1997_v32 = vmul.f32 %v6672_v5, %v6672_v5 }
 0x1fa   :  { %10320 = vst [vmem:[#allocation155_spill] sm:$0xff] %v6689_v19  ;;  %v2063_v27 = vmul.f32 %v6676_v34, %v6676_v34  ;;  %v2119_v25 = vadd.f32 %v2118_v15, %v1995_v54  ;;  %v2197_v14 = vadd.f32 %v2196_v20, %v2061_v6  ;;  %v1760_v55 = vadd.f32 %v1759_v33, %v1758_v30  ;;  %v10331_v54 = vld [vmem:[#allocation64_spill] sm:$0xff]  ;;  %v10333_v33 = vld [vmem:[#allocation43_spill] sm:$0xff] }
 0x1fb   :  { %10322 = vst [vmem:[#allocation133_spill] sm:$0xff] %v6693_v18  ;;  %v6714_v48 = vsub.f32 %v10327_v13, %v6517_v43  ;;  %v6718_v42 = vsub.f32 %v10329_v24, %v6517_v43  ;;  %v1999_v29 = vmul.f32 %v6689_v19, %v6689_v19  ;;  %v2065_v17 = vmul.f32 %v6693_v18, %v6693_v18 }
 0x1fc   :  { %10324 = vst [vmem:[#allocation59_spill] sm:$0xff] %v6702_v3  ;;  %v2120_v53 = vadd.f32 %v2119_v25, %v1997_v32  ;;  %v2198_v5 = vadd.f32 %v2197_v14, %v2063_v27  ;;  %v6726_v6 = vsub.f32 %v10331_v54, %v6517_v43  ;;  %v6730_v15 = vsub.f32 %v10333_v33, %v6517_v43  ;;  %v10335_v32 = vld [vmem:[#allocation61_spill] sm:$0xff] }
 0x1fd   :  { %10326 = vst [vmem:[#allocation153_spill] sm:$0xff] %v6706_v0  ;;  %v1839_v20 = vrot.slane %v1838_v52, 4  ;;  %v2001_v30 = vmul.f32 %v6702_v3, %v6702_v3  ;;  %v2067_v13 = vmul.f32 %v6706_v0, %v6706_v0  ;;  %v1761_v18 = vrot.slane %v1760_v55, 4  ;;  %v10337_v25 = vld [vmem:[#allocation41_spill] sm:$0xff] }
 0x1fe   :  { %10328 = vst [vmem:[#allocation49_spill] sm:$0xff] %v6714_v48  ;;  %v2121_v24 = vadd.f32 %v2120_v53, %v1999_v29  ;;  %v2199_v34 = vadd.f32 %v2198_v5, %v2065_v17  ;;  %v6738_v27 = vsub.f32 %v10335_v32, %v6517_v43  ;;  %v6742_v14 = vsub.f32 %v10337_v25, %v6517_v43  ;;  %v10339_v29 = vld [vmem:[#allocation63_spill] sm:$0xff] }
 0x1ff   :  { %10330 = vst [vmem:[#allocation66_spill] sm:$0xff] %v6718_v42  ;;  %v2003_v54 = vmul.f32 %v6714_v48, %v6714_v48  ;;  %v2069_v33 = vmul.f32 %v6718_v42, %v6718_v42  ;;  %v6750_v5 = vsub.f32 %v10339_v29, %v6517_v43  ;;  %v10341_v17 = vld [vmem:[#allocation55_spill] sm:$0xff]  ;;  %v1840_v32 = vadd.f32 %v1839_v20, %v1838_v52 }
 0x200   :  { %10332 = vst [vmem:[#allocation86_spill] sm:$0xff] %v6726_v6  ;;  %v2122_v3 = vadd.f32 %v2121_v24, %v2001_v30  ;;  %v2200_v19 = vadd.f32 %v2199_v34, %v2067_v13  ;;  %v6754_v53 = vsub.f32 %v10341_v17, %v6517_v43  ;;  %v2005_v25 = vmul.f32 %v6726_v6, %v6726_v6  ;;  %v10343_v34 = vld [vmem:[#allocation65_spill] sm:$0xff] }
 0x201   :  { %10334 = vst [vmem:[#allocation145_spill] sm:$0xff] %v6730_v15  ;;  %v2071_v0 = vmul.f32 %v6730_v15, %v6730_v15  ;;  %v1762_v42 = vadd.f32 %v1761_v18, %v1760_v55  ;;  %v6762_v30 = vsub.f32 %v10343_v34, %v6517_v43  ;;  %v10345_v13 = vld [vmem:[#allocation93_spill] sm:$0xff]  ;;  %v2007_v52 = vmul.f32 %v6738_v27, %v6738_v27 }
 0x202   :  { %10336 = vst [vmem:[#allocation114_spill] sm:$0xff] %v6738_v27  ;;  %v2123_v48 = vadd.f32 %v2122_v3, %v2003_v54  ;;  %v2201_v57 = vadd.f32 %v2200_v19, %v2069_v33  ;;  %v6766_v24 = vsub.f32 %v10345_v13, %v6517_v43  ;;  %v2073_v20 = vmul.f32 %v6742_v14, %v6742_v14  ;;  %v10347_v3 = vld [vmem:[#allocation72_spill] sm:$0xff]  ;;  %v10349_v18 = vld [vmem:[#allocation45_spill] sm:$0xff] }
 0x203   :  { %10338 = vst [vmem:[#allocation121_spill] sm:$0xff] %v6742_v14  ;;  %v6774_v19 = vsub.f32 %v10347_v3, %v6517_v43  ;;  %v6778_v55 = vsub.f32 %v10349_v18, %v6517_v43  ;;  %v2009_v54 = vmul.f32 %v6750_v5, %v6750_v5  ;;  %v2075_v33 = vmul.f32 %v6754_v53, %v6754_v53 }
 0x204   :  { %10340 = vst [vmem:[#allocation118_spill] sm:$0xff] %v6750_v5  ;;  %v2124_v29 = vadd.f32 %v2123_v48, %v2005_v25  ;;  %v2202_v17 = vadd.f32 %v2201_v57, %v2071_v0  ;;  %v1841_v15 = vrot.slane %v1840_v32, 2  ;;  %v1763_v14 = vrot.slane %v1762_v42, 2  ;;  %v10351_v57 = vld [vmem:[#allocation46_spill] sm:$0xff]  ;;  %v10353_v48 = vld [vmem:[#allocation67_spill] sm:$0xff] }
 0x205   :  { %10342 = vst [vmem:[#allocation124_spill] sm:$0xff] %v6754_v53  ;;  %v6786_v0 = vsub.f32 %v10351_v57, %v6517_v43  ;;  %v6790_v25 = vsub.f32 %v10353_v48, %v6517_v43  ;;  %v2011_v3 = vmul.f32 %v6762_v30, %v6762_v30  ;;  %v2077_v18 = vmul.f32 %v6766_v24, %v6766_v24 }
 0x206   :  { %10344 = vst [vmem:[#allocation120_spill] sm:$0xff] %v6762_v30  ;;  %v2125_v34 = vadd.f32 %v2124_v29, %v2007_v52  ;;  %v2203_v13 = vadd.f32 %v2202_v17, %v2073_v20  ;;  %v10355_v52 = vld [vmem:[#allocation103_spill] sm:$0xff]  ;;  %v10357_v29 = vld [vmem:[#allocation70_spill] sm:$0xff]  ;;  %v2013_v57 = vmul.f32 %v6774_v19, %v6774_v19  ;;  %v2079_v48 = vmul.f32 %v6778_v55, %v6778_v55 }
 0x207   :  { %10346 = vst [vmem:[#allocation123_spill] sm:$0xff] %v6766_v24  ;;  %v6798_v20 = vsub.f32 %v10355_v52, %v6517_v43  ;;  %v6802_v17 = vsub.f32 %v10357_v29, %v6517_v43  ;;  %v1842_v6 = vadd.f32 %v1841_v15, %v1840_v32  ;;  %v1764_v24 = vadd.f32 %v1763_v14, %v1762_v42  ;;  %v10365_v42 = vld [vmem:[#allocation76_spill] sm:$0xff] }
 0x208   :  { %10348 = vst [vmem:[#allocation125_spill] sm:$0xff] %v6774_v19  ;;  %v2126_v5 = vadd.f32 %v2125_v34, %v2009_v54  ;;  %v2204_v53 = vadd.f32 %v2203_v13, %v2075_v33  ;;  %v10359_v54 = vld [vmem:[#allocation47_spill] sm:$0xff]  ;;  %v10361_v34 = vld [vmem:[#allocation73_spill] sm:$0xff]  ;;  %v2015_v52 = vmul.f32 %v6786_v0, %v6786_v0  ;;  %v2081_v29 = vmul.f32 %v6790_v25, %v6790_v25 }
 0x209   :  { %10350 = vst [vmem:[#allocation130_spill] sm:$0xff] %v6778_v55  ;;  %v6810_v33 = vsub.f32 %v10359_v54, %v6517_v43  ;;  %v6814_v13 = vsub.f32 %v10361_v34, %v6517_v43  ;;  %v6826_v14 = vsub.f32 %v10365_v42, %v6517_v43  ;;  %v2083_v32 = vmul.f32 %v6802_v17, %v6802_v17 }
 0x20a   :  { %10352 = vst [vmem:[#allocation128_spill] sm:$0xff] %v6786_v0  ;;  %v2127_v30 = vadd.f32 %v2126_v5, %v2011_v3  ;;  %v2205_v27 = vadd.f32 %v2204_v53, %v2077_v18  ;;  %v10363_v5 = vld [vmem:[#allocation92_spill] sm:$0xff]  ;;  %v2017_v53 = vmul.f32 %v6798_v20, %v6798_v20  ;;  %v1843_v54 = vrot.slane %v1842_v6, 1 }
 0x20b   :  { %10354 = vst [vmem:[#allocation135_spill] sm:$0xff] %v6790_v25  ;;  %v6822_v15 = vsub.f32 %v10363_v5, %v6517_v43  ;;  %v1765_v34 = vrot.slane %v1764_v24, 1  ;;  %v2019_v5 = vmul.f32 %v6810_v33, %v6810_v33  ;;  %v2085_v42 = vmul.f32 %v6814_v13, %v6814_v13 }
 0x20c   :  { %10356 = vst [vmem:[#allocation132_spill] sm:$0xff] %v6798_v20  ;;  %v2128_v19 = vadd.f32 %v2127_v30, %v2013_v57  ;;  %v2206_v55 = vadd.f32 %v2205_v27, %v2079_v48  ;;  %v10367_v27 = vld [vmem:[#allocation98_spill] sm:$0xff]  ;;  %v10368_v57 = vld [vmem:[#allocation81_spill] sm:$0xff]  ;;  %v1844_v0 = vadd.f32 %v1843_v54, %v1842_v6  ;;  %vm3735_vm6 = vcmask 7168  }
 0x20d   :  { %10358 = vst [vmem:[#allocation139_spill] sm:$0xff] %v6802_v17  ;;  %v6834_v30 = vsub.f32 %v10367_v27, %v6517_v43  ;;  %v6838_v48 = vsub.f32 %v10368_v57, %v6517_v43  ;;  %v2021_v27 = vmul.f32 %v6822_v15, %v6822_v15  ;;  %v2087_v57 = vmul.f32 %v6826_v14, %v6826_v14 }
 0x20e   :  { %10360 = vst [vmem:[#allocation136_spill] sm:$0xff] %v6810_v33  ;;  %v2129_v3 = vadd.f32 %v2128_v19, %v2015_v52  ;;  %v2207_v18 = vadd.f32 %v2206_v55, %v2081_v29  ;;  %v10370_v19 = vld [vmem:[#allocation104_spill] sm:$0xff]  ;;  %v10371_v52 = vld [vmem:[#allocation87_spill] sm:$0xff] }
 0x20f   :  { %10362 = vst [vmem:[#allocation143_spill] sm:$0xff] %v6814_v13  ;;  %v6846_v55 = vsub.f32 %v10370_v19, %v6517_v43  ;;  %v6850_v29 = vsub.f32 %v10371_v52, %v6517_v43  ;;  %v1766_v13 = vadd.f32 %v1765_v34, %v1764_v24  ;;  %v2023_v19 = vmul.f32 %v6834_v30, %v6834_v30  ;;  %v10379_v24 = vld [vmem:[#allocation99_spill] sm:$0xff] }
 0x210   :  { %10364 = vst [vmem:[#allocation141_spill] sm:$0xff] %v6822_v15  ;;  %v2130_v25 = vadd.f32 %v2129_v3, %v2017_v53  ;;  %v2208_v17 = vadd.f32 %v2207_v18, %v2083_v32  ;;  %v10373_v53 = vld [vmem:[#allocation109_spill] sm:$0xff]  ;;  %v10375_v3 = vld [vmem:[#allocation94_spill] sm:$0xff]  ;;  %v2089_v52 = vmul.f32 %v6838_v48, %v6838_v48 }
 0x211   :  { %10366 = vst [vmem:[#allocation147_spill] sm:$0xff] %v6826_v14  ;;  %v6858_v32 = vsub.f32 %v10373_v53, %v6517_v43  ;;  %v6862_v18 = vsub.f32 %v10375_v3, %v6517_v43  ;;  %v2025_v54 = vmul.f32 %v6846_v55, %v6846_v55  ;;  %v2091_v34 = vmul.f32 %v6850_v29, %v6850_v29  ;;  %v10385_v3 = vld [vmem:[#allocation111_spill] sm:$0xff] }
 0x212   :  { %10369 = vst [vmem:[#allocation144_spill] sm:$0xff] %v6838_v48  ;;  %v2131_v33 = vadd.f32 %v2130_v25, %v2019_v5  ;;  %v2209_v20 = vadd.f32 %v2208_v17, %v2085_v42  ;;  %v10377_v25 = vld [vmem:[#allocation105_spill] sm:$0xff]  ;;  %v6874_v17 = vsub.f32 %v10379_v24, %v6517_v43  ;;  %v1846_v53 = vadd.f32 %v1844_v0, %v1766_v13  ;;  %v10387_v13 = vld [vmem:[#allocation159_spill] sm:$0xff] }
 0x213   :  { %10372 = vst [vmem:[#allocation150_spill] sm:$0xff] %v6850_v29  ;;  %v6870_v6 = vsub.f32 %v10377_v25, %v6517_v43  ;;  %v6890_v25 = vsub.f32 %v10385_v3, %v6517_v43  ;;  %v2027_v24 = vmul.f32 %v6858_v32, %v6858_v32 }
 0x214   :  { %10374 = vst [vmem:[#allocation148_spill] sm:$0xff] %v6858_v32  ;;  %v2132_v15 = vadd.f32 %v2131_v33, %v2021_v27  ;;  %v2210_v14 = vadd.f32 %v2209_v20, %v2087_v57  ;;  %v10381_v33 = vld [vmem:[#allocation115_spill] sm:$0xff]  ;;  %v10383_v27 = vld [vmem:[#allocation157_spill] sm:$0xff] }
 0x215   :  { %10376 = vst [vmem:[#allocation154_spill] sm:$0xff] %v6862_v18  ;;  %v6882_v20 = vsub.f32 %v10381_v33, %v6517_v43  ;;  %v6886_v57 = vsub.f32 %v10383_v27, %v6517_v43  ;;  %v10390_v33 = vld [vmem:[#allocation156_spill] sm:$0xff]  ;;  %v2029_v3 = vmul.f32 %v6870_v6, %v6870_v6 }
 0x216   :  { %10378 = vst [vmem:[#allocation152_spill] sm:$0xff] %v6870_v6  ;;  %v2133_v5 = vadd.f32 %v2132_v15, %v2023_v19  ;;  %v2211_v42 = vadd.f32 %v2210_v14, %v2089_v52  ;;  %v2093_v15 = vmul.f32 %v6862_v18, %v6862_v18  ;;  %v6898_v19 = vsub.f32 %v10387_v13, %v6517_v43 }
 0x217   :  { %10380 = vst [vmem:[#allocation79_spill] sm:$0xff] %v6874_v17  ;;  %v6902_v52 = vsub.f32 %v6167_v40, %v6517_v43  ;;  %v6906_v27 = vsub.f32 %v10390_v33, %v6517_v43  ;;  %v2095_v18 = vmul.f32 %v6874_v17, %v6874_v17  ;;  %v6920_v40 = vsub.f32 %v6216_v60, %v6517_v43  ;;  %v10395_v33 = vld [vmem:[#allocation158_spill] sm:$0xff] }
 0x218   :  { %10382 = vst [vmem:[#allocation53_spill] sm:$0xff] %v6882_v20  ;;  %v2134_v14 = vadd.f32 %v2133_v5, %v2025_v54  ;;  %v2212_v0 = vadd.f32 %v2211_v42, %v2091_v34  ;;  %v6912_v5 = vmul.f32 0.0019455253, %v1846_v53  ;;  %v6916_v42 = vsub.f32 %v6190_v2, %v6517_v43 }
 0x219   :  { %10384 = vst [vmem:[#allocation57_spill] sm:$0xff] %v6886_v57  ;;  %v6924_v13 = vsub.f32 %v6237_v62, %v6517_v43  ;;  %v6928_v29 = vsub.f32 %v10395_v33, %v6517_v43  ;;  %v2031_v53 = vmul.f32 %v6882_v20, %v6882_v20  ;;  %v6936_v60 = vsub.f32 %v6233_v36, %v6517_v43 }
 0x21a   :  { %10386 = vst [vmem:[#allocation48_spill] sm:$0xff] %v6890_v25  ;;  %v2135_v54 = vadd.f32 %v2134_v14, %v2027_v24  ;;  %v2213_v34 = vadd.f32 %v2212_v0, %v2093_v15  ;;  %v2097_v24 = vmul.f32 %v6890_v25, %v6890_v25  ;;  %v10397_v14 = vld [vmem:[#allocation160_spill] sm:$0xff]  ;;  %v2033_v0 = vmul.f32 %v6886_v57, %v6886_v57  ;;  %v10399_v25 = vld [vmem:[#allocation122_spill] sm:$0xff] }
 0x21b   :  { %10388 = vst [vmem:[#allocation64_spill] sm:$0xff] %v6898_v19  ;;  %v6940_v62 = vsub.f32 %v10397_v14, %v6517_v43  ;;  %v2099_v33 = vmul.f32 %v6906_v27, %v6906_v27  ;;  %v10404_v14 = vld [vmem:[#allocation129_spill] sm:$0xff] }
 0x21c   :  { %10389 = vst [vmem:[#allocation43_spill] sm:$0xff] %v6902_v52  ;;  %v2136_v2 = vadd.f32 %v2135_v54, %v2029_v3  ;;  %v2214_v15 = vadd.f32 %v2213_v34, %v2095_v18  ;;  %v6948_v3 = vsub.f32 %v10399_v25, %v6912_v5  ;;  %v10401_v18 = vld [vmem:[#allocation119_spill] sm:$0xff]  ;;  %v6956_v54 = vsub.f32 %v6173_v59, %v6517_v43 }
 0x21d   :  { %10391 = vst [vmem:[#allocation61_spill] sm:$0xff] %v6906_v27  ;;  %v6952_v36 = vsub.f32 %v10401_v18, %v6912_v5  ;;  %v6960_v34 = vsub.f32 %v6194_v31, %v6517_v43  ;;  %v10408_v27 = vld [vmem:[#allocation162_spill] sm:$0xff]  ;;  %v2103_v57 = vmul.f32 %v6940_v62, %v6940_v62 }
 0x21e   :  { %10392 = vst [vmem:[#allocation41_spill] sm:$0xff] %v6916_v42  ;;  %v2137_v17 = vadd.f32 %v2136_v2, %v2031_v53  ;;  %v2215_v48 = vadd.f32 %v2214_v15, %v2097_v24  ;;  %v6964_v53 = vsub.f32 %v10404_v14, %v6912_v5  ;;  %v10406_v24 = vld [vmem:[#allocation127_spill] sm:$0xff]  ;;  %v2035_v2 = vmul.f32 %v6898_v19, %v6898_v19 }
 0x21f   :  { %10393 = vst [vmem:[#allocation63_spill] sm:$0xff] %v6920_v40  ;;  %v6968_v25 = vsub.f32 %v10406_v24, %v6912_v5  ;;  %v2101_v15 = vmul.f32 %v6928_v29, %v6928_v29  ;;  %v6976_v31 = vsub.f32 %v10408_v27, %v6517_v43  ;;  %v2037_v14 = vmul.f32 %v6902_v52, %v6902_v52  ;;  %v10410_v24 = vld [vmem:[#allocation126_spill] sm:$0xff]  ;;  %v10412_v27 = vld [vmem:[#allocation161_spill] sm:$0xff] }
 0x220   :  { %10394 = vst [vmem:[#allocation55_spill] sm:$0xff] %v6924_v13  ;;  %v2138_v59 = vadd.f32 %v2137_v17, %v2033_v0  ;;  %v2216_v18 = vadd.f32 %v2215_v48, %v2099_v33  ;;  %v6984_v20 = vsub.f32 %v10410_v24, %v6912_v5  ;;  %v1982_v17 = vmul.f32 %v6948_v3, %v6948_v3  ;;  %v10413_v33 = vld [vmem:[#allocation134_spill] sm:$0xff] }
 0x221   :  { %10396 = vst [vmem:[#allocation65_spill] sm:$0xff] %v6928_v29  ;;  %v1984_v48 = vmul.f32 %v6952_v36, %v6952_v36  ;;  %v6992_v0 = vsub.f32 %v10412_v27, %v6517_v43  ;;  %v6996_v29 = vsub.f32 %v10413_v33, %v6912_v5  ;;  %v2048_v24 = vmul.f32 %v6964_v53, %v6964_v53 }
 0x222   :  { %10398 = vst [vmem:[#allocation93_spill] sm:$0xff] %v6940_v62  ;;  %v2139_v19 = vadd.f32 %v2138_v59, %v2035_v2  ;;  %v2217_v6 = vadd.f32 %v2216_v18, %v2101_v15  ;;  %v2050_v2 = vmul.f32 %v6968_v25, %v6968_v25  ;;  %v2039_v15 = vmul.f32 %v6916_v42, %v6916_v42 }
 0x223   :  { %10400 = vst [vmem:[#allocation72_spill] sm:$0xff] %v6948_v3  ;;  %v2041_v43 = vmul.f32 %v6920_v40, %v6920_v40  ;;  %v2043_v27 = vmul.f32 %v6924_v13, %v6924_v13  ;;  %v2105_v33 = vmul.f32 %v6956_v54, %v6956_v54  ;;  %v2152_v62 = vadd.f32 %v1984_v48, %v1982_v17  ;;  %v10425_v48 = vld [vmem:[#allocation151_spill] sm:$0xff] }
 0x224   :  { %10402 = vst [vmem:[#allocation45_spill] sm:$0xff] %v6952_v36  ;;  %v2140_v59 = vadd.f32 %v2139_v19, %v2037_v14  ;;  %v2218_v18 = vadd.f32 %v2217_v6, %v2103_v57  ;;  %v10415_v36 = vld [vmem:[#allocation131_spill] sm:$0xff]  ;;  %v10419_v19 = vld [vmem:[#allocation138_spill] sm:$0xff]  ;;  %v1986_v14 = vmul.f32 %v6984_v20, %v6984_v20  ;;  %v2230_v42 = vadd.f32 %v2050_v2, %v2048_v24 }
 0x225   :  { %10403 = vst [vmem:[#allocation46_spill] sm:$0xff] %v6956_v54  ;;  %v7006_v3 = vsub.f32 %v10415_v36, %v6912_v5  ;;  %v7020_v6 = vsub.f32 %v10419_v19, %v6912_v5  ;;  %v10421_v57 = vld [vmem:[#allocation146_spill] sm:$0xff]  ;;  %v2052_v54 = vmul.f32 %v6996_v29, %v6996_v29  ;;  %v2107_v17 = vmul.f32 %v6960_v34, %v6960_v34 }
 0x226   :  { %10405 = vst [vmem:[#allocation67_spill] sm:$0xff] %v6964_v53  ;;  %v7024_v36 = vsub.f32 %v10421_v57, %v6912_v5  ;;  %v2141_v13 = vadd.f32 %v2140_v59, %v2039_v15  ;;  %v2219_v40 = vadd.f32 %v2218_v18, %v2105_v33  ;;  %v10423_v19 = vld [vmem:[#allocation142_spill] sm:$0xff]  ;;  %v2153_v32 = vadd.f32 %v2152_v62, %v1986_v14  ;;  %v10427_v59 = vld [vmem:[#allocation149_spill] sm:$0xff]  ;;  %v10428_v33 = vld [vmem:[#allocation44_spill] sm:$0xff] }
 0x227   :  { %10407 = vst [vmem:[#allocation103_spill] sm:$0xff] %v6968_v25  ;;  %v10417_v25 = vld [vmem:[#allocation140_spill] sm:$0xff]  ;;  %v7034_v52 = vsub.f32 %v10423_v19, %v6912_v5  ;;  %v1988_v57 = vmul.f32 %v7006_v3, %v7006_v3  ;;  %v7042_v15 = vsub.f32 %v10425_v48, %v6912_v5  ;;  %v2231_v2 = vadd.f32 %v2230_v42, %v2052_v54  ;;  %v10430_v54 = vld [vmem:[#allocation82_spill] sm:$0xff] }
 0x228   :  { %10409 = vst [vmem:[#allocation70_spill] sm:$0xff] %v6976_v31  ;;  %v7016_v53 = vsub.f32 %v10417_v25, %v6912_v5  ;;  %v2045_v25 = vmul.f32 %v6936_v60, %v6936_v60  ;;  %v7048_v18 = vsub.f32 %v10427_v59, %v6912_v5  ;;  %v7052_v19 = vsub.f32 %v10428_v33, %v6912_v5 }
 0x229   :  { %10411 = vst [vmem:[#allocation47_spill] sm:$0xff] %v6984_v20  ;;  %v1990_v62 = vmul.f32 %v7020_v6, %v7020_v6  ;;  %v2154_v14 = vadd.f32 %v2153_v32, %v1988_v57  ;;  %v2056_v48 = vmul.f32 %v7024_v36, %v7024_v36  ;;  %v2109_v42 = vmul.f32 %v6976_v31, %v6976_v31 }
 0x22a   :  { %10414 = vst [vmem:[#allocation73_spill] sm:$0xff] %v6996_v29  ;;  %v2054_v24 = vmul.f32 %v7016_v53, %v7016_v53  ;;  %v2142_v29 = vadd.f32 %v2141_v13, %v2041_v43  ;;  %v7062_v59 = vsub.f32 %v10430_v54, %v6912_v5  ;;  %v1992_v33 = vmul.f32 %v7034_v52, %v7034_v52 }
 0x22b   :  { %10416 = vst [vmem:[#allocation92_spill] sm:$0xff] %v7006_v3  ;;  %v2220_v3 = vadd.f32 %v2219_v40, %v2107_v17  ;;  %v2111_v32 = vmul.f32 %v6992_v0, %v6992_v0  ;;  %v10431_v40 = vld [vmem:[#allocation95_spill] sm:$0xff]  ;;  %v2058_v43 = vmul.f32 %v7042_v15, %v7042_v15 }
 0x22c   :  { %10418 = vst [vmem:[#allocation76_spill] sm:$0xff] %v7016_v53  ;;  %v2232_v20 = vadd.f32 %v2231_v2, %v2054_v24  ;;  %v2155_v53 = vadd.f32 %v2154_v14, %v1990_v62  ;;  %v7070_v13 = vsub.f32 %v10431_v40, %v6912_v5  ;;  %v10433_v17 = vld [vmem:[#allocation51_spill] sm:$0xff]  ;;  %v1994_v62 = vmul.f32 %v7048_v18, %v7048_v18 }
 0x22d   :  { %10420 = vst [vmem:[#allocation98_spill] sm:$0xff] %v7020_v6  ;;  %v7076_v24 = vsub.f32 %v10433_v17, %v6912_v5  ;;  %v10434_v2 = vld [vmem:[#allocation75_spill] sm:$0xff]  ;;  %v2143_v31 = vadd.f32 %v2142_v29, %v2043_v27  ;;  %v2060_v40 = vmul.f32 %v7052_v19, %v7052_v19  ;;  %v2222_v6 = vsel %vm1719_vm10, %v2111_v32, 0.0 }
 0x22e   :  { %10422 = vst [vmem:[#allocation81_spill] sm:$0xff] %v7024_v36  ;;  %v2233_v57 = vadd.f32 %v2232_v20, %v2056_v48  ;;  %v7080_v54 = vsub.f32 %v10434_v2, %v6912_v5  ;;  %v2156_v14 = vadd.f32 %v2155_v53, %v1992_v33  ;;  %v2221_v36 = vadd.f32 %v2220_v3, %v2109_v42  ;;  %v10436_v48 = vld [vmem:[#allocation69_spill] sm:$0xff]  ;;  %v10437_v53 = vld [vmem:[#allocation50_spill] sm:$0xff] }
 0x22f   :  { %10424 = vst [vmem:[#allocation104_spill] sm:$0xff] %v7034_v52  ;;  %v2144_v20 = vsel %vm1719_vm10, %v2045_v25, 0.0  ;;  %v7089_v17 = vsub.f32 %v10436_v48, %v6912_v5  ;;  %v1996_v2 = vmul.f32 %v7062_v59, %v7062_v59  ;;  %v7096_v29 = vsub.f32 %v10437_v53, %v6912_v5  ;;  %v10439_v25 = vld [vmem:[#allocation80_spill] sm:$0xff]  ;;  %v10441_v33 = vld [vmem:[#allocation54_spill] sm:$0xff] }
 0x230   :  { %10426 = vst [vmem:[#allocation87_spill] sm:$0xff] %v7042_v15  ;;  %v2234_v52 = vadd.f32 %v2233_v57, %v2058_v43  ;;  %v2157_v15 = vadd.f32 %v2156_v14, %v1994_v62  ;;  %v2062_v3 = vmul.f32 %v7070_v13, %v7070_v13  ;;  %v7102_v42 = vsub.f32 %v10439_v25, %v6912_v5 }
 0x231   :  { %10429 = vst [vmem:[#allocation109_spill] sm:$0xff] %v7052_v19  ;;  %v7106_v43 = vsub.f32 %v10441_v33, %v6912_v5  ;;  %v1998_v57 = vmul.f32 %v7076_v24, %v7076_v24  ;;  %v2145_v62 = vadd.f32 %v2144_v20, %v2143_v31  ;;  %v2223_v14 = vadd.f32 %v2222_v6, %v2221_v36 }
 0x232   :  { %10432 = vst [vmem:[#allocation94_spill] sm:$0xff] %v7070_v13  ;;  %v2235_v27 = vadd.f32 %v2234_v52, %v2060_v40  ;;  %v2158_v32 = vadd.f32 %v2157_v15, %v1996_v2  ;;  %v2064_v48 = vmul.f32 %v7080_v54, %v7080_v54  ;;  %v10443_v52 = vld [vmem:[#allocation52_spill] sm:$0xff]  ;;  %v2000_v25 = vmul.f32 %v7089_v17, %v7089_v17  ;;  %v10446_v15 = vld [vmem:[#allocation58_spill] sm:$0xff] }
 0x233   :  { %10435 = vst [vmem:[#allocation105_spill] sm:$0xff] %v7080_v54  ;;  %v7114_v40 = vsub.f32 %v10443_v52, %v6912_v5  ;;  %v7120_v33 = vsub.f32 %v6245_v41, %v6912_v5  ;;  %v2066_v31 = vmul.f32 %v7096_v29, %v7096_v29  ;;  %v7126_v36 = vsub.f32 %v6230_v45, %v6912_v5  ;;  %v10451_v54 = vld [vmem:[#allocation74_spill] sm:$0xff] }
 0x234   :  { %10438 = vst [vmem:[#allocation99_spill] sm:$0xff] %v7096_v29  ;;  %v2236_v53 = vadd.f32 %v2235_v27, %v2062_v3  ;;  %v2159_v13 = vadd.f32 %v2158_v32, %v1998_v57  ;;  %v7130_v20 = vsub.f32 %v10446_v15, %v6912_v5  ;;  %v2002_v2 = vmul.f32 %v7102_v42, %v7102_v42  ;;  %v10449_v15 = vld [vmem:[#allocation68_spill] sm:$0xff] }
 0x235   :  { %10440 = vst [vmem:[#allocation115_spill] sm:$0xff] %v7102_v42  ;;  %v2146_v27 = vrot.slane %v2145_v62, 4  ;;  %v2224_v57 = vrot.slane %v2223_v14, 4  ;;  %v2068_v41 = vmul.f32 %v7106_v43, %v7106_v43  ;;  %v2004_v45 = vmul.f32 %v7114_v40, %v7114_v40 }
 0x236   :  { %10442 = vst [vmem:[#allocation157_spill] sm:$0xff] %v7106_v43  ;;  %v2237_v6 = vadd.f32 %v2236_v53, %v2064_v48  ;;  %v2160_v3 = vadd.f32 %v2159_v13, %v2000_v25  ;;  %v10448_v48 = vld [vmem:[#allocation56_spill] sm:$0xff]  ;;  %v7144_v29 = vsub.f32 %v10449_v15, %v6912_v5  ;;  %v2070_v13 = vmul.f32 %v7120_v33, %v7120_v33 }
 0x237   :  { %10444 = vst [vmem:[#allocation111_spill] sm:$0xff] %v7114_v40  ;;  %v7138_v53 = vsub.f32 %v10448_v48, %v6912_v5  ;;  %v7150_v43 = vsub.f32 %v10451_v54, %v6912_v5  ;;  %v2006_v48 = vmul.f32 %v7126_v36, %v7126_v36  ;;  %v2225_v19 = vadd.f32 %v2224_v57, %v2223_v14 }
 0x238   :  { %10445 = vst [vmem:[#allocation159_spill] sm:$0xff] %v7120_v33  ;;  %v2238_v32 = vadd.f32 %v2237_v6, %v2066_v31  ;;  %v2161_v52 = vadd.f32 %v2160_v3, %v2002_v2  ;;  %v10452_v31 = vld [vmem:[#allocation60_spill] sm:$0xff]  ;;  %v2147_v3 = vadd.f32 %v2146_v27, %v2145_v62  ;;  %v2072_v15 = vmul.f32 %v7130_v20, %v7130_v20 }
 0x239   :  { %10447 = vst [vmem:[#allocation156_spill] sm:$0xff] %v7130_v20  ;;  %v7154_v6 = vsub.f32 %v10452_v31, %v6912_v5  ;;  %v2008_v54 = vmul.f32 %v7138_v53, %v7138_v53  ;;  %v10456_v31 = vld [vmem:[#allocation78_spill] sm:$0xff]  ;;  %v2074_v62 = vmul.f32 %v7144_v29, %v7144_v29  ;;  %v2010_v27 = vmul.f32 %v7150_v43, %v7150_v43 }
 0x23a   :  { %10450 = vst [vmem:[#allocation158_spill] sm:$0xff] %v7144_v29  ;;  %v2239_v25 = vadd.f32 %v2238_v32, %v2068_v41  ;;  %v2162_v2 = vadd.f32 %v2161_v52, %v2004_v45  ;;  %v10454_v41 = vld [vmem:[#allocation42_spill] sm:$0xff]  ;;  %v7168_v42 = vsub.f32 %v10456_v31, %v6912_v5  ;;  %v2148_v45 = vrot.slane %v2147_v3, 2 }
 0x23b   :  { %10453 = vst [vmem:[#allocation160_spill] sm:$0xff] %v7154_v6  ;;  %v7162_v32 = vsub.f32 %v10454_v41, %v6912_v5  ;;  %v2226_v52 = vrot.slane %v2225_v19, 2 }
 0x23c   :  { %v2240_v40 = vadd.f32 %v2239_v25, %v2070_v13  ;;  %v2163_v33 = vadd.f32 %v2162_v2, %v2006_v48  ;;  %v2076_v13 = vmul.f32 %v7154_v6, %v7154_v6  ;;  %v10457_v48 = vld [vmem:[#allocation62_spill] sm:$0xff]  ;;  %v2149_v20 = vadd.f32 %v2148_v45, %v2147_v3 }
 0x23d   :  { %10455 = vst [vmem:[#allocation122_spill] sm:$0xff] %v7162_v32  ;;  %v7178_v2 = vsub.f32 %v10457_v48, %v6912_v5  ;;  %v2012_v41 = vmul.f32 %v7162_v32, %v7162_v32  ;;  %v2227_v6 = vadd.f32 %v2226_v52, %v2225_v19  ;;  %v10461_v19 = vld [vmem:[#allocation77_spill] sm:$0xff] }
 0x23e   :  { %v2241_v14 = vadd.f32 %v2240_v40, %v2072_v15  ;;  %v2164_v57 = vadd.f32 %v2163_v33, %v2008_v54  ;;  %v10458_v40 = vld [vmem:[#allocation84_spill] sm:$0xff]  ;;  %v2078_v33 = vmul.f32 %v7168_v42, %v7168_v42  ;;  %v7202_v45 = vsub.f32 %v10461_v19, %v6912_v5 }
 0x23f   :  { %v7184_v15 = vsub.f32 %v10458_v40, %v6912_v5  ;;  %v2014_v32 = vmul.f32 %v7178_v2, %v7178_v2 }
 0x240   :  { %v2242_v25 = vadd.f32 %v2241_v14, %v2074_v62  ;;  %v2165_v31 = vadd.f32 %v2164_v57, %v2010_v27  ;;  %v10459_v14 = vld [vmem:[#allocation71_spill] sm:$0xff]  ;;  %v7196_v27 = vsub.f32 %v6356_v4, %v6912_v5 }
 0x241   :  { %v7190_v48 = vsub.f32 %v10459_v14, %v6912_v5  ;;  %v2080_v57 = vmul.f32 %v7184_v15, %v7184_v15  ;;  %v2018_v14 = vmul.f32 %v7202_v45, %v7202_v45 }
 0x242   :  { %v2243_v54 = vadd.f32 %v2242_v25, %v2076_v13  ;;  %v2166_v29 = vadd.f32 %v2165_v31, %v2012_v41  ;;  %10460 = vst [vmem:[#allocation119_spill] sm:$0xff] %v7196_v27  ;;  %v2150_v13 = vrot.slane %v2149_v20, 1  ;;  %v2228_v25 = vrot.slane %v2227_v6, 1 }
 0x243   :  { %v2016_v52 = vmul.f32 %v7190_v48, %v7190_v48  ;;  %v7208_v41 = vsub.f32 %v6374_v9, %v6912_v5  ;;  %v2082_v4 = vmul.f32 %v7196_v27, %v7196_v27 }
 0x244   :  { %v2244_v62 = vadd.f32 %v2243_v54, %v2078_v33  ;;  %v2167_v40 = vadd.f32 %v2166_v29, %v2014_v32  ;;  %v2151_v33 = vadd.f32 %v2150_v13, %v2149_v20  ;;  %v2229_v29 = vadd.f32 %v2228_v25, %v2227_v6  ;;  %v10462_v54 = vld [vmem:[#allocation91_spill] sm:$0xff] }
 0x245   :  { %v2084_v9 = vmul.f32 %v7208_v41, %v7208_v41  ;;  %v7226_v20 = vsub.f32 %v6381_v21, %v6912_v5  ;;  %v7232_v13 = vsub.f32 %v6405_v61, %v6912_v5 }
 0x246   :  { %v2245_v3 = vadd.f32 %v2244_v62, %v2080_v57  ;;  %v2168_v31 = vadd.f32 %v2167_v40, %v2016_v52  ;;  %v7214_v62 = vsub.f32 %v10462_v54, %v6912_v5  ;;  %v7220_v57 = vsub.f32 %v6390_v37, %v6912_v5 }
 0x247   :  { %v2269_v27 = vadd.f32 %v2229_v29, %v2151_v33  ;;  %10463 = vst [vmem:[#allocation129_spill] sm:$0xff] %v7232_v13  ;;  %v2022_v21 = vmul.f32 %v7226_v20, %v7226_v20  ;;  %v2088_v61 = vmul.f32 %v7232_v13, %v7232_v13 }
 0x248   :  { %v2246_v32 = vadd.f32 %v2245_v3, %v2082_v4  ;;  %v2169_v19 = vadd.f32 %v2168_v31, %v2018_v14  ;;  %v2020_v6 = vmul.f32 %v7214_v62, %v7214_v62  ;;  %v2086_v37 = vmul.f32 %v7220_v57, %v7220_v57 }
 0x249   :  { %v2271_v3 = vmul.f32 0.0019455253, %v2269_v27  ;;  %v7238_v4 = vsub.f32 %v6393_v47, %v6912_v5  ;;  %v7244_v31 = vsub.f32 %v6421_v11, %v6912_v5  ;;  %v10465_v27 = vld [vmem:[#allocation89_spill] sm:$0xff]  ;;  %v7258_v14 = vsub.f32 %v6435_v38, %v6912_v5 }
 0x24a   :  { %v2247_v40 = vadd.f32 %v2246_v32, %v2084_v9  ;;  %v2170_v25 = vadd.f32 %v2169_v19, %v2020_v6  ;;  %v7252_v54 = vsub.f32 %v10465_v27, %v6912_v5  ;;  %v7305_v27 = vsub.f32 %v6504_v35, %v6912_v5 }
 0x24b   :  { %10464 = vst [vmem:[#allocation127_spill] sm:$0xff] %v7244_v31  ;;  %v7248_v29 = vadd.f32 1e-05, %v2271_v3  ;;  %v2024_v47 = vmul.f32 %v7238_v4, %v7238_v4  ;;  %v2090_v11 = vmul.f32 %v7244_v31, %v7244_v31  ;;  %v2092_v38 = vmul.f32 %v7258_v14, %v7258_v14 }
 0x24c   :  { %v2248_v52 = vadd.f32 %v2247_v40, %v2086_v37  ;;  %v2171_v33 = vadd.f32 %v2170_v25, %v2022_v21  ;;  %10466 = vst [vmem:[#allocation162_spill] sm:$0xff] %v7258_v14  ;;  %v7265_v40 = vsub.f32 %v6432_v28, %v6912_v5  ;;  %v2026_v6 = vmul.f32 %v7252_v54, %v7252_v54 }
 0x24d   :  { %4068 = vrsqrt.f32 %v7248_v29  ;;  %v7271_v37 = vsub.f32 %v6455_v23, %v6912_v5  ;;  %v7277_v25 = vsub.f32 %v6448_v46, %v6912_v5  ;;  %v7285_v21 = vsub.f32 %v6464_v26, %v6912_v5  ;;  %10470 = vst [vmem:[#allocation131_spill] sm:$0xff] %v7305_v27 }
 0x24e   :  { %v2249_v32 = vadd.f32 %v2248_v52, %v2088_v61  ;;  %v2172_v9 = vadd.f32 %v2171_v33, %v2024_v47  ;;  %v7281_v52 = vsub.f32 %v6467_v7, %v6912_v5  ;;  %v2028_v23 = vmul.f32 %v7265_v40, %v7265_v40 }
 0x24f   :  { %10467 = vst [vmem:[#allocation126_spill] sm:$0xff] %v7271_v37  ;;  %v7293_v33 = vsub.f32 %v6492_v44, %v6912_v5  ;;  %v2094_v46 = vmul.f32 %v7271_v37, %v7271_v37  ;;  %v7299_v7 = vsub.f32 %v6479_v56, %v6912_v5  ;;  %v2030_v26 = vmul.f32 %v7277_v25, %v7277_v25 }
 0x250   :  { %v2250_v19 = vadd.f32 %v2249_v32, %v2090_v11  ;;  %v2173_v3 = vadd.f32 %v2172_v9, %v2026_v6  ;;  %10468 = vst [vmem:[#allocation161_spill] sm:$0xff] %v7281_v52  ;;  %v2096_v47 = vmul.f32 %v7281_v52, %v7281_v52  ;;  %v7313_v9 = vsub.f32 %v6495_v51, %v6912_v5 }
 0x251   :  { %10469 = vst [vmem:[#allocation134_spill] sm:$0xff] %v7293_v33  ;;  %v2032_v56 = vmul.f32 %v7285_v21, %v7285_v21  ;;  %v7319_v6 = vsub.f32 %v6522_v10, %v6912_v5  ;;  %v2098_v35 = vmul.f32 %v7293_v33, %v7293_v33  ;;  %v2034_v51 = vmul.f32 %v7299_v7, %v7299_v7 }
 0x252   :  { %v2251_v28 = vadd.f32 %v2250_v19, %v2092_v38  ;;  %v2174_v32 = vadd.f32 %v2173_v3, %v2028_v23  ;;  %v7325_v3 = vsub.f32 %v6507_v49, %v6912_v5  ;;  %v7331_v23 = vsub.f32 %v6533_v50, %v6912_v5 }
 0x253   :  { %v7289_v61 = vpop.eup %4068  ;;  %10471 = vst [vmem:[#allocation140_spill] sm:$0xff] %v7319_v6  ;;  %v2100_v10 = vmul.f32 %v7305_v27, %v7305_v27  ;;  %v2036_v49 = vmul.f32 %v7313_v9, %v7313_v9  ;;  %v2102_v50 = vmul.f32 %v7319_v6, %v7319_v6  ;;  %vm2281_vm13 = vweird.f32 %v7248_v29  ;;  %v10510_v27 = vld [vmem:[#allocation136_spill] sm:$0xff] }
 0x254   :  { %v2252_v44 = vadd.f32 %v2251_v28, %v2094_v46  ;;  %v2276_v11 = vmul.f32 %v7289_v61, %v7248_v29  ;;  %v2175_v19 = vadd.f32 %v2174_v32, %v2030_v26  ;;  %10472 = vst [vmem:[#allocation138_spill] sm:$0xff] %v7331_v23  ;;  %v7338_v32 = vsub.f32 %v6525_v58, %v6912_v5 }
 0x255   :  { %v7354_v58 = vsub.f32 %v6586_v39, %v6912_v5  ;;  %v7370_v39 = vsub.f32 %v6645_v16, %v6912_v5  ;;  %vm2282_vm9 = vweird.f32 %v7289_v61 }
 0x256   :  { %v2253_v38 = vadd.f32 %v2252_v44, %v2096_v47  ;;  %v2176_v28 = vadd.f32 %v2175_v19, %v2032_v56  ;;  %v2277_v26 = vmul.f32 %v7289_v61, %v2276_v11  ;;  %v7344_v44 = vsub.f32 %v6561_v8, %v6912_v5  ;;  %v10474_v19 = vld [vmem:[#allocation85_spill] sm:$0xff]  ;;  %vm2283_vm15 = vmor %vm2281_vm13, %vm2282_vm9 }
 0x257   :  { %10475 = vst [vmem:[#allocation142_spill] sm:$0xff] %v7354_v58  ;;  %v2038_v11 = vmul.f32 %v7325_v3, %v7325_v3  ;;  %v7360_v8 = vsub.f32 %v6652_v12, %v6912_v5  ;;  %v7376_v12 = vsub.f32 %v6655_v1, %v6912_v5  ;;  %v2044_v1 = vmul.f32 %v7354_v58, %v7354_v58 }
 0x258   :  { %v2254_v46 = vadd.f32 %v2253_v38, %v2098_v35  ;;  %v2177_v47 = vadd.f32 %v2176_v28, %v2034_v51  ;;  %10473 = vst [vmem:[#allocation146_spill] sm:$0xff] %v7344_v44  ;;  %v7350_v35 = vsub.f32 %v10474_v19, %v6912_v5  ;;  %v7364_v51 = vsub.f32 %v6634_v22, %v6912_v5 }
 0x259   :  { %v2104_v28 = vmul.f32 %v7331_v23, %v7331_v23  ;;  %10477 = vst [vmem:[#allocation149_spill] sm:$0xff] %v7376_v12  ;;  %v2106_v22 = vmul.f32 %v7344_v44, %v7344_v44  ;;  %v2046_v16 = vmul.f32 %v7360_v8, %v7360_v8  ;;  %v2112_v5 = vmul.f32 %v7370_v39, %v7370_v39 }
 0x25a   :  { %v2255_v56 = vadd.f32 %v2254_v46, %v2100_v10  ;;  %v2178_v38 = vadd.f32 %v2177_v47, %v2036_v49  ;;  %10476 = vst [vmem:[#allocation151_spill] sm:$0xff] %v7364_v51  ;;  %v2278_v46 = vmul.f32 0.5, %v2277_v26  ;;  %v2040_v49 = vmul.f32 %v7338_v32, %v7338_v32 }
 0x25c   :  { %v2256_v10 = vadd.f32 %v2255_v56, %v2102_v50  ;;  %v2179_v47 = vadd.f32 %v2178_v38, %v2038_v11  ;;  %v2042_v50 = vmul.f32 %v7350_v35, %v7350_v35  ;;  %v2108_v56 = vmul.f32 %v7364_v51, %v7364_v51 }
 0x25d   :  { %v2279_v11 = vsub.f32 1.5, %v2278_v46 }
 0x25e   :  { %v2257_v19 = vadd.f32 %v2256_v10, %v2104_v28  ;;  %v2180_v26 = vadd.f32 %v2179_v47, %v2040_v49  ;;  %v2110_v28 = vmul.f32 %v7376_v12, %v7376_v12  ;;  %v2183_v47 = vsel %vm1719_vm10, %v2046_v16, 0.0 }
 0x25f   :  { %v2280_v6 = vmul.f32 %v7289_v61, %v2279_v11 }
 0x260   :  { %v2258_v23 = vadd.f32 %v2257_v19, %v2106_v22  ;;  %v2181_v38 = vadd.f32 %v2180_v26, %v2042_v50  ;;  %v2261_v22 = vsel %vm1719_vm10, %v2112_v5, 0.0  ;;  %v2427_v50 = vld [vmem:[%s9543_s6] sm:$0x3] }
 0x261   :  { %v7401_v26 = vsel %vm2283_vm15, %v7289_v61, %v2280_v6  ;;  %v7403_v11 = vperm.slane %v2427_v50, 0  ;;  %v10483_v6 = vld [vmem:[#allocation107_spill] sm:$0xff] }
 0x262   :  { %v2259_v10 = vadd.f32 %v2258_v23, %v2108_v56  ;;  %v2182_v49 = vadd.f32 %v2181_v38, %v2044_v1  ;;  %10478 = vst [vmem:[#allocation44_spill] sm:$0xff] %v7401_v26  ;;  %v7405_v1 = vperm.slane %v2427_v50, 1  ;;  %v7409_v29 = vmul.f32 %v7401_v26, %v6992_v0  ;;  %v10486_v50 = vld [vmem:[#allocation108_spill] sm:$0xff] }
 0x264   :  { %v2260_v44 = vadd.f32 %v2259_v10, %v2110_v28  ;;  %v2184_v46 = vadd.f32 %v2183_v47, %v2182_v49  ;;  %10479 = vst [vmem:[#allocation82_spill] sm:$0xff] %v7405_v1  ;;  %v10482_v28 = vld [vmem:[#allocation88_spill] sm:$0xff]  ;;  %v7425_v49 = vmul.f32 %v7401_v26, %v6590_v63  ;;  %v10484_v47 = vld [vmem:[#allocation113_spill] sm:$0xff] }
 0x265   :  { %10480 = vst [vmem:[#allocation95_spill] sm:$0xff] %v7409_v29  ;;  %v7417_v10 = vmul.f32 %v7401_v26, %v10482_v28  ;;  %v7429_v0 = vmul.f32 %v7401_v26, %v10484_v47  ;;  %v10488_v63 = vld [vmem:[#allocation116_spill] sm:$0xff]  ;;  %v10490_v47 = vld [vmem:[#allocation155_spill] sm:$0xff]  ;;  %v10504_v1 = vld [vmem:[#allocation125_spill] sm:$0xff] }
 0x266   :  { %v2262_v19 = vadd.f32 %v2261_v22, %v2260_v44  ;;  %v2185_v58 = vrot.slane %v2184_v46, 4  ;;  %v10481_v44 = vld [vmem:[#allocation83_spill] sm:$0xff]  ;;  %v10485_v22 = vld [vmem:[#allocation102_spill] sm:$0xff]  ;;  %v7445_v12 = vmul.f32 %v7401_v26, %v10488_v63 }
 0x267   :  { %v7413_v38 = vmul.f32 %v7401_v26, %v10481_v44  ;;  %v10487_v44 = vld [vmem:[#allocation101_spill] sm:$0xff] }
 0x268   :  { %v2263_v23 = vrot.slane %v2262_v19, 4  ;;  %v2186_v16 = vadd.f32 %v2185_v58, %v2184_v46  ;;  %v7421_v58 = vmul.f32 %v7401_v26, %v10483_v6  ;;  %v7441_v28 = vmul.f32 %v7401_v26, %v10487_v44  ;;  %10489 = vst [vmem:[#allocation51_spill] sm:$0xff] %v7445_v12  ;;  %v10496_v44 = vld [vmem:[#allocation86_spill] sm:$0xff] }
 0x26a   :  { %v2264_v56 = vadd.f32 %v2263_v23, %v2262_v19  ;;  %v2187_v5 = vrot.slane %v2186_v16, 2  ;;  %v7433_v19 = vmul.f32 %v7401_v26, %v10485_v22  ;;  %v7437_v23 = vmul.f32 %v7401_v26, %v10486_v50  ;;  %v10494_v50 = vld [vmem:[#allocation49_spill] sm:$0xff] }
 0x26b   :  { %v7457_v51 = vmul.f32 %v7401_v26, %v10494_v50  ;;  %v7477_v50 = vmul.f32 %v7401_v26, %v10504_v1  ;;  %v7497_v1 = vmul.f32 %v7401_v26, %v6834_v30 }
 0x26c   :  { %v2265_v61 = vrot.slane %v2264_v56, 2  ;;  %v2188_v46 = vadd.f32 %v2187_v5, %v2186_v16  ;;  %v7449_v16 = vmul.f32 %v7401_v26, %v10490_v47  ;;  %v10492_v5 = vld [vmem:[#allocation59_spill] sm:$0xff]  ;;  %v10500_v47 = vld [vmem:[#allocation118_spill] sm:$0xff] }
 0x26d   :  { %v7453_v22 = vmul.f32 %v7401_v26, %v10492_v5  ;;  %10495 = vst [vmem:[#allocation50_spill] sm:$0xff] %v7457_v51  ;;  %v10502_v5 = vld [vmem:[#allocation120_spill] sm:$0xff] }
 0x26e   :  { %v2266_v6 = vadd.f32 %v2265_v61, %v2264_v56  ;;  %10491 = vst [vmem:[#allocation75_spill] sm:$0xff] %v7449_v16  ;;  %v2189_v29 = vrot.slane %v2188_v46, 1  ;;  %v7461_v56 = vmul.f32 %v7401_v26, %v10496_v44  ;;  %v10498_v61 = vld [vmem:[#allocation114_spill] sm:$0xff]  ;;  %v7469_v16 = vmul.f32 %v7401_v26, %v10500_v47  ;;  %v10506_v44 = vld [vmem:[#allocation128_spill] sm:$0xff] }
 0x26f   :  { %10493 = vst [vmem:[#allocation69_spill] sm:$0xff] %v7453_v22  ;;  %v7465_v63 = vmul.f32 %v7401_v26, %v10498_v61  ;;  %v7473_v22 = vmul.f32 %v7401_v26, %v10502_v5  ;;  %v10508_v61 = vld [vmem:[#allocation132_spill] sm:$0xff]  ;;  %v7489_v47 = vmul.f32 %v7401_v26, %v10510_v27  ;;  %v10512_v5 = vld [vmem:[#allocation141_spill] sm:$0xff] }
 0x270   :  { %10497 = vst [vmem:[#allocation80_spill] sm:$0xff] %v7461_v56  ;;  %v2267_v12 = vrot.slane %v2266_v6, 1  ;;  %v2190_v51 = vadd.f32 %v2189_v29, %v2188_v46  ;;  %v7481_v56 = vmul.f32 %v7401_v26, %v10506_v44  ;;  %v7501_v29 = vmul.f32 %v7401_v26, %v6846_v55  ;;  %v10516_v46 = vld [vmem:[#allocation148_spill] sm:$0xff] }
 0x271   :  { %10499 = vst [vmem:[#allocation54_spill] sm:$0xff] %v7465_v63  ;;  %v7485_v63 = vmul.f32 %v7401_v26, %v10508_v61  ;;  %v7505_v44 = vmul.f32 %v7401_v26, %v10516_v46  ;;  %v10518_v61 = vld [vmem:[#allocation152_spill] sm:$0xff] }
 0x272   :  { %10501 = vst [vmem:[#allocation52_spill] sm:$0xff] %v7469_v16  ;;  %v2268_v16 = vadd.f32 %v2267_v12, %v2266_v6  ;;  %v7509_v27 = vmul.f32 %v7401_v26, %v10518_v61  ;;  %v10520_v12 = vld [vmem:[#allocation53_spill] sm:$0xff] }
 0x273   :  { %10503 = vst [vmem:[#allocation58_spill] sm:$0xff] %v7473_v22  ;;  %v7493_v22 = vmul.f32 %v7401_v26, %v10512_v5  ;;  %v7513_v6 = vmul.f32 %v7401_v26, %v10520_v12  ;;  %v10522_v5 = vld [vmem:[#allocation57_spill] sm:$0xff] }
 0x274   :  { %10505 = vst [vmem:[#allocation56_spill] sm:$0xff] %v7477_v50  ;;  %v7517_v30 = vmul.f32 %v7401_v26, %v10522_v5  ;;  %v2359_v5 = vmul.f32 %v7401_v26, %v6936_v60 }
 0x275   :  { %10507 = vst [vmem:[#allocation68_spill] sm:$0xff] %v7481_v56 }
 0x276   :  { %10509 = vst [vmem:[#allocation74_spill] sm:$0xff] %v7485_v63 }
 0x277   :  { %10511 = vst [vmem:[#allocation60_spill] sm:$0xff] %v7489_v47 }
 0x278   :  { %10513 = vst [vmem:[#allocation42_spill] sm:$0xff] %v7493_v22  ;;  %v10524_v22 = vld [vmem:[#allocation64_spill] sm:$0xff] }
 0x279   :  { %10514 = vst [vmem:[#allocation78_spill] sm:$0xff] %v7497_v1  ;;  %v2270_v1 = vadd.f32 %v2268_v16, %v2190_v51  ;;  %v7521_v55 = vmul.f32 %v7401_v26, %v10524_v22  ;;  %v10532_v51 = vld [vmem:[#allocation100_spill] sm:$0xff]  ;;  %v10533_v22 = vld [vmem:[#allocation90_spill] sm:$0xff] }
 0x27a   :  { %10515 = vst [vmem:[#allocation62_spill] sm:$0xff] %v7501_v29  ;;  %v10526_v29 = vld [vmem:[#allocation43_spill] sm:$0xff]  ;;  %v2361_v16 = vmul.f32 %v7401_v26, %v10532_v51  ;;  %v10538_v51 = vld [vmem:[#allocation112_spill] sm:$0xff] }
 0x27b   :  { %10517 = vst [vmem:[#allocation84_spill] sm:$0xff] %v7505_v44  ;;  %v7525_v46 = vmul.f32 %v7401_v26, %v10526_v29  ;;  %v10528_v44 = vld [vmem:[#allocation41_spill] sm:$0xff]  ;;  %v2272_v29 = vmul.f32 0.0019455253, %v2270_v1  ;;  %v7557_v47 = vmul.f32 %v7401_v26, %v10538_v51  ;;  %v10547_v51 = vld [vmem:[#allocation66_spill] sm:$0xff] }
 0x27c   :  { %10519 = vst [vmem:[#allocation71_spill] sm:$0xff] %v7509_v27  ;;  %v7529_v61 = vmul.f32 %v7401_v26, %v10528_v44  ;;  %v10530_v27 = vld [vmem:[#allocation63_spill] sm:$0xff]  ;;  %v10535_v44 = vld [vmem:[#allocation96_spill] sm:$0xff]  ;;  %v7579_v33 = vmul.f32 %v7401_v26, %v10547_v51  ;;  %v10557_v51 = vld [vmem:[#allocation130_spill] sm:$0xff] }
 0x27d   :  { %10521 = vst [vmem:[#allocation77_spill] sm:$0xff] %v7513_v6  ;;  %v7533_v12 = vmul.f32 %v7401_v26, %v10530_v27  ;;  %v10536_v6 = vld [vmem:[#allocation106_spill] sm:$0xff] }
 0x27e   :  { %10523 = vst [vmem:[#allocation91_spill] sm:$0xff] %v7517_v30  ;;  %v7549_v27 = vmul.f32 %v7401_v26, %v10536_v6  ;;  %v10543_v6 = vld [vmem:[#allocation133_spill] sm:$0xff] }
 0x27f   :  { %10525 = vst [vmem:[#allocation89_spill] sm:$0xff] %v7521_v55  ;;  %v7541_v55 = vmul.f32 %v7401_v26, %v10533_v22  ;;  %v10539_v22 = vld [vmem:[#allocation137_spill] sm:$0xff]  ;;  %v7571_v63 = vmul.f32 %v7401_v26, %v10543_v6 }
 0x280   :  { %10527 = vst [vmem:[#allocation85_spill] sm:$0xff] %v7525_v46  ;;  %v10534_v46 = vld [vmem:[#allocation97_spill] sm:$0xff]  ;;  %v7561_v1 = vmul.f32 %v7401_v26, %v10539_v22 }
 0x281   :  { %10529 = vst [vmem:[#allocation83_spill] sm:$0xff] %v7529_v61  ;;  %v2365_v30 = vmul.f32 %v7401_v26, %v10534_v46  ;;  %v2367_v61 = vmul.f32 %v7401_v26, %v10535_v44  ;;  %v10541_v46 = vld [vmem:[#allocation110_spill] sm:$0xff]  ;;  %v7567_v44 = vadd.f32 1e-05, %v2272_v29  ;;  %v10549_v22 = vld [vmem:[#allocation145_spill] sm:$0xff] }
 0x282   :  { %10531 = vst [vmem:[#allocation88_spill] sm:$0xff] %v7533_v12  ;;  %v10537_v12 = vld [vmem:[#allocation117_spill] sm:$0xff]  ;;  %v7565_v56 = vmul.f32 %v7401_v26, %v10541_v46 }
 0x283   :  { %v7553_v60 = vmul.f32 %v7401_v26, %v10537_v12  ;;  %10540 = vst [vmem:[#allocation107_spill] sm:$0xff] %v7561_v1  ;;  %v10545_v12 = vld [vmem:[#allocation153_spill] sm:$0xff]  ;;  %v7583_v1 = vmul.f32 %v7401_v26, %v10549_v22  ;;  %4070 = vrsqrt.f32 %v7567_v44  ;;  %v10559_v22 = vld [vmem:[#allocation135_spill] sm:$0xff]  ;;  %vm2291_vm5 = vweird.f32 %v7567_v44 }
 0x284   :  { %10542 = vst [vmem:[#allocation113_spill] sm:$0xff] %v7565_v56  ;;  %v7575_v50 = vmul.f32 %v7401_v26, %v10545_v12  ;;  %v10551_v46 = vld [vmem:[#allocation121_spill] sm:$0xff]  ;;  %v10553_v56 = vld [vmem:[#allocation124_spill] sm:$0xff] }
 0x285   :  { %10544 = vst [vmem:[#allocation102_spill] sm:$0xff] %v7571_v63  ;;  %v7587_v29 = vmul.f32 %v7401_v26, %v10551_v46  ;;  %v7591_v6 = vmul.f32 %v7401_v26, %v10553_v56  ;;  %v10555_v63 = vld [vmem:[#allocation123_spill] sm:$0xff] }
 0x286   :  { %10546 = vst [vmem:[#allocation108_spill] sm:$0xff] %v7575_v50  ;;  %v7595_v12 = vmul.f32 %v7401_v26, %v10555_v63  ;;  %v10561_v46 = vld [vmem:[#allocation139_spill] sm:$0xff]  ;;  %v10567_v50 = vld [vmem:[#allocation144_spill] sm:$0xff] }
 0x287   :  { %10548 = vst [vmem:[#allocation101_spill] sm:$0xff] %v7579_v33  ;;  %v7600_v33 = vmul.f32 %v7401_v26, %v10557_v51  ;;  %v10563_v56 = vld [vmem:[#allocation143_spill] sm:$0xff]  ;;  %v7620_v51 = vmul.f32 %v7401_v26, %v10567_v50  ;;  %v10575_v50 = vld [vmem:[#allocation48_spill] sm:$0xff] }
 0x288   :  { %10550 = vst [vmem:[#allocation116_spill] sm:$0xff] %v7583_v1  ;;  %v7604_v1 = vmul.f32 %v7401_v26, %v10559_v22  ;;  %v10565_v63 = vld [vmem:[#allocation147_spill] sm:$0xff] }
 0x289   :  { %10552 = vst [vmem:[#allocation155_spill] sm:$0xff] %v7587_v29  ;;  %v7608_v29 = vmul.f32 %v7401_v26, %v10561_v46  ;;  %v2565_v46 = vld [vmem:[%s9544_s7] sm:$0x3] }
 0x28a   :  { %10554 = vst [vmem:[#allocation59_spill] sm:$0xff] %v7591_v6  ;;  %v7612_v6 = vmul.f32 %v7401_v26, %v10563_v56  ;;  %v10571_v56 = vld [vmem:[#allocation154_spill] sm:$0xff] }
 0x28b   :  { %10556 = vst [vmem:[#allocation49_spill] sm:$0xff] %v7595_v12  ;;  %v7616_v12 = vmul.f32 %v7401_v26, %v10565_v63  ;;  %v10573_v63 = vld [vmem:[#allocation79_spill] sm:$0xff] }
 0x28c   :  { %10558 = vst [vmem:[#allocation86_spill] sm:$0xff] %v7600_v33  ;;  %v10569_v33 = vld [vmem:[#allocation150_spill] sm:$0xff] }
 0x28d   :  { %10560 = vst [vmem:[#allocation114_spill] sm:$0xff] %v7604_v1  ;;  %v7624_v22 = vmul.f32 %v7401_v26, %v10569_v33  ;;  %v2499_v1 = vmul.f32 %v7403_v11, %v2361_v16  ;;  %v7642_v33 = vperm.slane %v2565_v46, 0  ;;  %v2437_v16 = vmul.f32 %v7403_v11, %v7421_v58  ;;  %v4071_v58 = vpop.eup %4070 }
 0x28e   :  { %10562 = vst [vmem:[#allocation118_spill] sm:$0xff] %v7608_v29  ;;  %v2503_v29 = vmul.f32 %v7403_v11, %v2365_v30  ;;  %v10583_v30 = vld [vmem:[#allocation46_spill] sm:$0xff]  ;;  %vm2292_vm0 = vweird.f32 %v4071_v58 }
 0x28f   :  { %10564 = vst [vmem:[#allocation120_spill] sm:$0xff] %v7612_v6  ;;  %v7632_v6 = vmul.f32 %v7401_v26, %v10571_v56  ;;  %v2439_v56 = vmul.f32 %v7403_v11, %v7425_v49  ;;  %v7667_v37 = vmul.f32 %v7401_v26, %v10583_v30  ;;  %v2637_v49 = vadd.f32 %v7642_v33, %v2499_v1  ;;  %vm2293_vm3 = vmor %vm2291_vm5, %vm2292_vm0 }
 0x290   :  { %10566 = vst [vmem:[#allocation125_spill] sm:$0xff] %v7616_v12  ;;  %v7636_v12 = vmul.f32 %v7401_v26, %v10573_v63  ;;  %v2505_v30 = vmul.f32 %v7403_v11, %v2367_v61  ;;  %v7682_v1 = vmul.f32 %v7401_v26, %v6960_v34 }
 0x291   :  { %10568 = vst [vmem:[#allocation128_spill] sm:$0xff] %v7620_v51  ;;  %v7640_v51 = vmul.f32 %v7401_v26, %v10575_v50 }
 0x292   :  { %10570 = vst [vmem:[#allocation132_spill] sm:$0xff] %v7624_v22  ;;  %v2433_v22 = vmul.f32 %v7403_v11, %v7413_v38  ;;  %v2435_v38 = vmul.f32 %v7403_v11, %v7417_v10 }
 0x293   :  { %10572 = vst [vmem:[#allocation136_spill] sm:$0xff] %v7632_v6  ;;  %v10577_v6 = vld [vmem:[#allocation61_spill] sm:$0xff] }
 0x294   :  { %10574 = vst [vmem:[#allocation141_spill] sm:$0xff] %v7636_v12  ;;  %v7653_v63 = vmul.f32 %v7401_v26, %v10577_v6  ;;  %v10579_v12 = vld [vmem:[#allocation65_spill] sm:$0xff]  ;;  %v2575_v6 = vadd.f32 %v7642_v33, %v2437_v16  ;;  %v2571_v10 = vadd.f32 %v7642_v33, %v2433_v22  ;;  %v2577_v16 = vadd.f32 %v7642_v33, %v2439_v56 }
 0x295   :  { %10576 = vst [vmem:[#allocation148_spill] sm:$0xff] %v7640_v51  ;;  %v7657_v50 = vmul.f32 %v7401_v26, %v10579_v12  ;;  %v10581_v51 = vld [vmem:[#allocation93_spill] sm:$0xff]  ;;  %v2441_v12 = vmul.f32 %v7403_v11, %v7429_v0  ;;  %v7686_v0 = vmul.f32 %v7403_v11, %v2359_v5  ;;  %v2573_v22 = vadd.f32 %v7642_v33, %v2435_v38 }
 0x296   :  { %10578 = vst [vmem:[#allocation152_spill] sm:$0xff] %v7653_v63  ;;  %v7661_v52 = vmul.f32 %v7401_v26, %v10581_v51  ;;  %v2835_v51 = vld [vmem:[%s9545_s8] sm:$0x3]  ;;  %v7689_v63 = vperm.slane %v2565_v46, 1  ;;  %v2707_v61 = vmax.f32 %v2575_v6, 0.0  ;;  %v2643_v5 = vadd.f32 %v7642_v33, %v2505_v30 }
 0x297   :  { %10580 = vst [vmem:[#allocation53_spill] sm:$0xff] %v7657_v50  ;;  %v2286_v50 = vmul.f32 %v4071_v58, %v7567_v44  ;;  %v7692_v14 = vperm.slane %v2835_v51, 0  ;;  %v2579_v34 = vadd.f32 %v7642_v33, %v2441_v12  ;;  %v2705_v13 = vmax.f32 %v2573_v22, 0.0 }
 0x298   :  { %10582 = vst [vmem:[#allocation57_spill] sm:$0xff] %v7661_v52  ;;  %v2641_v52 = vadd.f32 %v7642_v33, %v2503_v29  ;;  %v2769_v29 = vmax.f32 %v2637_v49, 0.0  ;;  %v2501_v56 = vmul.f32 %v7403_v11, %v7541_v55  ;;  %v2507_v46 = vmul.f32 %v7403_v11, %v7549_v27 }
 0x299   :  { %10584 = vst [vmem:[#allocation64_spill] sm:$0xff] %v7667_v37  ;;  %v2287_v37 = vmul.f32 %v4071_v58, %v2286_v50  ;;  %v7700_v38 = vperm.slane %v2835_v51, 1  ;;  %v2711_v49 = vmax.f32 %v2579_v34, 0.0  ;;  %v2775_v6 = vmax.f32 %v2643_v5, 0.0 }
 0x29a   :  { %10585 = vst [vmem:[#allocation43_spill] sm:$0xff] %v7682_v1  ;;  %v2703_v1 = vmax.f32 %v2571_v10, 0.0  ;;  %v2773_v31 = vmax.f32 %v2641_v52, 0.0  ;;  %v7703_v12 = vmul.f32 %v7692_v14, %v2769_v29  ;;  %v2445_v52 = vmul.f32 %v7403_v11, %v7437_v23 }
 0x29b   :  { %10586 = vst [vmem:[#allocation41_spill] sm:$0xff] %v7686_v0  ;;  %v2288_v26 = vmul.f32 0.5, %v2287_v37  ;;  %v2709_v0 = vmax.f32 %v2577_v16, 0.0  ;;  %v7706_v37 = vadd.f32 %v7642_v33, %v2501_v56  ;;  %v2443_v55 = vmul.f32 %v7403_v11, %v7433_v19  ;;  %v10590_v56 = vld [vmem:[#allocation45_spill] sm:$0xff] }
 0x29c   :  { %v7713_v27 = vmul.f32 %v7692_v14, %v2707_v61  ;;  %v2509_v51 = vmul.f32 %v7403_v11, %v7553_v60  ;;  %v7724_v30 = vmul.f32 %v7692_v14, %v2703_v1  ;;  %v7727_v23 = vmul.f32 %v7692_v14, %v2773_v31  ;;  %v10589_v61 = vld [vmem:[#allocation72_spill] sm:$0xff]  ;;  %v10615_v31 = vld [vmem:[#allocation67_spill] sm:$0xff] }
 0x29d   :  { %v2289_v50 = vsub.f32 1.5, %v2288_v26  ;;  %v7716_v26 = vadd.f32 %v7642_v33, %v2507_v46  ;;  %v7730_v19 = vmul.f32 %v7692_v14, %v2709_v0  ;;  %v7733_v16 = vmul.f32 %v7692_v14, %v2705_v13  ;;  %v10597_v0 = vld [vmem:[#allocation122_spill] sm:$0xff] }
 0x29e   :  { %v7738_v60 = vmul.f32 %v7692_v14, %v2711_v49  ;;  %v7741_v44 = vmul.f32 %v7692_v14, %v2775_v6  ;;  %v7745_v1 = vmul.f32 %v7403_v11, %v7441_v28  ;;  %v7750_v29 = vadd.f32 %v7642_v33, %v2445_v52  ;;  %v10593_v52 = vld [vmem:[#allocation98_spill] sm:$0xff] }
 0x29f   :  { %v2290_v10 = vmul.f32 %v4071_v58, %v2289_v50  ;;  %v7753_v13 = vadd.f32 %v7642_v33, %v2443_v55  ;;  %v7764_v28 = vadd.f32 %v7642_v33, %v2509_v51  ;;  %v7768_v5 = vmul.f32 %v7403_v11, %v7557_v47  ;;  %v10591_v50 = vld [vmem:[#allocation47_spill] sm:$0xff] }
 0x2a1   :  { %v7735_v22 = vsel %vm2293_vm3, %v4071_v58, %v2290_v10  ;;  %v10594_v10 = vld [vmem:[#allocation104_spill] sm:$0xff] }
 0x2a2   :  { %10587 = vst [vmem:[#allocation63_spill] sm:$0xff] %v7735_v22  ;;  %v7757_v58 = vmul.f32 %v7735_v22, %v7370_v39  ;;  %v7761_v34 = vmul.f32 %v7735_v22, %v10589_v61  ;;  %v7772_v46 = vmul.f32 %v7735_v22, %v10590_v56  ;;  %v2300_v49 = vmul.f32 %v7735_v22, %v10591_v50  ;;  %v10592_v39 = vld [vmem:[#allocation92_spill] sm:$0xff] }
 0x2a3   :  { %v7778_v6 = vmul.f32 %v7735_v22, %v10592_v39  ;;  %v7782_v55 = vmul.f32 %v7735_v22, %v10593_v52  ;;  %v7786_v51 = vmul.f32 %v7735_v22, %v10594_v10  ;;  %v7790_v47 = vmul.f32 %v7735_v22, %v7048_v18  ;;  %v10595_v39 = vld [vmem:[#allocation115_spill] sm:$0xff] }
 0x2a4   :  { %10588 = vst [vmem:[#allocation100_spill] sm:$0xff] %v7757_v58  ;;  %v7794_v61 = vmul.f32 %v7735_v22, %v7062_v59  ;;  %v7798_v56 = vmul.f32 %v7735_v22, %v7076_v24  ;;  %v7802_v50 = vmul.f32 %v7735_v22, %v7089_v17  ;;  %v7806_v52 = vmul.f32 %v7735_v22, %v10595_v39  ;;  %v10596_v10 = vld [vmem:[#allocation111_spill] sm:$0xff] }
 0x2a5   :  { %v7810_v18 = vmul.f32 %v7735_v22, %v10596_v10  ;;  %v7814_v59 = vmul.f32 %v7735_v22, %v7126_v36  ;;  %v7818_v24 = vmul.f32 %v7735_v22, %v7138_v53  ;;  %v7822_v17 = vmul.f32 %v7735_v22, %v7150_v43  ;;  %v10616_v58 = vld [vmem:[#allocation103_spill] sm:$0xff] }
 0x2a6   :  { %v7826_v39 = vmul.f32 %v7735_v22, %v10597_v0  ;;  %v7830_v10 = vmul.f32 %v7735_v22, %v7178_v2  ;;  %v7834_v36 = vmul.f32 %v7735_v22, %v7190_v48  ;;  %v7838_v53 = vmul.f32 %v7735_v22, %v7202_v45 }
 0x2a7   :  { %v7842_v43 = vmul.f32 %v7735_v22, %v7214_v62  ;;  %v7846_v0 = vmul.f32 %v7735_v22, %v7226_v20  ;;  %v7850_v2 = vmul.f32 %v7735_v22, %v7238_v4  ;;  %v7854_v48 = vmul.f32 %v7735_v22, %v7252_v54 }
 0x2a8   :  { %10598 = vst [vmem:[#allocation90_spill] sm:$0xff] %v7826_v39  ;;  %v7858_v45 = vmul.f32 %v7735_v22, %v7265_v40  ;;  %v7862_v62 = vmul.f32 %v7735_v22, %v7277_v25  ;;  %v7866_v20 = vmul.f32 %v7735_v22, %v7285_v21  ;;  %v7870_v4 = vmul.f32 %v7735_v22, %v7299_v7 }
 0x2a9   :  { %10599 = vst [vmem:[#allocation97_spill] sm:$0xff] %v7830_v10  ;;  %v7874_v54 = vmul.f32 %v7735_v22, %v7313_v9  ;;  %v7878_v40 = vmul.f32 %v7735_v22, %v7325_v3  ;;  %v7882_v25 = vmul.f32 %v7735_v22, %v7338_v32  ;;  %v7886_v21 = vmul.f32 %v7735_v22, %v7350_v35  ;;  %v10617_v3 = vld [vmem:[#allocation73_spill] sm:$0xff]  ;;  %v10618_v32 = vld [vmem:[#allocation76_spill] sm:$0xff]  ;;  %v10639_v10 = vld [vmem:[#allocation127_spill] sm:$0xff] }
 0x2aa   :  { %10600 = vst [vmem:[#allocation96_spill] sm:$0xff] %v7834_v36  ;;  %v7890_v7 = vmul.f32 %v7735_v22, %v7360_v8  ;;  %v2362_v9 = vmul.f32 %v7735_v22, %v10615_v31  ;;  %v10633_v36 = vld [vmem:[#allocation119_spill] sm:$0xff] }
 0x2ab   :  { %10601 = vst [vmem:[#allocation106_spill] sm:$0xff] %v7838_v53  ;;  %v10637_v53 = vld [vmem:[#allocation129_spill] sm:$0xff] }
 0x2ac   :  { %10602 = vst [vmem:[#allocation117_spill] sm:$0xff] %v7842_v43  ;;  %v10630_v43 = vld [vmem:[#allocation160_spill] sm:$0xff] }
 0x2ad   :  { %10603 = vst [vmem:[#allocation112_spill] sm:$0xff] %v7846_v0  ;;  %v10628_v0 = vld [vmem:[#allocation158_spill] sm:$0xff] }
 0x2ae   :  { %10604 = vst [vmem:[#allocation137_spill] sm:$0xff] %v7850_v2  ;;  %v10627_v2 = vld [vmem:[#allocation156_spill] sm:$0xff] }
 0x2af   :  { %10605 = vst [vmem:[#allocation110_spill] sm:$0xff] %v7854_v48  ;;  %v10626_v48 = vld [vmem:[#allocation159_spill] sm:$0xff] }
 0x2b0   :  { %10606 = vst [vmem:[#allocation133_spill] sm:$0xff] %v7858_v45 }
 0x2b1   :  { %10607 = vst [vmem:[#allocation153_spill] sm:$0xff] %v7862_v62 }
 0x2b2   :  { %10608 = vst [vmem:[#allocation66_spill] sm:$0xff] %v7866_v20  ;;  %v10621_v20 = vld [vmem:[#allocation109_spill] sm:$0xff] }
 0x2b3   :  { %10609 = vst [vmem:[#allocation145_spill] sm:$0xff] %v7870_v4  ;;  %v10619_v4 = vld [vmem:[#allocation81_spill] sm:$0xff]  ;;  %v7912_v31 = vmul.f32 %v7735_v22, %v10621_v20  ;;  %v7932_v20 = vmul.f32 %v7735_v22, %v10626_v48  ;;  %v7952_v48 = vmul.f32 %v7735_v22, %v7184_v15  ;;  %v7972_v15 = vmul.f32 %v7735_v22, %v10639_v10 }
 0x2b4   :  { %10610 = vst [vmem:[#allocation121_spill] sm:$0xff] %v7874_v54  ;;  %v7896_v54 = vmul.f32 %v7735_v22, %v10616_v58  ;;  %v7904_v35 = vmul.f32 %v7735_v22, %v10619_v4  ;;  %v10622_v58 = vld [vmem:[#allocation94_spill] sm:$0xff] }
 0x2b5   :  { %10611 = vst [vmem:[#allocation124_spill] sm:$0xff] %v7878_v40  ;;  %v2366_v40 = vmul.f32 %v7735_v22, %v10617_v3  ;;  %v7916_v45 = vmul.f32 %v7735_v22, %v10622_v58  ;;  %v10623_v3 = vld [vmem:[#allocation105_spill] sm:$0xff]  ;;  %v7936_v58 = vmul.f32 %v7735_v22, %v10627_v2  ;;  %v7956_v2 = vmul.f32 %v7735_v22, %v10633_v36 }
 0x2b6   :  { %10612 = vst [vmem:[#allocation123_spill] sm:$0xff] %v7882_v25  ;;  %v2368_v25 = vmul.f32 %v7735_v22, %v10618_v32  ;;  %v7920_v62 = vmul.f32 %v7735_v22, %v10623_v3  ;;  %v10624_v32 = vld [vmem:[#allocation99_spill] sm:$0xff]  ;;  %v7940_v3 = vmul.f32 %v7735_v22, %v10628_v0  ;;  %v7960_v0 = vmul.f32 %v7735_v22, %v7208_v41 }
 0x2b7   :  { %10613 = vst [vmem:[#allocation130_spill] sm:$0xff] %v7886_v21  ;;  %v10620_v21 = vld [vmem:[#allocation87_spill] sm:$0xff]  ;;  %v7924_v4 = vmul.f32 %v7735_v22, %v10624_v32  ;;  %v7944_v32 = vmul.f32 %v7735_v22, %v10630_v43  ;;  %v7964_v43 = vmul.f32 %v7735_v22, %v7220_v57 }
 0x2b8   :  { %10614 = vst [vmem:[#allocation135_spill] sm:$0xff] %v7890_v7  ;;  %v7908_v8 = vmul.f32 %v7735_v22, %v10620_v21  ;;  %v10625_v7 = vld [vmem:[#allocation157_spill] sm:$0xff] }
 0x2b9   :  { %v7928_v21 = vmul.f32 %v7735_v22, %v10625_v7  ;;  %10629 = vst [vmem:[#allocation139_spill] sm:$0xff] %v7940_v3  ;;  %v7948_v7 = vmul.f32 %v7735_v22, %v7168_v42  ;;  %v7968_v42 = vmul.f32 %v7735_v22, %v10637_v53 }
 0x2ba   :  { %10632 = vst [vmem:[#allocation147_spill] sm:$0xff] %v7952_v48  ;;  %v10641_v48 = vld [vmem:[#allocation162_spill] sm:$0xff] }
 0x2bb   :  { %10631 = vst [vmem:[#allocation143_spill] sm:$0xff] %v7948_v7  ;;  %v7976_v36 = vmul.f32 %v7735_v22, %v10641_v48 }
 0x2bc   :  { %10634 = vst [vmem:[#allocation144_spill] sm:$0xff] %v7956_v2  ;;  %v10643_v2 = vld [vmem:[#allocation126_spill] sm:$0xff] }
 0x2bd   :  { %10635 = vst [vmem:[#allocation150_spill] sm:$0xff] %v7960_v0  ;;  %v7980_v41 = vmul.f32 %v7735_v22, %v10643_v2  ;;  %v10645_v0 = vld [vmem:[#allocation161_spill] sm:$0xff]  ;;  %v10654_v2 = vld [vmem:[#allocation138_spill] sm:$0xff] }
 0x2be   :  { %10636 = vst [vmem:[#allocation154_spill] sm:$0xff] %v7964_v43  ;;  %v7984_v57 = vmul.f32 %v7735_v22, %v10645_v0  ;;  %v10647_v43 = vld [vmem:[#allocation134_spill] sm:$0xff] }
 0x2bf   :  { %10638 = vst [vmem:[#allocation79_spill] sm:$0xff] %v7968_v42  ;;  %v7988_v53 = vmul.f32 %v7735_v22, %v10647_v43  ;;  %v10649_v42 = vld [vmem:[#allocation131_spill] sm:$0xff] }
 0x2c0   :  { %10640 = vst [vmem:[#allocation48_spill] sm:$0xff] %v7972_v15  ;;  %v7992_v10 = vmul.f32 %v7735_v22, %v10649_v42  ;;  %v10651_v15 = vld [vmem:[#allocation140_spill] sm:$0xff] }
 0x2c1   :  { %10642 = vst [vmem:[#allocation61_spill] sm:$0xff] %v7976_v36  ;;  %v7996_v48 = vmul.f32 %v7735_v22, %v10651_v15  ;;  %v10653_v36 = vld [vmem:[#allocation82_spill] sm:$0xff] }
 0x2c2   :  { %10644 = vst [vmem:[#allocation65_spill] sm:$0xff] %v7980_v41  ;;  %v2500_v7 = vmul.f32 %v10653_v36, %v2362_v9  ;;  %v8001_v41 = vmul.f32 %v7735_v22, %v10654_v2  ;;  %v2438_v0 = vmul.f32 %v10653_v36, %v2300_v49  ;;  %v2434_v43 = vmul.f32 %v10653_v36, %v7761_v34 }
 0x2c3   :  { %10646 = vst [vmem:[#allocation93_spill] sm:$0xff] %v7984_v57  ;;  %v2436_v15 = vmul.f32 %v10653_v36, %v7772_v46  ;;  %v2442_v9 = vmul.f32 %v10653_v36, %v7782_v55  ;;  %v2506_v34 = vmul.f32 %v10653_v36, %v2368_v25 }
 0x2c4   :  { %10648 = vst [vmem:[#allocation46_spill] sm:$0xff] %v7988_v53  ;;  %v2504_v53 = vmul.f32 %v10653_v36, %v2366_v40  ;;  %v2638_v42 = vadd.f32 %v7689_v63, %v2500_v7  ;;  %v2576_v2 = vadd.f32 %v7689_v63, %v2438_v0  ;;  %v2572_v49 = vadd.f32 %v7689_v63, %v2434_v43 }
 0x2c5   :  { %10650 = vst [vmem:[#allocation72_spill] sm:$0xff] %v7992_v10  ;;  %v2440_v10 = vmul.f32 %v10653_v36, %v7778_v6  ;;  %v2580_v6 = vadd.f32 %v7689_v63, %v2442_v9  ;;  %v2644_v55 = vadd.f32 %v7689_v63, %v2506_v34 }
 0x2c6   :  { %10652 = vst [vmem:[#allocation45_spill] sm:$0xff] %v7996_v48  ;;  %v2770_v40 = vmax.f32 %v2638_v42, 0.0  ;;  %v2574_v48 = vadd.f32 %v7689_v63, %v2436_v15  ;;  %v2708_v57 = vmax.f32 %v2576_v2, 0.0  ;;  %v2704_v46 = vmax.f32 %v2572_v49, 0.0 }
 0x2c7   :  { %10655 = vst [vmem:[#allocation47_spill] sm:$0xff] %v8001_v41  ;;  %v2642_v41 = vadd.f32 %v7689_v63, %v2504_v53  ;;  %v2578_v7 = vadd.f32 %v7689_v63, %v2440_v10  ;;  %v2712_v3 = vmax.f32 %v2580_v6, 0.0  ;;  %v2776_v42 = vmax.f32 %v2644_v55, 0.0 }
 0x2c8   :  { %v2908_v0 = vmul.f32 %v7700_v38, %v2770_v40  ;;  %v2706_v43 = vmax.f32 %v2574_v48, 0.0  ;;  %v2846_v53 = vmul.f32 %v7700_v38, %v2708_v57  ;;  %v2842_v25 = vmul.f32 %v7700_v38, %v2704_v46 }
 0x2c9   :  { %v2774_v22 = vmax.f32 %v2642_v41, 0.0  ;;  %v2710_v39 = vmax.f32 %v2578_v7, 0.0  ;;  %v2850_v2 = vmul.f32 %v7700_v38, %v2712_v3  ;;  %v2914_v57 = vmul.f32 %v7700_v38, %v2776_v42 }
 0x2ca   :  { %v3074_v15 = vadd.f32 %v2908_v0, %v7703_v12  ;;  %v2844_v41 = vmul.f32 %v7700_v38, %v2706_v43  ;;  %v2979_v49 = vadd.f32 %v2846_v53, %v7713_v27  ;;  %v2973_v48 = vadd.f32 %v2842_v25, %v7724_v30 }
 0x2cb   :  { %v2912_v10 = vmul.f32 %v7700_v38, %v2774_v22  ;;  %v2848_v9 = vmul.f32 %v7700_v38, %v2710_v39  ;;  %v8037_v12 = vadd.f32 %v2850_v2, %v7738_v60  ;;  %v2502_v39 = vmul.f32 %v10653_v36, %v7896_v54 }
 0x2cc   :  { %3075 = vadd.xlane.f32.xlu2 %v3074_v15  ;;  %v2976_v40 = vadd.f32 %v2844_v41, %v7733_v16  ;;  %2980 = vadd.xlane.f32.xlu1 %v2979_v49  ;;  %v8042_v27 = vadd.f32 %v2914_v57, %v7741_v44  ;;  %v10656_v30 = vmax.f32 %v7706_v37, 0.0  ;;  %v2715_v16 = vmax.f32 %v7750_v29, 0.0 }
 0x2cd   :  { %v3080_v34 = vadd.f32 %v2912_v10, %v7727_v23  ;;  %v2982_v22 = vadd.f32 %v2848_v9, %v7730_v19  ;;  %2974 = vadd.xlane.f32.xlu0 %v2973_v48  ;;  %v2508_v19 = vmul.f32 %v10653_v36, %v7904_v35  ;;  %v2640_v60 = vadd.f32 %v7689_v63, %v2502_v39 }
 0x2ce   :  { %v2909_v23 = vmul.f32 %v7692_v14, %v10656_v30  ;;  %v10657_v3 = vmax.f32 %v7716_v26, 0.0  ;;  %v2446_v7 = vmul.f32 %v10653_v36, %v7790_v47  ;;  %v2444_v44 = vmul.f32 %v10653_v36, %v7786_v51 }
 0x2cf   :  { %v2646_v37 = vadd.f32 %v7689_v63, %v2508_v19  ;;  %v2853_v6 = vmul.f32 %v7692_v14, %v2715_v16  ;;  %v2713_v35 = vmax.f32 %v7753_v13, 0.0  ;;  %v2510_v29 = vmul.f32 %v10653_v36, %v7908_v8 }
 0x2d0   :  { %v2915_v54 = vmul.f32 %v7692_v14, %v10657_v3  ;;  %v2772_v46 = vmax.f32 %v2640_v60, 0.0  ;;  %v2584_v26 = vadd.f32 %v7689_v63, %v2446_v7  ;;  %v2582_v55 = vadd.f32 %v7689_v63, %v2444_v44  ;;  %v10659_v44 = vld [vmem:[#allocation113_spill] sm:$0xff] }
 0x2d1   :  { %v2779_v0 = vmax.f32 %v7764_v28, 0.0  ;;  %v2778_v47 = vmax.f32 %v2646_v37, 0.0  ;;  %v2851_v43 = vmul.f32 %v7692_v14, %v2713_v35  ;;  %v2648_v51 = vadd.f32 %v7689_v63, %v2510_v29  ;;  %v10660_v29 = vld [vmem:[#allocation107_spill] sm:$0xff] }
 0x2d2   :  { %v2448_v53 = vmul.f32 %v10653_v36, %v7794_v61  ;;  %v2910_v13 = vmul.f32 %v7700_v38, %v2772_v46  ;;  %v2716_v25 = vmax.f32 %v2584_v26, 0.0  ;;  %v2714_v10 = vmax.f32 %v2582_v55, 0.0 }
 0x2d3   :  { %v2917_v8 = vmul.f32 %v7692_v14, %v2779_v0  ;;  %v2916_v42 = vmul.f32 %v7700_v38, %v2778_v47  ;;  %v2780_v15 = vmax.f32 %v2648_v51, 0.0  ;;  %v2585_v28 = vadd.f32 %v7642_v33, %v7745_v1 }
 0x2d4   :  { %v2586_v9 = vadd.f32 %v7689_v63, %v2448_v53  ;;  %3081 = vadd.xlane.f32.xlu2 %v3080_v34  ;;  %v3077_v41 = vadd.f32 %v2910_v13, %v2909_v23  ;;  %v2854_v2 = vmul.f32 %v7700_v38, %v2716_v25  ;;  %v2852_v61 = vmul.f32 %v7700_v38, %v2714_v10  ;;  %v10661_v10 = vld [vmem:[#allocation75_spill] sm:$0xff] }
 0x2d5   :  { %v2512_v49 = vmul.f32 %v10653_v36, %v7912_v31  ;;  %2983 = vadd.xlane.f32.xlu1 %v2982_v22  ;;  %2977 = vadd.xlane.f32.xlu0 %v2976_v40  ;;  %v8080_v48 = vadd.f32 %v2916_v42, %v2915_v54  ;;  %v2918_v57 = vmul.f32 %v7700_v38, %v2780_v15  ;;  %v2717_v39 = vmax.f32 %v2585_v28, 0.0  ;;  %v10658_v40 = vld [vmem:[#allocation51_spill] sm:$0xff] }
 0x2d6   :  { %v2718_v30 = vmax.f32 %v2586_v9, 0.0  ;;  %v8083_v1 = vadd.f32 %v2854_v2, %v2853_v6  ;;  %v8085_v19 = vadd.f32 %v2852_v61, %v2851_v43  ;;  %v2649_v34 = vadd.f32 %v7642_v33, %v7768_v5 }
 0x2d7   :  { %v2650_v23 = vadd.f32 %v7689_v63, %v2512_v49  ;;  %v8090_v16 = vadd.f32 %v2918_v57, %v2917_v8  ;;  %v2855_v31 = vmul.f32 %v7692_v14, %v2717_v39  ;;  %v2449_v60 = vmul.f32 %v7403_v11, %v10658_v40 }
 0x2d8   :  { %v2856_v22 = vmul.f32 %v7700_v38, %v2718_v30  ;;  %v2781_v3 = vmax.f32 %v2649_v34, 0.0  ;;  %v2450_v7 = vmul.f32 %v10653_v36, %v7798_v56  ;;  %v2515_v37 = vmul.f32 %v7403_v11, %v10659_v44 }
 0x2d9   :  { %v2782_v54 = vmax.f32 %v2650_v23, 0.0  ;;  %v2587_v6 = vadd.f32 %v7642_v33, %v2449_v60  ;;  %v2516_v35 = vmul.f32 %v10653_v36, %v7920_v62  ;;  %v2513_v46 = vmul.f32 %v7403_v11, %v10660_v29  ;;  %v10663_v60 = vld [vmem:[#allocation69_spill] sm:$0xff]  ;;  %v10664_v29 = vld [vmem:[#allocation108_spill] sm:$0xff] }
 0x2da   :  { %v8100_v5 = vadd.f32 %v2856_v22, %v2855_v31  ;;  %v2919_v26 = vmul.f32 %v7692_v14, %v2781_v3  ;;  %v2588_v0 = vadd.f32 %v7689_v63, %v2450_v7  ;;  %v2653_v56 = vadd.f32 %v7642_v33, %v2515_v37 }
 0x2db   :  { %v2920_v55 = vmul.f32 %v7700_v38, %v2782_v54  ;;  %v2719_v47 = vmax.f32 %v2587_v6, 0.0  ;;  %v2654_v43 = vadd.f32 %v7689_v63, %v2516_v35  ;;  %v2514_v51 = vmul.f32 %v10653_v36, %v7916_v45 }
 0x2dc   :  { %v2651_v53 = vadd.f32 %v7642_v33, %v2513_v46  ;;  %2986 = vadd.xlane.f32.xlu2 %v8037_v12  ;;  %v2720_v13 = vmax.f32 %v2588_v0, 0.0  ;;  %v2785_v25 = vmax.f32 %v2653_v56, 0.0  ;;  %v2451_v8 = vmul.f32 %v7403_v11, %v10661_v10 }
 0x2dd   :  { %v8116_v62 = vadd.f32 %v2920_v55, %v2919_v26  ;;  %3084 = vadd.xlane.f32.xlu1 %v8042_v27  ;;  %3078 = vadd.xlane.f32.xlu0 %v3077_v41  ;;  %v2857_v42 = vmul.f32 %v7692_v14, %v2719_v47  ;;  %v2786_v15 = vmax.f32 %v2654_v43, 0.0  ;;  %v2652_v28 = vadd.f32 %v7689_v63, %v2514_v51  ;;  %v10662_v41 = vld [vmem:[#allocation102_spill] sm:$0xff]  ;;  %v10665_v51 = vld [vmem:[#allocation80_spill] sm:$0xff] }
 0x2de   :  { %v2783_v45 = vmax.f32 %v2651_v53, 0.0  ;;  %v2858_v9 = vmul.f32 %v7700_v38, %v2720_v13  ;;  %v2923_v12 = vmul.f32 %v7692_v14, %v2785_v25  ;;  %v2452_v2 = vmul.f32 %v10653_v36, %v7802_v50 }
 0x2df   :  { %v2589_v61 = vadd.f32 %v7642_v33, %v2451_v8  ;;  %v2924_v49 = vmul.f32 %v7700_v38, %v2786_v15  ;;  %v2784_v57 = vmax.f32 %v2652_v28, 0.0  ;;  %v2517_v39 = vmul.f32 %v7403_v11, %v10662_v41  ;;  %v10667_v41 = vld [vmem:[#allocation101_spill] sm:$0xff] }
 0x2e0   :  { %v2921_v27 = vmul.f32 %v7692_v14, %v2783_v45  ;;  %v8132_v30 = vadd.f32 %v2858_v9, %v2857_v42  ;;  %v2590_v34 = vadd.f32 %v7689_v63, %v2452_v2  ;;  %v2518_v31 = vmul.f32 %v10653_v36, %v7924_v4  ;;  %v10666_v45 = vld [vmem:[#allocation50_spill] sm:$0xff] }
 0x2e1   :  { %v2721_v23 = vmax.f32 %v2589_v61, 0.0  ;;  %v8137_v22 = vadd.f32 %v2924_v49, %v2923_v12  ;;  %v2922_v50 = vmul.f32 %v7700_v38, %v2784_v57  ;;  %v2655_v40 = vadd.f32 %v7642_v33, %v2517_v39 }
 0x2e2   :  { %v2453_v3 = vmul.f32 %v7403_v11, %v10663_v60  ;;  %v2722_v54 = vmax.f32 %v2590_v34, 0.0  ;;  %v2656_v44 = vadd.f32 %v7689_v63, %v2518_v31  ;;  %v2454_v37 = vmul.f32 %v10653_v36, %v7806_v52 }
 0x2e3   :  { %v2859_v7 = vmul.f32 %v7692_v14, %v2721_v23  ;;  %v8147_v6 = vadd.f32 %v2922_v50, %v2921_v27  ;;  %v2787_v4 = vmax.f32 %v2655_v40, 0.0  ;;  %v2519_v46 = vmul.f32 %v7403_v11, %v10664_v29  ;;  %v10669_v29 = vld [vmem:[#allocation116_spill] sm:$0xff] }
 0x2e4   :  { %v2591_v35 = vadd.f32 %v7642_v33, %v2453_v3  ;;  %3087 = vadd.xlane.f32.xlu2 %v8080_v48  ;;  %v2860_v26 = vmul.f32 %v7700_v38, %v2722_v54  ;;  %v2788_v55 = vmax.f32 %v2656_v44, 0.0  ;;  %v2592_v0 = vadd.f32 %v7689_v63, %v2454_v37  ;;  %v10668_v3 = vld [vmem:[#allocation54_spill] sm:$0xff] }
 0x2e5   :  { %v2520_v56 = vmul.f32 %v10653_v36, %v7928_v21  ;;  %2992 = vadd.xlane.f32.xlu1 %v8083_v1  ;;  %2989 = vadd.xlane.f32.xlu0 %v8085_v19  ;;  %v2925_v52 = vmul.f32 %v7692_v14, %v2787_v4  ;;  %v2657_v43 = vadd.f32 %v7642_v33, %v2519_v46 }
 0x2e6   :  { %v2723_v47 = vmax.f32 %v2591_v35, 0.0  ;;  %v2457_v48 = vmul.f32 %v7403_v11, %v10665_v51  ;;  %v8163_v53 = vadd.f32 %v2860_v26, %v2859_v7  ;;  %v2926_v13 = vmul.f32 %v7700_v38, %v2788_v55 }
 0x2e7   :  { %v2724_v25 = vmax.f32 %v2592_v0, 0.0  ;;  %v2658_v10 = vadd.f32 %v7689_v63, %v2520_v56  ;;  %v2789_v1 = vmax.f32 %v2657_v43, 0.0  ;;  %v2458_v19 = vmul.f32 %v10653_v36, %v7814_v59 }
 0x2e8   :  { %v2861_v21 = vmul.f32 %v7692_v14, %v2723_v47  ;;  %v2595_v8 = vadd.f32 %v7642_v33, %v2457_v48  ;;  %v8171_v42 = vadd.f32 %v2926_v13, %v2925_v52  ;;  %v2455_v9 = vmul.f32 %v7403_v11, %v10666_v45  ;;  %v10670_v48 = vld [vmem:[#allocation52_spill] sm:$0xff] }
 0x2e9   :  { %v2862_v15 = vmul.f32 %v7700_v38, %v2724_v25  ;;  %v2790_v28 = vmax.f32 %v2658_v10, 0.0  ;;  %v2927_v12 = vmul.f32 %v7692_v14, %v2789_v1  ;;  %v2596_v2 = vadd.f32 %v7689_v63, %v2458_v19 }
 0x2ea   :  { %v2727_v61 = vmax.f32 %v2595_v8, 0.0  ;;  %v2456_v49 = vmul.f32 %v10653_v36, %v7810_v18  ;;  %v2593_v27 = vadd.f32 %v7642_v33, %v2455_v9  ;;  %v2521_v39 = vmul.f32 %v7403_v11, %v10667_v41 }
 0x2eb   :  { %v8180_v57 = vadd.f32 %v2862_v15, %v2861_v21  ;;  %v2928_v59 = vmul.f32 %v7700_v38, %v2790_v28  ;;  %v2728_v34 = vmax.f32 %v2596_v2, 0.0  ;;  %v2522_v50 = vmul.f32 %v10653_v36, %v7932_v20  ;;  %v10671_v15 = vld [vmem:[#allocation59_spill] sm:$0xff] }
 0x2ec   :  { %v2865_v23 = vmul.f32 %v7692_v14, %v2727_v61  ;;  %v2594_v31 = vadd.f32 %v7689_v63, %v2456_v49  ;;  %3090 = vadd.xlane.f32.xlu2 %v8090_v16  ;;  %v2725_v40 = vmax.f32 %v2593_v27, 0.0  ;;  %v2659_v60 = vadd.f32 %v7642_v33, %v2521_v39 }
 0x2ed   :  { %v8191_v18 = vadd.f32 %v2928_v59, %v2927_v12  ;;  %v2459_v54 = vmul.f32 %v7403_v11, %v10668_v3  ;;  %2995 = vadd.xlane.f32.xlu1 %v8100_v5  ;;  %3093 = vadd.xlane.f32.xlu0 %v8116_v62  ;;  %v2866_v7 = vmul.f32 %v7700_v38, %v2728_v34  ;;  %v10672_v59 = vld [vmem:[#allocation155_spill] sm:$0xff] }
 0x2ee   :  { %v2726_v44 = vmax.f32 %v2594_v31, 0.0  ;;  %v2660_v37 = vadd.f32 %v7689_v63, %v2522_v50  ;;  %v2460_v20 = vmul.f32 %v10653_v36, %v7818_v24  ;;  %v2863_v16 = vmul.f32 %v7692_v14, %v2725_v40  ;;  %v10673_v34 = vld [vmem:[#allocation139_spill] sm:$0xff]  ;;  %v10674_v31 = vld [vmem:[#allocation58_spill] sm:$0xff] }
 0x2ef   :  { %v2791_v4 = vmax.f32 %v2659_v60, 0.0  ;;  %v2597_v35 = vadd.f32 %v7642_v33, %v2459_v54  ;;  %v2523_v46 = vmul.f32 %v7403_v11, %v10669_v29  ;;  %v8206_v26 = vadd.f32 %v2866_v7, %v2865_v23 }
 0x2f0   :  { %v2864_v5 = vmul.f32 %v7700_v38, %v2726_v44  ;;  %v2792_v62 = vmax.f32 %v2660_v37, 0.0  ;;  %v2598_v55 = vadd.f32 %v7689_v63, %v2460_v20  ;;  %v2524_v24 = vmul.f32 %v10653_v36, %v7936_v58  ;;  %v10675_v37 = vld [vmem:[#allocation90_spill] sm:$0xff] }
 0x2f1   :  { %v2929_v0 = vmul.f32 %v7692_v14, %v2791_v4  ;;  %v2729_v56 = vmax.f32 %v2597_v35, 0.0  ;;  %v2661_v52 = vadd.f32 %v7642_v33, %v2523_v46  ;;  %v2461_v13 = vmul.f32 %v7403_v11, %v10670_v48  ;;  %v10676_v46 = vld [vmem:[#allocation49_spill] sm:$0xff]  ;;  %v10678_v48 = vld [vmem:[#allocation56_spill] sm:$0xff] }
 0x2f2   :  { %v8214_v47 = vadd.f32 %v2864_v5, %v2863_v16  ;;  %v2930_v43 = vmul.f32 %v7700_v38, %v2792_v62  ;;  %v2730_v51 = vmax.f32 %v2598_v55, 0.0  ;;  %v2662_v10 = vadd.f32 %v7689_v63, %v2524_v24 }
 0x2f3   :  { %v2867_v25 = vmul.f32 %v7692_v14, %v2729_v56  ;;  %v2793_v21 = vmax.f32 %v2661_v52, 0.0  ;;  %v2462_v1 = vmul.f32 %v10653_v36, %v7822_v17  ;;  %v2599_v8 = vadd.f32 %v7642_v33, %v2461_v13  ;;  %v10677_v56 = vld [vmem:[#allocation143_spill] sm:$0xff] }
 0x2f4   :  { %v8223_v19 = vadd.f32 %v2930_v43, %v2929_v0  ;;  %v2868_v58 = vmul.f32 %v7700_v38, %v2730_v51  ;;  %v2527_v28 = vmul.f32 %v7403_v11, %v10671_v15  ;;  %2998 = vadd.xlane.f32.xlu2 %v8132_v30  ;;  %v2794_v45 = vmax.f32 %v2662_v10, 0.0 }
 0x2f5   :  { %v2931_v9 = vmul.f32 %v7692_v14, %v2793_v21  ;;  %v2600_v12 = vadd.f32 %v7689_v63, %v2462_v1  ;;  %v2528_v2 = vmul.f32 %v10653_v36, %v7944_v32  ;;  %3099 = vadd.xlane.f32.xlu1 %v8137_v22  ;;  %3096 = vadd.xlane.f32.xlu0 %v8147_v6  ;;  %v2731_v61 = vmax.f32 %v2599_v8, 0.0  ;;  %v10679_v1 = vld [vmem:[#allocation97_spill] sm:$0xff] }
 0x2f6   :  { %v8236_v17 = vadd.f32 %v2868_v58, %v2867_v25  ;;  %v2665_v49 = vadd.f32 %v7642_v33, %v2527_v28  ;;  %v2525_v30 = vmul.f32 %v7403_v11, %v10672_v59  ;;  %v2932_v27 = vmul.f32 %v7700_v38, %v2794_v45  ;;  %v10680_v28 = vld [vmem:[#allocation86_spill] sm:$0xff] }
 0x2f7   :  { %v2732_v41 = vmax.f32 %v2600_v12, 0.0  ;;  %v2666_v39 = vadd.f32 %v7689_v63, %v2528_v2  ;;  %v2526_v32 = vmul.f32 %v10653_v36, %v10673_v34  ;;  %v2869_v22 = vmul.f32 %v7692_v14, %v2731_v61  ;;  %v10681_v12 = vld [vmem:[#allocation147_spill] sm:$0xff] }
 0x2f8   :  { %v2797_v23 = vmax.f32 %v2665_v49, 0.0  ;;  %v2663_v6 = vadd.f32 %v7642_v33, %v2525_v30  ;;  %v2463_v50 = vmul.f32 %v7403_v11, %v10674_v31  ;;  %v8249_v40 = vadd.f32 %v2932_v27, %v2931_v9  ;;  %v10682_v30 = vld [vmem:[#allocation74_spill] sm:$0xff] }
 0x2f9   :  { %v2870_v60 = vmul.f32 %v7700_v38, %v2732_v41  ;;  %v2798_v3 = vmax.f32 %v2666_v39, 0.0  ;;  %v2664_v54 = vadd.f32 %v7689_v63, %v2526_v32  ;;  %v2464_v20 = vmul.f32 %v10653_v36, %v10675_v37 }
 0x2fa   :  { %v2935_v7 = vmul.f32 %v7692_v14, %v2797_v23  ;;  %v2795_v44 = vmax.f32 %v2663_v6, 0.0  ;;  %v2601_v16 = vadd.f32 %v7642_v33, %v2463_v50  ;;  %v2529_v5 = vmul.f32 %v7403_v11, %v10676_v46  ;;  %v10683_v6 = vld [vmem:[#allocation106_spill] sm:$0xff] }
 0x2fb   :  { %v8257_v4 = vadd.f32 %v2870_v60, %v2869_v22  ;;  %v2936_v35 = vmul.f32 %v7700_v38, %v2798_v3  ;;  %v2796_v29 = vmax.f32 %v2664_v54, 0.0  ;;  %v2602_v55 = vadd.f32 %v7689_v63, %v2464_v20 }
 0x2fc   :  { %v2933_v62 = vmul.f32 %v7692_v14, %v2795_v44  ;;  %v2733_v0 = vmax.f32 %v2601_v16, 0.0  ;;  %v2530_v24 = vmul.f32 %v10653_v36, %v10677_v56  ;;  %3001 = vadd.xlane.f32.xlu2 %v8163_v53  ;;  %v2667_v51 = vadd.f32 %v7642_v33, %v2529_v5  ;;  %v10686_v56 = vld [vmem:[#allocation114_spill] sm:$0xff] }
 0x2fd   :  { %v8267_v52 = vadd.f32 %v2936_v35, %v2935_v7  ;;  %v2934_v43 = vmul.f32 %v7700_v38, %v2796_v29  ;;  %v2465_v13 = vmul.f32 %v7403_v11, %v10678_v48  ;;  %3102 = vadd.xlane.f32.xlu1 %v8171_v42  ;;  %3004 = vadd.xlane.f32.xlu0 %v8180_v57  ;;  %v2734_v25 = vmax.f32 %v2602_v55, 0.0  ;;  %v10684_v7 = vld [vmem:[#allocation68_spill] sm:$0xff] }
 0x2fe   :  { %v2871_v10 = vmul.f32 %v7692_v14, %v2733_v0  ;;  %v2668_v21 = vadd.f32 %v7689_v63, %v2530_v24  ;;  %v2466_v53 = vmul.f32 %v10653_v36, %v10679_v1  ;;  %v2799_v8 = vmax.f32 %v2667_v51, 0.0  ;;  %v10685_v35 = vld [vmem:[#allocation96_spill] sm:$0xff]  ;;  %v10689_v1 = vld [vmem:[#allocation117_spill] sm:$0xff] }
 0x2ff   :  { %v8279_v58 = vadd.f32 %v2934_v43, %v2933_v62  ;;  %v2603_v15 = vadd.f32 %v7642_v33, %v2465_v13  ;;  %v2531_v45 = vmul.f32 %v7403_v11, %v10680_v28  ;;  %v2872_v42 = vmul.f32 %v7700_v38, %v2734_v25  ;;  %v10688_v48 = vld [vmem:[#allocation60_spill] sm:$0xff] }
 0x300   :  { %v2800_v9 = vmax.f32 %v2668_v21, 0.0  ;;  %v2604_v57 = vadd.f32 %v7689_v63, %v2466_v53  ;;  %v2532_v2 = vmul.f32 %v10653_v36, %v10681_v12  ;;  %v2937_v61 = vmul.f32 %v7692_v14, %v2799_v8 }
 0x301   :  { %v2735_v49 = vmax.f32 %v2603_v15, 0.0  ;;  %v2669_v59 = vadd.f32 %v7642_v33, %v2531_v45  ;;  %v2469_v27 = vmul.f32 %v7403_v11, %v10682_v30  ;;  %v8292_v41 = vadd.f32 %v2872_v42, %v2871_v10  ;;  %v10690_v45 = vld [vmem:[#allocation118_spill] sm:$0xff] }
 0x302   :  { %v2938_v39 = vmul.f32 %v7700_v38, %v2800_v9  ;;  %v2736_v34 = vmax.f32 %v2604_v57, 0.0  ;;  %v2670_v32 = vadd.f32 %v7689_v63, %v2532_v2  ;;  %v2470_v31 = vmul.f32 %v10653_v36, %v10683_v6 }
 0x303   :  { %v2873_v22 = vmul.f32 %v7692_v14, %v2735_v49  ;;  %v2801_v23 = vmax.f32 %v2669_v59, 0.0  ;;  %v2607_v50 = vadd.f32 %v7642_v33, %v2469_v27  ;;  %v2467_v44 = vmul.f32 %v7403_v11, %v10684_v7  ;;  %v10691_v59 = vld [vmem:[#allocation150_spill] sm:$0xff] }
 0x304   :  { %v8300_v60 = vadd.f32 %v2938_v39, %v2937_v61  ;;  %v2874_v3 = vmul.f32 %v7700_v38, %v2736_v34  ;;  %v2802_v54 = vmax.f32 %v2670_v32, 0.0  ;;  %3105 = vadd.xlane.f32.xlu2 %v8191_v18  ;;  %v2608_v20 = vadd.f32 %v7689_v63, %v2470_v31 }
 0x305   :  { %v2939_v37 = vmul.f32 %v7692_v14, %v2801_v23  ;;  %v2739_v16 = vmax.f32 %v2607_v50, 0.0  ;;  %v2468_v29 = vmul.f32 %v10653_v36, %v10685_v35  ;;  %3010 = vadd.xlane.f32.xlu1 %v8206_v26  ;;  %3007 = vadd.xlane.f32.xlu0 %v8214_v47  ;;  %v2605_v62 = vadd.f32 %v7642_v33, %v2467_v44  ;;  %v10687_v26 = vld [vmem:[#allocation144_spill] sm:$0xff]  ;;  %v10695_v35 = vld [vmem:[#allocation79_spill] sm:$0xff] }
 0x306   :  { %v8312_v46 = vadd.f32 %v2874_v3, %v2873_v22  ;;  %v2940_v5 = vmul.f32 %v7700_v38, %v2802_v54  ;;  %v2740_v55 = vmax.f32 %v2608_v20, 0.0  ;;  %v2533_v24 = vmul.f32 %v7403_v11, %v10686_v56  ;;  %v10692_v22 = vld [vmem:[#allocation42_spill] sm:$0xff]  ;;  %v10693_v54 = vld [vmem:[#allocation112_spill] sm:$0xff] }
 0x307   :  { %v2877_v18 = vmul.f32 %v7692_v14, %v2739_v16  ;;  %v2606_v0 = vadd.f32 %v7689_v63, %v2468_v29  ;;  %v2737_v51 = vmax.f32 %v2605_v62, 0.0  ;;  %v2534_v47 = vmul.f32 %v10653_v36, %v10687_v26  ;;  %v10697_v26 = vld [vmem:[#allocation154_spill] sm:$0xff] }
 0x308   :  { %v8320_v43 = vadd.f32 %v2940_v5, %v2939_v37  ;;  %v2471_v13 = vmul.f32 %v7403_v11, %v10688_v48  ;;  %v2878_v25 = vmul.f32 %v7700_v38, %v2740_v55  ;;  %v2671_v21 = vadd.f32 %v7642_v33, %v2533_v24  ;;  %v10694_v37 = vld [vmem:[#allocation125_spill] sm:$0xff]  ;;  %v10696_v24 = vld [vmem:[#allocation120_spill] sm:$0xff] }
 0x309   :  { %v2738_v10 = vmax.f32 %v2606_v0, 0.0  ;;  %v2472_v53 = vmul.f32 %v10653_v36, %v10689_v1  ;;  %v2875_v8 = vmul.f32 %v7692_v14, %v2737_v51  ;;  %v2672_v15 = vadd.f32 %v7689_v63, %v2534_v47 }
 0x30a   :  { %v2609_v28 = vadd.f32 %v7642_v33, %v2471_v13  ;;  %v2535_v42 = vmul.f32 %v7403_v11, %v10690_v45  ;;  %v8335_v9 = vadd.f32 %v2878_v25, %v2877_v18  ;;  %v2803_v12 = vmax.f32 %v2671_v21, 0.0 }
 0x30b   :  { %v2876_v57 = vmul.f32 %v7700_v38, %v2738_v10  ;;  %v2610_v2 = vadd.f32 %v7689_v63, %v2472_v53  ;;  %v2804_v61 = vmax.f32 %v2672_v15, 0.0  ;;  %v2536_v30 = vmul.f32 %v10653_v36, %v10691_v59  ;;  %v10698_v10 = vld [vmem:[#allocation78_spill] sm:$0xff]  ;;  %v10700_v59 = vld [vmem:[#allocation128_spill] sm:$0xff] }
 0x30c   :  { %v2741_v49 = vmax.f32 %v2609_v28, 0.0  ;;  %v2673_v27 = vadd.f32 %v7642_v33, %v2535_v42  ;;  %3108 = vadd.xlane.f32.xlu2 %v8223_v19  ;;  %v2941_v34 = vmul.f32 %v7692_v14, %v2803_v12  ;;  %v2473_v23 = vmul.f32 %v7403_v11, %v10692_v22  ;;  %v10699_v42 = vld [vmem:[#allocation137_spill] sm:$0xff] }
 0x30d   :  { %v8343_v39 = vadd.f32 %v2876_v57, %v2875_v8  ;;  %v2742_v32 = vmax.f32 %v2610_v2, 0.0  ;;  %3013 = vadd.xlane.f32.xlu1 %v8236_v17  ;;  %3111 = vadd.xlane.f32.xlu0 %v8249_v40  ;;  %v2942_v6 = vmul.f32 %v7700_v38, %v2804_v61  ;;  %v2674_v50 = vadd.f32 %v7689_v63, %v2536_v30 }
 0x30e   :  { %v2879_v31 = vmul.f32 %v7692_v14, %v2741_v49  ;;  %v2805_v3 = vmax.f32 %v2673_v27, 0.0  ;;  %v2474_v7 = vmul.f32 %v10653_v36, %v10693_v54  ;;  %v2611_v44 = vadd.f32 %v7642_v33, %v2473_v23 }
 0x30f   :  { %v2880_v19 = vmul.f32 %v7700_v38, %v2742_v32  ;;  %v2539_v20 = vmul.f32 %v7403_v11, %v10694_v37  ;;  %v8359_v17 = vadd.f32 %v2942_v6, %v2941_v34  ;;  %v2806_v40 = vmax.f32 %v2674_v50, 0.0  ;;  %v10701_v32 = vld [vmem:[#allocation48_spill] sm:$0xff]  ;;  %v10703_v37 = vld [vmem:[#allocation110_spill] sm:$0xff] }
 0x310   :  { %v2943_v16 = vmul.f32 %v7692_v14, %v2805_v3  ;;  %v2540_v29 = vmul.f32 %v10653_v36, %v10695_v35  ;;  %v2612_v62 = vadd.f32 %v7689_v63, %v2474_v7  ;;  %v2743_v55 = vmax.f32 %v2611_v44, 0.0 }
 0x311   :  { %v8364_v5 = vadd.f32 %v2880_v19, %v2879_v31  ;;  %v2677_v18 = vadd.f32 %v7642_v33, %v2539_v20  ;;  %v2944_v0 = vmul.f32 %v7700_v38, %v2806_v40  ;;  %v2537_v51 = vmul.f32 %v7403_v11, %v10696_v24  ;;  %v10702_v19 = vld [vmem:[#allocation62_spill] sm:$0xff]  ;;  %v10704_v40 = vld [vmem:[#allocation132_spill] sm:$0xff] }
 0x312   :  { %v2678_v56 = vadd.f32 %v7689_v63, %v2540_v29  ;;  %v2538_v47 = vmul.f32 %v10653_v36, %v10697_v26  ;;  %v2744_v48 = vmax.f32 %v2612_v62, 0.0  ;;  %v2881_v13 = vmul.f32 %v7692_v14, %v2743_v55  ;;  %v10705_v55 = vld [vmem:[#allocation61_spill] sm:$0xff] }
 0x313   :  { %v2809_v25 = vmax.f32 %v2677_v18, 0.0  ;;  %v2475_v21 = vmul.f32 %v7403_v11, %v10698_v10  ;;  %v8377_v1 = vadd.f32 %v2944_v0, %v2943_v16  ;;  %v2675_v8 = vadd.f32 %v7642_v33, %v2537_v51  ;;  %v10706_v51 = vld [vmem:[#allocation71_spill] sm:$0xff]  ;;  %v10707_v10 = vld [vmem:[#allocation146_spill] sm:$0xff] }
 0x314   :  { %v2810_v53 = vmax.f32 %v2678_v56, 0.0  ;;  %v2676_v15 = vadd.f32 %v7689_v63, %v2538_v47  ;;  %3016 = vadd.xlane.f32.xlu2 %v8257_v4  ;;  %v2882_v28 = vmul.f32 %v7700_v38, %v2744_v48  ;;  %v2476_v57 = vmul.f32 %v10653_v36, %v10699_v42 }
 0x315   :  { %v2947_v45 = vmul.f32 %v7692_v14, %v2809_v25  ;;  %v2613_v12 = vadd.f32 %v7642_v33, %v2475_v21  ;;  %3117 = vadd.xlane.f32.xlu1 %v8267_v52  ;;  %3114 = vadd.xlane.f32.xlu0 %v8279_v58  ;;  %v2807_v61 = vmax.f32 %v2675_v8, 0.0  ;;  %v2541_v4 = vmul.f32 %v7403_v11, %v10700_v59  ;;  %v10708_v21 = vld [vmem:[#allocation63_spill] sm:$0xff] }
 0x316   :  { %v2948_v2 = vmul.f32 %v7700_v38, %v2810_v53  ;;  %v2808_v49 = vmax.f32 %v2676_v15, 0.0  ;;  %v8392_v30 = vadd.f32 %v2882_v28, %v2881_v13  ;;  %v2614_v27 = vadd.f32 %v7689_v63, %v2476_v57  ;;  %v10709_v8 = vld [vmem:[#allocation135_spill] sm:$0xff] }
 0x317   :  { %v2745_v34 = vmax.f32 %v2613_v12, 0.0  ;;  %v2542_v22 = vmul.f32 %v10653_v36, %v10701_v32  ;;  %v2945_v52 = vmul.f32 %v7692_v14, %v2807_v61  ;;  %v2679_v6 = vadd.f32 %v7642_v33, %v2541_v4  ;;  %v10710_v12 = vld [vmem:[#allocation153_spill] sm:$0xff]  ;;  %v10711_v4 = vld [vmem:[#allocation84_spill] sm:$0xff] }
 0x318   :  { %v8397_v23 = vadd.f32 %v2948_v2, %v2947_v45  ;;  %v2946_v58 = vmul.f32 %v7700_v38, %v2808_v49  ;;  %v2746_v31 = vmax.f32 %v2614_v27, 0.0  ;;  %v2477_v54 = vmul.f32 %v7403_v11, %v10702_v19 }
 0x319   :  { %v2883_v50 = vmul.f32 %v7692_v14, %v2745_v34  ;;  %v2680_v3 = vadd.f32 %v7689_v63, %v2542_v22  ;;  %v2811_v44 = vmax.f32 %v2679_v6, 0.0  ;;  %v2478_v20 = vmul.f32 %v10653_v36, %v10703_v37  ;;  %v10712_v34 = vld [vmem:[#allocation133_spill] sm:$0xff]  ;;  %v10713_v22 = vld [vmem:[#allocation136_spill] sm:$0xff] }
 0x31a   :  { %v8406_v7 = vadd.f32 %v2946_v58, %v2945_v52  ;;  %v2543_v16 = vmul.f32 %v7403_v11, %v10704_v40  ;;  %v2884_v35 = vmul.f32 %v7700_v38, %v2746_v31  ;;  %v2615_v62 = vadd.f32 %v7642_v33, %v2477_v54 }
 0x31b   :  { %v2812_v29 = vmax.f32 %v2680_v3, 0.0  ;;  %v2544_v18 = vmul.f32 %v10653_v36, %v10705_v55  ;;  %v2949_v0 = vmul.f32 %v7692_v14, %v2811_v44  ;;  %v2616_v56 = vadd.f32 %v7689_v63, %v2478_v20 }
 0x31c   :  { %v2681_v24 = vadd.f32 %v7642_v33, %v2543_v16  ;;  %v2481_v26 = vmul.f32 %v7403_v11, %v10706_v51  ;;  %3019 = vadd.xlane.f32.xlu2 %v8292_v41  ;;  %v8422_v47 = vadd.f32 %v2884_v35, %v2883_v50  ;;  %v2747_v13 = vmax.f32 %v2615_v62, 0.0  ;;  %v10714_v50 = vld [vmem:[#allocation65_spill] sm:$0xff] }
 0x31d   :  { %v2950_v48 = vmul.f32 %v7700_v38, %v2812_v29  ;;  %v2682_v25 = vadd.f32 %v7689_v63, %v2544_v18  ;;  %v8428_v53 = vmul.f32 %v10708_v21, %v10707_v10  ;;  %v8432_v15 = vmul.f32 %v10653_v36, %v10709_v8  ;;  %3120 = vadd.xlane.f32.xlu1 %v8300_v60  ;;  %v10715_v35 = vld [vmem:[#allocation77_spill] sm:$0xff] }
 0x31e   :  { %3022 = vadd.xlane.f32.xlu0 %v8312_v46  ;;  %v2748_v41 = vmax.f32 %v2616_v56, 0.0  ;;  %v2813_v28 = vmax.f32 %v2681_v24, 0.0  ;;  %v2885_v42 = vmul.f32 %v7692_v14, %v2747_v13  ;;  %v2482_v2 = vmul.f32 %v10653_v36, %v10710_v12 }
 0x31f   :  { %v8436_v45 = vadd.f32 %v2950_v48, %v2949_v0  ;;  %v2814_v57 = vmax.f32 %v2682_v25, 0.0  ;;  %v2619_v59 = vadd.f32 %v7642_v33, %v2481_v26  ;;  %v2479_v60 = vmul.f32 %v7403_v11, %v10711_v4  ;;  %v10716_v0 = vld [vmem:[#allocation66_spill] sm:$0xff]  ;;  %v10717_v48 = vld [vmem:[#allocation141_spill] sm:$0xff] }
 0x320   :  { %v2886_v61 = vmul.f32 %v7700_v38, %v2748_v41  ;;  %v2951_v49 = vmul.f32 %v7692_v14, %v2813_v28  ;;  %v2620_v27 = vadd.f32 %v7689_v63, %v2482_v2  ;;  %v2480_v32 = vmul.f32 %v10653_v36, %v10712_v34  ;;  %v10719_v2 = vld [vmem:[#allocation91_spill] sm:$0xff] }
 0x321   :  { %v2952_v46 = vmul.f32 %v7700_v38, %v2814_v57  ;;  %v2545_v52 = vmul.f32 %v7403_v11, %v10713_v22  ;;  %v2751_v6 = vmax.f32 %v2619_v59, 0.0  ;;  %v2617_v31 = vadd.f32 %v7642_v33, %v2479_v60 }
 0x322   :  { %v8452_v58 = vadd.f32 %v2886_v61, %v2885_v42  ;;  %v2546_v3 = vmul.f32 %v10653_v36, %v10714_v50  ;;  %v2752_v54 = vmax.f32 %v2620_v27, 0.0  ;;  %v2618_v44 = vadd.f32 %v7689_v63, %v2480_v32 }
 0x323   :  { %v8457_v19 = vadd.f32 %v2952_v46, %v2951_v49  ;;  %v2683_v37 = vadd.f32 %v7642_v33, %v2545_v52  ;;  %v2889_v20 = vmul.f32 %v7692_v14, %v2751_v6  ;;  %v2749_v40 = vmax.f32 %v2617_v31, 0.0  ;;  %v10720_v49 = vld [vmem:[#allocation145_spill] sm:$0xff]  ;;  %v10721_v52 = vld [vmem:[#allocation152_spill] sm:$0xff] }
 0x324   :  { %v2684_v16 = vadd.f32 %v7689_v63, %v2546_v3  ;;  %v2483_v29 = vmul.f32 %v7403_v11, %v10715_v35  ;;  %3123 = vadd.xlane.f32.xlu2 %v8320_v43  ;;  %v2890_v62 = vmul.f32 %v7700_v38, %v2752_v54  ;;  %v2750_v55 = vmax.f32 %v2618_v44, 0.0  ;;  %v10722_v3 = vld [vmem:[#allocation72_spill] sm:$0xff] }
 0x325   :  { %v2815_v18 = vmax.f32 %v2683_v37, 0.0  ;;  %v2484_v56 = vmul.f32 %v10653_v36, %v10716_v0  ;;  %3028 = vadd.xlane.f32.xlu1 %v8335_v9  ;;  %v2887_v24 = vmul.f32 %v7692_v14, %v2749_v40  ;;  %v2547_v13 = vmul.f32 %v7403_v11, %v10717_v48  ;;  %v10723_v44 = vld [vmem:[#allocation148_spill] sm:$0xff] }
 0x326   :  { %3025 = vadd.xlane.f32.xlu0 %v8343_v39  ;;  %v2816_v51 = vmax.f32 %v2684_v16, 0.0  ;;  %v2621_v26 = vadd.f32 %v7642_v33, %v2483_v29  ;;  %v8475_v43 = vadd.f32 %v2890_v62, %v2889_v20  ;;  %v2888_v25 = vmul.f32 %v7700_v38, %v2750_v55  ;;  %v10718_v39 = vld [vmem:[#allocation93_spill] sm:$0xff]  ;;  %v10724_v55 = vld [vmem:[#allocation46_spill] sm:$0xff] }
 0x327   :  { %v2953_v10 = vmul.f32 %v7692_v14, %v2815_v18  ;;  %v2622_v8 = vadd.f32 %v7689_v63, %v2484_v56  ;;  %v2548_v28 = vmul.f32 %v10653_v36, %v10718_v39  ;;  %v2685_v42 = vadd.f32 %v7642_v33, %v2547_v13 }
 0x328   :  { %v2954_v9 = vmul.f32 %v7700_v38, %v2816_v51  ;;  %v2753_v41 = vmax.f32 %v2621_v26, 0.0  ;;  %v8484_v57 = vadd.f32 %v2888_v25, %v2887_v24  ;;  %v2485_v61 = vmul.f32 %v7403_v11, %v10719_v2 }
 0x329   :  { %v2754_v12 = vmax.f32 %v2622_v8, 0.0  ;;  %v2486_v59 = vmul.f32 %v10653_v36, %v10720_v49  ;;  %v2686_v46 = vadd.f32 %v7689_v63, %v2548_v28  ;;  %v2817_v27 = vmax.f32 %v2685_v42, 0.0  ;;  %v10726_v8 = vld [vmem:[#allocation121_spill] sm:$0xff] }
 0x32a   :  { %v8490_v4 = vadd.f32 %v2954_v9, %v2953_v10  ;;  %v2891_v60 = vmul.f32 %v7692_v14, %v2753_v41  ;;  %v2623_v32 = vadd.f32 %v7642_v33, %v2485_v61  ;;  %v2551_v6 = vmul.f32 %v7403_v11, %v10721_v52  ;;  %v10727_v42 = vld [vmem:[#allocation53_spill] sm:$0xff] }
 0x32b   :  { %v2892_v34 = vmul.f32 %v7700_v38, %v2754_v12  ;;  %v2624_v22 = vadd.f32 %v7689_v63, %v2486_v59  ;;  %v2818_v31 = vmax.f32 %v2686_v46, 0.0  ;;  %v2955_v50 = vmul.f32 %v7692_v14, %v2817_v27  ;;  %v10728_v49 = vld [vmem:[#allocation45_spill] sm:$0xff] }
 0x32c   :  { %v2552_v54 = vmul.f32 %v10653_v36, %v10722_v3  ;;  %v2549_v37 = vmul.f32 %v7403_v11, %v10723_v44  ;;  %3126 = vadd.xlane.f32.xlu2 %v8359_v17  ;;  %v2755_v40 = vmax.f32 %v2623_v32, 0.0  ;;  %v2689_v35 = vadd.f32 %v7642_v33, %v2551_v6 }
 0x32d   :  { %v8505_v20 = vadd.f32 %v2892_v34, %v2891_v60  ;;  %v2756_v16 = vmax.f32 %v2624_v22, 0.0  ;;  %3031 = vadd.xlane.f32.xlu1 %v8364_v5  ;;  %v2956_v29 = vmul.f32 %v7700_v38, %v2818_v31  ;;  %v2550_v18 = vmul.f32 %v10653_v36, %v10724_v55  ;;  %v10729_v60 = vld [vmem:[#allocation85_spill] sm:$0xff]  ;;  %v10730_v31 = vld [vmem:[#allocation124_spill] sm:$0xff] }
 0x32e   :  { %3129 = vadd.xlane.f32.xlu0 %v8377_v1  ;;  %v2690_v62 = vadd.f32 %v7689_v63, %v2552_v54  ;;  %v2893_v0 = vmul.f32 %v7692_v14, %v2755_v40  ;;  %v2821_v56 = vmax.f32 %v2689_v35, 0.0  ;;  %v2687_v24 = vadd.f32 %v7642_v33, %v2549_v37  ;;  %v10725_v1 = vld [vmem:[#allocation89_spill] sm:$0xff] }
 0x32f   :  { %v2894_v17 = vmul.f32 %v7700_v38, %v2756_v16  ;;  %v8517_v51 = vadd.f32 %v2956_v29, %v2955_v50  ;;  %v2688_v5 = vadd.f32 %v7689_v63, %v2550_v18  ;;  %v2487_v48 = vmul.f32 %v7403_v11, %v10725_v1  ;;  %v10731_v40 = vld [vmem:[#allocation57_spill] sm:$0xff]  ;;  %v10732_v18 = vld [vmem:[#allocation47_spill] sm:$0xff] }
 0x330   :  { %v2822_v26 = vmax.f32 %v2690_v62, 0.0  ;;  %v2959_v25 = vmul.f32 %v7692_v14, %v2821_v56  ;;  %v2819_v10 = vmax.f32 %v2687_v24, 0.0  ;;  %v2488_v9 = vmul.f32 %v10653_v36, %v10726_v8 }
 0x331   :  { %v8522_v13 = vadd.f32 %v2894_v17, %v2893_v0  ;;  %v2820_v39 = vmax.f32 %v2688_v5, 0.0  ;;  %v2625_v28 = vadd.f32 %v7642_v33, %v2487_v48  ;;  %v2553_v12 = vmul.f32 %v7403_v11, %v10727_v42  ;;  %v10733_v0 = vld [vmem:[#allocation88_spill] sm:$0xff]  ;;  %v10736_v42 = vld [vmem:[#allocation123_spill] sm:$0xff] }
 0x332   :  { %v2960_v41 = vmul.f32 %v7700_v38, %v2822_v26  ;;  %v2957_v2 = vmul.f32 %v7692_v14, %v2819_v10  ;;  %v2626_v61 = vadd.f32 %v7689_v63, %v2488_v9  ;;  %v2554_v59 = vmul.f32 %v10653_v36, %v10728_v49 }
 0x333   :  { %v2489_v46 = vmul.f32 %v7403_v11, %v10729_v60  ;;  %v2958_v34 = vmul.f32 %v7700_v38, %v2820_v39  ;;  %v2757_v32 = vmax.f32 %v2625_v28, 0.0  ;;  %v2691_v22 = vadd.f32 %v7642_v33, %v2553_v12  ;;  %v10735_v39 = vld [vmem:[#allocation83_spill] sm:$0xff] }
 0x334   :  { %v8537_v27 = vadd.f32 %v2960_v41, %v2959_v25  ;;  %3034 = vadd.xlane.f32.xlu2 %v8392_v30  ;;  %v2758_v52 = vmax.f32 %v2626_v61, 0.0  ;;  %v2692_v6 = vadd.f32 %v7689_v63, %v2554_v59  ;;  %v2490_v50 = vmul.f32 %v10653_v36, %v10730_v31  ;;  %v10734_v25 = vld [vmem:[#allocation130_spill] sm:$0xff] }
 0x335   :  { %v2627_v3 = vadd.f32 %v7642_v33, %v2489_v46  ;;  %3135 = vadd.xlane.f32.xlu1 %v8397_v23  ;;  %v8548_v54 = vadd.f32 %v2958_v34, %v2957_v2  ;;  %v2895_v44 = vmul.f32 %v7692_v14, %v2757_v32  ;;  %v2823_v37 = vmax.f32 %v2691_v22, 0.0  ;;  %v10737_v32 = vld [vmem:[#allocation64_spill] sm:$0xff] }
 0x336   :  { %3132 = vadd.xlane.f32.xlu0 %v8406_v7  ;;  %v2555_v30 = vmul.f32 %v7403_v11, %v10731_v40  ;;  %v2896_v16 = vmul.f32 %v7700_v38, %v2758_v52  ;;  %v2824_v35 = vmax.f32 %v2692_v6, 0.0  ;;  %v2628_v29 = vadd.f32 %v7689_v63, %v2490_v50 }
 0x337   :  { %v2759_v62 = vmax.f32 %v2627_v3, 0.0  ;;  %v2961_v55 = vmul.f32 %v7692_v14, %v2823_v37  ;;  %v2556_v23 = vmul.f32 %v10653_v36, %v10732_v18  ;;  %v2493_v17 = vmul.f32 %v7403_v11, %v10733_v0  ;;  %v10738_v37 = vld [vmem:[#allocation41_spill] sm:$0xff] }
 0x338   :  { %v2693_v7 = vadd.f32 %v7642_v33, %v2555_v30  ;;  %v8561_v56 = vadd.f32 %v2896_v16, %v2895_v44  ;;  %v2962_v24 = vmul.f32 %v7700_v38, %v2824_v35  ;;  %v2760_v26 = vmax.f32 %v2628_v29, 0.0  ;;  %v10739_v29 = vld [vmem:[#allocation151_spill] sm:$0xff] }
 0x339   :  { %v2897_v5 = vmul.f32 %v7692_v14, %v2759_v62  ;;  %v2694_v1 = vadd.f32 %v7689_v63, %v2556_v23  ;;  %v2494_v10 = vmul.f32 %v10653_v36, %v10734_v25  ;;  %v2631_v8 = vadd.f32 %v7642_v33, %v2493_v17 }
 0x33a   :  { %v2825_v48 = vmax.f32 %v2693_v7, 0.0  ;;  %v8569_v9 = vadd.f32 %v2962_v24, %v2961_v55  ;;  %v2898_v41 = vmul.f32 %v7700_v38, %v2760_v26  ;;  %v2491_v28 = vmul.f32 %v7403_v11, %v10735_v39  ;;  %v10742_v39 = vld [vmem:[#allocation43_spill] sm:$0xff] }
 0x33b   :  { %v2492_v12 = vmul.f32 %v10653_v36, %v10736_v42  ;;  %v2826_v2 = vmax.f32 %v2694_v1, 0.0  ;;  %v2632_v49 = vadd.f32 %v7689_v63, %v2494_v10  ;;  %v2763_v59 = vmax.f32 %v2631_v8, 0.0  ;;  %v10741_v10 = vld [vmem:[#allocation100_spill] sm:$0xff] }
 0x33c   :  { %v2963_v61 = vmul.f32 %v7692_v14, %v2825_v48  ;;  %3037 = vadd.xlane.f32.xlu2 %v8422_v47  ;;  %v8579_v60 = vadd.f32 %v2898_v41, %v2897_v5  ;;  %v2629_v46 = vadd.f32 %v7642_v33, %v2491_v28  ;;  %v2557_v22 = vmul.f32 %v7403_v11, %v10737_v32  ;;  %v10740_v5 = vld [vmem:[#allocation95_spill] sm:$0xff] }
 0x33d   :  { %v2630_v34 = vadd.f32 %v7689_v63, %v2492_v12  ;;  %3138 = vadd.xlane.f32.xlu1 %v8436_v45  ;;  %v2964_v52 = vmul.f32 %v7700_v38, %v2826_v2  ;;  %v2764_v6 = vmax.f32 %v2632_v49, 0.0  ;;  %v2901_v31 = vmul.f32 %v7692_v14, %v2763_v59  ;;  %v10743_v12 = vld [vmem:[#allocation70_spill] sm:$0xff]  ;;  %v10744_v2 = vld [vmem:[#allocation44_spill] sm:$0xff]  ;;  %v10745_v49 = vld [vmem:[#allocation149_spill] sm:$0xff] }
 0x33e   :  { %3040 = vadd.xlane.f32.xlu0 %v8452_v58  ;;  %v2558_v47 = vmul.f32 %v10653_v36, %v8428_v53  ;;  %v2761_v50 = vmax.f32 %v2629_v46, 0.0  ;;  %v2695_v44 = vadd.f32 %v7642_v33, %v2557_v22  ;;  %v2635_v40 = vadd.f32 %v7642_v33, %v10738_v37 }
 0x33f   :  { %v2762_v3 = vmax.f32 %v2630_v34, 0.0  ;;  %v8594_v30 = vpop.xlane.xlu2 %3075  ;;  %v8596_v45 = vadd.f32 %v2964_v52, %v2963_v61  ;;  %v2902_v58 = vmul.f32 %v7700_v38, %v2764_v6  ;;  %v2636_v35 = vadd.f32 %v7689_v63, %v8432_v15  ;;  %v8604_v62 = vpop.xlane.xlu1 %2980 }
 0x340   :  { %v2696_v16 = vadd.f32 %v7689_v63, %v2558_v47  ;;  %v2422_v53 = vmul.f32 %v10708_v21, %v10739_v29  ;;  %v8606_v55 = vpop.xlane.xlu0 %2974  ;;  %v2899_v18 = vmul.f32 %v7692_v14, %v2761_v50  ;;  %v2827_v7 = vmax.f32 %v2695_v44, 0.0  ;;  %v10746_v29 = vld [vmem:[#allocation55_spill] sm:$0xff] }
 0x341   :  { %v2900_v23 = vmul.f32 %v7700_v38, %v2762_v3  ;;  %v8610_v0 = vadd.f32 %v2902_v58, %v2901_v31  ;;  %v2767_v15 = vmax.f32 %v2635_v40, 0.0  ;;  %v2563_v1 = vmul.f32 %v7403_v11, %v10740_v5 }
 0x342   :  { %v2828_v17 = vmax.f32 %v2696_v16, 0.0  ;;  %v2965_v26 = vmul.f32 %v7692_v14, %v2827_v7  ;;  %v2768_v25 = vmax.f32 %v2636_v35, 0.0  ;;  %v2564_v8 = vmul.f32 %v10653_v36, %v10741_v10 }
 0x343   :  { %v8612_v24 = vadd.f32 %v2900_v23, %v2899_v18  ;;  %v2905_v41 = vmul.f32 %v7692_v14, %v2767_v15  ;;  %v2559_v28 = vmul.f32 %v7403_v11, %v10742_v39  ;;  %v2560_v42 = vmul.f32 %v10653_v36, %v2422_v53  ;;  %v10747_v18 = vld [vmem:[#allocation142_spill] sm:$0xff] }
 0x344   :  { %v2966_v48 = vmul.f32 %v7700_v38, %v2828_v17  ;;  %3141 = vadd.xlane.f32.xlu2 %v8457_v19  ;;  %v2423_v61 = vmul.f32 %v10744_v2, %v10743_v12  ;;  %v2424_v59 = vmul.f32 %v10708_v21, %v10745_v49  ;;  %v2906_v19 = vmul.f32 %v7700_v38, %v2768_v25 }
 0x345   :  { %3046 = vadd.xlane.f32.xlu1 %v8475_v43  ;;  %v3069_v32 = vsel %vm1719_vm10, %v2905_v41, 0.0  ;;  %v2697_v22 = vadd.f32 %v7642_v33, %v2559_v28  ;;  %v2698_v43 = vadd.f32 %v7689_v63, %v2560_v42  ;;  %v2702_v47 = vadd.f32 %v7689_v63, %v2564_v8 }
 0x346   :  { %3043 = vadd.xlane.f32.xlu0 %v8484_v57  ;;  %v8631_v46 = vadd.f32 %v2966_v48, %v2965_v26  ;;  %v2701_v57 = vadd.f32 %v7642_v33, %v2563_v1  ;;  %v3070_v31 = vsel %vm1719_vm10, %v2906_v19, 0.0  ;;  %v2561_v16 = vmul.f32 %v7403_v11, %v2423_v61 }
 0x347   :  { %v8634_v34 = vpop.xlane.xlu2 %3081  ;;  %v3071_v50 = vadd.f32 %v3070_v31, %v3069_v32  ;;  %v2829_v3 = vmax.f32 %v2697_v22, 0.0  ;;  %v2830_v44 = vmax.f32 %v2698_v43, 0.0  ;;  %v2834_v40 = vmax.f32 %v2702_v47, 0.0 }
 0x348   :  { %v8640_v52 = vpop.xlane.xlu1 %2983  ;;  %v8642_v6 = vpop.xlane.xlu0 %2977  ;;  %v2833_v37 = vmax.f32 %v2701_v57, 0.0  ;;  %v2562_v35 = vmul.f32 %v10653_v36, %v2424_v59  ;;  %v2357_v53 = vmul.f32 %v10744_v2, %v10746_v29  ;;  %v2358_v23 = vmul.f32 %v10708_v21, %v10747_v18 }
 0x349   :  { %v2967_v58 = vmul.f32 %v7692_v14, %v2829_v3  ;;  %v2968_v7 = vmul.f32 %v7700_v38, %v2830_v44  ;;  %v2972_v15 = vmul.f32 %v7700_v38, %v2834_v40  ;;  %v2699_v48 = vadd.f32 %v7642_v33, %v2561_v16  ;;  %v10751_v40 = vld [vmem:[#allocation10_spill] sm:$0xff] }
 0x34a   :  { %v2971_v17 = vmul.f32 %v7692_v14, %v2833_v37  ;;  %v2700_v21 = vadd.f32 %v7689_v63, %v2562_v35  ;;  %v2495_v8 = vmul.f32 %v7403_v11, %v2357_v53  ;;  %v8702_v43 = vstv %s9546_s9 }
 0x34b   :  { %v3164_v26 = vadd.f32 %v2968_v7, %v2967_v58  ;;  %v3171_v10 = vsel %vm1719_vm10, %v2972_v15, 0.0  ;;  %v2831_v41 = vmax.f32 %v2699_v48, 0.0  ;;  %v3210_v57 = vadd.f32 %v8702_v43, %v8594_v30  ;;  %v10752_v58 = vld [vmem:[#allocation19_spill] sm:$0xff]  ;;  %v10758_v48 = vld [vmem:[#allocation9_spill] sm:$0xff] }
 0x34c   :  { %3144 = vadd.xlane.f32.xlu2 %v8490_v4  ;;  %v3170_v1 = vsel %vm1719_vm10, %v2971_v17, 0.0  ;;  %v2832_v39 = vmax.f32 %v2700_v21, 0.0  ;;  %v2633_v28 = vadd.f32 %v7642_v33, %v2495_v8  ;;  %v3212_v37 = vadd.f32 %v8702_v43, %v8634_v34  ;;  %v10754_v30 = vld [vmem:[#allocation7_spill] sm:$0xff] }
 0x34d   :  { %3049 = vadd.xlane.f32.xlu1 %v8505_v20  ;;  %v2496_v20 = vmul.f32 %v10653_v36, %v2358_v23  ;;  %v2969_v12 = vmul.f32 %v7692_v14, %v2831_v41  ;;  %v8711_v44 = vsub.f32 0.0, %v3210_v57  ;;  %vm10753_vm7 = vcmp.eq.s32.totalorder %v10751_v40, %v10752_v58 }
 0x34e   :  { %3147 = vadd.xlane.f32.xlu0 %v8517_v51  ;;  %v3172_v51 = vadd.f32 %v3171_v10, %v3170_v1  ;;  %v2970_v2 = vmul.f32 %v7700_v38, %v2832_v39  ;;  %v2765_v36 = vmax.f32 %v2633_v28, 0.0  ;;  %vm10755_vm4 = vcmp.eq.s32.totalorder %v10754_v30, %v10752_v58  ;;  %v10762_v39 = vld [vmem:[#allocation8_spill] sm:$0xff] }
 0x34f   :  { %v8659_v5 = vpop.xlane.xlu2 %2986  ;;  %v2634_v42 = vadd.f32 %v7689_v63, %v2496_v20  ;;  %10750 = vst [vmem:[#allocation104_spill] sm:$0xff] %v8711_v44  ;;  %v3702_v29 = vsel %vm10755_vm4, %v8711_v44, 0.0  ;;  %v8724_v53 = vsub.f32 0.0, %v3212_v37  ;;  %vm10759_vm11 = vcmp.eq.s32.totalorder %v10758_v48, %v10752_v58  ;;  %v10760_v20 = vld [vmem:[#allocation12_spill] sm:$0xff] }
 0x350   :  { %v3085_v4 = vpop.xlane.xlu1 %3084  ;;  %v3079_v25 = vpop.xlane.xlu0 %3078  ;;  %v3167_v11 = vadd.f32 %v2970_v2, %v2969_v12  ;;  %v2903_v33 = vmul.f32 %v7692_v14, %v2765_v36  ;;  %v3808_v15 = vsel %vm3735_vm6, %v3702_v29, 0.0  ;;  %vm10761_vm2 = vcmp.eq.s32.totalorder %v10760_v20, %v10752_v58 }
 0x351   :  { %v2766_v49 = vmax.f32 %v2634_v42, 0.0  ;;  %v3213_v35 = vadd.f32 %v8702_v43, %v3085_v4  ;;  %10756 = vst [vmem:[#allocation115_spill] sm:$0xff] %v8724_v53  ;;  %v3704_v21 = vsel %vm10759_vm11, %v8724_v53, 0.0  ;;  %vm10763_vm8 = vcmp.eq.s32.totalorder %v10762_v39, %v10752_v58 }
 0x352   :  { %v3811_v8 = vsel %vm3735_vm6, %v3704_v21, 0.0 }
 0x353   :  { %v2904_v63 = vmul.f32 %v7700_v38, %v2766_v49  ;;  %v8732_v1 = vsub.f32 0.0, %v3213_v35  ;;  %v10768_v35 = vld [vmem:[#allocation13_spill] sm:$0xff] }
 0x354   :  { %3052 = vadd.xlane.f32.xlu2 %v8522_v13  ;;  %vm10769_vm12 = vcmp.eq.s32.totalorder %v10768_v35, %v10752_v58 }
 0x355   :  { %3153 = vadd.xlane.f32.xlu1 %v8537_v27  ;;  %v3066_v13 = vadd.f32 %v2904_v63, %v2903_v33 }
 0x356   :  { %3150 = vadd.xlane.f32.xlu0 %v8548_v54 }
 0x357   :  { %v3088_v61 = vpop.xlane.xlu2 %3087 }
 0x358   :  { %v8674_v59 = vpop.xlane.xlu1 %2992  ;;  %v8676_v19 = vpop.xlane.xlu0 %2989  ;;  %v3214_v18 = vadd.f32 %v8702_v43, %v3088_v61 }
 0x35c   :  { %3055 = vadd.xlane.f32.xlu2 %v8561_v56 }
 0x35d   :  { %3156 = vadd.xlane.f32.xlu1 %v8569_v9 }
 0x35e   :  { %3058 = vadd.xlane.f32.xlu0 %v8579_v60 }
 0x35f   :  { %v3091_v27 = vpop.xlane.xlu2 %3090 }
 0x360   :  { %v8683_v54 = vpop.xlane.xlu1 %2995  ;;  %v3094_v32 = vpop.xlane.xlu0 %3093  ;;  %v3215_v7 = vadd.f32 %v8702_v43, %v3091_v27 }
 0x361   :  { %v3216_v42 = vadd.f32 %v8702_v43, %v3094_v32 }
 0x362   :  { %v8740_v10 = vsub.f32 0.0, %v3215_v7 }
 0x363   :  { %v8763_v27 = vsub.f32 0.0, %v3216_v42 }
 0x364   :  { %3159 = vadd.xlane.f32.xlu2 %v8596_v45 }
 0x365   :  { %3064 = vadd.xlane.f32.xlu1 %v8610_v0  ;;  %v3708_v29 = vsel %vm10769_vm12, %v8763_v27, 0.0 }
 0x366   :  { %3061 = vadd.xlane.f32.xlu0 %v8612_v24 }
 0x367   :  { %v8688_v14 = vpop.xlane.xlu2 %2998 }
 0x368   :  { %v3100_v38 = vpop.xlane.xlu1 %3099  ;;  %v3097_v22 = vpop.xlane.xlu0 %3096 }
 0x369   :  { %v3217_v12 = vadd.f32 %v8702_v43, %v3097_v22  ;;  %v3218_v57 = vadd.f32 %v8702_v43, %v3100_v38 }
 0x36b   :  { %v8765_v32 = vsub.f32 0.0, %v3217_v12  ;;  %v8779_v21 = vsub.f32 0.0, %v3218_v57 }
 0x36c   :  { %3162 = vadd.xlane.f32.xlu2 %v8631_v46  ;;  %v3211_v46 = vadd.f32 %v8702_v43, %v3079_v25  ;;  %v8738_v25 = vsub.f32 0.0, %v3214_v18  ;;  %v10770_v18 = vld [vmem:[#allocation15_spill] sm:$0xff] }
 0x36d   :  { %3072 = vadd.xlane.f32.xlu1 %v3071_v50  ;;  %vm10771_vm14 = vcmp.eq.s32.totalorder %v10770_v18, %v10752_v58 }
 0x36e   :  { %3165 = vadd.xlane.f32.xlu0 %v3164_v26  ;;  %v8707_v47 = vsub.f32 0.0, %v3211_v46  ;;  %v3706_v28 = vsel %vm10763_vm8, %v8738_v25, 0.0 }
 0x36f   :  { %v8691_v56 = vpop.xlane.xlu2 %3001  ;;  %v3815_v63 = vsel %vm3735_vm6, %v3706_v28, 0.0 }
 0x370   :  { %v3103_v9 = vpop.xlane.xlu1 %3102  ;;  %v8693_v60 = vpop.xlane.xlu0 %3004  ;;  %v3703_v16 = vsel %vm10753_vm7, %v8707_v47, 0.0 }
 0x371   :  { %v3809_v23 = vsel %vm3735_vm6, %v3703_v16, 0.0  ;;  %v3219_v37 = vadd.f32 %v8702_v43, %v3103_v9 }
 0x372   :  { %v3810_v4 = vadd.f32 %v3809_v23, %v3808_v15  ;;  %v3709_v23 = vsel %vm10771_vm14, %v8765_v32, 0.0 }
 0x374   :  { %3173 = vadd.xlane.f32.xlu2 %v3172_v51  ;;  %v3705_v51 = vsel %vm10761_vm2, %v8732_v1, 0.0  ;;  %v3812_v41 = vadd.f32 %v3811_v8, %v3810_v4  ;;  %v8781_v4 = vsub.f32 0.0, %v3219_v37 }
 0x375   :  { %3168 = vadd.xlane.f32.xlu1 %v3167_v11  ;;  %v10765_v11 = vld [vmem:[#allocation11_spill] sm:$0xff]  ;;  %v3813_v33 = vsel %vm3735_vm6, %v3705_v51, 0.0  ;;  %v3819_v51 = vsel %vm3735_vm6, %v3708_v29, 0.0 }
 0x376   :  { %3067 = vadd.xlane.f32.xlu0 %v3066_v13  ;;  %vm10766_vm1 = vcmp.eq.s32.totalorder %v10765_v11, %v10752_v58  ;;  %v3814_v13 = vadd.f32 %v3813_v33, %v3812_v41  ;;  %v3821_v41 = vsel %vm3735_vm6, %v3709_v23, 0.0  ;;  %v10776_v33 = vld [vmem:[#allocation16_spill] sm:$0xff] }
 0x377   :  { %v3106_v45 = vpop.xlane.xlu2 %3105  ;;  %v3707_v61 = vsel %vm10766_vm1, %v8740_v10, 0.0  ;;  %vm10777_vm13 = vcmp.eq.s32.totalorder %v10776_v33, %v10752_v58 }
 0x378   :  { %v8695_v0 = vpop.xlane.xlu1 %3010  ;;  %v8697_v24 = vpop.xlane.xlu0 %3007  ;;  %v3817_v22 = vsel %vm3735_vm6, %v3707_v61, 0.0  ;;  %v3816_v46 = vadd.f32 %v3815_v63, %v3814_v13  ;;  %v3220_v7 = vadd.f32 %v8702_v43, %v3106_v45  ;;  %v10774_v45 = vld [vmem:[#allocation14_spill] sm:$0xff] }
 0x379   :  { %10748 = vst [vmem:[#allocation92_spill] sm:$0xff] %v8695_v0  ;;  %vm10775_vm9 = vcmp.eq.s32.totalorder %v10774_v45, %v10752_v58  ;;  %v10778_v13 = vld [vmem:[#allocation18_spill] sm:$0xff] }
 0x37a   :  { %v3818_v16 = vadd.f32 %v3817_v22, %v3816_v46  ;;  %v8790_v42 = vsub.f32 0.0, %v3220_v7  ;;  %v3710_v12 = vsel %vm10775_vm9, %v8779_v21, 0.0  ;;  %vm10779_vm15 = vcmp.eq.s32.totalorder %v10778_v13, %v10752_v58  ;;  %v10780_v7 = vld [vmem:[#allocation17_spill] sm:$0xff] }
 0x37b   :  { %v3823_v37 = vsel %vm3735_vm6, %v3710_v12, 0.0  ;;  %vm10781_vm5 = vcmp.eq.s32.totalorder %v10780_v7, %v10752_v58 }
 0x37c   :  { %v3820_v28 = vadd.f32 %v3819_v51, %v3818_v16  ;;  %v3712_v22 = vsel %vm10779_vm15, %v8790_v42, 0.0 }
 0x37e   :  { %v3822_v61 = vadd.f32 %v3821_v41, %v3820_v28  ;;  %v3827_v28 = vsel %vm3735_vm6, %v3712_v22, 0.0  ;;  %v10786_v22 = vld [vmem:[#allocation21_spill] sm:$0xff] }
 0x37f   :  { %v3109_v31 = vpop.xlane.xlu2 %3108  ;;  %vm10787_vm3 = vcmp.eq.s32.totalorder %v10786_v22, %v10752_v58  ;;  %v10790_v22 = vld [vmem:[#allocation22_spill] sm:$0xff] }
 0x380   :  { %v8709_v50 = vpop.xlane.xlu1 %3013  ;;  %v3112_v3 = vpop.xlane.xlu0 %3111  ;;  %v3221_v38 = vadd.f32 %v8702_v43, %v3109_v31  ;;  %v3711_v31 = vsel %vm10777_vm13, %v8781_v4, 0.0  ;;  %v3824_v23 = vadd.f32 %v3823_v37, %v3822_v61  ;;  %vm10791_vm7 = vcmp.eq.s32.totalorder %v10790_v22, %v10752_v58 }
 0x381   :  { %10749 = vst [vmem:[#allocation98_spill] sm:$0xff] %v8709_v50  ;;  %v3222_v46 = vadd.f32 %v8702_v43, %v3112_v3  ;;  %v3825_v16 = vsel %vm3735_vm6, %v3711_v31, 0.0 }
 0x382   :  { %v8800_v63 = vsub.f32 0.0, %v3221_v38 }
 0x383   :  { %v8817_v3 = vsub.f32 0.0, %v3222_v46 }
 0x384   :  { %v3713_v38 = vsel %vm10781_vm5, %v8800_v63, 0.0 }
 0x385   :  { %v3829_v12 = vsel %vm3735_vm6, %v3713_v38, 0.0 }
 0x387   :  { %v8728_v34 = vpop.xlane.xlu2 %3016 }
 0x388   :  { %10757 = vst [vmem:[#allocation111_spill] sm:$0xff] %v8728_v34  ;;  %v3118_v17 = vpop.xlane.xlu1 %3117  ;;  %v3115_v26 = vpop.xlane.xlu0 %3114 }
 0x389   :  { %v3223_v57 = vadd.f32 %v8702_v43, %v3115_v26  ;;  %v3224_v61 = vadd.f32 %v8702_v43, %v3118_v17 }
 0x38b   :  { %v8819_v26 = vsub.f32 0.0, %v3223_v57 }
 0x38d   :  { %10783 = vst [vmem:[#allocation81_spill] sm:$0xff] %v8819_v26  ;;  %v3715_v46 = vsel %vm10787_vm3, %v8819_v26, 0.0 }
 0x38f   :  { %v8753_v2 = vpop.xlane.xlu2 %3019 }
 0x390   :  { %10764 = vst [vmem:[#allocation122_spill] sm:$0xff] %v8753_v2  ;;  %v3121_v36 = vpop.xlane.xlu1 %3120 }
 0x391   :  { %v8759_v49 = vpop.xlane.xlu0 %3022  ;;  %v3225_v37 = vadd.f32 %v8702_v43, %v3121_v36 }
 0x392   :  { %10767 = vst [vmem:[#allocation67_spill] sm:$0xff] %v8759_v49  ;;  %v10784_v49 = vld [vmem:[#allocation20_spill] sm:$0xff] }
 0x393   :  { %vm10785_vm0 = vcmp.eq.s32.totalorder %v10784_v49, %v10752_v58  ;;  %v8837_v17 = vsub.f32 0.0, %v3225_v37  ;;  %v10792_v37 = vld [vmem:[#allocation23_spill] sm:$0xff] }
 0x394   :  { %vm10793_vm4 = vcmp.eq.s32.totalorder %v10792_v37, %v10752_v58  ;;  %v10797_v37 = vld [vmem:[#allocation25_spill] sm:$0xff] }
 0x395   :  { %vm10798_vm2 = vcmp.eq.s32.totalorder %v10797_v37, %v10752_v58  ;;  %v10800_v37 = vld [vmem:[#allocation26_spill] sm:$0xff] }
 0x396   :  { %vm10801_vm8 = vcmp.eq.s32.totalorder %v10800_v37, %v10752_v58  ;;  %v10810_v37 = vld [vmem:[#allocation29_spill] sm:$0xff] }
 0x397   :  { %v3124_v15 = vpop.xlane.xlu2 %3123  ;;  %vm10811_vm14 = vcmp.eq.s32.totalorder %v10810_v37, %v10752_v58 }
 0x398   :  { %v8784_v9 = vpop.xlane.xlu1 %3028  ;;  %v3226_v57 = vadd.f32 %v8702_v43, %v3124_v15 }
 0x399   :  { %10772 = vst [vmem:[#allocation103_spill] sm:$0xff] %v8784_v9  ;;  %v8786_v8 = vpop.xlane.xlu0 %3025  ;;  %v3826_v9 = vadd.f32 %v3825_v16, %v3824_v23 }
 0x39a   :  { %10773 = vst [vmem:[#allocation73_spill] sm:$0xff] %v8786_v8  ;;  %v8842_v49 = vsub.f32 0.0, %v3226_v57 }
 0x39b   :  { %v3828_v31 = vadd.f32 %v3827_v28, %v3826_v9  ;;  %v8835_v9 = vsub.f32 0.0, %v3224_v61 }
 0x39d   :  { %v3830_v8 = vadd.f32 %v3829_v12, %v3828_v31  ;;  %10789 = vst [vmem:[#allocation109_spill] sm:$0xff] %v8835_v9  ;;  %v3833_v12 = vsel %vm3735_vm6, %v3715_v46, 0.0  ;;  %v3716_v15 = vsel %vm10791_vm7, %v8835_v9, 0.0 }
 0x39f   :  { %v3127_v29 = vpop.xlane.xlu2 %3126 }
 0x3a0   :  { %v8814_v51 = vpop.xlane.xlu1 %3031  ;;  %v3227_v36 = vadd.f32 %v8702_v43, %v3127_v29  ;;  %v3717_v29 = vsel %vm10793_vm4, %v8837_v17, 0.0 }
 0x3a1   :  { %10782 = vst [vmem:[#allocation76_spill] sm:$0xff] %v8814_v51  ;;  %v3130_v41 = vpop.xlane.xlu0 %3129  ;;  %v3714_v51 = vsel %vm10785_vm0, %v8817_v3, 0.0 }
 0x3a2   :  { %v3831_v28 = vsel %vm3735_vm6, %v3714_v51, 0.0  ;;  %v10794_v51 = vld [vmem:[#allocation24_spill] sm:$0xff]  ;;  %v3228_v46 = vadd.f32 %v8702_v43, %v3130_v41 }
 0x3a3   :  { %v3832_v31 = vadd.f32 %v3831_v28, %v3830_v8  ;;  %vm10795_vm11 = vcmp.eq.s32.totalorder %v10794_v51, %v10752_v58  ;;  %v3835_v28 = vsel %vm3735_vm6, %v3716_v15, 0.0 }
 0x3a4   :  { %v3718_v8 = vsel %vm10795_vm11, %v8842_v49, 0.0  ;;  %v8871_v13 = vsub.f32 0.0, %v3228_v46 }
 0x3a5   :  { %v3834_v61 = vadd.f32 %v3833_v12, %v3832_v31  ;;  %v3837_v12 = vsel %vm3735_vm6, %v3717_v29, 0.0  ;;  %v3839_v51 = vsel %vm3735_vm6, %v3718_v8, 0.0  ;;  %v10802_v8 = vld [vmem:[#allocation27_spill] sm:$0xff] }
 0x3a6   :  { %vm10803_vm1 = vcmp.eq.s32.totalorder %v10802_v8, %v10752_v58  ;;  %v10808_v8 = vld [vmem:[#allocation28_spill] sm:$0xff] }
 0x3a7   :  { %v8833_v16 = vpop.xlane.xlu2 %3034  ;;  %v3836_v22 = vadd.f32 %v3835_v28, %v3834_v61  ;;  %vm10809_vm12 = vcmp.eq.s32.totalorder %v10808_v8, %v10752_v58 }
 0x3a8   :  { %10788 = vst [vmem:[#allocation87_spill] sm:$0xff] %v8833_v16  ;;  %v3136_v23 = vpop.xlane.xlu1 %3135  ;;  %v8852_v16 = vsub.f32 0.0, %v3227_v36 }
 0x3a9   :  { %v3133_v38 = vpop.xlane.xlu0 %3132  ;;  %v3838_v41 = vadd.f32 %v3837_v12, %v3836_v22  ;;  %v3230_v61 = vadd.f32 %v8702_v43, %v3136_v23 }
 0x3aa   :  { %v3229_v57 = vadd.f32 %v8702_v43, %v3133_v38  ;;  %v3719_v36 = vsel %vm10798_vm2, %v8852_v16, 0.0 }
 0x3ab   :  { %v3841_v15 = vsel %vm3735_vm6, %v3719_v36, 0.0  ;;  %v3840_v29 = vadd.f32 %v3839_v51, %v3838_v41 }
 0x3ac   :  { %v8873_v38 = vsub.f32 0.0, %v3229_v57  ;;  %v8886_v57 = vsub.f32 0.0, %v3230_v61 }
 0x3ae   :  { %v3721_v22 = vsel %vm10803_vm1, %v8873_v38, 0.0  ;;  %v3722_v61 = vsel %vm10809_vm12, %v8886_v57, 0.0 }
 0x3af   :  { %v8862_v31 = vpop.xlane.xlu2 %3037  ;;  %v3845_v41 = vsel %vm3735_vm6, %v3721_v22, 0.0 }
 0x3b0   :  { %10796 = vst [vmem:[#allocation94_spill] sm:$0xff] %v8862_v31  ;;  %v3139_v2 = vpop.xlane.xlu1 %3138  ;;  %v3842_v31 = vadd.f32 %v3841_v15, %v3840_v29 }
 0x3b1   :  { %v8868_v7 = vpop.xlane.xlu0 %3040  ;;  %v3231_v28 = vadd.f32 %v8702_v43, %v3139_v2 }
 0x3b2   :  { %10799 = vst [vmem:[#allocation105_spill] sm:$0xff] %v8868_v7  ;;  %v3720_v7 = vsel %vm10801_vm8, %v8871_v13, 0.0 }
 0x3b3   :  { %v8888_v12 = vsub.f32 0.0, %v3231_v28  ;;  %v3843_v36 = vsel %vm3735_vm6, %v3720_v7, 0.0 }
 0x3b4   :  { %v3844_v15 = vadd.f32 %v3843_v36, %v3842_v31  ;;  %v3847_v31 = vsel %vm3735_vm6, %v3722_v61, 0.0  ;;  %v10815_v61 = vld [vmem:[#allocation31_spill] sm:$0xff] }
 0x3b5   :  { %10804 = vst [vmem:[#allocation99_spill] sm:$0xff] %v8888_v12  ;;  %vm10816_vm13 = vcmp.eq.s32.totalorder %v10815_v61, %v10752_v58 }
 0x3b6   :  { %v3846_v28 = vadd.f32 %v3845_v41, %v3844_v15 }
 0x3b7   :  { %v3142_v46 = vpop.xlane.xlu2 %3141 }
 0x3b8   :  { %v3232_v23 = vadd.f32 %v8702_v43, %v3142_v46  ;;  %v8891_v51 = vpop.xlane.xlu1 %3046  ;;  %v3723_v46 = vsel %vm10811_vm14, %v8888_v12, 0.0  ;;  %v3848_v36 = vadd.f32 %v3847_v31, %v3846_v28 }
 0x3b9   :  { %10805 = vst [vmem:[#allocation157_spill] sm:$0xff] %v8891_v51  ;;  %v8893_v2 = vpop.xlane.xlu0 %3043  ;;  %v3849_v22 = vsel %vm3735_vm6, %v3723_v46, 0.0 }
 0x3ba   :  { %10806 = vst [vmem:[#allocation159_spill] sm:$0xff] %v8893_v2  ;;  %v8897_v29 = vsub.f32 0.0, %v3232_v23  ;;  %v10812_v2 = vld [vmem:[#allocation30_spill] sm:$0xff]  ;;  %v3850_v34 = vadd.f32 %v3849_v22, %v3848_v36 }
 0x3bb   :  { %vm10813_vm9 = vcmp.eq.s32.totalorder %v10812_v2, %v10752_v58 }
 0x3bc   :  { %10807 = vst [vmem:[#allocation156_spill] sm:$0xff] %v8897_v29  ;;  %v3724_v7 = vsel %vm10813_vm9, %v8897_v29, 0.0 }
 0x3bd   :  { %v3851_v15 = vsel %vm3735_vm6, %v3724_v7, 0.0 }
 0x3be   :  { %v3852_v0 = vadd.f32 %v3851_v15, %v3850_v34 }
 0x3bf   :  { %v3145_v23 = vpop.xlane.xlu2 %3144 }
 0x3c0   :  { %v3233_v8 = vadd.f32 %v8702_v43, %v3145_v23  ;;  %v8914_v51 = vpop.xlane.xlu1 %3049  ;;  %v10817_v23 = vld [vmem:[#allocation32_spill] sm:$0xff] }
 0x3c1   :  { %10814 = vst [vmem:[#allocation158_spill] sm:$0xff] %v8914_v51  ;;  %v3148_v41 = vpop.xlane.xlu0 %3147  ;;  %vm10818_vm15 = vcmp.eq.s32.totalorder %v10817_v23, %v10752_v58 }
 0x3c2   :  { %v3234_v37 = vadd.f32 %v8702_v43, %v3148_v41  ;;  %v8918_v50 = vsub.f32 0.0, %v3233_v8 }
 0x3c4   :  { %v8920_v2 = vsub.f32 0.0, %v3234_v37  ;;  %v3725_v28 = vsel %vm10816_vm13, %v8918_v50, 0.0 }
 0x3c5   :  { %v3853_v46 = vsel %vm3735_vm6, %v3725_v28, 0.0 }
 0x3c6   :  { %v3854_v31 = vadd.f32 %v3853_v46, %v3852_v0  ;;  %v3726_v7 = vsel %vm10818_vm15, %v8920_v2, 0.0  ;;  %v10821_v0 = vld [vmem:[#allocation34_spill] sm:$0xff] }
 0x3c7   :  { %v3855_v22 = vsel %vm3735_vm6, %v3726_v7, 0.0  ;;  %v8932_v8 = vpop.xlane.xlu2 %3052  ;;  %vm10822_vm5 = vcmp.eq.s32.totalorder %v10821_v0, %v10752_v58  ;;  %v10823_v7 = vld [vmem:[#allocation33_spill] sm:$0xff]  ;;  %v3349_v0 = vmax.f32 %v8707_v47, %v8732_v1 }
 0x3c8   :  { %10819 = vst [vmem:[#allocation160_spill] sm:$0xff] %v8932_v8  ;;  %v3856_v37 = vadd.f32 %v3855_v22, %v3854_v31  ;;  %v3154_v36 = vpop.xlane.xlu1 %3153  ;;  %vm10824_vm0 = vcmp.eq.s32.totalorder %v10823_v7, %v10752_v58  ;;  %v3348_v22 = vmax.f32 %v8711_v44, %v8724_v53 }
 0x3c9   :  { %v3151_v34 = vpop.xlane.xlu0 %3150  ;;  %v3236_v41 = vadd.f32 %v8702_v43, %v3154_v36  ;;  %v3351_v53 = vmax.f32 %v3349_v0, %v8740_v10 }
 0x3ca   :  { %v3235_v15 = vadd.f32 %v8702_v43, %v3151_v34  ;;  %v3350_v51 = vmax.f32 %v3348_v22, %v8738_v25 }
 0x3cb   :  { %v8936_v61 = vsub.f32 0.0, %v3236_v41 }
 0x3cc   :  { %v8938_v28 = vsub.f32 0.0, %v3235_v15 }
 0x3cd   :  { %10820 = vst [vmem:[#allocation119_spill] sm:$0xff] %v8936_v61  ;;  %v3728_v46 = vsel %vm10822_vm5, %v8936_v61, 0.0 }
 0x3ce   :  { %v3727_v31 = vsel %vm10824_vm0, %v8938_v28, 0.0  ;;  %v3859_v8 = vsel %vm3735_vm6, %v3728_v46, 0.0 }
 0x3cf   :  { %v3857_v36 = vsel %vm3735_vm6, %v3727_v31, 0.0  ;;  %v8951_v34 = vpop.xlane.xlu2 %3055  ;;  %v3352_v31 = vmax.f32 %v3350_v51, %v8763_v27 }
 0x3d0   :  { %10825 = vst [vmem:[#allocation129_spill] sm:$0xff] %v8951_v34  ;;  %v3858_v41 = vadd.f32 %v3857_v36, %v3856_v37  ;;  %v3157_v15 = vpop.xlane.xlu1 %3156  ;;  %v3353_v36 = vmax.f32 %v3351_v53, %v8765_v32  ;;  %v10827_v34 = vld [vmem:[#allocation35_spill] sm:$0xff] }
 0x3d1   :  { %v8953_v23 = vpop.xlane.xlu0 %3058  ;;  %v3237_v7 = vadd.f32 %v8702_v43, %v3157_v15  ;;  %v3354_v37 = vmax.f32 %v3352_v31, %v8779_v21  ;;  %vm10828_vm3 = vcmp.eq.s32.totalorder %v10827_v34, %v10752_v58 }
 0x3d2   :  { %10826 = vst [vmem:[#allocation127_spill] sm:$0xff] %v8953_v23  ;;  %v3860_v33 = vadd.f32 %v3859_v8, %v3858_v41  ;;  %v3355_v15 = vmax.f32 %v3353_v36, %v8781_v4 }
 0x3d3   :  { %v8962_v44 = vsub.f32 0.0, %v3237_v7  ;;  %v3356_v8 = vmax.f32 %v3354_v37, %v8790_v42  ;;  %v10831_v37 = vld [vmem:[#allocation36_spill] sm:$0xff] }
 0x3d4   :  { %v3357_v53 = vmax.f32 %v3355_v15, %v8800_v63  ;;  %vm10832_vm7 = vcmp.eq.s32.totalorder %v10831_v37, %v10752_v58 }
 0x3d5   :  { %v3729_v22 = vsel %vm10828_vm3, %v8962_v44, 0.0  ;;  %v3358_v23 = vmax.f32 %v3356_v8, %v8817_v3 }
 0x3d6   :  { %v3861_v46 = vsel %vm3735_vm6, %v3729_v22, 0.0  ;;  %v3359_v36 = vmax.f32 %v3357_v53, %v8819_v26 }
 0x3d7   :  { %v3862_v0 = vadd.f32 %v3861_v46, %v3860_v33  ;;  %v3160_v41 = vpop.xlane.xlu2 %3159  ;;  %v3360_v22 = vmax.f32 %v3358_v23, %v8835_v9 }
 0x3d8   :  { %v3238_v51 = vadd.f32 %v8702_v43, %v3160_v41  ;;  %v8974_v7 = vpop.xlane.xlu1 %3064  ;;  %v3361_v46 = vmax.f32 %v3359_v36, %v8837_v17 }
 0x3d9   :  { %10829 = vst [vmem:[#allocation162_spill] sm:$0xff] %v8974_v7  ;;  %v8976_v31 = vpop.xlane.xlu0 %3061  ;;  %v3362_v41 = vmax.f32 %v3360_v22, %v8842_v49  ;;  %v3178_v22 = vadd.f32 %v8702_v43, %v8642_v6 }
 0x3da   :  { %10830 = vst [vmem:[#allocation126_spill] sm:$0xff] %v8976_v31  ;;  %v8980_v34 = vsub.f32 0.0, %v3238_v51  ;;  %v3363_v8 = vmax.f32 %v3361_v46, %v8852_v16 }
 0x3db   :  { %v3364_v51 = vmax.f32 %v3362_v41, %v8871_v13  ;;  %v10834_v41 = vld [vmem:[#allocation37_spill] sm:$0xff] }
 0x3dc   :  { %v3730_v33 = vsel %vm10832_vm7, %v8980_v34, 0.0  ;;  %v3365_v26 = vmax.f32 %v3363_v8, %v8873_v38  ;;  %vm10835_vm4 = vcmp.eq.s32.totalorder %v10834_v41, %v10752_v58 }
 0x3dd   :  { %v3863_v31 = vsel %vm3735_vm6, %v3730_v33, 0.0  ;;  %v3366_v37 = vmax.f32 %v3364_v51, %v8886_v57 }
 0x3de   :  { %v3864_v15 = vadd.f32 %v3863_v31, %v3862_v0  ;;  %v3367_v31 = vmax.f32 %v3365_v26, %v8888_v12 }
 0x3df   :  { %v3163_v7 = vpop.xlane.xlu2 %3162  ;;  %v3368_v33 = vmax.f32 %v3366_v37, %v8897_v29  ;;  %v10836_v37 = vld [vmem:[#allocation38_spill] sm:$0xff] }
 0x3e0   :  { %v3239_v23 = vadd.f32 %v8702_v43, %v3163_v7  ;;  %v8994_v53 = vpop.xlane.xlu1 %3072  ;;  %v3177_v7 = vadd.f32 %v8702_v43, %v8606_v55  ;;  %vm10837_vm11 = vcmp.eq.s32.totalorder %v10836_v37, %v10752_v58 }
 0x3e1   :  { %v3166_v9 = vpop.xlane.xlu0 %3165  ;;  %v3370_v6 = vmax.f32 %v3368_v33, %v8920_v2 }
 0x3e2   :  { %v3240_v36 = vadd.f32 %v8702_v43, %v3166_v9  ;;  %v9001_v0 = vsub.f32 0.0, %v3239_v23  ;;  %v3369_v9 = vmax.f32 %v3367_v31, %v8918_v50  ;;  %v9016_v23 = vsub.f32 0.0, %v3178_v22 }
 0x3e3   :  { %v3372_v55 = vmax.f32 %v3370_v6, %v8936_v61  ;;  %v3179_v31 = vadd.f32 %v8702_v43, %v8604_v62  ;;  %v9027_v33 = vsub.f32 0.0, %v3177_v7  ;;  %v3180_v62 = vadd.f32 %v8702_v43, %v8640_v52 }
 0x3e4   :  { %v9005_v46 = vsub.f32 0.0, %v3240_v36  ;;  %v3731_v8 = vsel %vm10835_vm4, %v9001_v0, 0.0  ;;  %v3371_v29 = vmax.f32 %v3369_v9, %v8938_v28  ;;  %v10838_v9 = vld [vmem:[#allocation6_spill] sm:$0xff] }
 0x3e5   :  { %v3865_v51 = vsel %vm3735_vm6, %v3731_v8, 0.0  ;;  %v3374_v37 = vmax.f32 %v3372_v55, %v8980_v34  ;;  %vm10839_vm2 = vcmp.eq.s32.totalorder %v10751_v40, %v10838_v9  ;;  %vm10840_vm8 = vcmp.eq.s32.totalorder %v10754_v30, %v10838_v9 }
 0x3e6   :  { %10833 = vst [vmem:[#allocation161_spill] sm:$0xff] %v9005_v46  ;;  %v3866_v26 = vadd.f32 %v3865_v51, %v3864_v15  ;;  %v3732_v36 = vsel %vm10837_vm11, %v9005_v46, 0.0  ;;  %v3373_v51 = vmax.f32 %v3371_v29, %v8962_v44  ;;  %v9047_v29 = vsub.f32 0.0, %v3179_v31 }
 0x3e7   :  { %v3867_v41 = vsel %vm3735_vm6, %v3732_v36, 0.0  ;;  %v3174_v12 = vpop.xlane.xlu2 %3173  ;;  %v3670_v36 = vsel %vm10839_vm2, %v9016_v23, 0.0  ;;  %v3181_v40 = vadd.f32 %v8702_v43, %v8659_v5  ;;  %v3182_v31 = vadd.f32 %v8702_v43, %v8676_v19 }
 0x3e8   :  { %v9029_v22 = vadd.f32 %v3867_v41, %v3866_v26  ;;  %v3242_v15 = vadd.f32 %v8702_v43, %v3174_v12  ;;  %v3169_v8 = vpop.xlane.xlu1 %3168  ;;  %v3375_v7 = vmax.f32 %v3373_v51, %v9001_v0  ;;  %v3376_v12 = vmax.f32 %v3374_v37, %v9005_v46 }
 0x3e9   :  { %v3241_v6 = vadd.f32 %v8702_v43, %v3169_v8  ;;  %v3669_v26 = vsel %vm10840_vm8, %v9027_v33, 0.0  ;;  %v3737_v52 = vsel %vm3735_vm6, %v3670_v36, 0.0  ;;  %v9062_v51 = vsub.f32 0.0, %v3180_v62 }
 0x3ea   :  { %v9039_v61 = vsub.f32 0.0, %v3242_v15  ;;  %v3736_v8 = vsel %vm3735_vm6, %v3669_v26, 0.0  ;;  %vm10841_vm1 = vcmp.eq.s32.totalorder %v10758_v48, %v10838_v9  ;;  %v9068_v46 = vsub.f32 0.0, %v3181_v40 }
 0x3eb   :  { %v9045_v41 = vsub.f32 0.0, %v3241_v6  ;;  %v3671_v5 = vsel %vm10841_vm1, %v9047_v29, 0.0  ;;  %v3738_v6 = vadd.f32 %v3737_v52, %v3736_v8  ;;  %vm10842_vm12 = vcmp.eq.s32.totalorder %v10760_v20, %v10838_v9 }
 0x3ec   :  { %v3378_v55 = vsel %vm1719_vm10, %v9039_v61, -inf  ;;  %v3672_v19 = vsel %vm10842_vm12, %v9062_v51, 0.0  ;;  %vm10843_vm14 = vcmp.eq.s32.totalorder %v10762_v39, %v10838_v9  ;;  %v3183_v40 = vadd.f32 %v8702_v43, %v8674_v59 }
 0x3ed   :  { %v3379_v15 = vmax.f32 %v3376_v12, %v3378_v55  ;;  %v3377_v37 = vmax.f32 %v3375_v7, %v9045_v41  ;;  %v9070_v12 = vsub.f32 0.0, %v3182_v31  ;;  %v3739_v7 = vsel %vm3735_vm6, %v3671_v5, 0.0 }
 0x3ee   :  { %v3740_v26 = vadd.f32 %v3739_v7, %v3738_v6  ;;  %v3673_v48 = vsel %vm10843_vm14, %v9068_v46, 0.0  ;;  %v3184_v55 = vadd.f32 %v8702_v43, %v8683_v54  ;;  %vm10844_vm9 = vcmp.eq.s32.totalorder %v10765_v11, %v10838_v9 }
 0x3ef   :  { %v3380_v30 = vmax.f32 %v3379_v15, %v3377_v37  ;;  %v3674_v20 = vsel %vm10844_vm9, %v9070_v12, 0.0  ;;  %v3185_v15 = vadd.f32 %v8702_v43, %v8688_v14  ;;  %v3741_v37 = vsel %vm3735_vm6, %v3672_v19, 0.0 }
 0x3f0   :  { %v3743_v39 = vsel %vm3735_vm6, %v3673_v48, 0.0  ;;  %v3742_v8 = vadd.f32 %v3741_v37, %v3740_v26  ;;  %v9095_v59 = vsub.f32 0.0, %v3184_v55  ;;  %v3186_v54 = vadd.f32 %v8702_v43, %v8691_v56 }
 0x3f1   :  { %v3381_v36 = vrot.slane %v3380_v30, 4  ;;  %v3745_v5 = vsel %vm3735_vm6, %v3674_v20, 0.0  ;;  %vm10845_vm13 = vcmp.eq.s32.totalorder %v10768_v35, %v10838_v9  ;;  %vm10846_vm15 = vcmp.eq.s32.totalorder %v10770_v18, %v10838_v9  ;;  %v10848_v20 = vld [vmem:[#allocation16_spill] sm:$0xff] }
 0x3f2   :  { %v3744_v6 = vadd.f32 %v3743_v39, %v3742_v8  ;;  %v3676_v19 = vsel %vm10846_vm15, %v9095_v59, 0.0  ;;  %v3187_v56 = vadd.f32 %v8702_v43, %v8693_v60  ;;  %v3309_v48 = vmax.f32 %v9027_v33, %v9047_v29 }
 0x3f3   :  { %v3382_v62 = vmax.f32 %v3380_v30, %v3381_v36  ;;  %v9093_v30 = vsub.f32 0.0, %v3183_v40  ;;  %v9100_v36 = vsub.f32 0.0, %v3185_v15  ;;  %vm10847_vm5 = vcmp.eq.s32.totalorder %v10774_v45, %v10838_v9  ;;  %v10851_v45 = vld [vmem:[#allocation104_spill] sm:$0xff] }
 0x3f4   :  { %v3746_v7 = vadd.f32 %v3745_v5, %v3744_v6  ;;  %v3188_v40 = vadd.f32 %v8702_v43, %v8697_v24  ;;  %v3749_v55 = vsel %vm3735_vm6, %v3676_v19, 0.0  ;;  %vm10849_vm0 = vcmp.eq.s32.totalorder %v10848_v20, %v10838_v9  ;;  %v10853_v19 = vld [vmem:[#allocation115_spill] sm:$0xff] }
 0x3f5   :  { %v3383_v52 = vrot.slane %v3382_v62, 2  ;;  %v3675_v14 = vsel %vm10845_vm13, %v9093_v30, 0.0  ;;  %v3677_v35 = vsel %vm10847_vm5, %v9100_v36, 0.0  ;;  %v9132_v39 = vsub.f32 0.0, %v3187_v56  ;;  %v10855_v20 = vld [vmem:[#allocation111_spill] sm:$0xff] }
 0x3f6   :  { %v3747_v18 = vsel %vm3735_vm6, %v3675_v14, 0.0  ;;  %v3751_v37 = vsel %vm3735_vm6, %v3677_v35, 0.0  ;;  %v3310_v8 = vmax.f32 %v9016_v23, %v9062_v51  ;;  %v9140_v5 = vsub.f32 0.0, %v3188_v40  ;;  %v10852_v14 = vld [vmem:[#allocation92_spill] sm:$0xff] }
 0x3f7   :  { %v3384_v31 = vmax.f32 %v3382_v62, %v3383_v52  ;;  %v9110_v62 = vsub.f32 0.0, %v3186_v54  ;;  %v3311_v52 = vmax.f32 %v3309_v48, %v9068_v46  ;;  %v3748_v60 = vadd.f32 %v3747_v18, %v3746_v7  ;;  %10850 = vst [vmem:[#allocation134_spill] sm:$0xff] %v9132_v39 }
 0x3f8   :  { %v3189_v7 = vadd.f32 %v8702_v43, %v10852_v14  ;;  %v3312_v48 = vmax.f32 %v3310_v8, %v9070_v12  ;;  %v3191_v40 = vadd.f32 %v8702_v43, %v10855_v20  ;;  %vm3799_vm14 = vcmask 0  }
 0x3f9   :  { %v3385_v11 = vrot.slane %v3384_v31, 1  ;;  %v3678_v15 = vsel %vm10849_vm0, %v9110_v62, 0.0  ;;  %v3750_v54 = vadd.f32 %v3749_v55, %v3748_v60  ;;  %v10856_v55 = vld [vmem:[#allocation18_spill] sm:$0xff] }
 0x3fa   :  { %v3753_v6 = vsel %vm3735_vm6, %v3678_v15, 0.0  ;;  %vm10857_vm3 = vcmp.eq.s32.totalorder %v10856_v55, %v10838_v9  ;;  %v3314_v14 = vmax.f32 %v3312_v48, %v9095_v59 }
 0x3fb   :  { %v9114_v26 = vmax.f32 %v3384_v31, %v3385_v11  ;;  %v3313_v11 = vmax.f32 %v3311_v52, %v9093_v30  ;;  %v3752_v35 = vadd.f32 %v3751_v37, %v3750_v54  ;;  %v3679_v52 = vsel %vm10857_vm3, %v9132_v39, 0.0  ;;  %v10858_v54 = vld [vmem:[#allocation17_spill] sm:$0xff] }
 0x3fc   :  { %vm10859_vm7 = vcmp.eq.s32.totalorder %v10858_v54, %v10838_v9 }
 0x3fd   :  { %v3420_v31 = vsub.f32 %v10851_v45, %v9114_v26  ;;  %v3421_v24 = vsub.f32 %v8707_v47, %v9114_v26  ;;  %v3422_v56 = vsub.f32 %v10853_v19, %v9114_v26  ;;  %v10854_v47 = vld [vmem:[#allocation98_spill] sm:$0xff]  ;;  %v3423_v60 = vsub.f32 %v8732_v1, %v9114_v26 }
 0x3fe   :  { %v3190_v18 = vadd.f32 %v8702_v43, %v10854_v47  ;;  %v3315_v37 = vmax.f32 %v3313_v11, %v9100_v36  ;;  %v3754_v8 = vadd.f32 %v3753_v6, %v3752_v35  ;;  %v3680_v19 = vsel %vm10859_vm7, %v9140_v5, 0.0  ;;  %v10861_v6 = vld [vmem:[#allocation122_spill] sm:$0xff] }
 0x3ff   :  { %v3519_v15 = vmul.f32 1.442695, %v3420_v31  ;;  %v3521_v45 = vmul.f32 1.442695, %v3421_v24  ;;  %v9165_v47 = vsub.f32 0.0, %v3189_v7  ;;  %v3424_v20 = vsub.f32 %v8738_v25, %v9114_v26 }
 0x400   :  { %v3523_v55 = vmul.f32 1.442695, %v3422_v56  ;;  %v3755_v1 = vsel %vm3735_vm6, %v3679_v52, 0.0  ;;  %v9170_v31 = vsub.f32 0.0, %v3190_v18  ;;  %v9172_v24 = vsub.f32 0.0, %v3191_v40  ;;  %v10862_v18 = vld [vmem:[#allocation20_spill] sm:$0xff] }
 0x401   :  { %4072 = vpow2.f32 %v3519_v15  ;;  %v3757_v11 = vsel %vm3735_vm6, %v3680_v19, 0.0  ;;  %v3192_v48 = vadd.f32 %v8702_v43, %v10861_v6  ;;  %v3425_v7 = vsub.f32 %v8740_v10, %v9114_v26  ;;  %v10864_v19 = vld [vmem:[#allocation21_spill] sm:$0xff] }
 0x402   :  { %10860 = vst [vmem:[#allocation131_spill] sm:$0xff] %v9172_v24  ;;  %4074 = vpow2.f32 %v3521_v45  ;;  %v3525_v35 = vmul.f32 1.442695, %v3423_v60  ;;  %v3316_v25 = vmax.f32 %v3314_v14, %v9110_v62  ;;  %v3317_v56 = vmax.f32 %v3315_v37, %v9132_v39  ;;  %v10866_v60 = vld [vmem:[#allocation22_spill] sm:$0xff]  ;;  %v10868_v37 = vld [vmem:[#allocation67_spill] sm:$0xff] }
 0x403   :  { %v3756_v15 = vadd.f32 %v3755_v1, %v3754_v8  ;;  %vm10863_vm4 = vcmp.eq.s32.totalorder %v10862_v18, %v10838_v9  ;;  %v3426_v52 = vsub.f32 %v8763_v27, %v9114_v26  ;;  %4076 = vpow2.f32 %v3523_v55 }
 0x404   :  { %v3681_v40 = vsel %vm10863_vm4, %v9165_v47, 0.0  ;;  %v3527_v45 = vmul.f32 1.442695, %v3424_v20  ;;  %vm10865_vm11 = vcmp.eq.s32.totalorder %v10864_v19, %v10838_v9  ;;  %vm10867_vm2 = vcmp.eq.s32.totalorder %v10866_v60, %v10838_v9 }
 0x405   :  { %v3758_v54 = vadd.f32 %v3757_v11, %v3756_v15  ;;  %v3682_v10 = vsel %vm10865_vm11, %v9170_v31, 0.0  ;;  %v3683_v14 = vsel %vm10867_vm2, %v9172_v24, 0.0  ;;  %v3193_v8 = vadd.f32 %v8702_v43, %v10868_v37 }
 0x406   :  { %v9197_v6 = vsub.f32 0.0, %v3192_v48  ;;  %v3427_v27 = vsub.f32 %v8765_v32, %v9114_v26  ;;  %4078 = vpow2.f32 %v3525_v35  ;;  %v3529_v20 = vmul.f32 1.442695, %v3425_v7 }
 0x407   :  { %v4073_v1 = vpop.eup %4072  ;;  %v3319_v11 = vmax.f32 %v3317_v56, %v9165_v47  ;;  %v3759_v15 = vsel %vm3735_vm6, %v3681_v40, 0.0  ;;  %v3318_v18 = vmax.f32 %v3316_v25, %v9140_v5  ;;  %v3761_v19 = vsel %vm3735_vm6, %v3682_v10, 0.0  ;;  %v10871_v56 = vld [vmem:[#allocation23_spill] sm:$0xff] }
 0x408   :  { %10869 = vst [vmem:[#allocation140_spill] sm:$0xff] %v9197_v6  ;;  %v4075_v55 = vpop.eup %4074  ;;  %v3428_v60 = vsub.f32 %v8779_v21, %v9114_v26  ;;  %4080 = vpow2.f32 %v3527_v45  ;;  %v3531_v48 = vmul.f32 1.442695, %v3426_v52  ;;  %v3760_v37 = vadd.f32 %v3759_v15, %v3758_v54 }
 0x409   :  { %v3763_v39 = vsel %vm3735_vm6, %v3683_v14, 0.0  ;;  %v9208_v32 = vsub.f32 0.0, %v3193_v8  ;;  %v3624_v7 = vadd.f32 %v4075_v55, %v4073_v1  ;;  %v4077_v35 = vpop.eup %4076  ;;  %vm10872_vm8 = vcmp.eq.s32.totalorder %v10871_v56, %v10838_v9  ;;  %v10873_v8 = vld [vmem:[#allocation73_spill] sm:$0xff] }
 0x40a   :  { %v3684_v40 = vsel %vm10872_vm8, %v9197_v6, 0.0  ;;  %v3429_v25 = vsub.f32 %v8781_v4, %v9114_v26  ;;  %4082 = vpow2.f32 %v3529_v20  ;;  %v3533_v10 = vmul.f32 1.442695, %v3427_v27 }
 0x40b   :  { %10870 = vst [vmem:[#allocation82_spill] sm:$0xff] %v9208_v32  ;;  %v3320_v21 = vmax.f32 %v3318_v18, %v9170_v31  ;;  %v3762_v52 = vadd.f32 %v3761_v19, %v3760_v37  ;;  %v3321_v45 = vmax.f32 %v3319_v11, %v9172_v24  ;;  %v3625_v54 = vadd.f32 %v4077_v35, %v3624_v7  ;;  %v10874_v7 = vld [vmem:[#allocation24_spill] sm:$0xff] }
 0x40c   :  { %v4079_v14 = vpop.eup %4078  ;;  %v3194_v1 = vadd.f32 %v8702_v43, %v10873_v8  ;;  %v3430_v55 = vsub.f32 %v8790_v42, %v9114_v26  ;;  %4084 = vpow2.f32 %v3531_v48  ;;  %v3535_v15 = vmul.f32 1.442695, %v3428_v60  ;;  %v10876_v60 = vld [vmem:[#allocation103_spill] sm:$0xff]  ;;  %v10877_v48 = vld [vmem:[#allocation76_spill] sm:$0xff] }
 0x40d   :  { %v3764_v56 = vadd.f32 %v3763_v39, %v3762_v52  ;;  %v3322_v4 = vmax.f32 %v3320_v21, %v9197_v6  ;;  %v3765_v27 = vsel %vm3735_vm6, %v3684_v40, 0.0  ;;  %v3626_v20 = vadd.f32 %v4079_v14, %v3625_v54  ;;  %v10880_v14 = vld [vmem:[#allocation94_spill] sm:$0xff]  ;;  %v10885_v6 = vld [vmem:[#allocation159_spill] sm:$0xff] }
 0x40e   :  { %v4081_v18 = vpop.eup %4080  ;;  %v3323_v19 = vmax.f32 %v3321_v45, %v9208_v32  ;;  %v3431_v11 = vsub.f32 %v8800_v63, %v9114_v26  ;;  %4086 = vpow2.f32 %v3533_v10  ;;  %v3537_v37 = vmul.f32 1.442695, %v3429_v25  ;;  %v10879_v45 = vld [vmem:[#allocation87_spill] sm:$0xff] }
 0x40f   :  { %vm10875_vm1 = vcmp.eq.s32.totalorder %v10874_v7, %v10838_v9  ;;  %v3195_v39 = vadd.f32 %v8702_v43, %v10876_v60  ;;  %v3196_v35 = vadd.f32 %v8702_v43, %v10877_v48  ;;  %v3627_v40 = vadd.f32 %v4081_v18, %v3626_v20 }
 0x410   :  { %v3685_v42 = vsel %vm10875_vm1, %v9208_v32, 0.0  ;;  %v4083_v21 = vpop.eup %4082  ;;  %v9235_v52 = vsub.f32 0.0, %v3194_v1  ;;  %v3432_v63 = vsub.f32 %v8817_v3, %v9114_v26  ;;  %4088 = vpow2.f32 %v3535_v15  ;;  %v10881_v1 = vld [vmem:[#allocation81_spill] sm:$0xff] }
 0x411   :  { %v3539_v25 = vmul.f32 1.442695, %v3430_v55  ;;  %v9239_v10 = vadd.f32 %v3765_v27, %v3764_v56  ;;  %v3197_v54 = vadd.f32 %v8702_v43, %v10879_v45  ;;  %v3198_v8 = vadd.f32 %v8702_v43, %v10880_v14  ;;  %v10882_v56 = vld [vmem:[#allocation105_spill] sm:$0xff] }
 0x412   :  { %10878 = vst [vmem:[#allocation138_spill] sm:$0xff] %v9235_v52  ;;  %v3628_v7 = vadd.f32 %v4083_v21, %v3627_v40  ;;  %v4085_v60 = vpop.eup %4084  ;;  %v9246_v20 = vsel %vm3735_vm6, %v3685_v42, 0.0  ;;  %v3433_v18 = vsub.f32 %v10881_v1, %v9114_v26  ;;  %4090 = vpow2.f32 %v3537_v37  ;;  %v10883_v21 = vld [vmem:[#allocation109_spill] sm:$0xff] }
 0x413   :  { %v3541_v3 = vmul.f32 1.442695, %v3431_v11  ;;  %v9250_v15 = vsub.f32 0.0, %v3195_v39  ;;  %v9252_v55 = vsub.f32 0.0, %v3196_v35  ;;  %v3199_v27 = vadd.f32 %v8702_v43, %v10882_v56  ;;  %v10884_v11 = vld [vmem:[#allocation157_spill] sm:$0xff] }
 0x414   :  { %v3629_v48 = vadd.f32 %v4085_v60, %v3628_v7  ;;  %v4087_v45 = vpop.eup %4086  ;;  %v3324_v40 = vmax.f32 %v3322_v4, %v9235_v52  ;;  %v3434_v42 = vsub.f32 %v10883_v21, %v9114_v26  ;;  %4092 = vpow2.f32 %v3539_v25  ;;  %v10886_v21 = vld [vmem:[#allocation160_spill] sm:$0xff] }
 0x415   :  { %v3543_v14 = vmul.f32 1.442695, %v3432_v63  ;;  %v9259_v32 = vsub.f32 0.0, %v3197_v54  ;;  %v9261_v37 = vsub.f32 0.0, %v3198_v8  ;;  %v3201_v39 = vadd.f32 %v8702_v43, %v10884_v11 }
 0x416   :  { %v3630_v35 = vadd.f32 %v4087_v45, %v3629_v48  ;;  %v4089_v1 = vpop.eup %4088  ;;  %v3200_v7 = vadd.f32 %v8702_v43, %v10885_v6  ;;  %v3435_v4 = vsub.f32 %v8837_v17, %v9114_v26  ;;  %4094 = vpow2.f32 %v3541_v3 }
 0x417   :  { %v3545_v60 = vmul.f32 1.442695, %v3433_v18  ;;  %v3325_v25 = vmax.f32 %v3323_v19, %v9250_v15  ;;  %v3326_v63 = vmax.f32 %v3324_v40, %v9252_v55  ;;  %v9271_v54 = vsub.f32 0.0, %v3199_v27 }
 0x418   :  { %v3631_v8 = vadd.f32 %v4089_v1, %v3630_v35  ;;  %v4091_v56 = vpop.eup %4090  ;;  %v3203_v48 = vadd.f32 %v8702_v43, %v10886_v21  ;;  %v3436_v45 = vsub.f32 %v8842_v49, %v9114_v26  ;;  %4096 = vpow2.f32 %v3543_v14  ;;  %v10887_v49 = vld [vmem:[#allocation158_spill] sm:$0xff]  ;;  %v10888_v14 = vld [vmem:[#allocation127_spill] sm:$0xff] }
 0x419   :  { %v3547_v6 = vmul.f32 1.442695, %v3434_v42  ;;  %v3327_v17 = vmax.f32 %v3325_v25, %v9259_v32  ;;  %v3328_v18 = vmax.f32 %v3326_v63, %v9261_v37  ;;  %v9279_v3 = vsub.f32 0.0, %v3201_v39 }
 0x41a   :  { %v3632_v19 = vadd.f32 %v4091_v56, %v3631_v8  ;;  %v4093_v40 = vpop.eup %4092  ;;  %v9281_v27 = vsub.f32 0.0, %v3200_v7  ;;  %v3437_v11 = vsub.f32 %v8852_v16, %v9114_v26  ;;  %4098 = vpow2.f32 %v3545_v60  ;;  %v10890_v56 = vld [vmem:[#allocation162_spill] sm:$0xff] }
 0x41b   :  { %v3549_v35 = vmul.f32 1.442695, %v3435_v4  ;;  %v3329_v1 = vmax.f32 %v3327_v17, %v9271_v54  ;;  %v3202_v42 = vadd.f32 %v8702_v43, %v10887_v49  ;;  %v3205_v25 = vadd.f32 %v8702_v43, %v10888_v14  ;;  %v10889_v4 = vld [vmem:[#allocation129_spill] sm:$0xff] }
 0x41c   :  { %v3633_v63 = vadd.f32 %v4093_v40, %v3632_v19  ;;  %v4095_v39 = vpop.eup %4094  ;;  %v9290_v21 = vsub.f32 0.0, %v3203_v48  ;;  %v3438_v7 = vsub.f32 %v8871_v13, %v9114_v26  ;;  %4100 = vpow2.f32 %v3547_v6 }
 0x41d   :  { %v3551_v8 = vmul.f32 1.442695, %v3436_v45  ;;  %v3331_v16 = vmax.f32 %v3329_v1, %v9279_v3  ;;  %v3204_v60 = vadd.f32 %v8702_v43, %v10889_v4  ;;  %v3207_v17 = vadd.f32 %v8702_v43, %v10890_v56 }
 0x41e   :  { %v3634_v49 = vadd.f32 %v4095_v39, %v3633_v63  ;;  %v4097_v24 = vpop.eup %4096  ;;  %v3330_v19 = vmax.f32 %v3328_v18, %v9281_v27  ;;  %v3439_v48 = vsub.f32 %v8873_v38, %v9114_v26  ;;  %4102 = vpow2.f32 %v3549_v35 }
 0x41f   :  { %v3553_v40 = vmul.f32 1.442695, %v3437_v11  ;;  %v9302_v13 = vsub.f32 0.0, %v3202_v42  ;;  %v9304_v45 = vsub.f32 0.0, %v3205_v25  ;;  %v3209_v6 = vadd.f32 %v8702_v43, %v8994_v53  ;;  %v10891_v11 = vld [vmem:[#allocation126_spill] sm:$0xff]  ;;  %v10892_v53 = vld [vmem:[#allocation25_spill] sm:$0xff] }
 0x420   :  { %v3635_v1 = vadd.f32 %v4097_v24, %v3634_v49  ;;  %v4099_v14 = vpop.eup %4098  ;;  %v3333_v4 = vmax.f32 %v3331_v16, %v9290_v21  ;;  %v3440_v63 = vsub.f32 %v8886_v57, %v9114_v26  ;;  %4104 = vpow2.f32 %v3551_v8  ;;  %v10894_v16 = vld [vmem:[#allocation99_spill] sm:$0xff] }
 0x421   :  { %v3555_v18 = vmul.f32 1.442695, %v3438_v7  ;;  %v9311_v39 = vsub.f32 0.0, %v3204_v60  ;;  %v9313_v38 = vsub.f32 0.0, %v3207_v17  ;;  %v3206_v35 = vadd.f32 %v8702_v43, %v10891_v11 }
 0x422   :  { %v3636_v42 = vadd.f32 %v4099_v14, %v3635_v1  ;;  %v4101_v25 = vpop.eup %4100  ;;  %vm10893_vm12 = vcmp.eq.s32.totalorder %v10892_v53, %v10838_v9  ;;  %v3441_v56 = vsub.f32 %v10894_v16, %v9114_v26  ;;  %4106 = vpow2.f32 %v3553_v40  ;;  %v10896_v1 = vld [vmem:[#allocation156_spill] sm:$0xff] }
 0x423   :  { %v3686_v24 = vsel %vm10893_vm12, %v9235_v52, 0.0  ;;  %v3557_v57 = vmul.f32 1.442695, %v3439_v48  ;;  %v3332_v7 = vmax.f32 %v3330_v19, %v9302_v13  ;;  %v3335_v8 = vmax.f32 %v3333_v4, %v9304_v45  ;;  %v10897_v4 = vld [vmem:[#allocation40_spill] sm:$0xff] }
 0x424   :  { %v9325_v60 = vsub.f32 0.0, %v3209_v6  ;;  %v3637_v17 = vadd.f32 %v4101_v25, %v3636_v42  ;;  %v4103_v49 = vpop.eup %4102  ;;  %v3442_v14 = vsub.f32 %v10896_v1, %v9114_v26  ;;  %4108 = vpow2.f32 %v3555_v18 }
 0x425   :  { %v3559_v11 = vmul.f32 1.442695, %v3440_v63  ;;  %v3334_v53 = vmax.f32 %v3332_v7, %v9311_v39  ;;  %v3337_v16 = vmax.f32 %v3335_v8, %v9313_v38  ;;  %v9331_v40 = vsub.f32 0.0, %v3206_v35  ;;  %v10899_v7 = vld [vmem:[#allocation39_spill] sm:$0xff] }
 0x426   :  { %10895 = vst [vmem:[#allocation51_spill] sm:$0xff] %v9325_v60  ;;  %v3638_v48 = vadd.f32 %v4103_v49, %v3637_v17  ;;  %v4105_v19 = vpop.eup %4104  ;;  %vm10898_vm9 = vcmp.eq.s32.totalorder %v10897_v4, %v10752_v58  ;;  %v3443_v42 = vsub.f32 %v8918_v50, %v9114_v26  ;;  %4110 = vpow2.f32 %v3557_v57  ;;  %v3068_v17 = vpop.xlane.xlu0 %3067 }
 0x427   :  { %v3734_v6 = vsel %vm10898_vm9, %v9039_v61, 0.0  ;;  %v3561_v25 = vmul.f32 1.442695, %v3441_v56  ;;  %v3339_v63 = vsel %vm1719_vm10, %v9325_v60, -inf  ;;  %v3444_v18 = vsub.f32 %v8920_v2, %v9114_v26 }
 0x428   :  { %v3639_v35 = vadd.f32 %v4105_v19, %v3638_v48  ;;  %vm10900_vm13 = vcmp.eq.s32.totalorder %v10899_v7, %v10752_v58  ;;  %v4107_v49 = vpop.eup %4106  ;;  %4112 = vpow2.f32 %v3559_v11  ;;  %v3563_v1 = vmul.f32 1.442695, %v3442_v14 }
 0x429   :  { %v3733_v8 = vsel %vm10900_vm13, %v9045_v41, 0.0  ;;  %v3208_v56 = vadd.f32 %v8702_v43, %v3068_v17  ;;  %v3336_v57 = vmax.f32 %v3334_v53, %v9331_v40  ;;  %v3871_v4 = vsel %vm3799_vm14, %v3734_v6, 0.0  ;;  %v10901_v6 = vld [vmem:[#allocation119_spill] sm:$0xff] }
 0x42a   :  { %v3869_v50 = vsel %vm3735_vm6, %v3733_v8, 0.0  ;;  %v3640_v60 = vadd.f32 %v4107_v49, %v3639_v35  ;;  %v4109_v48 = vpop.eup %4108  ;;  %v3445_v58 = vsub.f32 %v8938_v28, %v9114_v26  ;;  %4114 = vpow2.f32 %v3561_v25 }
 0x42b   :  { %v3870_v2 = vadd.f32 %v3869_v50, %v9029_v22  ;;  %v3565_v19 = vmul.f32 1.442695, %v3443_v42  ;;  %v9354_v52 = vsub.f32 0.0, %v3208_v56  ;;  %v3769_v14 = vsel %vm3735_vm6, %v3686_v24, 0.0  ;;  %v10902_v42 = vld [vmem:[#allocation26_spill] sm:$0xff] }
 0x42c   :  { %v3340_v11 = vmax.f32 %v3337_v16, %v3339_v63  ;;  %v3641_v8 = vadd.f32 %v4109_v48, %v3640_v60  ;;  %v4111_v53 = vpop.eup %4110  ;;  %v3446_v35 = vsub.f32 %v10901_v6, %v9114_v26  ;;  %4116 = vpow2.f32 %v3563_v1 }
 0x42d   :  { %v9357_v43 = vadd.f32 %v3871_v4, %v3870_v2  ;;  %v3567_v22 = vmul.f32 1.442695, %v3444_v18  ;;  %v3338_v17 = vmax.f32 %v3336_v57, %v9354_v52  ;;  %v3768_v28 = vadd.f32 %v9246_v20, %v9239_v10  ;;  %v10904_v57 = vld [vmem:[#allocation27_spill] sm:$0xff] }
 0x42e   :  { %vm10903_vm15 = vcmp.eq.s32.totalorder %v10902_v42, %v10838_v9  ;;  %v3642_v16 = vadd.f32 %v4111_v53, %v3641_v8  ;;  %v4113_v60 = vpop.eup %4112  ;;  %v3447_v4 = vsub.f32 %v8962_v44, %v9114_v26  ;;  %4118 = vpow2.f32 %v3565_v19 }
 0x42f   :  { %v3687_v24 = vsel %vm10903_vm15, %v9250_v15, 0.0  ;;  %v3569_v25 = vmul.f32 1.442695, %v3445_v58  ;;  %v3341_v63 = vmax.f32 %v3340_v11, %v3338_v17  ;;  %v3770_v49 = vadd.f32 %v3769_v14, %v3768_v28 }
 0x430   :  { %v3643_v18 = vadd.f32 %v4113_v60, %v3642_v16  ;;  %v4115_v1 = vpop.eup %4114  ;;  %v3448_v50 = vsub.f32 %v8980_v34, %v9114_v26  ;;  %4120 = vpow2.f32 %v3567_v22  ;;  %v3571_v10 = vmul.f32 1.442695, %v3446_v35  ;;  %v10906_v34 = vld [vmem:[#allocation28_spill] sm:$0xff]  ;;  %v10908_v35 = vld [vmem:[#allocation161_spill] sm:$0xff] }
 0x431   :  { %v3342_v20 = vrot.slane %v3341_v63, 4  ;;  %v3771_v56 = vsel %vm3735_vm6, %v3687_v24, 0.0  ;;  %vm10905_vm5 = vcmp.eq.s32.totalorder %v10904_v57, %v10838_v9  ;;  %v3449_v58 = vsub.f32 %v9001_v0, %v9114_v26  ;;  %v10909_v0 = vld [vmem:[#allocation29_spill] sm:$0xff] }
 0x432   :  { %v3688_v2 = vsel %vm10905_vm5, %v9252_v55, 0.0  ;;  %v3644_v44 = vadd.f32 %v4115_v1, %v3643_v18  ;;  %v4117_v48 = vpop.eup %4116  ;;  %4122 = vpow2.f32 %v3569_v25  ;;  %v3573_v19 = vmul.f32 1.442695, %v3447_v4 }
 0x433   :  { %v3343_v14 = vmax.f32 %v3341_v63, %v3342_v20  ;;  %v3772_v11 = vadd.f32 %v3771_v56, %v3770_v49  ;;  %vm10907_vm0 = vcmp.eq.s32.totalorder %v10906_v34, %v10838_v9  ;;  %v3450_v22 = vsub.f32 %v10908_v35, %v9114_v26 }
 0x434   :  { %v3689_v8 = vsel %vm10907_vm0, %v9259_v32, 0.0  ;;  %v3645_v53 = vadd.f32 %v4117_v48, %v3644_v44  ;;  %v4119_v6 = vpop.eup %4118  ;;  %4124 = vpow2.f32 %v3571_v10  ;;  %v3575_v17 = vmul.f32 1.442695, %v3448_v50 }
 0x435   :  { %v3344_v28 = vrot.slane %v3343_v14, 2  ;;  %v3773_v42 = vsel %vm3735_vm6, %v3688_v2, 0.0  ;;  %vm10910_vm3 = vcmp.eq.s32.totalorder %v10909_v0, %v10838_v9  ;;  %v3452_v16 = vsub.f32 %v9039_v61, %v9114_v26 }
 0x436   :  { %v3690_v24 = vsel %vm10910_vm3, %v9261_v37, 0.0  ;;  %v3646_v60 = vadd.f32 %v4119_v6, %v3645_v53  ;;  %v4121_v4 = vpop.eup %4120  ;;  %v3451_v25 = vsub.f32 %v9045_v41, %v9114_v26  ;;  %4126 = vpow2.f32 %v3573_v19 }
 0x437   :  { %v3577_v63 = vmul.f32 1.442695, %v3449_v58  ;;  %v3345_v49 = vmax.f32 %v3343_v14, %v3344_v28  ;;  %v3775_v18 = vsel %vm3735_vm6, %v3689_v8, 0.0  ;;  %v3774_v10 = vadd.f32 %v3773_v42, %v3772_v11  ;;  %v10911_v14 = vld [vmem:[#allocation30_spill] sm:$0xff]  ;;  %v10913_v11 = vld [vmem:[#allocation31_spill] sm:$0xff] }
 0x438   :  { %v3647_v1 = vadd.f32 %v4121_v4, %v3646_v60  ;;  %v4123_v50 = vpop.eup %4122  ;;  %4128 = vpow2.f32 %v3575_v17  ;;  %v3579_v20 = vmul.f32 1.442695, %v3450_v22  ;;  %v3777_v56 = vsel %vm3735_vm6, %v3690_v24, 0.0  ;;  %v10917_v4 = vld [vmem:[#allocation33_spill] sm:$0xff] }
 0x439   :  { %v3583_v57 = vmul.f32 1.442695, %v3452_v16  ;;  %v3346_v61 = vrot.slane %v3345_v49, 1  ;;  %v3776_v48 = vadd.f32 %v3775_v18, %v3774_v10  ;;  %4130 = vpow2.f32 %v3577_v63  ;;  %v10915_v16 = vld [vmem:[#allocation32_spill] sm:$0xff] }
 0x43a   :  { %v3648_v2 = vadd.f32 %v4123_v50, %v3647_v1  ;;  %v4125_v44 = vpop.eup %4124  ;;  %v3581_v34 = vmul.f32 1.442695, %v3451_v25  ;;  %vm10912_vm7 = vcmp.eq.s32.totalorder %v10911_v14, %v10838_v9  ;;  %vm10914_vm4 = vcmp.eq.s32.totalorder %v10913_v11, %v10838_v9  ;;  %v10921_v14 = vld [vmem:[#allocation35_spill] sm:$0xff] }
 0x43b   :  { %v3778_v58 = vadd.f32 %v3777_v56, %v3776_v48  ;;  %v3691_v8 = vsel %vm10912_vm7, %v9271_v54, 0.0  ;;  %v3692_v53 = vsel %vm10914_vm4, %v9281_v27, 0.0  ;;  %4132 = vpow2.f32 %v3579_v20  ;;  %v10919_v20 = vld [vmem:[#allocation34_spill] sm:$0xff] }
 0x43c   :  { %v3649_v41 = vadd.f32 %v4125_v44, %v3648_v2  ;;  %v4127_v19 = vpop.eup %4126  ;;  %4134 = vpow2.f32 %v3583_v57  ;;  %v9404_v35 = vmax.f32 %v3345_v49, %v3346_v61  ;;  %v3779_v17 = vsel %vm3735_vm6, %v3691_v8, 0.0 }
 0x43d   :  { %4136 = vpow2.f32 %v3581_v34  ;;  %v3781_v28 = vsel %vm3735_vm6, %v3692_v53, 0.0  ;;  %v3780_v24 = vadd.f32 %v3779_v17, %v3778_v58  ;;  %vm10916_vm11 = vcmp.eq.s32.totalorder %v10915_v16, %v10838_v9 }
 0x43e   :  { %v3650_v6 = vadd.f32 %v4127_v19, %v3649_v41  ;;  %v4129_v22 = vpop.eup %4128  ;;  %v3693_v60 = vsel %vm10916_vm11, %v9279_v3, 0.0  ;;  %vm10918_vm2 = vcmp.eq.s32.totalorder %v10917_v4, %v10838_v9  ;;  %v3387_v49 = vsub.f32 %v9027_v33, %v9404_v35  ;;  %v10925_v4 = vld [vmem:[#allocation37_spill] sm:$0xff] }
 0x43f   :  { %v4131_v0 = vpop.eup %4130  ;;  %v3694_v25 = vsel %vm10918_vm2, %v9302_v13, 0.0  ;;  %v3388_v18 = vsub.f32 %v9016_v23, %v9404_v35  ;;  %v3782_v50 = vadd.f32 %v3781_v28, %v3780_v24  ;;  %vm10920_vm8 = vcmp.eq.s32.totalorder %v10919_v20, %v10838_v9 }
 0x440   :  { %v3651_v42 = vadd.f32 %v4129_v22, %v3650_v6  ;;  %v3695_v56 = vsel %vm10920_vm8, %v9290_v21, 0.0  ;;  %v3389_v2 = vsub.f32 %v9047_v29, %v9404_v35  ;;  %v3783_v44 = vsel %vm3735_vm6, %v3693_v60, 0.0 }
 0x441   :  { %v4133_v1 = vpop.eup %4132  ;;  %v3785_v33 = vsel %vm3735_vm6, %v3694_v25, 0.0  ;;  %v3390_v23 = vsub.f32 %v9062_v51, %v9404_v35  ;;  %v3453_v34 = vmul.f32 1.442695, %v3387_v49  ;;  %v3455_v41 = vmul.f32 1.442695, %v3388_v18 }
 0x442   :  { %v3652_v63 = vadd.f32 %v4131_v0, %v3651_v42  ;;  %v4135_v10 = vpop.eup %4134  ;;  %v3784_v19 = vadd.f32 %v3783_v44, %v3782_v50  ;;  %v3787_v58 = vsel %vm3735_vm6, %v3695_v56, 0.0  ;;  %vm10922_vm1 = vcmp.eq.s32.totalorder %v10921_v14, %v10838_v9  ;;  %v10923_v0 = vld [vmem:[#allocation36_spill] sm:$0xff] }
 0x443   :  { %v4137_v61 = vpop.eup %4136  ;;  %v3696_v8 = vsel %vm10922_vm1, %v9311_v39, 0.0  ;;  %v3655_v29 = vsel %vm1719_vm10, %v4135_v10, 0.0  ;;  %v3391_v53 = vsub.f32 %v9068_v46, %v9404_v35  ;;  %4138 = vpow2.f32 %v3453_v34 }
 0x444   :  { %v3653_v57 = vadd.f32 %v4133_v1, %v3652_v63  ;;  %v3457_v6 = vmul.f32 1.442695, %v3389_v2  ;;  %v3786_v51 = vadd.f32 %v3785_v33, %v3784_v19  ;;  %4140 = vpow2.f32 %v3455_v41 }
 0x445   :  { %v3789_v22 = vsel %vm3735_vm6, %v3696_v8, 0.0  ;;  %v3392_v17 = vsub.f32 %v9070_v12, %v9404_v35  ;;  %v3459_v28 = vmul.f32 1.442695, %v3390_v23  ;;  %vm10924_vm12 = vcmp.eq.s32.totalorder %v10923_v0, %v10838_v9 }
 0x446   :  { %v3654_v48 = vadd.f32 %v4137_v61, %v3653_v57  ;;  %v3788_v42 = vadd.f32 %v3787_v58, %v3786_v51  ;;  %v3697_v24 = vsel %vm10924_vm12, %v9304_v45, 0.0  ;;  %v3393_v16 = vsub.f32 %v9093_v30, %v9404_v35  ;;  %v10927_v61 = vld [vmem:[#allocation38_spill] sm:$0xff] }
 0x447   :  { %4142 = vpow2.f32 %v3457_v6  ;;  %v3461_v46 = vmul.f32 1.442695, %v3391_v53  ;;  %vm10926_vm9 = vcmp.eq.s32.totalorder %v10925_v4, %v10838_v9  ;;  %v3394_v12 = vsub.f32 %v9095_v59, %v9404_v35 }
 0x448   :  { %v9436_v11 = vadd.f32 %v3655_v29, %v3654_v48  ;;  %v3790_v60 = vadd.f32 %v3789_v22, %v3788_v42  ;;  %v3698_v25 = vsel %vm10926_vm9, %v9331_v40, 0.0  ;;  %4144 = vpow2.f32 %v3459_v28 }
 0x449   :  { %v4139_v63 = vpop.eup %4138  ;;  %v3463_v49 = vmul.f32 1.442695, %v3392_v17  ;;  %v3791_v1 = vsel %vm3735_vm6, %v3697_v24, 0.0  ;;  %v3793_v50 = vsel %vm3735_vm6, %v3698_v25, 0.0  ;;  %v3395_v30 = vsub.f32 %v9100_v36, %v9404_v35  ;;  %v10929_v36 = vld [vmem:[#allocation134_spill] sm:$0xff] }
 0x44a   :  { %v4141_v18 = vpop.eup %4140  ;;  %4146 = vpow2.f32 %v3461_v46  ;;  %v3465_v10 = vmul.f32 1.442695, %v3393_v16  ;;  %v3792_v20 = vadd.f32 %v3791_v1, %v3790_v60  ;;  %v3396_v2 = vsub.f32 %v9110_v62, %v9404_v35  ;;  %v10931_v60 = vld [vmem:[#allocation131_spill] sm:$0xff] }
 0x44b   :  { %v3585_v56 = vadd.f32 %v4141_v18, %v4139_v63  ;;  %4148 = vpow2.f32 %v3463_v49  ;;  %v3467_v59 = vmul.f32 1.442695, %v3394_v12  ;;  %vm10928_vm13 = vcmp.eq.s32.totalorder %v10927_v61, %v10838_v9  ;;  %v10932_v12 = vld [vmem:[#allocation140_spill] sm:$0xff] }
 0x44c   :  { %v3699_v44 = vsel %vm10928_vm13, %v9313_v38, 0.0  ;;  %v3794_v33 = vadd.f32 %v3793_v50, %v3792_v20  ;;  %v3397_v34 = vsub.f32 %v10929_v36, %v9404_v35  ;;  %4150 = vpow2.f32 %v3465_v10  ;;  %v10933_v50 = vld [vmem:[#allocation82_spill] sm:$0xff] }
 0x44d   :  { %v4143_v57 = vpop.eup %4142  ;;  %v3469_v41 = vmul.f32 1.442695, %v3395_v30  ;;  %v3795_v14 = vsel %vm3735_vm6, %v3699_v44, 0.0  ;;  %v3398_v62 = vsub.f32 %v9140_v5, %v9404_v35  ;;  %4152 = vpow2.f32 %v3467_v59 }
 0x44e   :  { %v3586_v48 = vadd.f32 %v4143_v57, %v3585_v56  ;;  %v4145_v23 = vpop.eup %4144  ;;  %v3471_v8 = vmul.f32 1.442695, %v3396_v2  ;;  %v3796_v29 = vadd.f32 %v3795_v14, %v3794_v33  ;;  %v3399_v51 = vsub.f32 %v9165_v47, %v9404_v35  ;;  %v10934_v57 = vld [vmem:[#allocation138_spill] sm:$0xff] }
 0x44f   :  { %4154 = vpow2.f32 %v3469_v41  ;;  %v3473_v22 = vmul.f32 1.442695, %v3397_v34  ;;  %vm10930_vm15 = vcmp.eq.s32.totalorder %v10899_v7, %v10838_v9  ;;  %v3400_v5 = vsub.f32 %v9170_v31, %v9404_v35 }
 0x450   :  { %v3587_v19 = vadd.f32 %v4145_v23, %v3586_v48  ;;  %v4147_v58 = vpop.eup %4146  ;;  %v3700_v17 = vsel %vm10930_vm15, %v9354_v52, 0.0  ;;  %4156 = vpow2.f32 %v3471_v8  ;;  %v3475_v24 = vmul.f32 1.442695, %v3398_v62 }
 0x451   :  { %v4149_v6 = vpop.eup %4148  ;;  %v3797_v42 = vsel %vm3735_vm6, %v3700_v17, 0.0  ;;  %v3401_v4 = vsub.f32 %v10931_v60, %v9404_v35  ;;  %4158 = vpow2.f32 %v3473_v22  ;;  %v3477_v25 = vmul.f32 1.442695, %v3399_v51 }
 0x452   :  { %v3588_v53 = vadd.f32 %v4147_v58, %v3587_v19  ;;  %v4151_v0 = vpop.eup %4150  ;;  %v9479_v16 = vadd.f32 %v3797_v42, %v3796_v29  ;;  %v3402_v49 = vsub.f32 %v10932_v12, %v9404_v35  ;;  %4160 = vpow2.f32 %v3475_v24 }
 0x453   :  { %v4153_v47 = vpop.eup %4152  ;;  %v3479_v18 = vmul.f32 1.442695, %v3400_v5  ;;  %v3403_v30 = vsub.f32 %v10933_v50, %v9404_v35  ;;  %4162 = vpow2.f32 %v3477_v25  ;;  %v3481_v10 = vmul.f32 1.442695, %v3401_v4 }
 0x454   :  { %v3589_v28 = vadd.f32 %v4149_v6, %v3588_v53  ;;  %v3404_v2 = vsub.f32 %v10934_v57, %v9404_v35  ;;  %v3483_v59 = vmul.f32 1.442695, %v3402_v49  ;;  %v3405_v33 = vsub.f32 %v9250_v15, %v9404_v35 }
 0x455   :  { %v4155_v63 = vpop.eup %4154  ;;  %4164 = vpow2.f32 %v3479_v18  ;;  %v3485_v48 = vmul.f32 1.442695, %v3403_v30  ;;  %v3406_v34 = vsub.f32 %v9252_v55, %v9404_v35  ;;  %v3407_v14 = vsub.f32 %v9259_v32, %v9404_v35 }
 0x456   :  { %v3590_v46 = vadd.f32 %v4151_v0, %v3589_v28  ;;  %v4157_v31 = vpop.eup %4156  ;;  %4166 = vpow2.f32 %v3481_v10  ;;  %v3487_v41 = vmul.f32 1.442695, %v3404_v2  ;;  %v3489_v62 = vmul.f32 1.442695, %v3405_v33 }
 0x457   :  { %v4159_v56 = vpop.eup %4158  ;;  %4168 = vpow2.f32 %v3483_v59  ;;  %v3408_v15 = vsub.f32 %v9261_v37, %v9404_v35  ;;  %v3491_v53 = vmul.f32 1.442695, %v3406_v34  ;;  %v3409_v55 = vsub.f32 %v9271_v54, %v9404_v35  ;;  %v10935_v59 = vld [vmem:[#allocation51_spill] sm:$0xff] }
 0x458   :  { %v3591_v7 = vadd.f32 %v4153_v47, %v3590_v46  ;;  %v4161_v44 = vpop.eup %4160  ;;  %4170 = vpow2.f32 %v3485_v48  ;;  %v3493_v22 = vmul.f32 1.442695, %v3407_v14  ;;  %v3410_v32 = vsub.f32 %v9281_v27, %v9404_v35 }
 0x459   :  { %v4163_v36 = vpop.eup %4162  ;;  %4172 = vpow2.f32 %v3487_v41  ;;  %v3495_v42 = vmul.f32 1.442695, %v3408_v15  ;;  %v3411_v37 = vsub.f32 %v9279_v3, %v9404_v35  ;;  %v3497_v24 = vmul.f32 1.442695, %v3409_v55 }
 0x45a   :  { %v3592_v1 = vadd.f32 %v4155_v63, %v3591_v7  ;;  %4174 = vpow2.f32 %v3489_v62  ;;  %v3412_v54 = vsub.f32 %v9302_v13, %v9404_v35  ;;  %v3499_v60 = vmul.f32 1.442695, %v3410_v32 }
 0x45b   :  { %v4165_v58 = vpop.eup %4164  ;;  %4176 = vpow2.f32 %v3491_v53  ;;  %v3413_v27 = vsub.f32 %v9290_v21, %v9404_v35  ;;  %v3501_v7 = vmul.f32 1.442695, %v3411_v37  ;;  %v3414_v3 = vsub.f32 %v9311_v39, %v9404_v35 }
 0x45c   :  { %v3593_v20 = vadd.f32 %v4157_v31, %v3592_v1  ;;  %v4167_v29 = vpop.eup %4166  ;;  %4178 = vpow2.f32 %v3493_v22  ;;  %v3503_v49 = vmul.f32 1.442695, %v3412_v54  ;;  %v3415_v13 = vsub.f32 %v9304_v45, %v9404_v35 }
 0x45d   :  { %v4169_v51 = vpop.eup %4168  ;;  %4180 = vpow2.f32 %v3495_v42  ;;  %v3505_v31 = vmul.f32 1.442695, %v3413_v27  ;;  %v3416_v21 = vsub.f32 %v9331_v40, %v9404_v35  ;;  %v3507_v10 = vmul.f32 1.442695, %v3414_v3  ;;  %v10936_v42 = vld [vmem:[#allocation40_spill] sm:$0xff] }
 0x45e   :  { %v3594_v61 = vadd.f32 %v4159_v56, %v3593_v20  ;;  %v4171_v28 = vpop.eup %4170  ;;  %4182 = vpow2.f32 %v3497_v24  ;;  %v3657_v56 = vrot.slane %v9436_v11, 4  ;;  %v3873_v57 = vrot.slane %v9357_v43, 4 }
 0x45f   :  { %v4173_v5 = vpop.eup %4172  ;;  %4184 = vpow2.f32 %v3499_v60  ;;  %v3417_v2 = vsub.f32 %v9313_v38, %v9404_v35  ;;  %v3509_v45 = vmul.f32 1.442695, %v3415_v13  ;;  %v3418_v48 = vsub.f32 %v9354_v52, %v9404_v35 }
 0x460   :  { %v3595_v23 = vadd.f32 %v4161_v44, %v3594_v61  ;;  %v4175_v47 = vpop.eup %4174  ;;  %4186 = vpow2.f32 %v3501_v7  ;;  %v3419_v61 = vsub.f32 %v10935_v59, %v9404_v35  ;;  %v3658_v33 = vadd.f32 %v3657_v56, %v9436_v11 }
 0x461   :  { %v4177_v25 = vpop.eup %4176  ;;  %4188 = vpow2.f32 %v3503_v49  ;;  %v3874_v38 = vadd.f32 %v3873_v57, %v9357_v43  ;;  %vm10937_vm6 = vcmp.eq.s32.totalorder %v10936_v42, %v10838_v9 }
 0x462   :  { %v3596_v19 = vadd.f32 %v4163_v36, %v3595_v23  ;;  %v4179_v12 = vpop.eup %4178  ;;  %4190 = vpow2.f32 %v3505_v31  ;;  %v3511_v23 = vmul.f32 1.442695, %v3416_v21  ;;  %v3659_v34 = vrot.slane %v3658_v33, 2 }
 0x463   :  { %v4181_v1 = vpop.eup %4180  ;;  %4192 = vpow2.f32 %v3507_v10  ;;  %v3875_v52 = vrot.slane %v3874_v38, 2 }
 0x464   :  { %v3597_v8 = vadd.f32 %v4165_v58, %v3596_v19  ;;  %v4183_v30 = vpop.eup %4182  ;;  %4194 = vpow2.f32 %v3509_v45  ;;  %v3513_v19 = vmul.f32 1.442695, %v3417_v2  ;;  %v3517_v58 = vmul.f32 1.442695, %v3419_v61 }
 0x465   :  { %v4185_v39 = vpop.eup %4184  ;;  %v3660_v62 = vadd.f32 %v3659_v34, %v3658_v33  ;;  %4196 = vpow2.f32 %v3511_v23  ;;  %v3876_v43 = vadd.f32 %v3875_v52, %v3874_v38 }
 0x466   :  { %v3598_v6 = vadd.f32 %v4167_v29, %v3597_v8  ;;  %v4187_v40 = vpop.eup %4186  ;;  %v3515_v29 = vmul.f32 1.442695, %v3418_v48  ;;  %4198 = vpow2.f32 %v3513_v19 }
 0x467   :  { %v4189_v41 = vpop.eup %4188  ;;  %v3661_v15 = vrot.slane %v3660_v62, 1  ;;  %4200 = vpow2.f32 %v3517_v58 }
 0x468   :  { %v3599_v17 = vadd.f32 %v4169_v51, %v3598_v6  ;;  %v4191_v8 = vpop.eup %4190  ;;  %4202 = vpow2.f32 %v3515_v29 }
 0x469   :  { %v4193_v53 = vpop.eup %4192  ;;  %v3662_v51 = vadd.f32 %v3661_v15, %v3660_v62 }
 0x46a   :  { %v3600_v0 = vadd.f32 %v4171_v28, %v3599_v17  ;;  %v4195_v55 = vpop.eup %4194 }
 0x46b   :  { %4204 = vlog2.f32 %v3662_v51  ;;  %v4197_v17 = vpop.eup %4196 }
 0x46c   :  { %v3601_v46 = vadd.f32 %v4173_v5, %v3600_v0  ;;  %v4199_v32 = vpop.eup %4198  ;;  %v3701_v0 = vsel %vm10937_vm6, %v10935_v59, 0.0 }
 0x46d   :  { %v4201_v5 = vpop.eup %4200  ;;  %v3800_v54 = vsel %vm3799_vm14, %v3701_v0, 0.0 }
 0x46e   :  { %v3602_v4 = vadd.f32 %v4175_v47, %v3601_v46  ;;  %v4203_v24 = vpop.eup %4202  ;;  %v3877_v46 = vrot.slane %v3876_v43, 1 }
 0x470   :  { %v3603_v63 = vadd.f32 %v4177_v25, %v3602_v4  ;;  %v3616_v4 = vsel %vm1719_vm10, %v4201_v5, 0.0  ;;  %v3801_v25 = vadd.f32 %v3800_v54, %v9479_v16 }
 0x471   :  { %v4205_v47 = vpop.eup %4204 }
 0x472   :  { %v3604_v18 = vadd.f32 %v4179_v12, %v3603_v63  ;;  %v3666_v27 = vmul.f32 0.6931472, %v4205_v47  ;;  %v3878_v12 = vadd.f32 %v3877_v46, %v3876_v43  ;;  %v3802_v9 = vrot.slane %v3801_v25, 4 }
 0x474   :  { %v3605_v50 = vadd.f32 %v4181_v1, %v3604_v18  ;;  %v3668_v63 = vadd.f32 %v3666_v27, %v9114_v26  ;;  %v3803_v13 = vadd.f32 %v3802_v9, %v3801_v25 }
 0x476   :  { %v3606_v20 = vadd.f32 %v4183_v30, %v3605_v50  ;;  %v3880_v49 = vsub.f32 %v3668_v63, %v3878_v12  ;;  %v3804_v30 = vrot.slane %v3803_v13, 2 }
 0x478   :  { %v3607_v44 = vadd.f32 %v4185_v39, %v3606_v20  ;;  %v3805_v10 = vadd.f32 %v3804_v30, %v3803_v13  ;;  %v3882_v2 = vsel %vm3799_vm14, %v3880_v49, 0.0 }
 0x47a   :  { %v3608_v36 = vadd.f32 %v4187_v40, %v3607_v44  ;;  %v3806_v20 = vrot.slane %v3805_v10, 1 }
 0x47c   :  { %v3609_v14 = vadd.f32 %v4189_v41, %v3608_v36  ;;  %v3807_v57 = vadd.f32 %v3806_v20, %v3805_v10 }
 0x47e   :  { %v3610_v11 = vadd.f32 %v4191_v8, %v3609_v14 }
 0x480   :  { %v3611_v6 = vadd.f32 %v4193_v53, %v3610_v11 }
 0x482   :  { %v3612_v22 = vadd.f32 %v4195_v55, %v3611_v6 }
 0x484   :  { %v3613_v28 = vadd.f32 %v4197_v17, %v3612_v22 }
 0x486   :  { %v3614_v37 = vadd.f32 %v4199_v32, %v3613_v28 }
 0x488   :  { %v3615_v60 = vadd.f32 %v4203_v24, %v3614_v37 }
 0x48a   :  { %v3617_v7 = vadd.f32 %v3616_v4, %v3615_v60 }
 0x48c   :  { %v3618_v3 = vrot.slane %v3617_v7, 4 }
 0x48e   :  { %v3619_v18 = vadd.f32 %v3618_v3, %v3617_v7 }
 0x490   :  { %v3620_v1 = vrot.slane %v3619_v18, 2 }
 0x492   :  { %v3621_v31 = vadd.f32 %v3620_v1, %v3619_v18 }
 0x494   :  { %v3622_v50 = vrot.slane %v3621_v31, 1 }
 0x496   :  { %v3623_v21 = vadd.f32 %v3622_v50, %v3621_v31 }
 0x498   :  { %4206 = vlog2.f32 %v3623_v21 }
 0x49e   :  { %v4207_v56 = vpop.eup %4206 }
 0x49f   :  { %v3664_v16 = vmul.f32 0.6931472, %v4207_v56 }
 0x4a1   :  { %v3667_v39 = vadd.f32 %v3664_v16, %v9404_v35 }
 0x4a3   :  { %v3879_v26 = vsub.f32 %v3667_v39, %v3807_v57 }
 0x4a5   :  { %v3881_v45 = vsel %vm3799_vm14, %v3879_v26, 0.0 }
 0x4a6   :  { %v3883_v59 = vadd.f32 %v3882_v2, %v3881_v45 }
 0x4a8   :  { %3884 = vadd.xlane.f32.xlu2 %v3883_v59 }
 0x51b   :  { %v3885_v61 = vpop.xlane.xlu2 %3884 }
 0x51c   :  { %v3886_v44 = vrot.slane %v3885_v61, 4 }
 0x51e   :  { %v3887_v33 = vadd.f32 %v3886_v44, %v3885_v61 }
 0x520   :  { %v3888_v40 = vrot.slane %v3887_v33, 2 }
 0x522   :  { %v3889_v48 = vadd.f32 %v3888_v40, %v3887_v33 }
 0x524   :  { %v3890_v23 = vrot.slane %v3889_v48, 1 }
 0x526   :  { %v3891_v36 = vadd.f32 %v3890_v23, %v3889_v48 }
 0x528   :  { %4059 = vpush %v3891_v36 }
 0x559   :  { %s4060_s11 = spop %4059 }
 0x55a   :  { %s3893_s12 = smul.f32 0.5, %s4060_s11 }
 0x55c   :  { %3895 = sst [smem:[#allocation3]] %s3893_s12 }
 0x55d   :  { %3904 = dma.smem_to_hbm %s4223_s4, 16, %s3902_s30, [#allocation4]  }
 0x55e   :  { %4220 = dma.done.wait [#allocation4], 16  }
 0x55f   :  { %4221 = vsyncadd [#allocation4], 4294967280 }
 0x560   :  { %3909 = sfence }
 0x561   :  { %3910 = vsyncpa [#allocation4], 1 }

</bundles_post_ra>
